<compile_context>
chip_gen: v5e
topology: v5e:2x2
jax: 0.10.0
libtpu: 0.0.40
codegen_flags: <defaults>
</compile_context>

<pallas_src>
import jax
import jax.numpy as jnp
from jax import lax
from jax.experimental import pallas as pl
from jax.experimental.pallas import tpu as pltpu


# ---------------------------------------------------------------------------
# Single fused kernel: 2-layer bidirectional LSTM + pooling + head.
# ---------------------------------------------------------------------------
def fused_lstm_model_kernel(
        emb_ref,                     # (T, B, E)   embedded tokens
        wih0_ref,                    # (E, 8H)     layer-0 input weights [fwd 4H | bwd 4H]
        whh0_ref,                    # (2H, 8H)    layer-0 recurrent weights (block-diag)
        b0_ref,                      # (1, 8H)     layer-0 (b_ih + b_hh) [fwd | bwd]
        wih1_ref,                    # (2H, 8H)    layer-1 input weights [fwd 4H | bwd 4H]
        whh1_ref,                    # (2H, 8H)    layer-1 recurrent weights (block-diag)
        b1_ref,                      # (1, 8H)
        gamma_ref, beta_ref,         # (1, D)      LayerNorm affine
        fcw_ref,                     # (D, O)      final Linear weight (pre-transposed)
        fcb_ref,                     # (1, O)
        out_ref,                     # (B, O)
        gx_sc,                       # (T, B, 8H)  hoisted input-projected gates (reused per layer)
        seq_sc,                      # (T, B, 2H)  layer-0 [fwd | bwd] hidden sequence
        h_sc,                        # (B, 2H)     [h_fwd | h_bwd]
        c_sc,                        # (B, 2H)     [c_fwd | c_bwd]
        comb_sc):                    # (B, D)      concat staging buffer
    T, B, E = emb_ref.shape
    H = h_sc.shape[-1] // 2
    H2, H3, H4, H8 = 2 * H, 3 * H, 4 * H, 8 * H

    def cell(gates, c_prev):
        # gates: (B, 4H) in PyTorch order [i | f | g | o]; c_prev: (B, H)
        i_g = jax.nn.sigmoid(gates[:, 0:H])
        f_g = jax.nn.sigmoid(gates[:, H:H2])
        g_g = jnp.tanh(gates[:, H2:H3])
        o_g = jax.nn.sigmoid(gates[:, H3:H4])
        c = f_g * c_prev + i_g * g_g
        h = o_g * jnp.tanh(c)
        return h, c

    def recurrence(whh, store_seq):
        h_sc[...] = jnp.zeros_like(h_sc)
        c_sc[...] = jnp.zeros_like(c_sc)

        def step(s, carry):
            # One fused (B,2H)@(2H,8H) matmul covers both directions.
            g_rec = jnp.dot(h_sc[...], whh,
                            preferred_element_type=jnp.float32)        # (B, 8H)
            gf = gx_sc[s, :, 0:H4] + g_rec[:, 0:H4]                    # fwd gates @ time s
            gb = gx_sc[T - 1 - s, :, H4:H8] + g_rec[:, H4:H8]          # bwd gates @ time T-1-s
            h_f, c_f = cell(gf, c_sc[:, 0:H])
            h_b, c_b = cell(gb, c_sc[:, H:H2])
            h_sc[:, 0:H] = h_f
            h_sc[:, H:H2] = h_b
            c_sc[:, 0:H] = c_f
            c_sc[:, H:H2] = c_b
            if store_seq:                       # trace-time flag (layer 0 only)
                seq_sc[s, :, 0:H] = h_f
                seq_sc[T - 1 - s, :, H:H2] = h_b
            return carry

        lax.fori_loop(0, T, step, 0, unroll=True)

    # ---------------- layer 0 ----------------
    # Hoisted input projection: independent per-timestep matmuls, all off the
    # serial dependency chain; results stay in VMEM.
    wih0 = wih0_ref[...]
    b0 = b0_ref[...]
    for t in range(T):                          # static unrolled loop
        gx_sc[t] = jnp.dot(emb_ref[t], wih0,
                           preferred_element_type=jnp.float32) + b0
    recurrence(whh0_ref[...], store_seq=True)

    # ---------------- layer 1 ----------------
    # TODO(synk): inter-layer LSTM dropout (p=0.2) treated as identity (eval mode).
    wih1 = wih1_ref[...]
    b1 = b1_ref[...]
    for t in range(T):
        gx_sc[t] = jnp.dot(seq_sc[t], wih1,
                           preferred_element_type=jnp.float32) + b1
    recurrence(whh1_ref[...], store_seq=False)

    # -------- pooling + concat + LayerNorm + (Dropout=id) + ReLU + Linear ----
    emb = emb_ref[...]
    avg_emb = jnp.mean(emb, axis=0)                        # (B, E)
    max_emb = jnp.max(emb, axis=0)                         # (B, E)

    comb_sc[:, 0:H2] = h_sc[...]                           # hidden_cat = [h_fwd_T | h_bwd_0]
    comb_sc[:, H2:H2 + E] = avg_emb
    comb_sc[:, H2 + E:H2 + 2 * E] = max_emb

    x = comb_sc[...]                                       # (B, D)
    mean = jnp.mean(x, axis=-1, keepdims=True)
    var = jnp.mean((x - mean) ** 2, axis=-1, keepdims=True)
    normed = (x - mean) * lax.rsqrt(var + 1e-5)
    normed = normed * gamma_ref[...] + beta_ref[...]
    # TODO(synk): Dropout(0.3) in the head treated as identity (eval mode).
    act = jnp.maximum(normed, 0.0)
    out_ref[...] = (jnp.dot(act, fcw_ref[...],
                            preferred_element_type=jnp.float32)
                    + fcb_ref[...]).astype(out_ref.dtype)


# ---------------------------------------------------------------------------
# Forward pass (embedding gather in XLA, everything else in ONE pallas_call).
# ---------------------------------------------------------------------------
def lstm_model_forward(text, params):
    # text: (batch, seq) int32 -> PyTorch batch_first=False layout (seq, batch)
    text_t = jnp.transpose(text)
    embedded = jnp.take(params['embedding'], text_t, axis=0)     # (T, B, E) f32

    T, B, E = embedded.shape
    H = params['whh0'].shape[0] // 2
    O = params['fc_w'].shape[1]
    D = 2 * H + 2 * E

    out = pl.pallas_call(
        fused_lstm_model_kernel,
        out_shape=jax.ShapeDtypeStruct((B, O), jnp.float32),
        scratch_shapes=[
            pltpu.VMEM((T, B, 8 * H), jnp.float32),   # gx_sc
            pltpu.VMEM((T, B, 2 * H), jnp.float32),   # seq_sc
            pltpu.VMEM((B, 2 * H), jnp.float32),      # h_sc
            pltpu.VMEM((B, 2 * H), jnp.float32),      # c_sc
            pltpu.VMEM((B, D), jnp.float32),          # comb_sc
        ],
        compiler_params=pltpu.CompilerParams(
            vmem_limit_bytes=64 * 1024 * 1024),
    )(embedded,
      params['wih0'], params['whh0'], params['b0'],
      params['wih1'], params['whh1'], params['b1'],
      params['ln_gamma'], params['ln_beta'], params['fc_w'], params['fc_b'])
    return out


# ---------------------------------------------------------------------------
# Raw (PyTorch-layout) parameter init + one-time preparation (transposes,
# bias sums, direction stacking, block-diagonal recurrent weights).
# ---------------------------------------------------------------------------
def init_raw_params(key, vocab, E, H, O):
    D = 2 * H + 2 * E
    keys = jax.random.split(key, 20)

    def n(k, shape, scale=0.1):
        return scale * jax.random.normal(k, shape, dtype=jnp.float32)

    emb = n(keys[0], (vocab, E))
    emb = emb.at[0].set(0.0)                 # padding_idx = 0
    raw = {'embedding': emb}

    idx = 1
    for layer, I in [(0, E), (1, 2 * H)]:
        for suffix in ('', 'r'):
            raw[f'w_ih_l{layer}{suffix}'] = n(keys[idx], (4 * H, I)); idx += 1
            raw[f'w_hh_l{layer}{suffix}'] = n(keys[idx], (4 * H, H)); idx += 1
            raw[f'b_ih_l{layer}{suffix}'] = n(keys[idx], (4 * H,)); idx += 1
            raw[f'b_hh_l{layer}{suffix}'] = n(keys[idx], (4 * H,)); idx += 1

    raw['ln_gamma'] = jnp.ones((D,), jnp.float32)
    raw['ln_beta'] = jnp.zeros((D,), jnp.float32)
    raw['fc_w'] = n(keys[17], (O, D))        # PyTorch Linear weight: (out, in)
    raw['fc_b'] = n(keys[18], (O,))
    return raw


def prepare_params(raw):
    """One-time weight repacking (done at load time, not per forward call)."""
    H = raw['w_hh_l0'].shape[1]
    E = raw['w_ih_l0'].shape[1]
    D = 2 * H + 2 * E

    def blockdiag(w_f, w_b):
        # PyTorch w_hh: (4H, H).  Build (2H, 8H) block-diag of the transposes.
        z = jnp.zeros((H, 4 * H), jnp.float32)
        top = jnp.concatenate([w_f.T, z], axis=1)     # (H, 8H)
        bot = jnp.concatenate([z, w_b.T], axis=1)     # (H, 8H)
        return jnp.concatenate([top, bot], axis=0)    # (2H, 8H)

    p = {'embedding': raw['embedding']}
    # Layer 0: input weights stacked along the 8H output axis [fwd | bwd].
    p['wih0'] = jnp.concatenate([raw['w_ih_l0'].T, raw['w_ih_l0r'].T], axis=1)   # (E, 8H)
    p['whh0'] = blockdiag(raw['w_hh_l0'], raw['w_hh_l0r'])                        # (2H, 8H)
    p['b0'] = jnp.concatenate([raw['b_ih_l0'] + raw['b_hh_l0'],
                               raw['b_ih_l0r'] + raw['b_hh_l0r']]).reshape(1, 8 * H)
    # Layer 1: input is x1[t] = [fwd_h_t | bwd_h_t] (2H), same stacking.
    p['wih1'] = jnp.concatenate([raw['w_ih_l1'].T, raw['w_ih_l1r'].T], axis=1)    # (2H, 8H)
    p['whh1'] = blockdiag(raw['w_hh_l1'], raw['w_hh_l1r'])                        # (2H, 8H)
    p['b1'] = jnp.concatenate([raw['b_ih_l1'] + raw['b_hh_l1'],
                               raw['b_ih_l1r'] + raw['b_hh_l1r']]).reshape(1, 8 * H)
    p['ln_gamma'] = raw['ln_gamma'].reshape(1, D)
    p['ln_beta'] = raw['ln_beta'].reshape(1, D)
    p['fc_w'] = raw['fc_w'].T                                                     # (D, O)
    p['fc_b'] = raw['fc_b'].reshape(1, -1)                                        # (1, O)
    return p


if __name__ == "__main__":
    vocab, E, H, O = 50, 32, 32, 8
    batch, seq = 4, 8

    key = jax.random.PRNGKey(0)
    pkey, dkey = jax.random.split(key)
    raw = init_raw_params(pkey, vocab, E, H, O)
    params = prepare_params(raw)
    text = jax.random.randint(dkey, (batch, seq), 0, vocab, dtype=jnp.int32)

    fwd = jax.jit(lstm_model_forward)
    out = jax.block_until_ready(fwd(text, params))
    assert out.shape == (batch, O), out.shape
    assert bool(jnp.all(jnp.isfinite(out)))
    print("KERNEL_OK")
</pallas_src>

<mosaic_0001>
module attributes {stable_mosaic.version = 11 : i64} {
  func.func @fused_lstm_model_kernel(%arg0: memref<8x4x32xf32, #tpu.memory_space<vmem>>, %arg1: memref<32x256xf32, #tpu.memory_space<vmem>>, %arg2: memref<64x256xf32, #tpu.memory_space<vmem>>, %arg3: memref<1x256xf32, #tpu.memory_space<vmem>>, %arg4: memref<64x256xf32, #tpu.memory_space<vmem>>, %arg5: memref<64x256xf32, #tpu.memory_space<vmem>>, %arg6: memref<1x256xf32, #tpu.memory_space<vmem>>, %arg7: memref<1x128xf32, #tpu.memory_space<vmem>>, %arg8: memref<1x128xf32, #tpu.memory_space<vmem>>, %arg9: memref<128x8xf32, #tpu.memory_space<vmem>>, %arg10: memref<1x8xf32, #tpu.memory_space<vmem>>, %arg11: memref<4x8xf32, #tpu.memory_space<vmem>>, %arg12: memref<8x4x256xf32, #tpu.memory_space<vmem>>, %arg13: memref<8x4x64xf32, #tpu.memory_space<vmem>>, %arg14: memref<4x64xf32, #tpu.memory_space<vmem>>, %arg15: memref<4x64xf32, #tpu.memory_space<vmem>>, %arg16: memref<4x128xf32, #tpu.memory_space<vmem>>) attributes {dimension_semantics = [], scalar_prefetch = 0 : i64, scratch_operands = 5 : i64, tpu.core_type = #tpu.core_type<tc>} {
    %c0 = arith.constant 0 : index
    %c0_0 = arith.constant 0 : index
    %0 = vector.load %arg1[%c0, %c0_0] : memref<32x256xf32, #tpu.memory_space<vmem>>, vector<32x256xf32>
    %c0_1 = arith.constant 0 : index
    %c0_2 = arith.constant 0 : index
    %1 = vector.load %arg3[%c0_1, %c0_2] : memref<1x256xf32, #tpu.memory_space<vmem>>, vector<1x256xf32>
    %c0_3 = arith.constant 0 : index
    %c0_4 = arith.constant 0 : index
    %c0_5 = arith.constant 0 : index
    %2 = vector.load %arg0[%c0_3, %c0_4, %c0_5] : memref<8x4x32xf32, #tpu.memory_space<vmem>>, vector<1x4x32xf32>
    %3 = vector.shape_cast %2 : vector<1x4x32xf32> to vector<4x32xf32>
    %cst = arith.constant dense<0.000000e+00> : vector<4x256xf32>
    %4 = tpu.matmul %3, %0, %cst {dimension_numbers = #tpu.dot_dimension_numbers<[1], [0], [0], [1], [0, 0, 1, 1], [], []>} : vector<4x32xf32>, vector<32x256xf32>, vector<4x256xf32> -> vector<4x256xf32>
    %5 = vector.broadcast %1 : vector<1x256xf32> to vector<4x256xf32>
    %6 = arith.addf %4, %5 : vector<4x256xf32>
    %c0_6 = arith.constant 0 : index
    %c0_7 = arith.constant 0 : index
    %c0_8 = arith.constant 0 : index
    %7 = vector.load %arg12[%c0_6, %c0_7, %c0_8] : memref<8x4x256xf32, #tpu.memory_space<vmem>>, vector<1x4x256xf32>
    %8 = vector.shape_cast %7 : vector<1x4x256xf32> to vector<4x256xf32>
    %9 = vector.shape_cast %6 : vector<4x256xf32> to vector<1x4x256xf32>
    tpu.vector_store %arg12[%c0_6, %c0_7, %c0_8], %9 {strides = array<i32>} : memref<8x4x256xf32, #tpu.memory_space<vmem>>, vector<1x4x256xf32>,
    %c1 = arith.constant 1 : index
    %c0_9 = arith.constant 0 : index
    %c0_10 = arith.constant 0 : index
    %10 = vector.load %arg0[%c1, %c0_9, %c0_10] : memref<8x4x32xf32, #tpu.memory_space<vmem>>, vector<1x4x32xf32>
    %11 = vector.shape_cast %10 : vector<1x4x32xf32> to vector<4x32xf32>
    %cst_11 = arith.constant dense<0.000000e+00> : vector<4x256xf32>
    %12 = tpu.matmul %11, %0, %cst_11 {dimension_numbers = #tpu.dot_dimension_numbers<[1], [0], [0], [1], [0, 0, 1, 1], [], []>} : vector<4x32xf32>, vector<32x256xf32>, vector<4x256xf32> -> vector<4x256xf32>
    %13 = vector.broadcast %1 : vector<1x256xf32> to vector<4x256xf32>
    %14 = arith.addf %12, %13 : vector<4x256xf32>
    %c1_12 = arith.constant 1 : index
    %c0_13 = arith.constant 0 : index
    %c0_14 = arith.constant 0 : index
    %15 = vector.load %arg12[%c1_12, %c0_13, %c0_14] : memref<8x4x256xf32, #tpu.memory_space<vmem>>, vector<1x4x256xf32>
    %16 = vector.shape_cast %15 : vector<1x4x256xf32> to vector<4x256xf32>
    %17 = vector.shape_cast %14 : vector<4x256xf32> to vector<1x4x256xf32>
    tpu.vector_store %arg12[%c1_12, %c0_13, %c0_14], %17 {strides = array<i32>} : memref<8x4x256xf32, #tpu.memory_space<vmem>>, vector<1x4x256xf32>,
    %c2 = arith.constant 2 : index
    %c0_15 = arith.constant 0 : index
    %c0_16 = arith.constant 0 : index
    %18 = vector.load %arg0[%c2, %c0_15, %c0_16] : memref<8x4x32xf32, #tpu.memory_space<vmem>>, vector<1x4x32xf32>
    %19 = vector.shape_cast %18 : vector<1x4x32xf32> to vector<4x32xf32>
    %cst_17 = arith.constant dense<0.000000e+00> : vector<4x256xf32>
    %20 = tpu.matmul %19, %0, %cst_17 {dimension_numbers = #tpu.dot_dimension_numbers<[1], [0], [0], [1], [0, 0, 1, 1], [], []>} : vector<4x32xf32>, vector<32x256xf32>, vector<4x256xf32> -> vector<4x256xf32>
    %21 = vector.broadcast %1 : vector<1x256xf32> to vector<4x256xf32>
    %22 = arith.addf %20, %21 : vector<4x256xf32>
    %c2_18 = arith.constant 2 : index
    %c0_19 = arith.constant 0 : index
    %c0_20 = arith.constant 0 : index
    %23 = vector.load %arg12[%c2_18, %c0_19, %c0_20] : memref<8x4x256xf32, #tpu.memory_space<vmem>>, vector<1x4x256xf32>
    %24 = vector.shape_cast %23 : vector<1x4x256xf32> to vector<4x256xf32>
    %25 = vector.shape_cast %22 : vector<4x256xf32> to vector<1x4x256xf32>
    tpu.vector_store %arg12[%c2_18, %c0_19, %c0_20], %25 {strides = array<i32>} : memref<8x4x256xf32, #tpu.memory_space<vmem>>, vector<1x4x256xf32>,
    %c3 = arith.constant 3 : index
    %c0_21 = arith.constant 0 : index
    %c0_22 = arith.constant 0 : index
    %26 = vector.load %arg0[%c3, %c0_21, %c0_22] : memref<8x4x32xf32, #tpu.memory_space<vmem>>, vector<1x4x32xf32>
    %27 = vector.shape_cast %26 : vector<1x4x32xf32> to vector<4x32xf32>
    %cst_23 = arith.constant dense<0.000000e+00> : vector<4x256xf32>
    %28 = tpu.matmul %27, %0, %cst_23 {dimension_numbers = #tpu.dot_dimension_numbers<[1], [0], [0], [1], [0, 0, 1, 1], [], []>} : vector<4x32xf32>, vector<32x256xf32>, vector<4x256xf32> -> vector<4x256xf32>
    %29 = vector.broadcast %1 : vector<1x256xf32> to vector<4x256xf32>
    %30 = arith.addf %28, %29 : vector<4x256xf32>
    %c3_24 = arith.constant 3 : index
    %c0_25 = arith.constant 0 : index
    %c0_26 = arith.constant 0 : index
    %31 = vector.load %arg12[%c3_24, %c0_25, %c0_26] : memref<8x4x256xf32, #tpu.memory_space<vmem>>, vector<1x4x256xf32>
    %32 = vector.shape_cast %31 : vector<1x4x256xf32> to vector<4x256xf32>
    %33 = vector.shape_cast %30 : vector<4x256xf32> to vector<1x4x256xf32>
    tpu.vector_store %arg12[%c3_24, %c0_25, %c0_26], %33 {strides = array<i32>} : memref<8x4x256xf32, #tpu.memory_space<vmem>>, vector<1x4x256xf32>,
    %c4 = arith.constant 4 : index
    %c0_27 = arith.constant 0 : index
    %c0_28 = arith.constant 0 : index
    %34 = vector.load %arg0[%c4, %c0_27, %c0_28] : memref<8x4x32xf32, #tpu.memory_space<vmem>>, vector<1x4x32xf32>
    %35 = vector.shape_cast %34 : vector<1x4x32xf32> to vector<4x32xf32>
    %cst_29 = arith.constant dense<0.000000e+00> : vector<4x256xf32>
    %36 = tpu.matmul %35, %0, %cst_29 {dimension_numbers = #tpu.dot_dimension_numbers<[1], [0], [0], [1], [0, 0, 1, 1], [], []>} : vector<4x32xf32>, vector<32x256xf32>, vector<4x256xf32> -> vector<4x256xf32>
    %37 = vector.broadcast %1 : vector<1x256xf32> to vector<4x256xf32>
    %38 = arith.addf %36, %37 : vector<4x256xf32>
    %c4_30 = arith.constant 4 : index
    %c0_31 = arith.constant 0 : index
    %c0_32 = arith.constant 0 : index
    %39 = vector.load %arg12[%c4_30, %c0_31, %c0_32] : memref<8x4x256xf32, #tpu.memory_space<vmem>>, vector<1x4x256xf32>
    %40 = vector.shape_cast %39 : vector<1x4x256xf32> to vector<4x256xf32>
    %41 = vector.shape_cast %38 : vector<4x256xf32> to vector<1x4x256xf32>
    tpu.vector_store %arg12[%c4_30, %c0_31, %c0_32], %41 {strides = array<i32>} : memref<8x4x256xf32, #tpu.memory_space<vmem>>, vector<1x4x256xf32>,
    %c5 = arith.constant 5 : index
    %c0_33 = arith.constant 0 : index
    %c0_34 = arith.constant 0 : index
    %42 = vector.load %arg0[%c5, %c0_33, %c0_34] : memref<8x4x32xf32, #tpu.memory_space<vmem>>, vector<1x4x32xf32>
    %43 = vector.shape_cast %42 : vector<1x4x32xf32> to vector<4x32xf32>
    %cst_35 = arith.constant dense<0.000000e+00> : vector<4x256xf32>
    %44 = tpu.matmul %43, %0, %cst_35 {dimension_numbers = #tpu.dot_dimension_numbers<[1], [0], [0], [1], [0, 0, 1, 1], [], []>} : vector<4x32xf32>, vector<32x256xf32>, vector<4x256xf32> -> vector<4x256xf32>
    %45 = vector.broadcast %1 : vector<1x256xf32> to vector<4x256xf32>
    %46 = arith.addf %44, %45 : vector<4x256xf32>
    %c5_36 = arith.constant 5 : index
    %c0_37 = arith.constant 0 : index
    %c0_38 = arith.constant 0 : index
    %47 = vector.load %arg12[%c5_36, %c0_37, %c0_38] : memref<8x4x256xf32, #tpu.memory_space<vmem>>, vector<1x4x256xf32>
    %48 = vector.shape_cast %47 : vector<1x4x256xf32> to vector<4x256xf32>
    %49 = vector.shape_cast %46 : vector<4x256xf32> to vector<1x4x256xf32>
    tpu.vector_store %arg12[%c5_36, %c0_37, %c0_38], %49 {strides = array<i32>} : memref<8x4x256xf32, #tpu.memory_space<vmem>>, vector<1x4x256xf32>,
    %c6 = arith.constant 6 : index
    %c0_39 = arith.constant 0 : index
    %c0_40 = arith.constant 0 : index
    %50 = vector.load %arg0[%c6, %c0_39, %c0_40] : memref<8x4x32xf32, #tpu.memory_space<vmem>>, vector<1x4x32xf32>
    %51 = vector.shape_cast %50 : vector<1x4x32xf32> to vector<4x32xf32>
    %cst_41 = arith.constant dense<0.000000e+00> : vector<4x256xf32>
    %52 = tpu.matmul %51, %0, %cst_41 {dimension_numbers = #tpu.dot_dimension_numbers<[1], [0], [0], [1], [0, 0, 1, 1], [], []>} : vector<4x32xf32>, vector<32x256xf32>, vector<4x256xf32> -> vector<4x256xf32>
    %53 = vector.broadcast %1 : vector<1x256xf32> to vector<4x256xf32>
    %54 = arith.addf %52, %53 : vector<4x256xf32>
    %c6_42 = arith.constant 6 : index
    %c0_43 = arith.constant 0 : index
    %c0_44 = arith.constant 0 : index
    %55 = vector.load %arg12[%c6_42, %c0_43, %c0_44] : memref<8x4x256xf32, #tpu.memory_space<vmem>>, vector<1x4x256xf32>
    %56 = vector.shape_cast %55 : vector<1x4x256xf32> to vector<4x256xf32>
    %57 = vector.shape_cast %54 : vector<4x256xf32> to vector<1x4x256xf32>
    tpu.vector_store %arg12[%c6_42, %c0_43, %c0_44], %57 {strides = array<i32>} : memref<8x4x256xf32, #tpu.memory_space<vmem>>, vector<1x4x256xf32>,
    %c7 = arith.constant 7 : index
    %c0_45 = arith.constant 0 : index
    %c0_46 = arith.constant 0 : index
    %58 = vector.load %arg0[%c7, %c0_45, %c0_46] : memref<8x4x32xf32, #tpu.memory_space<vmem>>, vector<1x4x32xf32>
    %59 = vector.shape_cast %58 : vector<1x4x32xf32> to vector<4x32xf32>
    %cst_47 = arith.constant dense<0.000000e+00> : vector<4x256xf32>
    %60 = tpu.matmul %59, %0, %cst_47 {dimension_numbers = #tpu.dot_dimension_numbers<[1], [0], [0], [1], [0, 0, 1, 1], [], []>} : vector<4x32xf32>, vector<32x256xf32>, vector<4x256xf32> -> vector<4x256xf32>
    %61 = vector.broadcast %1 : vector<1x256xf32> to vector<4x256xf32>
    %62 = arith.addf %60, %61 : vector<4x256xf32>
    %c7_48 = arith.constant 7 : index
    %c0_49 = arith.constant 0 : index
    %c0_50 = arith.constant 0 : index
    %63 = vector.load %arg12[%c7_48, %c0_49, %c0_50] : memref<8x4x256xf32, #tpu.memory_space<vmem>>, vector<1x4x256xf32>
    %64 = vector.shape_cast %63 : vector<1x4x256xf32> to vector<4x256xf32>
    %65 = vector.shape_cast %62 : vector<4x256xf32> to vector<1x4x256xf32>
    tpu.vector_store %arg12[%c7_48, %c0_49, %c0_50], %65 {strides = array<i32>} : memref<8x4x256xf32, #tpu.memory_space<vmem>>, vector<1x4x256xf32>,
    %c0_51 = arith.constant 0 : index
    %c0_52 = arith.constant 0 : index
    %66 = vector.load %arg2[%c0_51, %c0_52] : memref<64x256xf32, #tpu.memory_space<vmem>>, vector<64x256xf32>
    %cst_53 = arith.constant 0.000000e+00 : f32
    %67 = vector.broadcast %cst_53 : f32 to vector<4x64xf32>
    %c0_54 = arith.constant 0 : index
    %c0_55 = arith.constant 0 : index
    %68 = vector.load %arg14[%c0_54, %c0_55] : memref<4x64xf32, #tpu.memory_space<vmem>>, vector<4x64xf32>
    tpu.vector_store %arg14[%c0_54, %c0_55], %67 {strides = array<i32>} : memref<4x64xf32, #tpu.memory_space<vmem>>, vector<4x64xf32>,
    %cst_56 = arith.constant 0.000000e+00 : f32
    %69 = vector.broadcast %cst_56 : f32 to vector<4x64xf32>
    %c0_57 = arith.constant 0 : index
    %c0_58 = arith.constant 0 : index
    %70 = vector.load %arg15[%c0_57, %c0_58] : memref<4x64xf32, #tpu.memory_space<vmem>>, vector<4x64xf32>
    tpu.vector_store %arg15[%c0_57, %c0_58], %69 {strides = array<i32>} : memref<4x64xf32, #tpu.memory_space<vmem>>, vector<4x64xf32>,
    %c0_i32 = arith.constant 0 : i32
    %c0_59 = arith.constant 0 : index
    %c0_60 = arith.constant 0 : index
    %71 = vector.load %arg14[%c0_59, %c0_60] : memref<4x64xf32, #tpu.memory_space<vmem>>, vector<4x64xf32>
    %cst_61 = arith.constant dense<0.000000e+00> : vector<4x256xf32>
    %72 = tpu.matmul %71, %66, %cst_61 {dimension_numbers = #tpu.dot_dimension_numbers<[1], [0], [0], [1], [0, 0, 1, 1], [], []>} : vector<4x64xf32>, vector<64x256xf32>, vector<4x256xf32> -> vector<4x256xf32>
    %73 = arith.index_cast %c0_i32 : i32 to index
    %c0_62 = arith.constant 0 : index
    %c0_63 = arith.constant 0 : index
    %74 = vector.load %arg12[%73, %c0_62, %c0_63] : memref<8x4x256xf32, #tpu.memory_space<vmem>>, vector<1x4x128xf32>
    %75 = vector.shape_cast %74 : vector<1x4x128xf32> to vector<4x128xf32>
    %76 = vector.extract_strided_slice %72 {offsets = [0, 0], sizes = [4, 128], strides = [1, 1]} : vector<4x256xf32> to vector<4x128xf32>
    %77 = arith.addf %75, %76 : vector<4x128xf32>
    %c7_i32 = arith.constant 7 : i32
    %78 = arith.subi %c7_i32, %c0_i32 : i32
    %79 = arith.index_cast %78 : i32 to index
    %c0_64 = arith.constant 0 : index
    %c128 = arith.constant 128 : index
    %80 = vector.load %arg12[%79, %c0_64, %c128] : memref<8x4x256xf32, #tpu.memory_space<vmem>>, vector<1x4x128xf32>
    %81 = vector.shape_cast %80 : vector<1x4x128xf32> to vector<4x128xf32>
    %82 = vector.extract_strided_slice %72 {offsets = [0, 128], sizes = [4, 128], strides = [1, 1]} : vector<4x256xf32> to vector<4x128xf32>
    %83 = arith.addf %81, %82 : vector<4x128xf32>
    %c0_65 = arith.constant 0 : index
    %c0_66 = arith.constant 0 : index
    %84 = vector.load %arg15[%c0_65, %c0_66] : memref<4x64xf32, #tpu.memory_space<vmem>>, vector<4x32xf32>
    %85 = vector.extract_strided_slice %77 {offsets = [0, 0], sizes = [4, 32], strides = [1, 1]} : vector<4x128xf32> to vector<4x32xf32>
    %86 = arith.negf %85 : vector<4x32xf32>
    %87 = math.exp %86 : vector<4x32xf32>
    %cst_67 = arith.constant 1.000000e+00 : f32
    %88 = vector.broadcast %cst_67 : f32 to vector<4x32xf32>
    %89 = arith.addf %88, %87 : vector<4x32xf32>
    %90 = arith.divf %88, %89 : vector<4x32xf32>
    %91 = vector.extract_strided_slice %77 {offsets = [0, 32], sizes = [4, 32], strides = [1, 1]} : vector<4x128xf32> to vector<4x32xf32>
    %92 = arith.negf %91 : vector<4x32xf32>
    %93 = math.exp %92 : vector<4x32xf32>
    %cst_68 = arith.constant 1.000000e+00 : f32
    %94 = vector.broadcast %cst_68 : f32 to vector<4x32xf32>
    %95 = arith.addf %94, %93 : vector<4x32xf32>
    %96 = arith.divf %94, %95 : vector<4x32xf32>
    %97 = vector.extract_strided_slice %77 {offsets = [0, 64], sizes = [4, 32], strides = [1, 1]} : vector<4x128xf32> to vector<4x32xf32>
    %98 = math.tanh %97 : vector<4x32xf32>
    %99 = vector.extract_strided_slice %77 {offsets = [0, 96], sizes = [4, 32], strides = [1, 1]} : vector<4x128xf32> to vector<4x32xf32>
    %100 = arith.negf %99 : vector<4x32xf32>
    %101 = math.exp %100 : vector<4x32xf32>
    %cst_69 = arith.constant 1.000000e+00 : f32
    %102 = vector.broadcast %cst_69 : f32 to vector<4x32xf32>
    %103 = arith.addf %102, %101 : vector<4x32xf32>
    %104 = arith.divf %102, %103 : vector<4x32xf32>
    %105 = arith.mulf %96, %84 : vector<4x32xf32>
    %106 = arith.mulf %90, %98 : vector<4x32xf32>
    %107 = arith.addf %105, %106 : vector<4x32xf32>
    %108 = math.tanh %107 : vector<4x32xf32>
    %109 = arith.mulf %104, %108 : vector<4x32xf32>
    %c0_70 = arith.constant 0 : index
    %c32 = arith.constant 32 : index
    %110 = vector.load %arg15[%c0_70, %c32] : memref<4x64xf32, #tpu.memory_space<vmem>>, vector<4x32xf32>
    %111 = vector.extract_strided_slice %83 {offsets = [0, 0], sizes = [4, 32], strides = [1, 1]} : vector<4x128xf32> to vector<4x32xf32>
    %112 = arith.negf %111 : vector<4x32xf32>
    %113 = math.exp %112 : vector<4x32xf32>
    %cst_71 = arith.constant 1.000000e+00 : f32
    %114 = vector.broadcast %cst_71 : f32 to vector<4x32xf32>
    %115 = arith.addf %114, %113 : vector<4x32xf32>
    %116 = arith.divf %114, %115 : vector<4x32xf32>
    %117 = vector.extract_strided_slice %83 {offsets = [0, 32], sizes = [4, 32], strides = [1, 1]} : vector<4x128xf32> to vector<4x32xf32>
    %118 = arith.negf %117 : vector<4x32xf32>
    %119 = math.exp %118 : vector<4x32xf32>
    %cst_72 = arith.constant 1.000000e+00 : f32
    %120 = vector.broadcast %cst_72 : f32 to vector<4x32xf32>
    %121 = arith.addf %120, %119 : vector<4x32xf32>
    %122 = arith.divf %120, %121 : vector<4x32xf32>
    %123 = vector.extract_strided_slice %83 {offsets = [0, 64], sizes = [4, 32], strides = [1, 1]} : vector<4x128xf32> to vector<4x32xf32>
    %124 = math.tanh %123 : vector<4x32xf32>
    %125 = vector.extract_strided_slice %83 {offsets = [0, 96], sizes = [4, 32], strides = [1, 1]} : vector<4x128xf32> to vector<4x32xf32>
    %126 = arith.negf %125 : vector<4x32xf32>
    %127 = math.exp %126 : vector<4x32xf32>
    %cst_73 = arith.constant 1.000000e+00 : f32
    %128 = vector.broadcast %cst_73 : f32 to vector<4x32xf32>
    %129 = arith.addf %128, %127 : vector<4x32xf32>
    %130 = arith.divf %128, %129 : vector<4x32xf32>
    %131 = arith.mulf %122, %110 : vector<4x32xf32>
    %132 = arith.mulf %116, %124 : vector<4x32xf32>
    %133 = arith.addf %131, %132 : vector<4x32xf32>
    %134 = math.tanh %133 : vector<4x32xf32>
    %135 = arith.mulf %130, %134 : vector<4x32xf32>
    %c0_74 = arith.constant 0 : index
    %c0_75 = arith.constant 0 : index
    %136 = vector.load %arg14[%c0_74, %c0_75] : memref<4x64xf32, #tpu.memory_space<vmem>>, vector<4x32xf32>
    tpu.vector_store %arg14[%c0_74, %c0_75], %109 {strides = array<i32>} : memref<4x64xf32, #tpu.memory_space<vmem>>, vector<4x32xf32>,
    %c0_76 = arith.constant 0 : index
    %c32_77 = arith.constant 32 : index
    %137 = vector.load %arg14[%c0_76, %c32_77] : memref<4x64xf32, #tpu.memory_space<vmem>>, vector<4x32xf32>
    tpu.vector_store %arg14[%c0_76, %c32_77], %135 {strides = array<i32>} : memref<4x64xf32, #tpu.memory_space<vmem>>, vector<4x32xf32>,
    %c0_78 = arith.constant 0 : index
    %c0_79 = arith.constant 0 : index
    %138 = vector.load %arg15[%c0_78, %c0_79] : memref<4x64xf32, #tpu.memory_space<vmem>>, vector<4x32xf32>
    tpu.vector_store %arg15[%c0_78, %c0_79], %107 {strides = array<i32>} : memref<4x64xf32, #tpu.memory_space<vmem>>, vector<4x32xf32>,
    %c0_80 = arith.constant 0 : index
    %c32_81 = arith.constant 32 : index
    %139 = vector.load %arg15[%c0_80, %c32_81] : memref<4x64xf32, #tpu.memory_space<vmem>>, vector<4x32xf32>
    tpu.vector_store %arg15[%c0_80, %c32_81], %133 {strides = array<i32>} : memref<4x64xf32, #tpu.memory_space<vmem>>, vector<4x32xf32>,
    %140 = arith.index_cast %c0_i32 : i32 to index
    %c0_82 = arith.constant 0 : index
    %c0_83 = arith.constant 0 : index
    %141 = vector.load %arg13[%140, %c0_82, %c0_83] : memref<8x4x64xf32, #tpu.memory_space<vmem>>, vector<1x4x32xf32>
    %142 = vector.shape_cast %141 : vector<1x4x32xf32> to vector<4x32xf32>
    %143 = vector.shape_cast %109 : vector<4x32xf32> to vector<1x4x32xf32>
    tpu.vector_store %arg13[%140, %c0_82, %c0_83], %143 {strides = array<i32>} : memref<8x4x64xf32, #tpu.memory_space<vmem>>, vector<1x4x32xf32>,
    %c7_i32_84 = arith.constant 7 : i32
    %144 = arith.subi %c7_i32_84, %c0_i32 : i32
    %145 = arith.index_cast %144 : i32 to index
    %c0_85 = arith.constant 0 : index
    %c32_86 = arith.constant 32 : index
    %146 = vector.load %arg13[%145, %c0_85, %c32_86] : memref<8x4x64xf32, #tpu.memory_space<vmem>>, vector<1x4x32xf32>
    %147 = vector.shape_cast %146 : vector<1x4x32xf32> to vector<4x32xf32>
    %148 = vector.shape_cast %135 : vector<4x32xf32> to vector<1x4x32xf32>
    tpu.vector_store %arg13[%145, %c0_85, %c32_86], %148 {strides = array<i32>} : memref<8x4x64xf32, #tpu.memory_space<vmem>>, vector<1x4x32xf32>,
    %c1_i32 = arith.constant 1 : i32
    %c0_87 = arith.constant 0 : index
    %c0_88 = arith.constant 0 : index
    %149 = vector.load %arg14[%c0_87, %c0_88] : memref<4x64xf32, #tpu.memory_space<vmem>>, vector<4x64xf32>
    %cst_89 = arith.constant dense<0.000000e+00> : vector<4x256xf32>
    %150 = tpu.matmul %149, %66, %cst_89 {dimension_numbers = #tpu.dot_dimension_numbers<[1], [0], [0], [1], [0, 0, 1, 1], [], []>} : vector<4x64xf32>, vector<64x256xf32>, vector<4x256xf32> -> vector<4x256xf32>
    %151 = arith.index_cast %c1_i32 : i32 to index
    %c0_90 = arith.constant 0 : index
    %c0_91 = arith.constant 0 : index
    %152 = vector.load %arg12[%151, %c0_90, %c0_91] : memref<8x4x256xf32, #tpu.memory_space<vmem>>, vector<1x4x128xf32>
    %153 = vector.shape_cast %152 : vector<1x4x128xf32> to vector<4x128xf32>
    %154 = vector.extract_strided_slice %150 {offsets = [0, 0], sizes = [4, 128], strides = [1, 1]} : vector<4x256xf32> to vector<4x128xf32>
    %155 = arith.addf %153, %154 : vector<4x128xf32>
    %c7_i32_92 = arith.constant 7 : i32
    %156 = arith.subi %c7_i32_92, %c1_i32 : i32
    %157 = arith.index_cast %156 : i32 to index
    %c0_93 = arith.constant 0 : index
    %c128_94 = arith.constant 128 : index
    %158 = vector.load %arg12[%157, %c0_93, %c128_94] : memref<8x4x256xf32, #tpu.memory_space<vmem>>, vector<1x4x128xf32>
    %159 = vector.shape_cast %158 : vector<1x4x128xf32> to vector<4x128xf32>
    %160 = vector.extract_strided_slice %150 {offsets = [0, 128], sizes = [4, 128], strides = [1, 1]} : vector<4x256xf32> to vector<4x128xf32>
    %161 = arith.addf %159, %160 : vector<4x128xf32>
    %c0_95 = arith.constant 0 : index
    %c0_96 = arith.constant 0 : index
    %162 = vector.load %arg15[%c0_95, %c0_96] : memref<4x64xf32, #tpu.memory_space<vmem>>, vector<4x32xf32>
    %163 = vector.extract_strided_slice %155 {offsets = [0, 0], sizes = [4, 32], strides = [1, 1]} : vector<4x128xf32> to vector<4x32xf32>
    %164 = arith.negf %163 : vector<4x32xf32>
    %165 = math.exp %164 : vector<4x32xf32>
    %cst_97 = arith.constant 1.000000e+00 : f32
    %166 = vector.broadcast %cst_97 : f32 to vector<4x32xf32>
    %167 = arith.addf %166, %165 : vector<4x32xf32>
    %168 = arith.divf %166, %167 : vector<4x32xf32>
    %169 = vector.extract_strided_slice %155 {offsets = [0, 32], sizes = [4, 32], strides = [1, 1]} : vector<4x128xf32> to vector<4x32xf32>
    %170 = arith.negf %169 : vector<4x32xf32>
    %171 = math.exp %170 : vector<4x32xf32>
    %cst_98 = arith.constant 1.000000e+00 : f32
    %172 = vector.broadcast %cst_98 : f32 to vector<4x32xf32>
    %173 = arith.addf %172, %171 : vector<4x32xf32>
    %174 = arith.divf %172, %173 : vector<4x32xf32>
    %175 = vector.extract_strided_slice %155 {offsets = [0, 64], sizes = [4, 32], strides = [1, 1]} : vector<4x128xf32> to vector<4x32xf32>
    %176 = math.tanh %175 : vector<4x32xf32>
    %177 = vector.extract_strided_slice %155 {offsets = [0, 96], sizes = [4, 32], strides = [1, 1]} : vector<4x128xf32> to vector<4x32xf32>
    %178 = arith.negf %177 : vector<4x32xf32>
    %179 = math.exp %178 : vector<4x32xf32>
    %cst_99 = arith.constant 1.000000e+00 : f32
    %180 = vector.broadcast %cst_99 : f32 to vector<4x32xf32>
    %181 = arith.addf %180, %179 : vector<4x32xf32>
    %182 = arith.divf %180, %181 : vector<4x32xf32>
    %183 = arith.mulf %174, %162 : vector<4x32xf32>
    %184 = arith.mulf %168, %176 : vector<4x32xf32>
    %185 = arith.addf %183, %184 : vector<4x32xf32>
    %186 = math.tanh %185 : vector<4x32xf32>
    %187 = arith.mulf %182, %186 : vector<4x32xf32>
    %c0_100 = arith.constant 0 : index
    %c32_101 = arith.constant 32 : index
    %188 = vector.load %arg15[%c0_100, %c32_101] : memref<4x64xf32, #tpu.memory_space<vmem>>, vector<4x32xf32>
    %189 = vector.extract_strided_slice %161 {offsets = [0, 0], sizes = [4, 32], strides = [1, 1]} : vector<4x128xf32> to vector<4x32xf32>
    %190 = arith.negf %189 : vector<4x32xf32>
    %191 = math.exp %190 : vector<4x32xf32>
    %cst_102 = arith.constant 1.000000e+00 : f32
    %192 = vector.broadcast %cst_102 : f32 to vector<4x32xf32>
    %193 = arith.addf %192, %191 : vector<4x32xf32>
    %194 = arith.divf %192, %193 : vector<4x32xf32>
    %195 = vector.extract_strided_slice %161 {offsets = [0, 32], sizes = [4, 32], strides = [1, 1]} : vector<4x128xf32> to vector<4x32xf32>
    %196 = arith.negf %195 : vector<4x32xf32>
    %197 = math.exp %196 : vector<4x32xf32>
    %cst_103 = arith.constant 1.000000e+00 : f32
    %198 = vector.broadcast %cst_103 : f32 to vector<4x32xf32>
    %199 = arith.addf %198, %197 : vector<4x32xf32>
    %200 = arith.divf %198, %199 : vector<4x32xf32>
    %201 = vector.extract_strided_slice %161 {offsets = [0, 64], sizes = [4, 32], strides = [1, 1]} : vector<4x128xf32> to vector<4x32xf32>
    %202 = math.tanh %201 : vector<4x32xf32>
    %203 = vector.extract_strided_slice %161 {offsets = [0, 96], sizes = [4, 32], strides = [1, 1]} : vector<4x128xf32> to vector<4x32xf32>
    %204 = arith.negf %203 : vector<4x32xf32>
    %205 = math.exp %204 : vector<4x32xf32>
    %cst_104 = arith.constant 1.000000e+00 : f32
    %206 = vector.broadcast %cst_104 : f32 to vector<4x32xf32>
    %207 = arith.addf %206, %205 : vector<4x32xf32>
    %208 = arith.divf %206, %207 : vector<4x32xf32>
    %209 = arith.mulf %200, %188 : vector<4x32xf32>
    %210 = arith.mulf %194, %202 : vector<4x32xf32>
    %211 = arith.addf %209, %210 : vector<4x32xf32>
    %212 = math.tanh %211 : vector<4x32xf32>
    %213 = arith.mulf %208, %212 : vector<4x32xf32>
    %c0_105 = arith.constant 0 : index
    %c0_106 = arith.constant 0 : index
    %214 = vector.load %arg14[%c0_105, %c0_106] : memref<4x64xf32, #tpu.memory_space<vmem>>, vector<4x32xf32>
    tpu.vector_store %arg14[%c0_105, %c0_106], %187 {strides = array<i32>} : memref<4x64xf32, #tpu.memory_space<vmem>>, vector<4x32xf32>,
    %c0_107 = arith.constant 0 : index
    %c32_108 = arith.constant 32 : index
    %215 = vector.load %arg14[%c0_107, %c32_108] : memref<4x64xf32, #tpu.memory_space<vmem>>, vector<4x32xf32>
    tpu.vector_store %arg14[%c0_107, %c32_108], %213 {strides = array<i32>} : memref<4x64xf32, #tpu.memory_space<vmem>>, vector<4x32xf32>,
    %c0_109 = arith.constant 0 : index
    %c0_110 = arith.constant 0 : index
    %216 = vector.load %arg15[%c0_109, %c0_110] : memref<4x64xf32, #tpu.memory_space<vmem>>, vector<4x32xf32>
    tpu.vector_store %arg15[%c0_109, %c0_110], %185 {strides = array<i32>} : memref<4x64xf32, #tpu.memory_space<vmem>>, vector<4x32xf32>,
    %c0_111 = arith.constant 0 : index
    %c32_112 = arith.constant 32 : index
    %217 = vector.load %arg15[%c0_111, %c32_112] : memref<4x64xf32, #tpu.memory_space<vmem>>, vector<4x32xf32>
    tpu.vector_store %arg15[%c0_111, %c32_112], %211 {strides = array<i32>} : memref<4x64xf32, #tpu.memory_space<vmem>>, vector<4x32xf32>,
    %218 = arith.index_cast %c1_i32 : i32 to index
    %c0_113 = arith.constant 0 : index
    %c0_114 = arith.constant 0 : index
    %219 = vector.load %arg13[%218, %c0_113, %c0_114] : memref<8x4x64xf32, #tpu.memory_space<vmem>>, vector<1x4x32xf32>
    %220 = vector.shape_cast %219 : vector<1x4x32xf32> to vector<4x32xf32>
    %221 = vector.shape_cast %187 : vector<4x32xf32> to vector<1x4x32xf32>
    tpu.vector_store %arg13[%218, %c0_113, %c0_114], %221 {strides = array<i32>} : memref<8x4x64xf32, #tpu.memory_space<vmem>>, vector<1x4x32xf32>,
    %c7_i32_115 = arith.constant 7 : i32
    %222 = arith.subi %c7_i32_115, %c1_i32 : i32
    %223 = arith.index_cast %222 : i32 to index
    %c0_116 = arith.constant 0 : index
    %c32_117 = arith.constant 32 : index
    %224 = vector.load %arg13[%223, %c0_116, %c32_117] : memref<8x4x64xf32, #tpu.memory_space<vmem>>, vector<1x4x32xf32>
    %225 = vector.shape_cast %224 : vector<1x4x32xf32> to vector<4x32xf32>
    %226 = vector.shape_cast %213 : vector<4x32xf32> to vector<1x4x32xf32>
    tpu.vector_store %arg13[%223, %c0_116, %c32_117], %226 {strides = array<i32>} : memref<8x4x64xf32, #tpu.memory_space<vmem>>, vector<1x4x32xf32>,
    %c2_i32 = arith.constant 2 : i32
    %c0_118 = arith.constant 0 : index
    %c0_119 = arith.constant 0 : index
    %227 = vector.load %arg14[%c0_118, %c0_119] : memref<4x64xf32, #tpu.memory_space<vmem>>, vector<4x64xf32>
    %cst_120 = arith.constant dense<0.000000e+00> : vector<4x256xf32>
    %228 = tpu.matmul %227, %66, %cst_120 {dimension_numbers = #tpu.dot_dimension_numbers<[1], [0], [0], [1], [0, 0, 1, 1], [], []>} : vector<4x64xf32>, vector<64x256xf32>, vector<4x256xf32> -> vector<4x256xf32>
    %229 = arith.index_cast %c2_i32 : i32 to index
    %c0_121 = arith.constant 0 : index
    %c0_122 = arith.constant 0 : index
    %230 = vector.load %arg12[%229, %c0_121, %c0_122] : memref<8x4x256xf32, #tpu.memory_space<vmem>>, vector<1x4x128xf32>
    %231 = vector.shape_cast %230 : vector<1x4x128xf32> to vector<4x128xf32>
    %232 = vector.extract_strided_slice %228 {offsets = [0, 0], sizes = [4, 128], strides = [1, 1]} : vector<4x256xf32> to vector<4x128xf32>
    %233 = arith.addf %231, %232 : vector<4x128xf32>
    %c7_i32_123 = arith.constant 7 : i32
    %234 = arith.subi %c7_i32_123, %c2_i32 : i32
    %235 = arith.index_cast %234 : i32 to index
    %c0_124 = arith.constant 0 : index
    %c128_125 = arith.constant 128 : index
    %236 = vector.load %arg12[%235, %c0_124, %c128_125] : memref<8x4x256xf32, #tpu.memory_space<vmem>>, vector<1x4x128xf32>
    %237 = vector.shape_cast %236 : vector<1x4x128xf32> to vector<4x128xf32>
    %238 = vector.extract_strided_slice %228 {offsets = [0, 128], sizes = [4, 128], strides = [1, 1]} : vector<4x256xf32> to vector<4x128xf32>
    %239 = arith.addf %237, %238 : vector<4x128xf32>
    %c0_126 = arith.constant 0 : index
    %c0_127 = arith.constant 0 : index
    %240 = vector.load %arg15[%c0_126, %c0_127] : memref<4x64xf32, #tpu.memory_space<vmem>>, vector<4x32xf32>
    %241 = vector.extract_strided_slice %233 {offsets = [0, 0], sizes = [4, 32], strides = [1, 1]} : vector<4x128xf32> to vector<4x32xf32>
    %242 = arith.negf %241 : vector<4x32xf32>
    %243 = math.exp %242 : vector<4x32xf32>
    %cst_128 = arith.constant 1.000000e+00 : f32
    %244 = vector.broadcast %cst_128 : f32 to vector<4x32xf32>
    %245 = arith.addf %244, %243 : vector<4x32xf32>
    %246 = arith.divf %244, %245 : vector<4x32xf32>
    %247 = vector.extract_strided_slice %233 {offsets = [0, 32], sizes = [4, 32], strides = [1, 1]} : vector<4x128xf32> to vector<4x32xf32>
    %248 = arith.negf %247 : vector<4x32xf32>
    %249 = math.exp %248 : vector<4x32xf32>
    %cst_129 = arith.constant 1.000000e+00 : f32
    %250 = vector.broadcast %cst_129 : f32 to vector<4x32xf32>
    %251 = arith.addf %250, %249 : vector<4x32xf32>
    %252 = arith.divf %250, %251 : vector<4x32xf32>
    %253 = vector.extract_strided_slice %233 {offsets = [0, 64], sizes = [4, 32], strides = [1, 1]} : vector<4x128xf32> to vector<4x32xf32>
    %254 = math.tanh %253 : vector<4x32xf32>
    %255 = vector.extract_strided_slice %233 {offsets = [0, 96], sizes = [4, 32], strides = [1, 1]} : vector<4x128xf32> to vector<4x32xf32>
    %256 = arith.negf %255 : vector<4x32xf32>
    %257 = math.exp %256 : vector<4x32xf32>
    %cst_130 = arith.constant 1.000000e+00 : f32
    %258 = vector.broadcast %cst_130 : f32 to vector<4x32xf32>
    %259 = arith.addf %258, %257 : vector<4x32xf32>
    %260 = arith.divf %258, %259 : vector<4x32xf32>
    %261 = arith.mulf %252, %240 : vector<4x32xf32>
    %262 = arith.mulf %246, %254 : vector<4x32xf32>
    %263 = arith.addf %261, %262 : vector<4x32xf32>
    %264 = math.tanh %263 : vector<4x32xf32>
    %265 = arith.mulf %260, %264 : vector<4x32xf32>
    %c0_131 = arith.constant 0 : index
    %c32_132 = arith.constant 32 : index
    %266 = vector.load %arg15[%c0_131, %c32_132] : memref<4x64xf32, #tpu.memory_space<vmem>>, vector<4x32xf32>
    %267 = vector.extract_strided_slice %239 {offsets = [0, 0], sizes = [4, 32], strides = [1, 1]} : vector<4x128xf32> to vector<4x32xf32>
    %268 = arith.negf %267 : vector<4x32xf32>
    %269 = math.exp %268 : vector<4x32xf32>
    %cst_133 = arith.constant 1.000000e+00 : f32
    %270 = vector.broadcast %cst_133 : f32 to vector<4x32xf32>
    %271 = arith.addf %270, %269 : vector<4x32xf32>
    %272 = arith.divf %270, %271 : vector<4x32xf32>
    %273 = vector.extract_strided_slice %239 {offsets = [0, 32], sizes = [4, 32], strides = [1, 1]} : vector<4x128xf32> to vector<4x32xf32>
    %274 = arith.negf %273 : vector<4x32xf32>
    %275 = math.exp %274 : vector<4x32xf32>
    %cst_134 = arith.constant 1.000000e+00 : f32
    %276 = vector.broadcast %cst_134 : f32 to vector<4x32xf32>
    %277 = arith.addf %276, %275 : vector<4x32xf32>
    %278 = arith.divf %276, %277 : vector<4x32xf32>
    %279 = vector.extract_strided_slice %239 {offsets = [0, 64], sizes = [4, 32], strides = [1, 1]} : vector<4x128xf32> to vector<4x32xf32>
    %280 = math.tanh %279 : vector<4x32xf32>
    %281 = vector.extract_strided_slice %239 {offsets = [0, 96], sizes = [4, 32], strides = [1, 1]} : vector<4x128xf32> to vector<4x32xf32>
    %282 = arith.negf %281 : vector<4x32xf32>
    %283 = math.exp %282 : vector<4x32xf32>
    %cst_135 = arith.constant 1.000000e+00 : f32
    %284 = vector.broadcast %cst_135 : f32 to vector<4x32xf32>
    %285 = arith.addf %284, %283 : vector<4x32xf32>
    %286 = arith.divf %284, %285 : vector<4x32xf32>
    %287 = arith.mulf %278, %266 : vector<4x32xf32>
    %288 = arith.mulf %272, %280 : vector<4x32xf32>
    %289 = arith.addf %287, %288 : vector<4x32xf32>
    %290 = math.tanh %289 : vector<4x32xf32>
    %291 = arith.mulf %286, %290 : vector<4x32xf32>
    %c0_136 = arith.constant 0 : index
    %c0_137 = arith.constant 0 : index
    %292 = vector.load %arg14[%c0_136, %c0_137] : memref<4x64xf32, #tpu.memory_space<vmem>>, vector<4x32xf32>
    tpu.vector_store %arg14[%c0_136, %c0_137], %265 {strides = array<i32>} : memref<4x64xf32, #tpu.memory_space<vmem>>, vector<4x32xf32>,
    %c0_138 = arith.constant 0 : index
    %c32_139 = arith.constant 32 : index
    %293 = vector.load %arg14[%c0_138, %c32_139] : memref<4x64xf32, #tpu.memory_space<vmem>>, vector<4x32xf32>
    tpu.vector_store %arg14[%c0_138, %c32_139], %291 {strides = array<i32>} : memref<4x64xf32, #tpu.memory_space<vmem>>, vector<4x32xf32>,
    %c0_140 = arith.constant 0 : index
    %c0_141 = arith.constant 0 : index
    %294 = vector.load %arg15[%c0_140, %c0_141] : memref<4x64xf32, #tpu.memory_space<vmem>>, vector<4x32xf32>
    tpu.vector_store %arg15[%c0_140, %c0_141], %263 {strides = array<i32>} : memref<4x64xf32, #tpu.memory_space<vmem>>, vector<4x32xf32>,
    %c0_142 = arith.constant 0 : index
    %c32_143 = arith.constant 32 : index
    %295 = vector.load %arg15[%c0_142, %c32_143] : memref<4x64xf32, #tpu.memory_space<vmem>>, vector<4x32xf32>
    tpu.vector_store %arg15[%c0_142, %c32_143], %289 {strides = array<i32>} : memref<4x64xf32, #tpu.memory_space<vmem>>, vector<4x32xf32>,
    %296 = arith.index_cast %c2_i32 : i32 to index
    %c0_144 = arith.constant 0 : index
    %c0_145 = arith.constant 0 : index
    %297 = vector.load %arg13[%296, %c0_144, %c0_145] : memref<8x4x64xf32, #tpu.memory_space<vmem>>, vector<1x4x32xf32>
    %298 = vector.shape_cast %297 : vector<1x4x32xf32> to vector<4x32xf32>
    %299 = vector.shape_cast %265 : vector<4x32xf32> to vector<1x4x32xf32>
    tpu.vector_store %arg13[%296, %c0_144, %c0_145], %299 {strides = array<i32>} : memref<8x4x64xf32, #tpu.memory_space<vmem>>, vector<1x4x32xf32>,
    %c7_i32_146 = arith.constant 7 : i32
    %300 = arith.subi %c7_i32_146, %c2_i32 : i32
    %301 = arith.index_cast %300 : i32 to index
    %c0_147 = arith.constant 0 : index
    %c32_148 = arith.constant 32 : index
    %302 = vector.load %arg13[%301, %c0_147, %c32_148] : memref<8x4x64xf32, #tpu.memory_space<vmem>>, vector<1x4x32xf32>
    %303 = vector.shape_cast %302 : vector<1x4x32xf32> to vector<4x32xf32>
    %304 = vector.shape_cast %291 : vector<4x32xf32> to vector<1x4x32xf32>
    tpu.vector_store %arg13[%301, %c0_147, %c32_148], %304 {strides = array<i32>} : memref<8x4x64xf32, #tpu.memory_space<vmem>>, vector<1x4x32xf32>,
    %c3_i32 = arith.constant 3 : i32
    %c0_149 = arith.constant 0 : index
    %c0_150 = arith.constant 0 : index
    %305 = vector.load %arg14[%c0_149, %c0_150] : memref<4x64xf32, #tpu.memory_space<vmem>>, vector<4x64xf32>
    %cst_151 = arith.constant dense<0.000000e+00> : vector<4x256xf32>
    %306 = tpu.matmul %305, %66, %cst_151 {dimension_numbers = #tpu.dot_dimension_numbers<[1], [0], [0], [1], [0, 0, 1, 1], [], []>} : vector<4x64xf32>, vector<64x256xf32>, vector<4x256xf32> -> vector<4x256xf32>
    %307 = arith.index_cast %c3_i32 : i32 to index
    %c0_152 = arith.constant 0 : index
    %c0_153 = arith.constant 0 : index
    %308 = vector.load %arg12[%307, %c0_152, %c0_153] : memref<8x4x256xf32, #tpu.memory_space<vmem>>, vector<1x4x128xf32>
    %309 = vector.shape_cast %308 : vector<1x4x128xf32> to vector<4x128xf32>
    %310 = vector.extract_strided_slice %306 {offsets = [0, 0], sizes = [4, 128], strides = [1, 1]} : vector<4x256xf32> to vector<4x128xf32>
    %311 = arith.addf %309, %310 : vector<4x128xf32>
    %c7_i32_154 = arith.constant 7 : i32
    %312 = arith.subi %c7_i32_154, %c3_i32 : i32
    %313 = arith.index_cast %312 : i32 to index
    %c0_155 = arith.constant 0 : index
    %c128_156 = arith.constant 128 : index
    %314 = vector.load %arg12[%313, %c0_155, %c128_156] : memref<8x4x256xf32, #tpu.memory_space<vmem>>, vector<1x4x128xf32>
    %315 = vector.shape_cast %314 : vector<1x4x128xf32> to vector<4x128xf32>
    %316 = vector.extract_strided_slice %306 {offsets = [0, 128], sizes = [4, 128], strides = [1, 1]} : vector<4x256xf32> to vector<4x128xf32>
    %317 = arith.addf %315, %316 : vector<4x128xf32>
    %c0_157 = arith.constant 0 : index
    %c0_158 = arith.constant 0 : index
    %318 = vector.load %arg15[%c0_157, %c0_158] : memref<4x64xf32, #tpu.memory_space<vmem>>, vector<4x32xf32>
    %319 = vector.extract_strided_slice %311 {offsets = [0, 0], sizes = [4, 32], strides = [1, 1]} : vector<4x128xf32> to vector<4x32xf32>
    %320 = arith.negf %319 : vector<4x32xf32>
    %321 = math.exp %320 : vector<4x32xf32>
    %cst_159 = arith.constant 1.000000e+00 : f32
    %322 = vector.broadcast %cst_159 : f32 to vector<4x32xf32>
    %323 = arith.addf %322, %321 : vector<4x32xf32>
    %324 = arith.divf %322, %323 : vector<4x32xf32>
    %325 = vector.extract_strided_slice %311 {offsets = [0, 32], sizes = [4, 32], strides = [1, 1]} : vector<4x128xf32> to vector<4x32xf32>
    %326 = arith.negf %325 : vector<4x32xf32>
    %327 = math.exp %326 : vector<4x32xf32>
    %cst_160 = arith.constant 1.000000e+00 : f32
    %328 = vector.broadcast %cst_160 : f32 to vector<4x32xf32>
    %329 = arith.addf %328, %327 : vector<4x32xf32>
    %330 = arith.divf %328, %329 : vector<4x32xf32>
    %331 = vector.extract_strided_slice %311 {offsets = [0, 64], sizes = [4, 32], strides = [1, 1]} : vector<4x128xf32> to vector<4x32xf32>
    %332 = math.tanh %331 : vector<4x32xf32>
    %333 = vector.extract_strided_slice %311 {offsets = [0, 96], sizes = [4, 32], strides = [1, 1]} : vector<4x128xf32> to vector<4x32xf32>
    %334 = arith.negf %333 : vector<4x32xf32>
    %335 = math.exp %334 : vector<4x32xf32>
    %cst_161 = arith.constant 1.000000e+00 : f32
    %336 = vector.broadcast %cst_161 : f32 to vector<4x32xf32>
    %337 = arith.addf %336, %335 : vector<4x32xf32>
    %338 = arith.divf %336, %337 : vector<4x32xf32>
    %339 = arith.mulf %330, %318 : vector<4x32xf32>
    %340 = arith.mulf %324, %332 : vector<4x32xf32>
    %341 = arith.addf %339, %340 : vector<4x32xf32>
    %342 = math.tanh %341 : vector<4x32xf32>
    %343 = arith.mulf %338, %342 : vector<4x32xf32>
    %c0_162 = arith.constant 0 : index
    %c32_163 = arith.constant 32 : index
    %344 = vector.load %arg15[%c0_162, %c32_163] : memref<4x64xf32, #tpu.memory_space<vmem>>, vector<4x32xf32>
    %345 = vector.extract_strided_slice %317 {offsets = [0, 0], sizes = [4, 32], strides = [1, 1]} : vector<4x128xf32> to vector<4x32xf32>
    %346 = arith.negf %345 : vector<4x32xf32>
    %347 = math.exp %346 : vector<4x32xf32>
    %cst_164 = arith.constant 1.000000e+00 : f32
    %348 = vector.broadcast %cst_164 : f32 to vector<4x32xf32>
    %349 = arith.addf %348, %347 : vector<4x32xf32>
    %350 = arith.divf %348, %349 : vector<4x32xf32>
    %351 = vector.extract_strided_slice %317 {offsets = [0, 32], sizes = [4, 32], strides = [1, 1]} : vector<4x128xf32> to vector<4x32xf32>
    %352 = arith.negf %351 : vector<4x32xf32>
    %353 = math.exp %352 : vector<4x32xf32>
    %cst_165 = arith.constant 1.000000e+00 : f32
    %354 = vector.broadcast %cst_165 : f32 to vector<4x32xf32>
    %355 = arith.addf %354, %353 : vector<4x32xf32>
    %356 = arith.divf %354, %355 : vector<4x32xf32>
    %357 = vector.extract_strided_slice %317 {offsets = [0, 64], sizes = [4, 32], strides = [1, 1]} : vector<4x128xf32> to vector<4x32xf32>
    %358 = math.tanh %357 : vector<4x32xf32>
    %359 = vector.extract_strided_slice %317 {offsets = [0, 96], sizes = [4, 32], strides = [1, 1]} : vector<4x128xf32> to vector<4x32xf32>
    %360 = arith.negf %359 : vector<4x32xf32>
    %361 = math.exp %360 : vector<4x32xf32>
    %cst_166 = arith.constant 1.000000e+00 : f32
    %362 = vector.broadcast %cst_166 : f32 to vector<4x32xf32>
    %363 = arith.addf %362, %361 : vector<4x32xf32>
    %364 = arith.divf %362, %363 : vector<4x32xf32>
    %365 = arith.mulf %356, %344 : vector<4x32xf32>
    %366 = arith.mulf %350, %358 : vector<4x32xf32>
    %367 = arith.addf %365, %366 : vector<4x32xf32>
    %368 = math.tanh %367 : vector<4x32xf32>
    %369 = arith.mulf %364, %368 : vector<4x32xf32>
    %c0_167 = arith.constant 0 : index
    %c0_168 = arith.constant 0 : index
    %370 = vector.load %arg14[%c0_167, %c0_168] : memref<4x64xf32, #tpu.memory_space<vmem>>, vector<4x32xf32>
    tpu.vector_store %arg14[%c0_167, %c0_168], %343 {strides = array<i32>} : memref<4x64xf32, #tpu.memory_space<vmem>>, vector<4x32xf32>,
    %c0_169 = arith.constant 0 : index
    %c32_170 = arith.constant 32 : index
    %371 = vector.load %arg14[%c0_169, %c32_170] : memref<4x64xf32, #tpu.memory_space<vmem>>, vector<4x32xf32>
    tpu.vector_store %arg14[%c0_169, %c32_170], %369 {strides = array<i32>} : memref<4x64xf32, #tpu.memory_space<vmem>>, vector<4x32xf32>,
    %c0_171 = arith.constant 0 : index
    %c0_172 = arith.constant 0 : index
    %372 = vector.load %arg15[%c0_171, %c0_172] : memref<4x64xf32, #tpu.memory_space<vmem>>, vector<4x32xf32>
    tpu.vector_store %arg15[%c0_171, %c0_172], %341 {strides = array<i32>} : memref<4x64xf32, #tpu.memory_space<vmem>>, vector<4x32xf32>,
    %c0_173 = arith.constant 0 : index
    %c32_174 = arith.constant 32 : index
    %373 = vector.load %arg15[%c0_173, %c32_174] : memref<4x64xf32, #tpu.memory_space<vmem>>, vector<4x32xf32>
    tpu.vector_store %arg15[%c0_173, %c32_174], %367 {strides = array<i32>} : memref<4x64xf32, #tpu.memory_space<vmem>>, vector<4x32xf32>,
    %374 = arith.index_cast %c3_i32 : i32 to index
    %c0_175 = arith.constant 0 : index
    %c0_176 = arith.constant 0 : index
    %375 = vector.load %arg13[%374, %c0_175, %c0_176] : memref<8x4x64xf32, #tpu.memory_space<vmem>>, vector<1x4x32xf32>
    %376 = vector.shape_cast %375 : vector<1x4x32xf32> to vector<4x32xf32>
    %377 = vector.shape_cast %343 : vector<4x32xf32> to vector<1x4x32xf32>
    tpu.vector_store %arg13[%374, %c0_175, %c0_176], %377 {strides = array<i32>} : memref<8x4x64xf32, #tpu.memory_space<vmem>>, vector<1x4x32xf32>,
    %c7_i32_177 = arith.constant 7 : i32
    %378 = arith.subi %c7_i32_177, %c3_i32 : i32
    %379 = arith.index_cast %378 : i32 to index
    %c0_178 = arith.constant 0 : index
    %c32_179 = arith.constant 32 : index
    %380 = vector.load %arg13[%379, %c0_178, %c32_179] : memref<8x4x64xf32, #tpu.memory_space<vmem>>, vector<1x4x32xf32>
    %381 = vector.shape_cast %380 : vector<1x4x32xf32> to vector<4x32xf32>
    %382 = vector.shape_cast %369 : vector<4x32xf32> to vector<1x4x32xf32>
    tpu.vector_store %arg13[%379, %c0_178, %c32_179], %382 {strides = array<i32>} : memref<8x4x64xf32, #tpu.memory_space<vmem>>, vector<1x4x32xf32>,
    %c4_i32 = arith.constant 4 : i32
    %c0_180 = arith.constant 0 : index
    %c0_181 = arith.constant 0 : index
    %383 = vector.load %arg14[%c0_180, %c0_181] : memref<4x64xf32, #tpu.memory_space<vmem>>, vector<4x64xf32>
    %cst_182 = arith.constant dense<0.000000e+00> : vector<4x256xf32>
    %384 = tpu.matmul %383, %66, %cst_182 {dimension_numbers = #tpu.dot_dimension_numbers<[1], [0], [0], [1], [0, 0, 1, 1], [], []>} : vector<4x64xf32>, vector<64x256xf32>, vector<4x256xf32> -> vector<4x256xf32>
    %385 = arith.index_cast %c4_i32 : i32 to index
    %c0_183 = arith.constant 0 : index
    %c0_184 = arith.constant 0 : index
    %386 = vector.load %arg12[%385, %c0_183, %c0_184] : memref<8x4x256xf32, #tpu.memory_space<vmem>>, vector<1x4x128xf32>
    %387 = vector.shape_cast %386 : vector<1x4x128xf32> to vector<4x128xf32>
    %388 = vector.extract_strided_slice %384 {offsets = [0, 0], sizes = [4, 128], strides = [1, 1]} : vector<4x256xf32> to vector<4x128xf32>
    %389 = arith.addf %387, %388 : vector<4x128xf32>
    %c7_i32_185 = arith.constant 7 : i32
    %390 = arith.subi %c7_i32_185, %c4_i32 : i32
    %391 = arith.index_cast %390 : i32 to index
    %c0_186 = arith.constant 0 : index
    %c128_187 = arith.constant 128 : index
    %392 = vector.load %arg12[%391, %c0_186, %c128_187] : memref<8x4x256xf32, #tpu.memory_space<vmem>>, vector<1x4x128xf32>
    %393 = vector.shape_cast %392 : vector<1x4x128xf32> to vector<4x128xf32>
    %394 = vector.extract_strided_slice %384 {offsets = [0, 128], sizes = [4, 128], strides = [1, 1]} : vector<4x256xf32> to vector<4x128xf32>
    %395 = arith.addf %393, %394 : vector<4x128xf32>
    %c0_188 = arith.constant 0 : index
    %c0_189 = arith.constant 0 : index
    %396 = vector.load %arg15[%c0_188, %c0_189] : memref<4x64xf32, #tpu.memory_space<vmem>>, vector<4x32xf32>
    %397 = vector.extract_strided_slice %389 {offsets = [0, 0], sizes = [4, 32], strides = [1, 1]} : vector<4x128xf32> to vector<4x32xf32>
    %398 = arith.negf %397 : vector<4x32xf32>
    %399 = math.exp %398 : vector<4x32xf32>
    %cst_190 = arith.constant 1.000000e+00 : f32
    %400 = vector.broadcast %cst_190 : f32 to vector<4x32xf32>
    %401 = arith.addf %400, %399 : vector<4x32xf32>
    %402 = arith.divf %400, %401 : vector<4x32xf32>
    %403 = vector.extract_strided_slice %389 {offsets = [0, 32], sizes = [4, 32], strides = [1, 1]} : vector<4x128xf32> to vector<4x32xf32>
    %404 = arith.negf %403 : vector<4x32xf32>
    %405 = math.exp %404 : vector<4x32xf32>
    %cst_191 = arith.constant 1.000000e+00 : f32
    %406 = vector.broadcast %cst_191 : f32 to vector<4x32xf32>
    %407 = arith.addf %406, %405 : vector<4x32xf32>
    %408 = arith.divf %406, %407 : vector<4x32xf32>
    %409 = vector.extract_strided_slice %389 {offsets = [0, 64], sizes = [4, 32], strides = [1, 1]} : vector<4x128xf32> to vector<4x32xf32>
    %410 = math.tanh %409 : vector<4x32xf32>
    %411 = vector.extract_strided_slice %389 {offsets = [0, 96], sizes = [4, 32], strides = [1, 1]} : vector<4x128xf32> to vector<4x32xf32>
    %412 = arith.negf %411 : vector<4x32xf32>
    %413 = math.exp %412 : vector<4x32xf32>
    %cst_192 = arith.constant 1.000000e+00 : f32
    %414 = vector.broadcast %cst_192 : f32 to vector<4x32xf32>
    %415 = arith.addf %414, %413 : vector<4x32xf32>
    %416 = arith.divf %414, %415 : vector<4x32xf32>
    %417 = arith.mulf %408, %396 : vector<4x32xf32>
    %418 = arith.mulf %402, %410 : vector<4x32xf32>
    %419 = arith.addf %417, %418 : vector<4x32xf32>
    %420 = math.tanh %419 : vector<4x32xf32>
    %421 = arith.mulf %416, %420 : vector<4x32xf32>
    %c0_193 = arith.constant 0 : index
    %c32_194 = arith.constant 32 : index
    %422 = vector.load %arg15[%c0_193, %c32_194] : memref<4x64xf32, #tpu.memory_space<vmem>>, vector<4x32xf32>
    %423 = vector.extract_strided_slice %395 {offsets = [0, 0], sizes = [4, 32], strides = [1, 1]} : vector<4x128xf32> to vector<4x32xf32>
    %424 = arith.negf %423 : vector<4x32xf32>
    %425 = math.exp %424 : vector<4x32xf32>
    %cst_195 = arith.constant 1.000000e+00 : f32
    %426 = vector.broadcast %cst_195 : f32 to vector<4x32xf32>
    %427 = arith.addf %426, %425 : vector<4x32xf32>
    %428 = arith.divf %426, %427 : vector<4x32xf32>
    %429 = vector.extract_strided_slice %395 {offsets = [0, 32], sizes = [4, 32], strides = [1, 1]} : vector<4x128xf32> to vector<4x32xf32>
    %430 = arith.negf %429 : vector<4x32xf32>
    %431 = math.exp %430 : vector<4x32xf32>
    %cst_196 = arith.constant 1.000000e+00 : f32
    %432 = vector.broadcast %cst_196 : f32 to vector<4x32xf32>
    %433 = arith.addf %432, %431 : vector<4x32xf32>
    %434 = arith.divf %432, %433 : vector<4x32xf32>
    %435 = vector.extract_strided_slice %395 {offsets = [0, 64], sizes = [4, 32], strides = [1, 1]} : vector<4x128xf32> to vector<4x32xf32>
    %436 = math.tanh %435 : vector<4x32xf32>
    %437 = vector.extract_strided_slice %395 {offsets = [0, 96], sizes = [4, 32], strides = [1, 1]} : vector<4x128xf32> to vector<4x32xf32>
    %438 = arith.negf %437 : vector<4x32xf32>
    %439 = math.exp %438 : vector<4x32xf32>
    %cst_197 = arith.constant 1.000000e+00 : f32
    %440 = vector.broadcast %cst_197 : f32 to vector<4x32xf32>
    %441 = arith.addf %440, %439 : vector<4x32xf32>
    %442 = arith.divf %440, %441 : vector<4x32xf32>
    %443 = arith.mulf %434, %422 : vector<4x32xf32>
    %444 = arith.mulf %428, %436 : vector<4x32xf32>
    %445 = arith.addf %443, %444 : vector<4x32xf32>
    %446 = math.tanh %445 : vector<4x32xf32>
    %447 = arith.mulf %442, %446 : vector<4x32xf32>
    %c0_198 = arith.constant 0 : index
    %c0_199 = arith.constant 0 : index
    %448 = vector.load %arg14[%c0_198, %c0_199] : memref<4x64xf32, #tpu.memory_space<vmem>>, vector<4x32xf32>
    tpu.vector_store %arg14[%c0_198, %c0_199], %421 {strides = array<i32>} : memref<4x64xf32, #tpu.memory_space<vmem>>, vector<4x32xf32>,
    %c0_200 = arith.constant 0 : index
    %c32_201 = arith.constant 32 : index
    %449 = vector.load %arg14[%c0_200, %c32_201] : memref<4x64xf32, #tpu.memory_space<vmem>>, vector<4x32xf32>
    tpu.vector_store %arg14[%c0_200, %c32_201], %447 {strides = array<i32>} : memref<4x64xf32, #tpu.memory_space<vmem>>, vector<4x32xf32>,
    %c0_202 = arith.constant 0 : index
    %c0_203 = arith.constant 0 : index
    %450 = vector.load %arg15[%c0_202, %c0_203] : memref<4x64xf32, #tpu.memory_space<vmem>>, vector<4x32xf32>
    tpu.vector_store %arg15[%c0_202, %c0_203], %419 {strides = array<i32>} : memref<4x64xf32, #tpu.memory_space<vmem>>, vector<4x32xf32>,
    %c0_204 = arith.constant 0 : index
    %c32_205 = arith.constant 32 : index
    %451 = vector.load %arg15[%c0_204, %c32_205] : memref<4x64xf32, #tpu.memory_space<vmem>>, vector<4x32xf32>
    tpu.vector_store %arg15[%c0_204, %c32_205], %445 {strides = array<i32>} : memref<4x64xf32, #tpu.memory_space<vmem>>, vector<4x32xf32>,
    %452 = arith.index_cast %c4_i32 : i32 to index
    %c0_206 = arith.constant 0 : index
    %c0_207 = arith.constant 0 : index
    %453 = vector.load %arg13[%452, %c0_206, %c0_207] : memref<8x4x64xf32, #tpu.memory_space<vmem>>, vector<1x4x32xf32>
    %454 = vector.shape_cast %453 : vector<1x4x32xf32> to vector<4x32xf32>
    %455 = vector.shape_cast %421 : vector<4x32xf32> to vector<1x4x32xf32>
    tpu.vector_store %arg13[%452, %c0_206, %c0_207], %455 {strides = array<i32>} : memref<8x4x64xf32, #tpu.memory_space<vmem>>, vector<1x4x32xf32>,
    %c7_i32_208 = arith.constant 7 : i32
    %456 = arith.subi %c7_i32_208, %c4_i32 : i32
    %457 = arith.index_cast %456 : i32 to index
    %c0_209 = arith.constant 0 : index
    %c32_210 = arith.constant 32 : index
    %458 = vector.load %arg13[%457, %c0_209, %c32_210] : memref<8x4x64xf32, #tpu.memory_space<vmem>>, vector<1x4x32xf32>
    %459 = vector.shape_cast %458 : vector<1x4x32xf32> to vector<4x32xf32>
    %460 = vector.shape_cast %447 : vector<4x32xf32> to vector<1x4x32xf32>
    tpu.vector_store %arg13[%457, %c0_209, %c32_210], %460 {strides = array<i32>} : memref<8x4x64xf32, #tpu.memory_space<vmem>>, vector<1x4x32xf32>,
    %c5_i32 = arith.constant 5 : i32
    %c0_211 = arith.constant 0 : index
    %c0_212 = arith.constant 0 : index
    %461 = vector.load %arg14[%c0_211, %c0_212] : memref<4x64xf32, #tpu.memory_space<vmem>>, vector<4x64xf32>
    %cst_213 = arith.constant dense<0.000000e+00> : vector<4x256xf32>
    %462 = tpu.matmul %461, %66, %cst_213 {dimension_numbers = #tpu.dot_dimension_numbers<[1], [0], [0], [1], [0, 0, 1, 1], [], []>} : vector<4x64xf32>, vector<64x256xf32>, vector<4x256xf32> -> vector<4x256xf32>
    %463 = arith.index_cast %c5_i32 : i32 to index
    %c0_214 = arith.constant 0 : index
    %c0_215 = arith.constant 0 : index
    %464 = vector.load %arg12[%463, %c0_214, %c0_215] : memref<8x4x256xf32, #tpu.memory_space<vmem>>, vector<1x4x128xf32>
    %465 = vector.shape_cast %464 : vector<1x4x128xf32> to vector<4x128xf32>
    %466 = vector.extract_strided_slice %462 {offsets = [0, 0], sizes = [4, 128], strides = [1, 1]} : vector<4x256xf32> to vector<4x128xf32>
    %467 = arith.addf %465, %466 : vector<4x128xf32>
    %c7_i32_216 = arith.constant 7 : i32
    %468 = arith.subi %c7_i32_216, %c5_i32 : i32
    %469 = arith.index_cast %468 : i32 to index
    %c0_217 = arith.constant 0 : index
    %c128_218 = arith.constant 128 : index
    %470 = vector.load %arg12[%469, %c0_217, %c128_218] : memref<8x4x256xf32, #tpu.memory_space<vmem>>, vector<1x4x128xf32>
    %471 = vector.shape_cast %470 : vector<1x4x128xf32> to vector<4x128xf32>
    %472 = vector.extract_strided_slice %462 {offsets = [0, 128], sizes = [4, 128], strides = [1, 1]} : vector<4x256xf32> to vector<4x128xf32>
    %473 = arith.addf %471, %472 : vector<4x128xf32>
    %c0_219 = arith.constant 0 : index
    %c0_220 = arith.constant 0 : index
    %474 = vector.load %arg15[%c0_219, %c0_220] : memref<4x64xf32, #tpu.memory_space<vmem>>, vector<4x32xf32>
    %475 = vector.extract_strided_slice %467 {offsets = [0, 0], sizes = [4, 32], strides = [1, 1]} : vector<4x128xf32> to vector<4x32xf32>
    %476 = arith.negf %475 : vector<4x32xf32>
    %477 = math.exp %476 : vector<4x32xf32>
    %cst_221 = arith.constant 1.000000e+00 : f32
    %478 = vector.broadcast %cst_221 : f32 to vector<4x32xf32>
    %479 = arith.addf %478, %477 : vector<4x32xf32>
    %480 = arith.divf %478, %479 : vector<4x32xf32>
    %481 = vector.extract_strided_slice %467 {offsets = [0, 32], sizes = [4, 32], strides = [1, 1]} : vector<4x128xf32> to vector<4x32xf32>
    %482 = arith.negf %481 : vector<4x32xf32>
    %483 = math.exp %482 : vector<4x32xf32>
    %cst_222 = arith.constant 1.000000e+00 : f32
    %484 = vector.broadcast %cst_222 : f32 to vector<4x32xf32>
    %485 = arith.addf %484, %483 : vector<4x32xf32>
    %486 = arith.divf %484, %485 : vector<4x32xf32>
    %487 = vector.extract_strided_slice %467 {offsets = [0, 64], sizes = [4, 32], strides = [1, 1]} : vector<4x128xf32> to vector<4x32xf32>
    %488 = math.tanh %487 : vector<4x32xf32>
    %489 = vector.extract_strided_slice %467 {offsets = [0, 96], sizes = [4, 32], strides = [1, 1]} : vector<4x128xf32> to vector<4x32xf32>
    %490 = arith.negf %489 : vector<4x32xf32>
    %491 = math.exp %490 : vector<4x32xf32>
    %cst_223 = arith.constant 1.000000e+00 : f32
    %492 = vector.broadcast %cst_223 : f32 to vector<4x32xf32>
    %493 = arith.addf %492, %491 : vector<4x32xf32>
    %494 = arith.divf %492, %493 : vector<4x32xf32>
    %495 = arith.mulf %486, %474 : vector<4x32xf32>
    %496 = arith.mulf %480, %488 : vector<4x32xf32>
    %497 = arith.addf %495, %496 : vector<4x32xf32>
    %498 = math.tanh %497 : vector<4x32xf32>
    %499 = arith.mulf %494, %498 : vector<4x32xf32>
    %c0_224 = arith.constant 0 : index
    %c32_225 = arith.constant 32 : index
    %500 = vector.load %arg15[%c0_224, %c32_225] : memref<4x64xf32, #tpu.memory_space<vmem>>, vector<4x32xf32>
    %501 = vector.extract_strided_slice %473 {offsets = [0, 0], sizes = [4, 32], strides = [1, 1]} : vector<4x128xf32> to vector<4x32xf32>
    %502 = arith.negf %501 : vector<4x32xf32>
    %503 = math.exp %502 : vector<4x32xf32>
    %cst_226 = arith.constant 1.000000e+00 : f32
    %504 = vector.broadcast %cst_226 : f32 to vector<4x32xf32>
    %505 = arith.addf %504, %503 : vector<4x32xf32>
    %506 = arith.divf %504, %505 : vector<4x32xf32>
    %507 = vector.extract_strided_slice %473 {offsets = [0, 32], sizes = [4, 32], strides = [1, 1]} : vector<4x128xf32> to vector<4x32xf32>
    %508 = arith.negf %507 : vector<4x32xf32>
    %509 = math.exp %508 : vector<4x32xf32>
    %cst_227 = arith.constant 1.000000e+00 : f32
    %510 = vector.broadcast %cst_227 : f32 to vector<4x32xf32>
    %511 = arith.addf %510, %509 : vector<4x32xf32>
    %512 = arith.divf %510, %511 : vector<4x32xf32>
    %513 = vector.extract_strided_slice %473 {offsets = [0, 64], sizes = [4, 32], strides = [1, 1]} : vector<4x128xf32> to vector<4x32xf32>
    %514 = math.tanh %513 : vector<4x32xf32>
    %515 = vector.extract_strided_slice %473 {offsets = [0, 96], sizes = [4, 32], strides = [1, 1]} : vector<4x128xf32> to vector<4x32xf32>
    %516 = arith.negf %515 : vector<4x32xf32>
    %517 = math.exp %516 : vector<4x32xf32>
    %cst_228 = arith.constant 1.000000e+00 : f32
    %518 = vector.broadcast %cst_228 : f32 to vector<4x32xf32>
    %519 = arith.addf %518, %517 : vector<4x32xf32>
    %520 = arith.divf %518, %519 : vector<4x32xf32>
    %521 = arith.mulf %512, %500 : vector<4x32xf32>
    %522 = arith.mulf %506, %514 : vector<4x32xf32>
    %523 = arith.addf %521, %522 : vector<4x32xf32>
    %524 = math.tanh %523 : vector<4x32xf32>
    %525 = arith.mulf %520, %524 : vector<4x32xf32>
    %c0_229 = arith.constant 0 : index
    %c0_230 = arith.constant 0 : index
    %526 = vector.load %arg14[%c0_229, %c0_230] : memref<4x64xf32, #tpu.memory_space<vmem>>, vector<4x32xf32>
    tpu.vector_store %arg14[%c0_229, %c0_230], %499 {strides = array<i32>} : memref<4x64xf32, #tpu.memory_space<vmem>>, vector<4x32xf32>,
    %c0_231 = arith.constant 0 : index
    %c32_232 = arith.constant 32 : index
    %527 = vector.load %arg14[%c0_231, %c32_232] : memref<4x64xf32, #tpu.memory_space<vmem>>, vector<4x32xf32>
    tpu.vector_store %arg14[%c0_231, %c32_232], %525 {strides = array<i32>} : memref<4x64xf32, #tpu.memory_space<vmem>>, vector<4x32xf32>,
    %c0_233 = arith.constant 0 : index
    %c0_234 = arith.constant 0 : index
    %528 = vector.load %arg15[%c0_233, %c0_234] : memref<4x64xf32, #tpu.memory_space<vmem>>, vector<4x32xf32>
    tpu.vector_store %arg15[%c0_233, %c0_234], %497 {strides = array<i32>} : memref<4x64xf32, #tpu.memory_space<vmem>>, vector<4x32xf32>,
    %c0_235 = arith.constant 0 : index
    %c32_236 = arith.constant 32 : index
    %529 = vector.load %arg15[%c0_235, %c32_236] : memref<4x64xf32, #tpu.memory_space<vmem>>, vector<4x32xf32>
    tpu.vector_store %arg15[%c0_235, %c32_236], %523 {strides = array<i32>} : memref<4x64xf32, #tpu.memory_space<vmem>>, vector<4x32xf32>,
    %530 = arith.index_cast %c5_i32 : i32 to index
    %c0_237 = arith.constant 0 : index
    %c0_238 = arith.constant 0 : index
    %531 = vector.load %arg13[%530, %c0_237, %c0_238] : memref<8x4x64xf32, #tpu.memory_space<vmem>>, vector<1x4x32xf32>
    %532 = vector.shape_cast %531 : vector<1x4x32xf32> to vector<4x32xf32>
    %533 = vector.shape_cast %499 : vector<4x32xf32> to vector<1x4x32xf32>
    tpu.vector_store %arg13[%530, %c0_237, %c0_238], %533 {strides = array<i32>} : memref<8x4x64xf32, #tpu.memory_space<vmem>>, vector<1x4x32xf32>,
    %c7_i32_239 = arith.constant 7 : i32
    %534 = arith.subi %c7_i32_239, %c5_i32 : i32
    %535 = arith.index_cast %534 : i32 to index
    %c0_240 = arith.constant 0 : index
    %c32_241 = arith.constant 32 : index
    %536 = vector.load %arg13[%535, %c0_240, %c32_241] : memref<8x4x64xf32, #tpu.memory_space<vmem>>, vector<1x4x32xf32>
    %537 = vector.shape_cast %536 : vector<1x4x32xf32> to vector<4x32xf32>
    %538 = vector.shape_cast %525 : vector<4x32xf32> to vector<1x4x32xf32>
    tpu.vector_store %arg13[%535, %c0_240, %c32_241], %538 {strides = array<i32>} : memref<8x4x64xf32, #tpu.memory_space<vmem>>, vector<1x4x32xf32>,
    %c6_i32 = arith.constant 6 : i32
    %c0_242 = arith.constant 0 : index
    %c0_243 = arith.constant 0 : index
    %539 = vector.load %arg14[%c0_242, %c0_243] : memref<4x64xf32, #tpu.memory_space<vmem>>, vector<4x64xf32>
    %cst_244 = arith.constant dense<0.000000e+00> : vector<4x256xf32>
    %540 = tpu.matmul %539, %66, %cst_244 {dimension_numbers = #tpu.dot_dimension_numbers<[1], [0], [0], [1], [0, 0, 1, 1], [], []>} : vector<4x64xf32>, vector<64x256xf32>, vector<4x256xf32> -> vector<4x256xf32>
    %541 = arith.index_cast %c6_i32 : i32 to index
    %c0_245 = arith.constant 0 : index
    %c0_246 = arith.constant 0 : index
    %542 = vector.load %arg12[%541, %c0_245, %c0_246] : memref<8x4x256xf32, #tpu.memory_space<vmem>>, vector<1x4x128xf32>
    %543 = vector.shape_cast %542 : vector<1x4x128xf32> to vector<4x128xf32>
    %544 = vector.extract_strided_slice %540 {offsets = [0, 0], sizes = [4, 128], strides = [1, 1]} : vector<4x256xf32> to vector<4x128xf32>
    %545 = arith.addf %543, %544 : vector<4x128xf32>
    %c7_i32_247 = arith.constant 7 : i32
    %546 = arith.subi %c7_i32_247, %c6_i32 : i32
    %547 = arith.index_cast %546 : i32 to index
    %c0_248 = arith.constant 0 : index
    %c128_249 = arith.constant 128 : index
    %548 = vector.load %arg12[%547, %c0_248, %c128_249] : memref<8x4x256xf32, #tpu.memory_space<vmem>>, vector<1x4x128xf32>
    %549 = vector.shape_cast %548 : vector<1x4x128xf32> to vector<4x128xf32>
    %550 = vector.extract_strided_slice %540 {offsets = [0, 128], sizes = [4, 128], strides = [1, 1]} : vector<4x256xf32> to vector<4x128xf32>
    %551 = arith.addf %549, %550 : vector<4x128xf32>
    %c0_250 = arith.constant 0 : index
    %c0_251 = arith.constant 0 : index
    %552 = vector.load %arg15[%c0_250, %c0_251] : memref<4x64xf32, #tpu.memory_space<vmem>>, vector<4x32xf32>
    %553 = vector.extract_strided_slice %545 {offsets = [0, 0], sizes = [4, 32], strides = [1, 1]} : vector<4x128xf32> to vector<4x32xf32>
    %554 = arith.negf %553 : vector<4x32xf32>
    %555 = math.exp %554 : vector<4x32xf32>
    %cst_252 = arith.constant 1.000000e+00 : f32
    %556 = vector.broadcast %cst_252 : f32 to vector<4x32xf32>
    %557 = arith.addf %556, %555 : vector<4x32xf32>
    %558 = arith.divf %556, %557 : vector<4x32xf32>
    %559 = vector.extract_strided_slice %545 {offsets = [0, 32], sizes = [4, 32], strides = [1, 1]} : vector<4x128xf32> to vector<4x32xf32>
    %560 = arith.negf %559 : vector<4x32xf32>
    %561 = math.exp %560 : vector<4x32xf32>
    %cst_253 = arith.constant 1.000000e+00 : f32
    %562 = vector.broadcast %cst_253 : f32 to vector<4x32xf32>
    %563 = arith.addf %562, %561 : vector<4x32xf32>
    %564 = arith.divf %562, %563 : vector<4x32xf32>
    %565 = vector.extract_strided_slice %545 {offsets = [0, 64], sizes = [4, 32], strides = [1, 1]} : vector<4x128xf32> to vector<4x32xf32>
    %566 = math.tanh %565 : vector<4x32xf32>
    %567 = vector.extract_strided_slice %545 {offsets = [0, 96], sizes = [4, 32], strides = [1, 1]} : vector<4x128xf32> to vector<4x32xf32>
    %568 = arith.negf %567 : vector<4x32xf32>
    %569 = math.exp %568 : vector<4x32xf32>
    %cst_254 = arith.constant 1.000000e+00 : f32
    %570 = vector.broadcast %cst_254 : f32 to vector<4x32xf32>
    %571 = arith.addf %570, %569 : vector<4x32xf32>
    %572 = arith.divf %570, %571 : vector<4x32xf32>
    %573 = arith.mulf %564, %552 : vector<4x32xf32>
    %574 = arith.mulf %558, %566 : vector<4x32xf32>
    %575 = arith.addf %573, %574 : vector<4x32xf32>
    %576 = math.tanh %575 : vector<4x32xf32>
    %577 = arith.mulf %572, %576 : vector<4x32xf32>
    %c0_255 = arith.constant 0 : index
    %c32_256 = arith.constant 32 : index
    %578 = vector.load %arg15[%c0_255, %c32_256] : memref<4x64xf32, #tpu.memory_space<vmem>>, vector<4x32xf32>
    %579 = vector.extract_strided_slice %551 {offsets = [0, 0], sizes = [4, 32], strides = [1, 1]} : vector<4x128xf32> to vector<4x32xf32>
    %580 = arith.negf %579 : vector<4x32xf32>
    %581 = math.exp %580 : vector<4x32xf32>
    %cst_257 = arith.constant 1.000000e+00 : f32
    %582 = vector.broadcast %cst_257 : f32 to vector<4x32xf32>
    %583 = arith.addf %582, %581 : vector<4x32xf32>
    %584 = arith.divf %582, %583 : vector<4x32xf32>
    %585 = vector.extract_strided_slice %551 {offsets = [0, 32], sizes = [4, 32], strides = [1, 1]} : vector<4x128xf32> to vector<4x32xf32>
    %586 = arith.negf %585 : vector<4x32xf32>
    %587 = math.exp %586 : vector<4x32xf32>
    %cst_258 = arith.constant 1.000000e+00 : f32
    %588 = vector.broadcast %cst_258 : f32 to vector<4x32xf32>
    %589 = arith.addf %588, %587 : vector<4x32xf32>
    %590 = arith.divf %588, %589 : vector<4x32xf32>
    %591 = vector.extract_strided_slice %551 {offsets = [0, 64], sizes = [4, 32], strides = [1, 1]} : vector<4x128xf32> to vector<4x32xf32>
    %592 = math.tanh %591 : vector<4x32xf32>
    %593 = vector.extract_strided_slice %551 {offsets = [0, 96], sizes = [4, 32], strides = [1, 1]} : vector<4x128xf32> to vector<4x32xf32>
    %594 = arith.negf %593 : vector<4x32xf32>
    %595 = math.exp %594 : vector<4x32xf32>
    %cst_259 = arith.constant 1.000000e+00 : f32
    %596 = vector.broadcast %cst_259 : f32 to vector<4x32xf32>
    %597 = arith.addf %596, %595 : vector<4x32xf32>
    %598 = arith.divf %596, %597 : vector<4x32xf32>
    %599 = arith.mulf %590, %578 : vector<4x32xf32>
    %600 = arith.mulf %584, %592 : vector<4x32xf32>
    %601 = arith.addf %599, %600 : vector<4x32xf32>
    %602 = math.tanh %601 : vector<4x32xf32>
    %603 = arith.mulf %598, %602 : vector<4x32xf32>
    %c0_260 = arith.constant 0 : index
    %c0_261 = arith.constant 0 : index
    %604 = vector.load %arg14[%c0_260, %c0_261] : memref<4x64xf32, #tpu.memory_space<vmem>>, vector<4x32xf32>
    tpu.vector_store %arg14[%c0_260, %c0_261], %577 {strides = array<i32>} : memref<4x64xf32, #tpu.memory_space<vmem>>, vector<4x32xf32>,
    %c0_262 = arith.constant 0 : index
    %c32_263 = arith.constant 32 : index
    %605 = vector.load %arg14[%c0_262, %c32_263] : memref<4x64xf32, #tpu.memory_space<vmem>>, vector<4x32xf32>
    tpu.vector_store %arg14[%c0_262, %c32_263], %603 {strides = array<i32>} : memref<4x64xf32, #tpu.memory_space<vmem>>, vector<4x32xf32>,
    %c0_264 = arith.constant 0 : index
    %c0_265 = arith.constant 0 : index
    %606 = vector.load %arg15[%c0_264, %c0_265] : memref<4x64xf32, #tpu.memory_space<vmem>>, vector<4x32xf32>
    tpu.vector_store %arg15[%c0_264, %c0_265], %575 {strides = array<i32>} : memref<4x64xf32, #tpu.memory_space<vmem>>, vector<4x32xf32>,
    %c0_266 = arith.constant 0 : index
    %c32_267 = arith.constant 32 : index
    %607 = vector.load %arg15[%c0_266, %c32_267] : memref<4x64xf32, #tpu.memory_space<vmem>>, vector<4x32xf32>
    tpu.vector_store %arg15[%c0_266, %c32_267], %601 {strides = array<i32>} : memref<4x64xf32, #tpu.memory_space<vmem>>, vector<4x32xf32>,
    %608 = arith.index_cast %c6_i32 : i32 to index
    %c0_268 = arith.constant 0 : index
    %c0_269 = arith.constant 0 : index
    %609 = vector.load %arg13[%608, %c0_268, %c0_269] : memref<8x4x64xf32, #tpu.memory_space<vmem>>, vector<1x4x32xf32>
    %610 = vector.shape_cast %609 : vector<1x4x32xf32> to vector<4x32xf32>
    %611 = vector.shape_cast %577 : vector<4x32xf32> to vector<1x4x32xf32>
    tpu.vector_store %arg13[%608, %c0_268, %c0_269], %611 {strides = array<i32>} : memref<8x4x64xf32, #tpu.memory_space<vmem>>, vector<1x4x32xf32>,
    %c7_i32_270 = arith.constant 7 : i32
    %612 = arith.subi %c7_i32_270, %c6_i32 : i32
    %613 = arith.index_cast %612 : i32 to index
    %c0_271 = arith.constant 0 : index
    %c32_272 = arith.constant 32 : index
    %614 = vector.load %arg13[%613, %c0_271, %c32_272] : memref<8x4x64xf32, #tpu.memory_space<vmem>>, vector<1x4x32xf32>
    %615 = vector.shape_cast %614 : vector<1x4x32xf32> to vector<4x32xf32>
    %616 = vector.shape_cast %603 : vector<4x32xf32> to vector<1x4x32xf32>
    tpu.vector_store %arg13[%613, %c0_271, %c32_272], %616 {strides = array<i32>} : memref<8x4x64xf32, #tpu.memory_space<vmem>>, vector<1x4x32xf32>,
    %c7_i32_273 = arith.constant 7 : i32
    %c0_274 = arith.constant 0 : index
    %c0_275 = arith.constant 0 : index
    %617 = vector.load %arg14[%c0_274, %c0_275] : memref<4x64xf32, #tpu.memory_space<vmem>>, vector<4x64xf32>
    %cst_276 = arith.constant dense<0.000000e+00> : vector<4x256xf32>
    %618 = tpu.matmul %617, %66, %cst_276 {dimension_numbers = #tpu.dot_dimension_numbers<[1], [0], [0], [1], [0, 0, 1, 1], [], []>} : vector<4x64xf32>, vector<64x256xf32>, vector<4x256xf32> -> vector<4x256xf32>
    %619 = arith.index_cast %c7_i32_273 : i32 to index
    %c0_277 = arith.constant 0 : index
    %c0_278 = arith.constant 0 : index
    %620 = vector.load %arg12[%619, %c0_277, %c0_278] : memref<8x4x256xf32, #tpu.memory_space<vmem>>, vector<1x4x128xf32>
    %621 = vector.shape_cast %620 : vector<1x4x128xf32> to vector<4x128xf32>
    %622 = vector.extract_strided_slice %618 {offsets = [0, 0], sizes = [4, 128], strides = [1, 1]} : vector<4x256xf32> to vector<4x128xf32>
    %623 = arith.addf %621, %622 : vector<4x128xf32>
    %c7_i32_279 = arith.constant 7 : i32
    %624 = arith.subi %c7_i32_279, %c7_i32_273 : i32
    %625 = arith.index_cast %624 : i32 to index
    %c0_280 = arith.constant 0 : index
    %c128_281 = arith.constant 128 : index
    %626 = vector.load %arg12[%625, %c0_280, %c128_281] : memref<8x4x256xf32, #tpu.memory_space<vmem>>, vector<1x4x128xf32>
    %627 = vector.shape_cast %626 : vector<1x4x128xf32> to vector<4x128xf32>
    %628 = vector.extract_strided_slice %618 {offsets = [0, 128], sizes = [4, 128], strides = [1, 1]} : vector<4x256xf32> to vector<4x128xf32>
    %629 = arith.addf %627, %628 : vector<4x128xf32>
    %c0_282 = arith.constant 0 : index
    %c0_283 = arith.constant 0 : index
    %630 = vector.load %arg15[%c0_282, %c0_283] : memref<4x64xf32, #tpu.memory_space<vmem>>, vector<4x32xf32>
    %631 = vector.extract_strided_slice %623 {offsets = [0, 0], sizes = [4, 32], strides = [1, 1]} : vector<4x128xf32> to vector<4x32xf32>
    %632 = arith.negf %631 : vector<4x32xf32>
    %633 = math.exp %632 : vector<4x32xf32>
    %cst_284 = arith.constant 1.000000e+00 : f32
    %634 = vector.broadcast %cst_284 : f32 to vector<4x32xf32>
    %635 = arith.addf %634, %633 : vector<4x32xf32>
    %636 = arith.divf %634, %635 : vector<4x32xf32>
    %637 = vector.extract_strided_slice %623 {offsets = [0, 32], sizes = [4, 32], strides = [1, 1]} : vector<4x128xf32> to vector<4x32xf32>
    %638 = arith.negf %637 : vector<4x32xf32>
    %639 = math.exp %638 : vector<4x32xf32>
    %cst_285 = arith.constant 1.000000e+00 : f32
    %640 = vector.broadcast %cst_285 : f32 to vector<4x32xf32>
    %641 = arith.addf %640, %639 : vector<4x32xf32>
    %642 = arith.divf %640, %641 : vector<4x32xf32>
    %643 = vector.extract_strided_slice %623 {offsets = [0, 64], sizes = [4, 32], strides = [1, 1]} : vector<4x128xf32> to vector<4x32xf32>
    %644 = math.tanh %643 : vector<4x32xf32>
    %645 = vector.extract_strided_slice %623 {offsets = [0, 96], sizes = [4, 32], strides = [1, 1]} : vector<4x128xf32> to vector<4x32xf32>
    %646 = arith.negf %645 : vector<4x32xf32>
    %647 = math.exp %646 : vector<4x32xf32>
    %cst_286 = arith.constant 1.000000e+00 : f32
    %648 = vector.broadcast %cst_286 : f32 to vector<4x32xf32>
    %649 = arith.addf %648, %647 : vector<4x32xf32>
    %650 = arith.divf %648, %649 : vector<4x32xf32>
    %651 = arith.mulf %642, %630 : vector<4x32xf32>
    %652 = arith.mulf %636, %644 : vector<4x32xf32>
    %653 = arith.addf %651, %652 : vector<4x32xf32>
    %654 = math.tanh %653 : vector<4x32xf32>
    %655 = arith.mulf %650, %654 : vector<4x32xf32>
    %c0_287 = arith.constant 0 : index
    %c32_288 = arith.constant 32 : index
    %656 = vector.load %arg15[%c0_287, %c32_288] : memref<4x64xf32, #tpu.memory_space<vmem>>, vector<4x32xf32>
    %657 = vector.extract_strided_slice %629 {offsets = [0, 0], sizes = [4, 32], strides = [1, 1]} : vector<4x128xf32> to vector<4x32xf32>
    %658 = arith.negf %657 : vector<4x32xf32>
    %659 = math.exp %658 : vector<4x32xf32>
    %cst_289 = arith.constant 1.000000e+00 : f32
    %660 = vector.broadcast %cst_289 : f32 to vector<4x32xf32>
    %661 = arith.addf %660, %659 : vector<4x32xf32>
    %662 = arith.divf %660, %661 : vector<4x32xf32>
    %663 = vector.extract_strided_slice %629 {offsets = [0, 32], sizes = [4, 32], strides = [1, 1]} : vector<4x128xf32> to vector<4x32xf32>
    %664 = arith.negf %663 : vector<4x32xf32>
    %665 = math.exp %664 : vector<4x32xf32>
    %cst_290 = arith.constant 1.000000e+00 : f32
    %666 = vector.broadcast %cst_290 : f32 to vector<4x32xf32>
    %667 = arith.addf %666, %665 : vector<4x32xf32>
    %668 = arith.divf %666, %667 : vector<4x32xf32>
    %669 = vector.extract_strided_slice %629 {offsets = [0, 64], sizes = [4, 32], strides = [1, 1]} : vector<4x128xf32> to vector<4x32xf32>
    %670 = math.tanh %669 : vector<4x32xf32>
    %671 = vector.extract_strided_slice %629 {offsets = [0, 96], sizes = [4, 32], strides = [1, 1]} : vector<4x128xf32> to vector<4x32xf32>
    %672 = arith.negf %671 : vector<4x32xf32>
    %673 = math.exp %672 : vector<4x32xf32>
    %cst_291 = arith.constant 1.000000e+00 : f32
    %674 = vector.broadcast %cst_291 : f32 to vector<4x32xf32>
    %675 = arith.addf %674, %673 : vector<4x32xf32>
    %676 = arith.divf %674, %675 : vector<4x32xf32>
    %677 = arith.mulf %668, %656 : vector<4x32xf32>
    %678 = arith.mulf %662, %670 : vector<4x32xf32>
    %679 = arith.addf %677, %678 : vector<4x32xf32>
    %680 = math.tanh %679 : vector<4x32xf32>
    %681 = arith.mulf %676, %680 : vector<4x32xf32>
    %c0_292 = arith.constant 0 : index
    %c0_293 = arith.constant 0 : index
    %682 = vector.load %arg14[%c0_292, %c0_293] : memref<4x64xf32, #tpu.memory_space<vmem>>, vector<4x32xf32>
    tpu.vector_store %arg14[%c0_292, %c0_293], %655 {strides = array<i32>} : memref<4x64xf32, #tpu.memory_space<vmem>>, vector<4x32xf32>,
    %c0_294 = arith.constant 0 : index
    %c32_295 = arith.constant 32 : index
    %683 = vector.load %arg14[%c0_294, %c32_295] : memref<4x64xf32, #tpu.memory_space<vmem>>, vector<4x32xf32>
    tpu.vector_store %arg14[%c0_294, %c32_295], %681 {strides = array<i32>} : memref<4x64xf32, #tpu.memory_space<vmem>>, vector<4x32xf32>,
    %c0_296 = arith.constant 0 : index
    %c0_297 = arith.constant 0 : index
    %684 = vector.load %arg15[%c0_296, %c0_297] : memref<4x64xf32, #tpu.memory_space<vmem>>, vector<4x32xf32>
    tpu.vector_store %arg15[%c0_296, %c0_297], %653 {strides = array<i32>} : memref<4x64xf32, #tpu.memory_space<vmem>>, vector<4x32xf32>,
    %c0_298 = arith.constant 0 : index
    %c32_299 = arith.constant 32 : index
    %685 = vector.load %arg15[%c0_298, %c32_299] : memref<4x64xf32, #tpu.memory_space<vmem>>, vector<4x32xf32>
    tpu.vector_store %arg15[%c0_298, %c32_299], %679 {strides = array<i32>} : memref<4x64xf32, #tpu.memory_space<vmem>>, vector<4x32xf32>,
    %686 = arith.index_cast %c7_i32_273 : i32 to index
    %c0_300 = arith.constant 0 : index
    %c0_301 = arith.constant 0 : index
    %687 = vector.load %arg13[%686, %c0_300, %c0_301] : memref<8x4x64xf32, #tpu.memory_space<vmem>>, vector<1x4x32xf32>
    %688 = vector.shape_cast %687 : vector<1x4x32xf32> to vector<4x32xf32>
    %689 = vector.shape_cast %655 : vector<4x32xf32> to vector<1x4x32xf32>
    tpu.vector_store %arg13[%686, %c0_300, %c0_301], %689 {strides = array<i32>} : memref<8x4x64xf32, #tpu.memory_space<vmem>>, vector<1x4x32xf32>,
    %c7_i32_302 = arith.constant 7 : i32
    %690 = arith.subi %c7_i32_302, %c7_i32_273 : i32
    %691 = arith.index_cast %690 : i32 to index
    %c0_303 = arith.constant 0 : index
    %c32_304 = arith.constant 32 : index
    %692 = vector.load %arg13[%691, %c0_303, %c32_304] : memref<8x4x64xf32, #tpu.memory_space<vmem>>, vector<1x4x32xf32>
    %693 = vector.shape_cast %692 : vector<1x4x32xf32> to vector<4x32xf32>
    %694 = vector.shape_cast %681 : vector<4x32xf32> to vector<1x4x32xf32>
    tpu.vector_store %arg13[%691, %c0_303, %c32_304], %694 {strides = array<i32>} : memref<8x4x64xf32, #tpu.memory_space<vmem>>, vector<1x4x32xf32>,
    %c8_i32 = arith.constant 8 : i32
    %c0_305 = arith.constant 0 : index
    %c0_306 = arith.constant 0 : index
    %695 = vector.load %arg4[%c0_305, %c0_306] : memref<64x256xf32, #tpu.memory_space<vmem>>, vector<64x256xf32>
    %c0_307 = arith.constant 0 : index
    %c0_308 = arith.constant 0 : index
    %696 = vector.load %arg6[%c0_307, %c0_308] : memref<1x256xf32, #tpu.memory_space<vmem>>, vector<1x256xf32>
    %c0_309 = arith.constant 0 : index
    %c0_310 = arith.constant 0 : index
    %c0_311 = arith.constant 0 : index
    %697 = vector.load %arg13[%c0_309, %c0_310, %c0_311] : memref<8x4x64xf32, #tpu.memory_space<vmem>>, vector<1x4x64xf32>
    %698 = vector.shape_cast %697 : vector<1x4x64xf32> to vector<4x64xf32>
    %cst_312 = arith.constant dense<0.000000e+00> : vector<4x256xf32>
    %699 = tpu.matmul %698, %695, %cst_312 {dimension_numbers = #tpu.dot_dimension_numbers<[1], [0], [0], [1], [0, 0, 1, 1], [], []>} : vector<4x64xf32>, vector<64x256xf32>, vector<4x256xf32> -> vector<4x256xf32>
    %700 = vector.broadcast %696 : vector<1x256xf32> to vector<4x256xf32>
    %701 = arith.addf %699, %700 : vector<4x256xf32>
    %c0_313 = arith.constant 0 : index
    %c0_314 = arith.constant 0 : index
    %c0_315 = arith.constant 0 : index
    %702 = vector.load %arg12[%c0_313, %c0_314, %c0_315] : memref<8x4x256xf32, #tpu.memory_space<vmem>>, vector<1x4x256xf32>
    %703 = vector.shape_cast %702 : vector<1x4x256xf32> to vector<4x256xf32>
    %704 = vector.shape_cast %701 : vector<4x256xf32> to vector<1x4x256xf32>
    tpu.vector_store %arg12[%c0_313, %c0_314, %c0_315], %704 {strides = array<i32>} : memref<8x4x256xf32, #tpu.memory_space<vmem>>, vector<1x4x256xf32>,
    %c1_316 = arith.constant 1 : index
    %c0_317 = arith.constant 0 : index
    %c0_318 = arith.constant 0 : index
    %705 = vector.load %arg13[%c1_316, %c0_317, %c0_318] : memref<8x4x64xf32, #tpu.memory_space<vmem>>, vector<1x4x64xf32>
    %706 = vector.shape_cast %705 : vector<1x4x64xf32> to vector<4x64xf32>
    %cst_319 = arith.constant dense<0.000000e+00> : vector<4x256xf32>
    %707 = tpu.matmul %706, %695, %cst_319 {dimension_numbers = #tpu.dot_dimension_numbers<[1], [0], [0], [1], [0, 0, 1, 1], [], []>} : vector<4x64xf32>, vector<64x256xf32>, vector<4x256xf32> -> vector<4x256xf32>
    %708 = vector.broadcast %696 : vector<1x256xf32> to vector<4x256xf32>
    %709 = arith.addf %707, %708 : vector<4x256xf32>
    %c1_320 = arith.constant 1 : index
    %c0_321 = arith.constant 0 : index
    %c0_322 = arith.constant 0 : index
    %710 = vector.load %arg12[%c1_320, %c0_321, %c0_322] : memref<8x4x256xf32, #tpu.memory_space<vmem>>, vector<1x4x256xf32>
    %711 = vector.shape_cast %710 : vector<1x4x256xf32> to vector<4x256xf32>
    %712 = vector.shape_cast %709 : vector<4x256xf32> to vector<1x4x256xf32>
    tpu.vector_store %arg12[%c1_320, %c0_321, %c0_322], %712 {strides = array<i32>} : memref<8x4x256xf32, #tpu.memory_space<vmem>>, vector<1x4x256xf32>,
    %c2_323 = arith.constant 2 : index
    %c0_324 = arith.constant 0 : index
    %c0_325 = arith.constant 0 : index
    %713 = vector.load %arg13[%c2_323, %c0_324, %c0_325] : memref<8x4x64xf32, #tpu.memory_space<vmem>>, vector<1x4x64xf32>
    %714 = vector.shape_cast %713 : vector<1x4x64xf32> to vector<4x64xf32>
    %cst_326 = arith.constant dense<0.000000e+00> : vector<4x256xf32>
    %715 = tpu.matmul %714, %695, %cst_326 {dimension_numbers = #tpu.dot_dimension_numbers<[1], [0], [0], [1], [0, 0, 1, 1], [], []>} : vector<4x64xf32>, vector<64x256xf32>, vector<4x256xf32> -> vector<4x256xf32>
    %716 = vector.broadcast %696 : vector<1x256xf32> to vector<4x256xf32>
    %717 = arith.addf %715, %716 : vector<4x256xf32>
    %c2_327 = arith.constant 2 : index
    %c0_328 = arith.constant 0 : index
    %c0_329 = arith.constant 0 : index
    %718 = vector.load %arg12[%c2_327, %c0_328, %c0_329] : memref<8x4x256xf32, #tpu.memory_space<vmem>>, vector<1x4x256xf32>
    %719 = vector.shape_cast %718 : vector<1x4x256xf32> to vector<4x256xf32>
    %720 = vector.shape_cast %717 : vector<4x256xf32> to vector<1x4x256xf32>
    tpu.vector_store %arg12[%c2_327, %c0_328, %c0_329], %720 {strides = array<i32>} : memref<8x4x256xf32, #tpu.memory_space<vmem>>, vector<1x4x256xf32>,
    %c3_330 = arith.constant 3 : index
    %c0_331 = arith.constant 0 : index
    %c0_332 = arith.constant 0 : index
    %721 = vector.load %arg13[%c3_330, %c0_331, %c0_332] : memref<8x4x64xf32, #tpu.memory_space<vmem>>, vector<1x4x64xf32>
    %722 = vector.shape_cast %721 : vector<1x4x64xf32> to vector<4x64xf32>
    %cst_333 = arith.constant dense<0.000000e+00> : vector<4x256xf32>
    %723 = tpu.matmul %722, %695, %cst_333 {dimension_numbers = #tpu.dot_dimension_numbers<[1], [0], [0], [1], [0, 0, 1, 1], [], []>} : vector<4x64xf32>, vector<64x256xf32>, vector<4x256xf32> -> vector<4x256xf32>
    %724 = vector.broadcast %696 : vector<1x256xf32> to vector<4x256xf32>
    %725 = arith.addf %723, %724 : vector<4x256xf32>
    %c3_334 = arith.constant 3 : index
    %c0_335 = arith.constant 0 : index
    %c0_336 = arith.constant 0 : index
    %726 = vector.load %arg12[%c3_334, %c0_335, %c0_336] : memref<8x4x256xf32, #tpu.memory_space<vmem>>, vector<1x4x256xf32>
    %727 = vector.shape_cast %726 : vector<1x4x256xf32> to vector<4x256xf32>
    %728 = vector.shape_cast %725 : vector<4x256xf32> to vector<1x4x256xf32>
    tpu.vector_store %arg12[%c3_334, %c0_335, %c0_336], %728 {strides = array<i32>} : memref<8x4x256xf32, #tpu.memory_space<vmem>>, vector<1x4x256xf32>,
    %c4_337 = arith.constant 4 : index
    %c0_338 = arith.constant 0 : index
    %c0_339 = arith.constant 0 : index
    %729 = vector.load %arg13[%c4_337, %c0_338, %c0_339] : memref<8x4x64xf32, #tpu.memory_space<vmem>>, vector<1x4x64xf32>
    %730 = vector.shape_cast %729 : vector<1x4x64xf32> to vector<4x64xf32>
    %cst_340 = arith.constant dense<0.000000e+00> : vector<4x256xf32>
    %731 = tpu.matmul %730, %695, %cst_340 {dimension_numbers = #tpu.dot_dimension_numbers<[1], [0], [0], [1], [0, 0, 1, 1], [], []>} : vector<4x64xf32>, vector<64x256xf32>, vector<4x256xf32> -> vector<4x256xf32>
    %732 = vector.broadcast %696 : vector<1x256xf32> to vector<4x256xf32>
    %733 = arith.addf %731, %732 : vector<4x256xf32>
    %c4_341 = arith.constant 4 : index
    %c0_342 = arith.constant 0 : index
    %c0_343 = arith.constant 0 : index
    %734 = vector.load %arg12[%c4_341, %c0_342, %c0_343] : memref<8x4x256xf32, #tpu.memory_space<vmem>>, vector<1x4x256xf32>
    %735 = vector.shape_cast %734 : vector<1x4x256xf32> to vector<4x256xf32>
    %736 = vector.shape_cast %733 : vector<4x256xf32> to vector<1x4x256xf32>
    tpu.vector_store %arg12[%c4_341, %c0_342, %c0_343], %736 {strides = array<i32>} : memref<8x4x256xf32, #tpu.memory_space<vmem>>, vector<1x4x256xf32>,
    %c5_344 = arith.constant 5 : index
    %c0_345 = arith.constant 0 : index
    %c0_346 = arith.constant 0 : index
    %737 = vector.load %arg13[%c5_344, %c0_345, %c0_346] : memref<8x4x64xf32, #tpu.memory_space<vmem>>, vector<1x4x64xf32>
    %738 = vector.shape_cast %737 : vector<1x4x64xf32> to vector<4x64xf32>
    %cst_347 = arith.constant dense<0.000000e+00> : vector<4x256xf32>
    %739 = tpu.matmul %738, %695, %cst_347 {dimension_numbers = #tpu.dot_dimension_numbers<[1], [0], [0], [1], [0, 0, 1, 1], [], []>} : vector<4x64xf32>, vector<64x256xf32>, vector<4x256xf32> -> vector<4x256xf32>
    %740 = vector.broadcast %696 : vector<1x256xf32> to vector<4x256xf32>
    %741 = arith.addf %739, %740 : vector<4x256xf32>
    %c5_348 = arith.constant 5 : index
    %c0_349 = arith.constant 0 : index
    %c0_350 = arith.constant 0 : index
    %742 = vector.load %arg12[%c5_348, %c0_349, %c0_350] : memref<8x4x256xf32, #tpu.memory_space<vmem>>, vector<1x4x256xf32>
    %743 = vector.shape_cast %742 : vector<1x4x256xf32> to vector<4x256xf32>
    %744 = vector.shape_cast %741 : vector<4x256xf32> to vector<1x4x256xf32>
    tpu.vector_store %arg12[%c5_348, %c0_349, %c0_350], %744 {strides = array<i32>} : memref<8x4x256xf32, #tpu.memory_space<vmem>>, vector<1x4x256xf32>,
    %c6_351 = arith.constant 6 : index
    %c0_352 = arith.constant 0 : index
    %c0_353 = arith.constant 0 : index
    %745 = vector.load %arg13[%c6_351, %c0_352, %c0_353] : memref<8x4x64xf32, #tpu.memory_space<vmem>>, vector<1x4x64xf32>
    %746 = vector.shape_cast %745 : vector<1x4x64xf32> to vector<4x64xf32>
    %cst_354 = arith.constant dense<0.000000e+00> : vector<4x256xf32>
    %747 = tpu.matmul %746, %695, %cst_354 {dimension_numbers = #tpu.dot_dimension_numbers<[1], [0], [0], [1], [0, 0, 1, 1], [], []>} : vector<4x64xf32>, vector<64x256xf32>, vector<4x256xf32> -> vector<4x256xf32>
    %748 = vector.broadcast %696 : vector<1x256xf32> to vector<4x256xf32>
    %749 = arith.addf %747, %748 : vector<4x256xf32>
    %c6_355 = arith.constant 6 : index
    %c0_356 = arith.constant 0 : index
    %c0_357 = arith.constant 0 : index
    %750 = vector.load %arg12[%c6_355, %c0_356, %c0_357] : memref<8x4x256xf32, #tpu.memory_space<vmem>>, vector<1x4x256xf32>
    %751 = vector.shape_cast %750 : vector<1x4x256xf32> to vector<4x256xf32>
    %752 = vector.shape_cast %749 : vector<4x256xf32> to vector<1x4x256xf32>
    tpu.vector_store %arg12[%c6_355, %c0_356, %c0_357], %752 {strides = array<i32>} : memref<8x4x256xf32, #tpu.memory_space<vmem>>, vector<1x4x256xf32>,
    %c7_358 = arith.constant 7 : index
    %c0_359 = arith.constant 0 : index
    %c0_360 = arith.constant 0 : index
    %753 = vector.load %arg13[%c7_358, %c0_359, %c0_360] : memref<8x4x64xf32, #tpu.memory_space<vmem>>, vector<1x4x64xf32>
    %754 = vector.shape_cast %753 : vector<1x4x64xf32> to vector<4x64xf32>
    %cst_361 = arith.constant dense<0.000000e+00> : vector<4x256xf32>
    %755 = tpu.matmul %754, %695, %cst_361 {dimension_numbers = #tpu.dot_dimension_numbers<[1], [0], [0], [1], [0, 0, 1, 1], [], []>} : vector<4x64xf32>, vector<64x256xf32>, vector<4x256xf32> -> vector<4x256xf32>
    %756 = vector.broadcast %696 : vector<1x256xf32> to vector<4x256xf32>
    %757 = arith.addf %755, %756 : vector<4x256xf32>
    %c7_362 = arith.constant 7 : index
    %c0_363 = arith.constant 0 : index
    %c0_364 = arith.constant 0 : index
    %758 = vector.load %arg12[%c7_362, %c0_363, %c0_364] : memref<8x4x256xf32, #tpu.memory_space<vmem>>, vector<1x4x256xf32>
    %759 = vector.shape_cast %758 : vector<1x4x256xf32> to vector<4x256xf32>
    %760 = vector.shape_cast %757 : vector<4x256xf32> to vector<1x4x256xf32>
    tpu.vector_store %arg12[%c7_362, %c0_363, %c0_364], %760 {strides = array<i32>} : memref<8x4x256xf32, #tpu.memory_space<vmem>>, vector<1x4x256xf32>,
    %c0_365 = arith.constant 0 : index
    %c0_366 = arith.constant 0 : index
    %761 = vector.load %arg5[%c0_365, %c0_366] : memref<64x256xf32, #tpu.memory_space<vmem>>, vector<64x256xf32>
    %cst_367 = arith.constant 0.000000e+00 : f32
    %762 = vector.broadcast %cst_367 : f32 to vector<4x64xf32>
    %c0_368 = arith.constant 0 : index
    %c0_369 = arith.constant 0 : index
    %763 = vector.load %arg14[%c0_368, %c0_369] : memref<4x64xf32, #tpu.memory_space<vmem>>, vector<4x64xf32>
    tpu.vector_store %arg14[%c0_368, %c0_369], %762 {strides = array<i32>} : memref<4x64xf32, #tpu.memory_space<vmem>>, vector<4x64xf32>,
    %cst_370 = arith.constant 0.000000e+00 : f32
    %764 = vector.broadcast %cst_370 : f32 to vector<4x64xf32>
    %c0_371 = arith.constant 0 : index
    %c0_372 = arith.constant 0 : index
    %765 = vector.load %arg15[%c0_371, %c0_372] : memref<4x64xf32, #tpu.memory_space<vmem>>, vector<4x64xf32>
    tpu.vector_store %arg15[%c0_371, %c0_372], %764 {strides = array<i32>} : memref<4x64xf32, #tpu.memory_space<vmem>>, vector<4x64xf32>,
    %c0_i32_373 = arith.constant 0 : i32
    %c0_374 = arith.constant 0 : index
    %c0_375 = arith.constant 0 : index
    %766 = vector.load %arg14[%c0_374, %c0_375] : memref<4x64xf32, #tpu.memory_space<vmem>>, vector<4x64xf32>
    %cst_376 = arith.constant dense<0.000000e+00> : vector<4x256xf32>
    %767 = tpu.matmul %766, %761, %cst_376 {dimension_numbers = #tpu.dot_dimension_numbers<[1], [0], [0], [1], [0, 0, 1, 1], [], []>} : vector<4x64xf32>, vector<64x256xf32>, vector<4x256xf32> -> vector<4x256xf32>
    %768 = arith.index_cast %c0_i32_373 : i32 to index
    %c0_377 = arith.constant 0 : index
    %c0_378 = arith.constant 0 : index
    %769 = vector.load %arg12[%768, %c0_377, %c0_378] : memref<8x4x256xf32, #tpu.memory_space<vmem>>, vector<1x4x128xf32>
    %770 = vector.shape_cast %769 : vector<1x4x128xf32> to vector<4x128xf32>
    %771 = vector.extract_strided_slice %767 {offsets = [0, 0], sizes = [4, 128], strides = [1, 1]} : vector<4x256xf32> to vector<4x128xf32>
    %772 = arith.addf %770, %771 : vector<4x128xf32>
    %c7_i32_379 = arith.constant 7 : i32
    %773 = arith.subi %c7_i32_379, %c0_i32_373 : i32
    %774 = arith.index_cast %773 : i32 to index
    %c0_380 = arith.constant 0 : index
    %c128_381 = arith.constant 128 : index
    %775 = vector.load %arg12[%774, %c0_380, %c128_381] : memref<8x4x256xf32, #tpu.memory_space<vmem>>, vector<1x4x128xf32>
    %776 = vector.shape_cast %775 : vector<1x4x128xf32> to vector<4x128xf32>
    %777 = vector.extract_strided_slice %767 {offsets = [0, 128], sizes = [4, 128], strides = [1, 1]} : vector<4x256xf32> to vector<4x128xf32>
    %778 = arith.addf %776, %777 : vector<4x128xf32>
    %c0_382 = arith.constant 0 : index
    %c0_383 = arith.constant 0 : index
    %779 = vector.load %arg15[%c0_382, %c0_383] : memref<4x64xf32, #tpu.memory_space<vmem>>, vector<4x32xf32>
    %780 = vector.extract_strided_slice %772 {offsets = [0, 0], sizes = [4, 32], strides = [1, 1]} : vector<4x128xf32> to vector<4x32xf32>
    %781 = arith.negf %780 : vector<4x32xf32>
    %782 = math.exp %781 : vector<4x32xf32>
    %cst_384 = arith.constant 1.000000e+00 : f32
    %783 = vector.broadcast %cst_384 : f32 to vector<4x32xf32>
    %784 = arith.addf %783, %782 : vector<4x32xf32>
    %785 = arith.divf %783, %784 : vector<4x32xf32>
    %786 = vector.extract_strided_slice %772 {offsets = [0, 32], sizes = [4, 32], strides = [1, 1]} : vector<4x128xf32> to vector<4x32xf32>
    %787 = arith.negf %786 : vector<4x32xf32>
    %788 = math.exp %787 : vector<4x32xf32>
    %cst_385 = arith.constant 1.000000e+00 : f32
    %789 = vector.broadcast %cst_385 : f32 to vector<4x32xf32>
    %790 = arith.addf %789, %788 : vector<4x32xf32>
    %791 = arith.divf %789, %790 : vector<4x32xf32>
    %792 = vector.extract_strided_slice %772 {offsets = [0, 64], sizes = [4, 32], strides = [1, 1]} : vector<4x128xf32> to vector<4x32xf32>
    %793 = math.tanh %792 : vector<4x32xf32>
    %794 = vector.extract_strided_slice %772 {offsets = [0, 96], sizes = [4, 32], strides = [1, 1]} : vector<4x128xf32> to vector<4x32xf32>
    %795 = arith.negf %794 : vector<4x32xf32>
    %796 = math.exp %795 : vector<4x32xf32>
    %cst_386 = arith.constant 1.000000e+00 : f32
    %797 = vector.broadcast %cst_386 : f32 to vector<4x32xf32>
    %798 = arith.addf %797, %796 : vector<4x32xf32>
    %799 = arith.divf %797, %798 : vector<4x32xf32>
    %800 = arith.mulf %791, %779 : vector<4x32xf32>
    %801 = arith.mulf %785, %793 : vector<4x32xf32>
    %802 = arith.addf %800, %801 : vector<4x32xf32>
    %803 = math.tanh %802 : vector<4x32xf32>
    %804 = arith.mulf %799, %803 : vector<4x32xf32>
    %c0_387 = arith.constant 0 : index
    %c32_388 = arith.constant 32 : index
    %805 = vector.load %arg15[%c0_387, %c32_388] : memref<4x64xf32, #tpu.memory_space<vmem>>, vector<4x32xf32>
    %806 = vector.extract_strided_slice %778 {offsets = [0, 0], sizes = [4, 32], strides = [1, 1]} : vector<4x128xf32> to vector<4x32xf32>
    %807 = arith.negf %806 : vector<4x32xf32>
    %808 = math.exp %807 : vector<4x32xf32>
    %cst_389 = arith.constant 1.000000e+00 : f32
    %809 = vector.broadcast %cst_389 : f32 to vector<4x32xf32>
    %810 = arith.addf %809, %808 : vector<4x32xf32>
    %811 = arith.divf %809, %810 : vector<4x32xf32>
    %812 = vector.extract_strided_slice %778 {offsets = [0, 32], sizes = [4, 32], strides = [1, 1]} : vector<4x128xf32> to vector<4x32xf32>
    %813 = arith.negf %812 : vector<4x32xf32>
    %814 = math.exp %813 : vector<4x32xf32>
    %cst_390 = arith.constant 1.000000e+00 : f32
    %815 = vector.broadcast %cst_390 : f32 to vector<4x32xf32>
    %816 = arith.addf %815, %814 : vector<4x32xf32>
    %817 = arith.divf %815, %816 : vector<4x32xf32>
    %818 = vector.extract_strided_slice %778 {offsets = [0, 64], sizes = [4, 32], strides = [1, 1]} : vector<4x128xf32> to vector<4x32xf32>
    %819 = math.tanh %818 : vector<4x32xf32>
    %820 = vector.extract_strided_slice %778 {offsets = [0, 96], sizes = [4, 32], strides = [1, 1]} : vector<4x128xf32> to vector<4x32xf32>
    %821 = arith.negf %820 : vector<4x32xf32>
    %822 = math.exp %821 : vector<4x32xf32>
    %cst_391 = arith.constant 1.000000e+00 : f32
    %823 = vector.broadcast %cst_391 : f32 to vector<4x32xf32>
    %824 = arith.addf %823, %822 : vector<4x32xf32>
    %825 = arith.divf %823, %824 : vector<4x32xf32>
    %826 = arith.mulf %817, %805 : vector<4x32xf32>
    %827 = arith.mulf %811, %819 : vector<4x32xf32>
    %828 = arith.addf %826, %827 : vector<4x32xf32>
    %829 = math.tanh %828 : vector<4x32xf32>
    %830 = arith.mulf %825, %829 : vector<4x32xf32>
    %c0_392 = arith.constant 0 : index
    %c0_393 = arith.constant 0 : index
    %831 = vector.load %arg14[%c0_392, %c0_393] : memref<4x64xf32, #tpu.memory_space<vmem>>, vector<4x32xf32>
    tpu.vector_store %arg14[%c0_392, %c0_393], %804 {strides = array<i32>} : memref<4x64xf32, #tpu.memory_space<vmem>>, vector<4x32xf32>,
    %c0_394 = arith.constant 0 : index
    %c32_395 = arith.constant 32 : index
    %832 = vector.load %arg14[%c0_394, %c32_395] : memref<4x64xf32, #tpu.memory_space<vmem>>, vector<4x32xf32>
    tpu.vector_store %arg14[%c0_394, %c32_395], %830 {strides = array<i32>} : memref<4x64xf32, #tpu.memory_space<vmem>>, vector<4x32xf32>,
    %c0_396 = arith.constant 0 : index
    %c0_397 = arith.constant 0 : index
    %833 = vector.load %arg15[%c0_396, %c0_397] : memref<4x64xf32, #tpu.memory_space<vmem>>, vector<4x32xf32>
    tpu.vector_store %arg15[%c0_396, %c0_397], %802 {strides = array<i32>} : memref<4x64xf32, #tpu.memory_space<vmem>>, vector<4x32xf32>,
    %c0_398 = arith.constant 0 : index
    %c32_399 = arith.constant 32 : index
    %834 = vector.load %arg15[%c0_398, %c32_399] : memref<4x64xf32, #tpu.memory_space<vmem>>, vector<4x32xf32>
    tpu.vector_store %arg15[%c0_398, %c32_399], %828 {strides = array<i32>} : memref<4x64xf32, #tpu.memory_space<vmem>>, vector<4x32xf32>,
    %c1_i32_400 = arith.constant 1 : i32
    %c0_401 = arith.constant 0 : index
    %c0_402 = arith.constant 0 : index
    %835 = vector.load %arg14[%c0_401, %c0_402] : memref<4x64xf32, #tpu.memory_space<vmem>>, vector<4x64xf32>
    %cst_403 = arith.constant dense<0.000000e+00> : vector<4x256xf32>
    %836 = tpu.matmul %835, %761, %cst_403 {dimension_numbers = #tpu.dot_dimension_numbers<[1], [0], [0], [1], [0, 0, 1, 1], [], []>} : vector<4x64xf32>, vector<64x256xf32>, vector<4x256xf32> -> vector<4x256xf32>
    %837 = arith.index_cast %c1_i32_400 : i32 to index
    %c0_404 = arith.constant 0 : index
    %c0_405 = arith.constant 0 : index
    %838 = vector.load %arg12[%837, %c0_404, %c0_405] : memref<8x4x256xf32, #tpu.memory_space<vmem>>, vector<1x4x128xf32>
    %839 = vector.shape_cast %838 : vector<1x4x128xf32> to vector<4x128xf32>
    %840 = vector.extract_strided_slice %836 {offsets = [0, 0], sizes = [4, 128], strides = [1, 1]} : vector<4x256xf32> to vector<4x128xf32>
    %841 = arith.addf %839, %840 : vector<4x128xf32>
    %c7_i32_406 = arith.constant 7 : i32
    %842 = arith.subi %c7_i32_406, %c1_i32_400 : i32
    %843 = arith.index_cast %842 : i32 to index
    %c0_407 = arith.constant 0 : index
    %c128_408 = arith.constant 128 : index
    %844 = vector.load %arg12[%843, %c0_407, %c128_408] : memref<8x4x256xf32, #tpu.memory_space<vmem>>, vector<1x4x128xf32>
    %845 = vector.shape_cast %844 : vector<1x4x128xf32> to vector<4x128xf32>
    %846 = vector.extract_strided_slice %836 {offsets = [0, 128], sizes = [4, 128], strides = [1, 1]} : vector<4x256xf32> to vector<4x128xf32>
    %847 = arith.addf %845, %846 : vector<4x128xf32>
    %c0_409 = arith.constant 0 : index
    %c0_410 = arith.constant 0 : index
    %848 = vector.load %arg15[%c0_409, %c0_410] : memref<4x64xf32, #tpu.memory_space<vmem>>, vector<4x32xf32>
    %849 = vector.extract_strided_slice %841 {offsets = [0, 0], sizes = [4, 32], strides = [1, 1]} : vector<4x128xf32> to vector<4x32xf32>
    %850 = arith.negf %849 : vector<4x32xf32>
    %851 = math.exp %850 : vector<4x32xf32>
    %cst_411 = arith.constant 1.000000e+00 : f32
    %852 = vector.broadcast %cst_411 : f32 to vector<4x32xf32>
    %853 = arith.addf %852, %851 : vector<4x32xf32>
    %854 = arith.divf %852, %853 : vector<4x32xf32>
    %855 = vector.extract_strided_slice %841 {offsets = [0, 32], sizes = [4, 32], strides = [1, 1]} : vector<4x128xf32> to vector<4x32xf32>
    %856 = arith.negf %855 : vector<4x32xf32>
    %857 = math.exp %856 : vector<4x32xf32>
    %cst_412 = arith.constant 1.000000e+00 : f32
    %858 = vector.broadcast %cst_412 : f32 to vector<4x32xf32>
    %859 = arith.addf %858, %857 : vector<4x32xf32>
    %860 = arith.divf %858, %859 : vector<4x32xf32>
    %861 = vector.extract_strided_slice %841 {offsets = [0, 64], sizes = [4, 32], strides = [1, 1]} : vector<4x128xf32> to vector<4x32xf32>
    %862 = math.tanh %861 : vector<4x32xf32>
    %863 = vector.extract_strided_slice %841 {offsets = [0, 96], sizes = [4, 32], strides = [1, 1]} : vector<4x128xf32> to vector<4x32xf32>
    %864 = arith.negf %863 : vector<4x32xf32>
    %865 = math.exp %864 : vector<4x32xf32>
    %cst_413 = arith.constant 1.000000e+00 : f32
    %866 = vector.broadcast %cst_413 : f32 to vector<4x32xf32>
    %867 = arith.addf %866, %865 : vector<4x32xf32>
    %868 = arith.divf %866, %867 : vector<4x32xf32>
    %869 = arith.mulf %860, %848 : vector<4x32xf32>
    %870 = arith.mulf %854, %862 : vector<4x32xf32>
    %871 = arith.addf %869, %870 : vector<4x32xf32>
    %872 = math.tanh %871 : vector<4x32xf32>
    %873 = arith.mulf %868, %872 : vector<4x32xf32>
    %c0_414 = arith.constant 0 : index
    %c32_415 = arith.constant 32 : index
    %874 = vector.load %arg15[%c0_414, %c32_415] : memref<4x64xf32, #tpu.memory_space<vmem>>, vector<4x32xf32>
    %875 = vector.extract_strided_slice %847 {offsets = [0, 0], sizes = [4, 32], strides = [1, 1]} : vector<4x128xf32> to vector<4x32xf32>
    %876 = arith.negf %875 : vector<4x32xf32>
    %877 = math.exp %876 : vector<4x32xf32>
    %cst_416 = arith.constant 1.000000e+00 : f32
    %878 = vector.broadcast %cst_416 : f32 to vector<4x32xf32>
    %879 = arith.addf %878, %877 : vector<4x32xf32>
    %880 = arith.divf %878, %879 : vector<4x32xf32>
    %881 = vector.extract_strided_slice %847 {offsets = [0, 32], sizes = [4, 32], strides = [1, 1]} : vector<4x128xf32> to vector<4x32xf32>
    %882 = arith.negf %881 : vector<4x32xf32>
    %883 = math.exp %882 : vector<4x32xf32>
    %cst_417 = arith.constant 1.000000e+00 : f32
    %884 = vector.broadcast %cst_417 : f32 to vector<4x32xf32>
    %885 = arith.addf %884, %883 : vector<4x32xf32>
    %886 = arith.divf %884, %885 : vector<4x32xf32>
    %887 = vector.extract_strided_slice %847 {offsets = [0, 64], sizes = [4, 32], strides = [1, 1]} : vector<4x128xf32> to vector<4x32xf32>
    %888 = math.tanh %887 : vector<4x32xf32>
    %889 = vector.extract_strided_slice %847 {offsets = [0, 96], sizes = [4, 32], strides = [1, 1]} : vector<4x128xf32> to vector<4x32xf32>
    %890 = arith.negf %889 : vector<4x32xf32>
    %891 = math.exp %890 : vector<4x32xf32>
    %cst_418 = arith.constant 1.000000e+00 : f32
    %892 = vector.broadcast %cst_418 : f32 to vector<4x32xf32>
    %893 = arith.addf %892, %891 : vector<4x32xf32>
    %894 = arith.divf %892, %893 : vector<4x32xf32>
    %895 = arith.mulf %886, %874 : vector<4x32xf32>
    %896 = arith.mulf %880, %888 : vector<4x32xf32>
    %897 = arith.addf %895, %896 : vector<4x32xf32>
    %898 = math.tanh %897 : vector<4x32xf32>
    %899 = arith.mulf %894, %898 : vector<4x32xf32>
    %c0_419 = arith.constant 0 : index
    %c0_420 = arith.constant 0 : index
    %900 = vector.load %arg14[%c0_419, %c0_420] : memref<4x64xf32, #tpu.memory_space<vmem>>, vector<4x32xf32>
    tpu.vector_store %arg14[%c0_419, %c0_420], %873 {strides = array<i32>} : memref<4x64xf32, #tpu.memory_space<vmem>>, vector<4x32xf32>,
    %c0_421 = arith.constant 0 : index
    %c32_422 = arith.constant 32 : index
    %901 = vector.load %arg14[%c0_421, %c32_422] : memref<4x64xf32, #tpu.memory_space<vmem>>, vector<4x32xf32>
    tpu.vector_store %arg14[%c0_421, %c32_422], %899 {strides = array<i32>} : memref<4x64xf32, #tpu.memory_space<vmem>>, vector<4x32xf32>,
    %c0_423 = arith.constant 0 : index
    %c0_424 = arith.constant 0 : index
    %902 = vector.load %arg15[%c0_423, %c0_424] : memref<4x64xf32, #tpu.memory_space<vmem>>, vector<4x32xf32>
    tpu.vector_store %arg15[%c0_423, %c0_424], %871 {strides = array<i32>} : memref<4x64xf32, #tpu.memory_space<vmem>>, vector<4x32xf32>,
    %c0_425 = arith.constant 0 : index
    %c32_426 = arith.constant 32 : index
    %903 = vector.load %arg15[%c0_425, %c32_426] : memref<4x64xf32, #tpu.memory_space<vmem>>, vector<4x32xf32>
    tpu.vector_store %arg15[%c0_425, %c32_426], %897 {strides = array<i32>} : memref<4x64xf32, #tpu.memory_space<vmem>>, vector<4x32xf32>,
    %c2_i32_427 = arith.constant 2 : i32
    %c0_428 = arith.constant 0 : index
    %c0_429 = arith.constant 0 : index
    %904 = vector.load %arg14[%c0_428, %c0_429] : memref<4x64xf32, #tpu.memory_space<vmem>>, vector<4x64xf32>
    %cst_430 = arith.constant dense<0.000000e+00> : vector<4x256xf32>
    %905 = tpu.matmul %904, %761, %cst_430 {dimension_numbers = #tpu.dot_dimension_numbers<[1], [0], [0], [1], [0, 0, 1, 1], [], []>} : vector<4x64xf32>, vector<64x256xf32>, vector<4x256xf32> -> vector<4x256xf32>
    %906 = arith.index_cast %c2_i32_427 : i32 to index
    %c0_431 = arith.constant 0 : index
    %c0_432 = arith.constant 0 : index
    %907 = vector.load %arg12[%906, %c0_431, %c0_432] : memref<8x4x256xf32, #tpu.memory_space<vmem>>, vector<1x4x128xf32>
    %908 = vector.shape_cast %907 : vector<1x4x128xf32> to vector<4x128xf32>
    %909 = vector.extract_strided_slice %905 {offsets = [0, 0], sizes = [4, 128], strides = [1, 1]} : vector<4x256xf32> to vector<4x128xf32>
    %910 = arith.addf %908, %909 : vector<4x128xf32>
    %c7_i32_433 = arith.constant 7 : i32
    %911 = arith.subi %c7_i32_433, %c2_i32_427 : i32
    %912 = arith.index_cast %911 : i32 to index
    %c0_434 = arith.constant 0 : index
    %c128_435 = arith.constant 128 : index
    %913 = vector.load %arg12[%912, %c0_434, %c128_435] : memref<8x4x256xf32, #tpu.memory_space<vmem>>, vector<1x4x128xf32>
    %914 = vector.shape_cast %913 : vector<1x4x128xf32> to vector<4x128xf32>
    %915 = vector.extract_strided_slice %905 {offsets = [0, 128], sizes = [4, 128], strides = [1, 1]} : vector<4x256xf32> to vector<4x128xf32>
    %916 = arith.addf %914, %915 : vector<4x128xf32>
    %c0_436 = arith.constant 0 : index
    %c0_437 = arith.constant 0 : index
    %917 = vector.load %arg15[%c0_436, %c0_437] : memref<4x64xf32, #tpu.memory_space<vmem>>, vector<4x32xf32>
    %918 = vector.extract_strided_slice %910 {offsets = [0, 0], sizes = [4, 32], strides = [1, 1]} : vector<4x128xf32> to vector<4x32xf32>
    %919 = arith.negf %918 : vector<4x32xf32>
    %920 = math.exp %919 : vector<4x32xf32>
    %cst_438 = arith.constant 1.000000e+00 : f32
    %921 = vector.broadcast %cst_438 : f32 to vector<4x32xf32>
    %922 = arith.addf %921, %920 : vector<4x32xf32>
    %923 = arith.divf %921, %922 : vector<4x32xf32>
    %924 = vector.extract_strided_slice %910 {offsets = [0, 32], sizes = [4, 32], strides = [1, 1]} : vector<4x128xf32> to vector<4x32xf32>
    %925 = arith.negf %924 : vector<4x32xf32>
    %926 = math.exp %925 : vector<4x32xf32>
    %cst_439 = arith.constant 1.000000e+00 : f32
    %927 = vector.broadcast %cst_439 : f32 to vector<4x32xf32>
    %928 = arith.addf %927, %926 : vector<4x32xf32>
    %929 = arith.divf %927, %928 : vector<4x32xf32>
    %930 = vector.extract_strided_slice %910 {offsets = [0, 64], sizes = [4, 32], strides = [1, 1]} : vector<4x128xf32> to vector<4x32xf32>
    %931 = math.tanh %930 : vector<4x32xf32>
    %932 = vector.extract_strided_slice %910 {offsets = [0, 96], sizes = [4, 32], strides = [1, 1]} : vector<4x128xf32> to vector<4x32xf32>
    %933 = arith.negf %932 : vector<4x32xf32>
    %934 = math.exp %933 : vector<4x32xf32>
    %cst_440 = arith.constant 1.000000e+00 : f32
    %935 = vector.broadcast %cst_440 : f32 to vector<4x32xf32>
    %936 = arith.addf %935, %934 : vector<4x32xf32>
    %937 = arith.divf %935, %936 : vector<4x32xf32>
    %938 = arith.mulf %929, %917 : vector<4x32xf32>
    %939 = arith.mulf %923, %931 : vector<4x32xf32>
    %940 = arith.addf %938, %939 : vector<4x32xf32>
    %941 = math.tanh %940 : vector<4x32xf32>
    %942 = arith.mulf %937, %941 : vector<4x32xf32>
    %c0_441 = arith.constant 0 : index
    %c32_442 = arith.constant 32 : index
    %943 = vector.load %arg15[%c0_441, %c32_442] : memref<4x64xf32, #tpu.memory_space<vmem>>, vector<4x32xf32>
    %944 = vector.extract_strided_slice %916 {offsets = [0, 0], sizes = [4, 32], strides = [1, 1]} : vector<4x128xf32> to vector<4x32xf32>
    %945 = arith.negf %944 : vector<4x32xf32>
    %946 = math.exp %945 : vector<4x32xf32>
    %cst_443 = arith.constant 1.000000e+00 : f32
    %947 = vector.broadcast %cst_443 : f32 to vector<4x32xf32>
    %948 = arith.addf %947, %946 : vector<4x32xf32>
    %949 = arith.divf %947, %948 : vector<4x32xf32>
    %950 = vector.extract_strided_slice %916 {offsets = [0, 32], sizes = [4, 32], strides = [1, 1]} : vector<4x128xf32> to vector<4x32xf32>
    %951 = arith.negf %950 : vector<4x32xf32>
    %952 = math.exp %951 : vector<4x32xf32>
    %cst_444 = arith.constant 1.000000e+00 : f32
    %953 = vector.broadcast %cst_444 : f32 to vector<4x32xf32>
    %954 = arith.addf %953, %952 : vector<4x32xf32>
    %955 = arith.divf %953, %954 : vector<4x32xf32>
    %956 = vector.extract_strided_slice %916 {offsets = [0, 64], sizes = [4, 32], strides = [1, 1]} : vector<4x128xf32> to vector<4x32xf32>
    %957 = math.tanh %956 : vector<4x32xf32>
    %958 = vector.extract_strided_slice %916 {offsets = [0, 96], sizes = [4, 32], strides = [1, 1]} : vector<4x128xf32> to vector<4x32xf32>
    %959 = arith.negf %958 : vector<4x32xf32>
    %960 = math.exp %959 : vector<4x32xf32>
    %cst_445 = arith.constant 1.000000e+00 : f32
    %961 = vector.broadcast %cst_445 : f32 to vector<4x32xf32>
    %962 = arith.addf %961, %960 : vector<4x32xf32>
    %963 = arith.divf %961, %962 : vector<4x32xf32>
    %964 = arith.mulf %955, %943 : vector<4x32xf32>
    %965 = arith.mulf %949, %957 : vector<4x32xf32>
    %966 = arith.addf %964, %965 : vector<4x32xf32>
    %967 = math.tanh %966 : vector<4x32xf32>
    %968 = arith.mulf %963, %967 : vector<4x32xf32>
    %c0_446 = arith.constant 0 : index
    %c0_447 = arith.constant 0 : index
    %969 = vector.load %arg14[%c0_446, %c0_447] : memref<4x64xf32, #tpu.memory_space<vmem>>, vector<4x32xf32>
    tpu.vector_store %arg14[%c0_446, %c0_447], %942 {strides = array<i32>} : memref<4x64xf32, #tpu.memory_space<vmem>>, vector<4x32xf32>,
    %c0_448 = arith.constant 0 : index
    %c32_449 = arith.constant 32 : index
    %970 = vector.load %arg14[%c0_448, %c32_449] : memref<4x64xf32, #tpu.memory_space<vmem>>, vector<4x32xf32>
    tpu.vector_store %arg14[%c0_448, %c32_449], %968 {strides = array<i32>} : memref<4x64xf32, #tpu.memory_space<vmem>>, vector<4x32xf32>,
    %c0_450 = arith.constant 0 : index
    %c0_451 = arith.constant 0 : index
    %971 = vector.load %arg15[%c0_450, %c0_451] : memref<4x64xf32, #tpu.memory_space<vmem>>, vector<4x32xf32>
    tpu.vector_store %arg15[%c0_450, %c0_451], %940 {strides = array<i32>} : memref<4x64xf32, #tpu.memory_space<vmem>>, vector<4x32xf32>,
    %c0_452 = arith.constant 0 : index
    %c32_453 = arith.constant 32 : index
    %972 = vector.load %arg15[%c0_452, %c32_453] : memref<4x64xf32, #tpu.memory_space<vmem>>, vector<4x32xf32>
    tpu.vector_store %arg15[%c0_452, %c32_453], %966 {strides = array<i32>} : memref<4x64xf32, #tpu.memory_space<vmem>>, vector<4x32xf32>,
    %c3_i32_454 = arith.constant 3 : i32
    %c0_455 = arith.constant 0 : index
    %c0_456 = arith.constant 0 : index
    %973 = vector.load %arg14[%c0_455, %c0_456] : memref<4x64xf32, #tpu.memory_space<vmem>>, vector<4x64xf32>
    %cst_457 = arith.constant dense<0.000000e+00> : vector<4x256xf32>
    %974 = tpu.matmul %973, %761, %cst_457 {dimension_numbers = #tpu.dot_dimension_numbers<[1], [0], [0], [1], [0, 0, 1, 1], [], []>} : vector<4x64xf32>, vector<64x256xf32>, vector<4x256xf32> -> vector<4x256xf32>
    %975 = arith.index_cast %c3_i32_454 : i32 to index
    %c0_458 = arith.constant 0 : index
    %c0_459 = arith.constant 0 : index
    %976 = vector.load %arg12[%975, %c0_458, %c0_459] : memref<8x4x256xf32, #tpu.memory_space<vmem>>, vector<1x4x128xf32>
    %977 = vector.shape_cast %976 : vector<1x4x128xf32> to vector<4x128xf32>
    %978 = vector.extract_strided_slice %974 {offsets = [0, 0], sizes = [4, 128], strides = [1, 1]} : vector<4x256xf32> to vector<4x128xf32>
    %979 = arith.addf %977, %978 : vector<4x128xf32>
    %c7_i32_460 = arith.constant 7 : i32
    %980 = arith.subi %c7_i32_460, %c3_i32_454 : i32
    %981 = arith.index_cast %980 : i32 to index
    %c0_461 = arith.constant 0 : index
    %c128_462 = arith.constant 128 : index
    %982 = vector.load %arg12[%981, %c0_461, %c128_462] : memref<8x4x256xf32, #tpu.memory_space<vmem>>, vector<1x4x128xf32>
    %983 = vector.shape_cast %982 : vector<1x4x128xf32> to vector<4x128xf32>
    %984 = vector.extract_strided_slice %974 {offsets = [0, 128], sizes = [4, 128], strides = [1, 1]} : vector<4x256xf32> to vector<4x128xf32>
    %985 = arith.addf %983, %984 : vector<4x128xf32>
    %c0_463 = arith.constant 0 : index
    %c0_464 = arith.constant 0 : index
    %986 = vector.load %arg15[%c0_463, %c0_464] : memref<4x64xf32, #tpu.memory_space<vmem>>, vector<4x32xf32>
    %987 = vector.extract_strided_slice %979 {offsets = [0, 0], sizes = [4, 32], strides = [1, 1]} : vector<4x128xf32> to vector<4x32xf32>
    %988 = arith.negf %987 : vector<4x32xf32>
    %989 = math.exp %988 : vector<4x32xf32>
    %cst_465 = arith.constant 1.000000e+00 : f32
    %990 = vector.broadcast %cst_465 : f32 to vector<4x32xf32>
    %991 = arith.addf %990, %989 : vector<4x32xf32>
    %992 = arith.divf %990, %991 : vector<4x32xf32>
    %993 = vector.extract_strided_slice %979 {offsets = [0, 32], sizes = [4, 32], strides = [1, 1]} : vector<4x128xf32> to vector<4x32xf32>
    %994 = arith.negf %993 : vector<4x32xf32>
    %995 = math.exp %994 : vector<4x32xf32>
    %cst_466 = arith.constant 1.000000e+00 : f32
    %996 = vector.broadcast %cst_466 : f32 to vector<4x32xf32>
    %997 = arith.addf %996, %995 : vector<4x32xf32>
    %998 = arith.divf %996, %997 : vector<4x32xf32>
    %999 = vector.extract_strided_slice %979 {offsets = [0, 64], sizes = [4, 32], strides = [1, 1]} : vector<4x128xf32> to vector<4x32xf32>
    %1000 = math.tanh %999 : vector<4x32xf32>
    %1001 = vector.extract_strided_slice %979 {offsets = [0, 96], sizes = [4, 32], strides = [1, 1]} : vector<4x128xf32> to vector<4x32xf32>
    %1002 = arith.negf %1001 : vector<4x32xf32>
    %1003 = math.exp %1002 : vector<4x32xf32>
    %cst_467 = arith.constant 1.000000e+00 : f32
    %1004 = vector.broadcast %cst_467 : f32 to vector<4x32xf32>
    %1005 = arith.addf %1004, %1003 : vector<4x32xf32>
    %1006 = arith.divf %1004, %1005 : vector<4x32xf32>
    %1007 = arith.mulf %998, %986 : vector<4x32xf32>
    %1008 = arith.mulf %992, %1000 : vector<4x32xf32>
    %1009 = arith.addf %1007, %1008 : vector<4x32xf32>
    %1010 = math.tanh %1009 : vector<4x32xf32>
    %1011 = arith.mulf %1006, %1010 : vector<4x32xf32>
    %c0_468 = arith.constant 0 : index
    %c32_469 = arith.constant 32 : index
    %1012 = vector.load %arg15[%c0_468, %c32_469] : memref<4x64xf32, #tpu.memory_space<vmem>>, vector<4x32xf32>
    %1013 = vector.extract_strided_slice %985 {offsets = [0, 0], sizes = [4, 32], strides = [1, 1]} : vector<4x128xf32> to vector<4x32xf32>
    %1014 = arith.negf %1013 : vector<4x32xf32>
    %1015 = math.exp %1014 : vector<4x32xf32>
    %cst_470 = arith.constant 1.000000e+00 : f32
    %1016 = vector.broadcast %cst_470 : f32 to vector<4x32xf32>
    %1017 = arith.addf %1016, %1015 : vector<4x32xf32>
    %1018 = arith.divf %1016, %1017 : vector<4x32xf32>
    %1019 = vector.extract_strided_slice %985 {offsets = [0, 32], sizes = [4, 32], strides = [1, 1]} : vector<4x128xf32> to vector<4x32xf32>
    %1020 = arith.negf %1019 : vector<4x32xf32>
    %1021 = math.exp %1020 : vector<4x32xf32>
    %cst_471 = arith.constant 1.000000e+00 : f32
    %1022 = vector.broadcast %cst_471 : f32 to vector<4x32xf32>
    %1023 = arith.addf %1022, %1021 : vector<4x32xf32>
    %1024 = arith.divf %1022, %1023 : vector<4x32xf32>
    %1025 = vector.extract_strided_slice %985 {offsets = [0, 64], sizes = [4, 32], strides = [1, 1]} : vector<4x128xf32> to vector<4x32xf32>
    %1026 = math.tanh %1025 : vector<4x32xf32>
    %1027 = vector.extract_strided_slice %985 {offsets = [0, 96], sizes = [4, 32], strides = [1, 1]} : vector<4x128xf32> to vector<4x32xf32>
    %1028 = arith.negf %1027 : vector<4x32xf32>
    %1029 = math.exp %1028 : vector<4x32xf32>
    %cst_472 = arith.constant 1.000000e+00 : f32
    %1030 = vector.broadcast %cst_472 : f32 to vector<4x32xf32>
    %1031 = arith.addf %1030, %1029 : vector<4x32xf32>
    %1032 = arith.divf %1030, %1031 : vector<4x32xf32>
    %1033 = arith.mulf %1024, %1012 : vector<4x32xf32>
    %1034 = arith.mulf %1018, %1026 : vector<4x32xf32>
    %1035 = arith.addf %1033, %1034 : vector<4x32xf32>
    %1036 = math.tanh %1035 : vector<4x32xf32>
    %1037 = arith.mulf %1032, %1036 : vector<4x32xf32>
    %c0_473 = arith.constant 0 : index
    %c0_474 = arith.constant 0 : index
    %1038 = vector.load %arg14[%c0_473, %c0_474] : memref<4x64xf32, #tpu.memory_space<vmem>>, vector<4x32xf32>
    tpu.vector_store %arg14[%c0_473, %c0_474], %1011 {strides = array<i32>} : memref<4x64xf32, #tpu.memory_space<vmem>>, vector<4x32xf32>,
    %c0_475 = arith.constant 0 : index
    %c32_476 = arith.constant 32 : index
    %1039 = vector.load %arg14[%c0_475, %c32_476] : memref<4x64xf32, #tpu.memory_space<vmem>>, vector<4x32xf32>
    tpu.vector_store %arg14[%c0_475, %c32_476], %1037 {strides = array<i32>} : memref<4x64xf32, #tpu.memory_space<vmem>>, vector<4x32xf32>,
    %c0_477 = arith.constant 0 : index
    %c0_478 = arith.constant 0 : index
    %1040 = vector.load %arg15[%c0_477, %c0_478] : memref<4x64xf32, #tpu.memory_space<vmem>>, vector<4x32xf32>
    tpu.vector_store %arg15[%c0_477, %c0_478], %1009 {strides = array<i32>} : memref<4x64xf32, #tpu.memory_space<vmem>>, vector<4x32xf32>,
    %c0_479 = arith.constant 0 : index
    %c32_480 = arith.constant 32 : index
    %1041 = vector.load %arg15[%c0_479, %c32_480] : memref<4x64xf32, #tpu.memory_space<vmem>>, vector<4x32xf32>
    tpu.vector_store %arg15[%c0_479, %c32_480], %1035 {strides = array<i32>} : memref<4x64xf32, #tpu.memory_space<vmem>>, vector<4x32xf32>,
    %c4_i32_481 = arith.constant 4 : i32
    %c0_482 = arith.constant 0 : index
    %c0_483 = arith.constant 0 : index
    %1042 = vector.load %arg14[%c0_482, %c0_483] : memref<4x64xf32, #tpu.memory_space<vmem>>, vector<4x64xf32>
    %cst_484 = arith.constant dense<0.000000e+00> : vector<4x256xf32>
    %1043 = tpu.matmul %1042, %761, %cst_484 {dimension_numbers = #tpu.dot_dimension_numbers<[1], [0], [0], [1], [0, 0, 1, 1], [], []>} : vector<4x64xf32>, vector<64x256xf32>, vector<4x256xf32> -> vector<4x256xf32>
    %1044 = arith.index_cast %c4_i32_481 : i32 to index
    %c0_485 = arith.constant 0 : index
    %c0_486 = arith.constant 0 : index
    %1045 = vector.load %arg12[%1044, %c0_485, %c0_486] : memref<8x4x256xf32, #tpu.memory_space<vmem>>, vector<1x4x128xf32>
    %1046 = vector.shape_cast %1045 : vector<1x4x128xf32> to vector<4x128xf32>
    %1047 = vector.extract_strided_slice %1043 {offsets = [0, 0], sizes = [4, 128], strides = [1, 1]} : vector<4x256xf32> to vector<4x128xf32>
    %1048 = arith.addf %1046, %1047 : vector<4x128xf32>
    %c7_i32_487 = arith.constant 7 : i32
    %1049 = arith.subi %c7_i32_487, %c4_i32_481 : i32
    %1050 = arith.index_cast %1049 : i32 to index
    %c0_488 = arith.constant 0 : index
    %c128_489 = arith.constant 128 : index
    %1051 = vector.load %arg12[%1050, %c0_488, %c128_489] : memref<8x4x256xf32, #tpu.memory_space<vmem>>, vector<1x4x128xf32>
    %1052 = vector.shape_cast %1051 : vector<1x4x128xf32> to vector<4x128xf32>
    %1053 = vector.extract_strided_slice %1043 {offsets = [0, 128], sizes = [4, 128], strides = [1, 1]} : vector<4x256xf32> to vector<4x128xf32>
    %1054 = arith.addf %1052, %1053 : vector<4x128xf32>
    %c0_490 = arith.constant 0 : index
    %c0_491 = arith.constant 0 : index
    %1055 = vector.load %arg15[%c0_490, %c0_491] : memref<4x64xf32, #tpu.memory_space<vmem>>, vector<4x32xf32>
    %1056 = vector.extract_strided_slice %1048 {offsets = [0, 0], sizes = [4, 32], strides = [1, 1]} : vector<4x128xf32> to vector<4x32xf32>
    %1057 = arith.negf %1056 : vector<4x32xf32>
    %1058 = math.exp %1057 : vector<4x32xf32>
    %cst_492 = arith.constant 1.000000e+00 : f32
    %1059 = vector.broadcast %cst_492 : f32 to vector<4x32xf32>
    %1060 = arith.addf %1059, %1058 : vector<4x32xf32>
    %1061 = arith.divf %1059, %1060 : vector<4x32xf32>
    %1062 = vector.extract_strided_slice %1048 {offsets = [0, 32], sizes = [4, 32], strides = [1, 1]} : vector<4x128xf32> to vector<4x32xf32>
    %1063 = arith.negf %1062 : vector<4x32xf32>
    %1064 = math.exp %1063 : vector<4x32xf32>
    %cst_493 = arith.constant 1.000000e+00 : f32
    %1065 = vector.broadcast %cst_493 : f32 to vector<4x32xf32>
    %1066 = arith.addf %1065, %1064 : vector<4x32xf32>
    %1067 = arith.divf %1065, %1066 : vector<4x32xf32>
    %1068 = vector.extract_strided_slice %1048 {offsets = [0, 64], sizes = [4, 32], strides = [1, 1]} : vector<4x128xf32> to vector<4x32xf32>
    %1069 = math.tanh %1068 : vector<4x32xf32>
    %1070 = vector.extract_strided_slice %1048 {offsets = [0, 96], sizes = [4, 32], strides = [1, 1]} : vector<4x128xf32> to vector<4x32xf32>
    %1071 = arith.negf %1070 : vector<4x32xf32>
    %1072 = math.exp %1071 : vector<4x32xf32>
    %cst_494 = arith.constant 1.000000e+00 : f32
    %1073 = vector.broadcast %cst_494 : f32 to vector<4x32xf32>
    %1074 = arith.addf %1073, %1072 : vector<4x32xf32>
    %1075 = arith.divf %1073, %1074 : vector<4x32xf32>
    %1076 = arith.mulf %1067, %1055 : vector<4x32xf32>
    %1077 = arith.mulf %1061, %1069 : vector<4x32xf32>
    %1078 = arith.addf %1076, %1077 : vector<4x32xf32>
    %1079 = math.tanh %1078 : vector<4x32xf32>
    %1080 = arith.mulf %1075, %1079 : vector<4x32xf32>
    %c0_495 = arith.constant 0 : index
    %c32_496 = arith.constant 32 : index
    %1081 = vector.load %arg15[%c0_495, %c32_496] : memref<4x64xf32, #tpu.memory_space<vmem>>, vector<4x32xf32>
    %1082 = vector.extract_strided_slice %1054 {offsets = [0, 0], sizes = [4, 32], strides = [1, 1]} : vector<4x128xf32> to vector<4x32xf32>
    %1083 = arith.negf %1082 : vector<4x32xf32>
    %1084 = math.exp %1083 : vector<4x32xf32>
    %cst_497 = arith.constant 1.000000e+00 : f32
    %1085 = vector.broadcast %cst_497 : f32 to vector<4x32xf32>
    %1086 = arith.addf %1085, %1084 : vector<4x32xf32>
    %1087 = arith.divf %1085, %1086 : vector<4x32xf32>
    %1088 = vector.extract_strided_slice %1054 {offsets = [0, 32], sizes = [4, 32], strides = [1, 1]} : vector<4x128xf32> to vector<4x32xf32>
    %1089 = arith.negf %1088 : vector<4x32xf32>
    %1090 = math.exp %1089 : vector<4x32xf32>
    %cst_498 = arith.constant 1.000000e+00 : f32
    %1091 = vector.broadcast %cst_498 : f32 to vector<4x32xf32>
    %1092 = arith.addf %1091, %1090 : vector<4x32xf32>
    %1093 = arith.divf %1091, %1092 : vector<4x32xf32>
    %1094 = vector.extract_strided_slice %1054 {offsets = [0, 64], sizes = [4, 32], strides = [1, 1]} : vector<4x128xf32> to vector<4x32xf32>
    %1095 = math.tanh %1094 : vector<4x32xf32>
    %1096 = vector.extract_strided_slice %1054 {offsets = [0, 96], sizes = [4, 32], strides = [1, 1]} : vector<4x128xf32> to vector<4x32xf32>
    %1097 = arith.negf %1096 : vector<4x32xf32>
    %1098 = math.exp %1097 : vector<4x32xf32>
    %cst_499 = arith.constant 1.000000e+00 : f32
    %1099 = vector.broadcast %cst_499 : f32 to vector<4x32xf32>
    %1100 = arith.addf %1099, %1098 : vector<4x32xf32>
    %1101 = arith.divf %1099, %1100 : vector<4x32xf32>
    %1102 = arith.mulf %1093, %1081 : vector<4x32xf32>
    %1103 = arith.mulf %1087, %1095 : vector<4x32xf32>
    %1104 = arith.addf %1102, %1103 : vector<4x32xf32>
    %1105 = math.tanh %1104 : vector<4x32xf32>
    %1106 = arith.mulf %1101, %1105 : vector<4x32xf32>
    %c0_500 = arith.constant 0 : index
    %c0_501 = arith.constant 0 : index
    %1107 = vector.load %arg14[%c0_500, %c0_501] : memref<4x64xf32, #tpu.memory_space<vmem>>, vector<4x32xf32>
    tpu.vector_store %arg14[%c0_500, %c0_501], %1080 {strides = array<i32>} : memref<4x64xf32, #tpu.memory_space<vmem>>, vector<4x32xf32>,
    %c0_502 = arith.constant 0 : index
    %c32_503 = arith.constant 32 : index
    %1108 = vector.load %arg14[%c0_502, %c32_503] : memref<4x64xf32, #tpu.memory_space<vmem>>, vector<4x32xf32>
    tpu.vector_store %arg14[%c0_502, %c32_503], %1106 {strides = array<i32>} : memref<4x64xf32, #tpu.memory_space<vmem>>, vector<4x32xf32>,
    %c0_504 = arith.constant 0 : index
    %c0_505 = arith.constant 0 : index
    %1109 = vector.load %arg15[%c0_504, %c0_505] : memref<4x64xf32, #tpu.memory_space<vmem>>, vector<4x32xf32>
    tpu.vector_store %arg15[%c0_504, %c0_505], %1078 {strides = array<i32>} : memref<4x64xf32, #tpu.memory_space<vmem>>, vector<4x32xf32>,
    %c0_506 = arith.constant 0 : index
    %c32_507 = arith.constant 32 : index
    %1110 = vector.load %arg15[%c0_506, %c32_507] : memref<4x64xf32, #tpu.memory_space<vmem>>, vector<4x32xf32>
    tpu.vector_store %arg15[%c0_506, %c32_507], %1104 {strides = array<i32>} : memref<4x64xf32, #tpu.memory_space<vmem>>, vector<4x32xf32>,
    %c5_i32_508 = arith.constant 5 : i32
    %c0_509 = arith.constant 0 : index
    %c0_510 = arith.constant 0 : index
    %1111 = vector.load %arg14[%c0_509, %c0_510] : memref<4x64xf32, #tpu.memory_space<vmem>>, vector<4x64xf32>
    %cst_511 = arith.constant dense<0.000000e+00> : vector<4x256xf32>
    %1112 = tpu.matmul %1111, %761, %cst_511 {dimension_numbers = #tpu.dot_dimension_numbers<[1], [0], [0], [1], [0, 0, 1, 1], [], []>} : vector<4x64xf32>, vector<64x256xf32>, vector<4x256xf32> -> vector<4x256xf32>
    %1113 = arith.index_cast %c5_i32_508 : i32 to index
    %c0_512 = arith.constant 0 : index
    %c0_513 = arith.constant 0 : index
    %1114 = vector.load %arg12[%1113, %c0_512, %c0_513] : memref<8x4x256xf32, #tpu.memory_space<vmem>>, vector<1x4x128xf32>
    %1115 = vector.shape_cast %1114 : vector<1x4x128xf32> to vector<4x128xf32>
    %1116 = vector.extract_strided_slice %1112 {offsets = [0, 0], sizes = [4, 128], strides = [1, 1]} : vector<4x256xf32> to vector<4x128xf32>
    %1117 = arith.addf %1115, %1116 : vector<4x128xf32>
    %c7_i32_514 = arith.constant 7 : i32
    %1118 = arith.subi %c7_i32_514, %c5_i32_508 : i32
    %1119 = arith.index_cast %1118 : i32 to index
    %c0_515 = arith.constant 0 : index
    %c128_516 = arith.constant 128 : index
    %1120 = vector.load %arg12[%1119, %c0_515, %c128_516] : memref<8x4x256xf32, #tpu.memory_space<vmem>>, vector<1x4x128xf32>
    %1121 = vector.shape_cast %1120 : vector<1x4x128xf32> to vector<4x128xf32>
    %1122 = vector.extract_strided_slice %1112 {offsets = [0, 128], sizes = [4, 128], strides = [1, 1]} : vector<4x256xf32> to vector<4x128xf32>
    %1123 = arith.addf %1121, %1122 : vector<4x128xf32>
    %c0_517 = arith.constant 0 : index
    %c0_518 = arith.constant 0 : index
    %1124 = vector.load %arg15[%c0_517, %c0_518] : memref<4x64xf32, #tpu.memory_space<vmem>>, vector<4x32xf32>
    %1125 = vector.extract_strided_slice %1117 {offsets = [0, 0], sizes = [4, 32], strides = [1, 1]} : vector<4x128xf32> to vector<4x32xf32>
    %1126 = arith.negf %1125 : vector<4x32xf32>
    %1127 = math.exp %1126 : vector<4x32xf32>
    %cst_519 = arith.constant 1.000000e+00 : f32
    %1128 = vector.broadcast %cst_519 : f32 to vector<4x32xf32>
    %1129 = arith.addf %1128, %1127 : vector<4x32xf32>
    %1130 = arith.divf %1128, %1129 : vector<4x32xf32>
    %1131 = vector.extract_strided_slice %1117 {offsets = [0, 32], sizes = [4, 32], strides = [1, 1]} : vector<4x128xf32> to vector<4x32xf32>
    %1132 = arith.negf %1131 : vector<4x32xf32>
    %1133 = math.exp %1132 : vector<4x32xf32>
    %cst_520 = arith.constant 1.000000e+00 : f32
    %1134 = vector.broadcast %cst_520 : f32 to vector<4x32xf32>
    %1135 = arith.addf %1134, %1133 : vector<4x32xf32>
    %1136 = arith.divf %1134, %1135 : vector<4x32xf32>
    %1137 = vector.extract_strided_slice %1117 {offsets = [0, 64], sizes = [4, 32], strides = [1, 1]} : vector<4x128xf32> to vector<4x32xf32>
    %1138 = math.tanh %1137 : vector<4x32xf32>
    %1139 = vector.extract_strided_slice %1117 {offsets = [0, 96], sizes = [4, 32], strides = [1, 1]} : vector<4x128xf32> to vector<4x32xf32>
    %1140 = arith.negf %1139 : vector<4x32xf32>
    %1141 = math.exp %1140 : vector<4x32xf32>
    %cst_521 = arith.constant 1.000000e+00 : f32
    %1142 = vector.broadcast %cst_521 : f32 to vector<4x32xf32>
    %1143 = arith.addf %1142, %1141 : vector<4x32xf32>
    %1144 = arith.divf %1142, %1143 : vector<4x32xf32>
    %1145 = arith.mulf %1136, %1124 : vector<4x32xf32>
    %1146 = arith.mulf %1130, %1138 : vector<4x32xf32>
    %1147 = arith.addf %1145, %1146 : vector<4x32xf32>
    %1148 = math.tanh %1147 : vector<4x32xf32>
    %1149 = arith.mulf %1144, %1148 : vector<4x32xf32>
    %c0_522 = arith.constant 0 : index
    %c32_523 = arith.constant 32 : index
    %1150 = vector.load %arg15[%c0_522, %c32_523] : memref<4x64xf32, #tpu.memory_space<vmem>>, vector<4x32xf32>
    %1151 = vector.extract_strided_slice %1123 {offsets = [0, 0], sizes = [4, 32], strides = [1, 1]} : vector<4x128xf32> to vector<4x32xf32>
    %1152 = arith.negf %1151 : vector<4x32xf32>
    %1153 = math.exp %1152 : vector<4x32xf32>
    %cst_524 = arith.constant 1.000000e+00 : f32
    %1154 = vector.broadcast %cst_524 : f32 to vector<4x32xf32>
    %1155 = arith.addf %1154, %1153 : vector<4x32xf32>
    %1156 = arith.divf %1154, %1155 : vector<4x32xf32>
    %1157 = vector.extract_strided_slice %1123 {offsets = [0, 32], sizes = [4, 32], strides = [1, 1]} : vector<4x128xf32> to vector<4x32xf32>
    %1158 = arith.negf %1157 : vector<4x32xf32>
    %1159 = math.exp %1158 : vector<4x32xf32>
    %cst_525 = arith.constant 1.000000e+00 : f32
    %1160 = vector.broadcast %cst_525 : f32 to vector<4x32xf32>
    %1161 = arith.addf %1160, %1159 : vector<4x32xf32>
    %1162 = arith.divf %1160, %1161 : vector<4x32xf32>
    %1163 = vector.extract_strided_slice %1123 {offsets = [0, 64], sizes = [4, 32], strides = [1, 1]} : vector<4x128xf32> to vector<4x32xf32>
    %1164 = math.tanh %1163 : vector<4x32xf32>
    %1165 = vector.extract_strided_slice %1123 {offsets = [0, 96], sizes = [4, 32], strides = [1, 1]} : vector<4x128xf32> to vector<4x32xf32>
    %1166 = arith.negf %1165 : vector<4x32xf32>
    %1167 = math.exp %1166 : vector<4x32xf32>
    %cst_526 = arith.constant 1.000000e+00 : f32
    %1168 = vector.broadcast %cst_526 : f32 to vector<4x32xf32>
    %1169 = arith.addf %1168, %1167 : vector<4x32xf32>
    %1170 = arith.divf %1168, %1169 : vector<4x32xf32>
    %1171 = arith.mulf %1162, %1150 : vector<4x32xf32>
    %1172 = arith.mulf %1156, %1164 : vector<4x32xf32>
    %1173 = arith.addf %1171, %1172 : vector<4x32xf32>
    %1174 = math.tanh %1173 : vector<4x32xf32>
    %1175 = arith.mulf %1170, %1174 : vector<4x32xf32>
    %c0_527 = arith.constant 0 : index
    %c0_528 = arith.constant 0 : index
    %1176 = vector.load %arg14[%c0_527, %c0_528] : memref<4x64xf32, #tpu.memory_space<vmem>>, vector<4x32xf32>
    tpu.vector_store %arg14[%c0_527, %c0_528], %1149 {strides = array<i32>} : memref<4x64xf32, #tpu.memory_space<vmem>>, vector<4x32xf32>,
    %c0_529 = arith.constant 0 : index
    %c32_530 = arith.constant 32 : index
    %1177 = vector.load %arg14[%c0_529, %c32_530] : memref<4x64xf32, #tpu.memory_space<vmem>>, vector<4x32xf32>
    tpu.vector_store %arg14[%c0_529, %c32_530], %1175 {strides = array<i32>} : memref<4x64xf32, #tpu.memory_space<vmem>>, vector<4x32xf32>,
    %c0_531 = arith.constant 0 : index
    %c0_532 = arith.constant 0 : index
    %1178 = vector.load %arg15[%c0_531, %c0_532] : memref<4x64xf32, #tpu.memory_space<vmem>>, vector<4x32xf32>
    tpu.vector_store %arg15[%c0_531, %c0_532], %1147 {strides = array<i32>} : memref<4x64xf32, #tpu.memory_space<vmem>>, vector<4x32xf32>,
    %c0_533 = arith.constant 0 : index
    %c32_534 = arith.constant 32 : index
    %1179 = vector.load %arg15[%c0_533, %c32_534] : memref<4x64xf32, #tpu.memory_space<vmem>>, vector<4x32xf32>
    tpu.vector_store %arg15[%c0_533, %c32_534], %1173 {strides = array<i32>} : memref<4x64xf32, #tpu.memory_space<vmem>>, vector<4x32xf32>,
    %c6_i32_535 = arith.constant 6 : i32
    %c0_536 = arith.constant 0 : index
    %c0_537 = arith.constant 0 : index
    %1180 = vector.load %arg14[%c0_536, %c0_537] : memref<4x64xf32, #tpu.memory_space<vmem>>, vector<4x64xf32>
    %cst_538 = arith.constant dense<0.000000e+00> : vector<4x256xf32>
    %1181 = tpu.matmul %1180, %761, %cst_538 {dimension_numbers = #tpu.dot_dimension_numbers<[1], [0], [0], [1], [0, 0, 1, 1], [], []>} : vector<4x64xf32>, vector<64x256xf32>, vector<4x256xf32> -> vector<4x256xf32>
    %1182 = arith.index_cast %c6_i32_535 : i32 to index
    %c0_539 = arith.constant 0 : index
    %c0_540 = arith.constant 0 : index
    %1183 = vector.load %arg12[%1182, %c0_539, %c0_540] : memref<8x4x256xf32, #tpu.memory_space<vmem>>, vector<1x4x128xf32>
    %1184 = vector.shape_cast %1183 : vector<1x4x128xf32> to vector<4x128xf32>
    %1185 = vector.extract_strided_slice %1181 {offsets = [0, 0], sizes = [4, 128], strides = [1, 1]} : vector<4x256xf32> to vector<4x128xf32>
    %1186 = arith.addf %1184, %1185 : vector<4x128xf32>
    %c7_i32_541 = arith.constant 7 : i32
    %1187 = arith.subi %c7_i32_541, %c6_i32_535 : i32
    %1188 = arith.index_cast %1187 : i32 to index
    %c0_542 = arith.constant 0 : index
    %c128_543 = arith.constant 128 : index
    %1189 = vector.load %arg12[%1188, %c0_542, %c128_543] : memref<8x4x256xf32, #tpu.memory_space<vmem>>, vector<1x4x128xf32>
    %1190 = vector.shape_cast %1189 : vector<1x4x128xf32> to vector<4x128xf32>
    %1191 = vector.extract_strided_slice %1181 {offsets = [0, 128], sizes = [4, 128], strides = [1, 1]} : vector<4x256xf32> to vector<4x128xf32>
    %1192 = arith.addf %1190, %1191 : vector<4x128xf32>
    %c0_544 = arith.constant 0 : index
    %c0_545 = arith.constant 0 : index
    %1193 = vector.load %arg15[%c0_544, %c0_545] : memref<4x64xf32, #tpu.memory_space<vmem>>, vector<4x32xf32>
    %1194 = vector.extract_strided_slice %1186 {offsets = [0, 0], sizes = [4, 32], strides = [1, 1]} : vector<4x128xf32> to vector<4x32xf32>
    %1195 = arith.negf %1194 : vector<4x32xf32>
    %1196 = math.exp %1195 : vector<4x32xf32>
    %cst_546 = arith.constant 1.000000e+00 : f32
    %1197 = vector.broadcast %cst_546 : f32 to vector<4x32xf32>
    %1198 = arith.addf %1197, %1196 : vector<4x32xf32>
    %1199 = arith.divf %1197, %1198 : vector<4x32xf32>
    %1200 = vector.extract_strided_slice %1186 {offsets = [0, 32], sizes = [4, 32], strides = [1, 1]} : vector<4x128xf32> to vector<4x32xf32>
    %1201 = arith.negf %1200 : vector<4x32xf32>
    %1202 = math.exp %1201 : vector<4x32xf32>
    %cst_547 = arith.constant 1.000000e+00 : f32
    %1203 = vector.broadcast %cst_547 : f32 to vector<4x32xf32>
    %1204 = arith.addf %1203, %1202 : vector<4x32xf32>
    %1205 = arith.divf %1203, %1204 : vector<4x32xf32>
    %1206 = vector.extract_strided_slice %1186 {offsets = [0, 64], sizes = [4, 32], strides = [1, 1]} : vector<4x128xf32> to vector<4x32xf32>
    %1207 = math.tanh %1206 : vector<4x32xf32>
    %1208 = vector.extract_strided_slice %1186 {offsets = [0, 96], sizes = [4, 32], strides = [1, 1]} : vector<4x128xf32> to vector<4x32xf32>
    %1209 = arith.negf %1208 : vector<4x32xf32>
    %1210 = math.exp %1209 : vector<4x32xf32>
    %cst_548 = arith.constant 1.000000e+00 : f32
    %1211 = vector.broadcast %cst_548 : f32 to vector<4x32xf32>
    %1212 = arith.addf %1211, %1210 : vector<4x32xf32>
    %1213 = arith.divf %1211, %1212 : vector<4x32xf32>
    %1214 = arith.mulf %1205, %1193 : vector<4x32xf32>
    %1215 = arith.mulf %1199, %1207 : vector<4x32xf32>
    %1216 = arith.addf %1214, %1215 : vector<4x32xf32>
    %1217 = math.tanh %1216 : vector<4x32xf32>
    %1218 = arith.mulf %1213, %1217 : vector<4x32xf32>
    %c0_549 = arith.constant 0 : index
    %c32_550 = arith.constant 32 : index
    %1219 = vector.load %arg15[%c0_549, %c32_550] : memref<4x64xf32, #tpu.memory_space<vmem>>, vector<4x32xf32>
    %1220 = vector.extract_strided_slice %1192 {offsets = [0, 0], sizes = [4, 32], strides = [1, 1]} : vector<4x128xf32> to vector<4x32xf32>
    %1221 = arith.negf %1220 : vector<4x32xf32>
    %1222 = math.exp %1221 : vector<4x32xf32>
    %cst_551 = arith.constant 1.000000e+00 : f32
    %1223 = vector.broadcast %cst_551 : f32 to vector<4x32xf32>
    %1224 = arith.addf %1223, %1222 : vector<4x32xf32>
    %1225 = arith.divf %1223, %1224 : vector<4x32xf32>
    %1226 = vector.extract_strided_slice %1192 {offsets = [0, 32], sizes = [4, 32], strides = [1, 1]} : vector<4x128xf32> to vector<4x32xf32>
    %1227 = arith.negf %1226 : vector<4x32xf32>
    %1228 = math.exp %1227 : vector<4x32xf32>
    %cst_552 = arith.constant 1.000000e+00 : f32
    %1229 = vector.broadcast %cst_552 : f32 to vector<4x32xf32>
    %1230 = arith.addf %1229, %1228 : vector<4x32xf32>
    %1231 = arith.divf %1229, %1230 : vector<4x32xf32>
    %1232 = vector.extract_strided_slice %1192 {offsets = [0, 64], sizes = [4, 32], strides = [1, 1]} : vector<4x128xf32> to vector<4x32xf32>
    %1233 = math.tanh %1232 : vector<4x32xf32>
    %1234 = vector.extract_strided_slice %1192 {offsets = [0, 96], sizes = [4, 32], strides = [1, 1]} : vector<4x128xf32> to vector<4x32xf32>
    %1235 = arith.negf %1234 : vector<4x32xf32>
    %1236 = math.exp %1235 : vector<4x32xf32>
    %cst_553 = arith.constant 1.000000e+00 : f32
    %1237 = vector.broadcast %cst_553 : f32 to vector<4x32xf32>
    %1238 = arith.addf %1237, %1236 : vector<4x32xf32>
    %1239 = arith.divf %1237, %1238 : vector<4x32xf32>
    %1240 = arith.mulf %1231, %1219 : vector<4x32xf32>
    %1241 = arith.mulf %1225, %1233 : vector<4x32xf32>
    %1242 = arith.addf %1240, %1241 : vector<4x32xf32>
    %1243 = math.tanh %1242 : vector<4x32xf32>
    %1244 = arith.mulf %1239, %1243 : vector<4x32xf32>
    %c0_554 = arith.constant 0 : index
    %c0_555 = arith.constant 0 : index
    %1245 = vector.load %arg14[%c0_554, %c0_555] : memref<4x64xf32, #tpu.memory_space<vmem>>, vector<4x32xf32>
    tpu.vector_store %arg14[%c0_554, %c0_555], %1218 {strides = array<i32>} : memref<4x64xf32, #tpu.memory_space<vmem>>, vector<4x32xf32>,
    %c0_556 = arith.constant 0 : index
    %c32_557 = arith.constant 32 : index
    %1246 = vector.load %arg14[%c0_556, %c32_557] : memref<4x64xf32, #tpu.memory_space<vmem>>, vector<4x32xf32>
    tpu.vector_store %arg14[%c0_556, %c32_557], %1244 {strides = array<i32>} : memref<4x64xf32, #tpu.memory_space<vmem>>, vector<4x32xf32>,
    %c0_558 = arith.constant 0 : index
    %c0_559 = arith.constant 0 : index
    %1247 = vector.load %arg15[%c0_558, %c0_559] : memref<4x64xf32, #tpu.memory_space<vmem>>, vector<4x32xf32>
    tpu.vector_store %arg15[%c0_558, %c0_559], %1216 {strides = array<i32>} : memref<4x64xf32, #tpu.memory_space<vmem>>, vector<4x32xf32>,
    %c0_560 = arith.constant 0 : index
    %c32_561 = arith.constant 32 : index
    %1248 = vector.load %arg15[%c0_560, %c32_561] : memref<4x64xf32, #tpu.memory_space<vmem>>, vector<4x32xf32>
    tpu.vector_store %arg15[%c0_560, %c32_561], %1242 {strides = array<i32>} : memref<4x64xf32, #tpu.memory_space<vmem>>, vector<4x32xf32>,
    %c7_i32_562 = arith.constant 7 : i32
    %c0_563 = arith.constant 0 : index
    %c0_564 = arith.constant 0 : index
    %1249 = vector.load %arg14[%c0_563, %c0_564] : memref<4x64xf32, #tpu.memory_space<vmem>>, vector<4x64xf32>
    %cst_565 = arith.constant dense<0.000000e+00> : vector<4x256xf32>
    %1250 = tpu.matmul %1249, %761, %cst_565 {dimension_numbers = #tpu.dot_dimension_numbers<[1], [0], [0], [1], [0, 0, 1, 1], [], []>} : vector<4x64xf32>, vector<64x256xf32>, vector<4x256xf32> -> vector<4x256xf32>
    %1251 = arith.index_cast %c7_i32_562 : i32 to index
    %c0_566 = arith.constant 0 : index
    %c0_567 = arith.constant 0 : index
    %1252 = vector.load %arg12[%1251, %c0_566, %c0_567] : memref<8x4x256xf32, #tpu.memory_space<vmem>>, vector<1x4x128xf32>
    %1253 = vector.shape_cast %1252 : vector<1x4x128xf32> to vector<4x128xf32>
    %1254 = vector.extract_strided_slice %1250 {offsets = [0, 0], sizes = [4, 128], strides = [1, 1]} : vector<4x256xf32> to vector<4x128xf32>
    %1255 = arith.addf %1253, %1254 : vector<4x128xf32>
    %c7_i32_568 = arith.constant 7 : i32
    %1256 = arith.subi %c7_i32_568, %c7_i32_562 : i32
    %1257 = arith.index_cast %1256 : i32 to index
    %c0_569 = arith.constant 0 : index
    %c128_570 = arith.constant 128 : index
    %1258 = vector.load %arg12[%1257, %c0_569, %c128_570] : memref<8x4x256xf32, #tpu.memory_space<vmem>>, vector<1x4x128xf32>
    %1259 = vector.shape_cast %1258 : vector<1x4x128xf32> to vector<4x128xf32>
    %1260 = vector.extract_strided_slice %1250 {offsets = [0, 128], sizes = [4, 128], strides = [1, 1]} : vector<4x256xf32> to vector<4x128xf32>
    %1261 = arith.addf %1259, %1260 : vector<4x128xf32>
    %c0_571 = arith.constant 0 : index
    %c0_572 = arith.constant 0 : index
    %1262 = vector.load %arg15[%c0_571, %c0_572] : memref<4x64xf32, #tpu.memory_space<vmem>>, vector<4x32xf32>
    %1263 = vector.extract_strided_slice %1255 {offsets = [0, 0], sizes = [4, 32], strides = [1, 1]} : vector<4x128xf32> to vector<4x32xf32>
    %1264 = arith.negf %1263 : vector<4x32xf32>
    %1265 = math.exp %1264 : vector<4x32xf32>
    %cst_573 = arith.constant 1.000000e+00 : f32
    %1266 = vector.broadcast %cst_573 : f32 to vector<4x32xf32>
    %1267 = arith.addf %1266, %1265 : vector<4x32xf32>
    %1268 = arith.divf %1266, %1267 : vector<4x32xf32>
    %1269 = vector.extract_strided_slice %1255 {offsets = [0, 32], sizes = [4, 32], strides = [1, 1]} : vector<4x128xf32> to vector<4x32xf32>
    %1270 = arith.negf %1269 : vector<4x32xf32>
    %1271 = math.exp %1270 : vector<4x32xf32>
    %cst_574 = arith.constant 1.000000e+00 : f32
    %1272 = vector.broadcast %cst_574 : f32 to vector<4x32xf32>
    %1273 = arith.addf %1272, %1271 : vector<4x32xf32>
    %1274 = arith.divf %1272, %1273 : vector<4x32xf32>
    %1275 = vector.extract_strided_slice %1255 {offsets = [0, 64], sizes = [4, 32], strides = [1, 1]} : vector<4x128xf32> to vector<4x32xf32>
    %1276 = math.tanh %1275 : vector<4x32xf32>
    %1277 = vector.extract_strided_slice %1255 {offsets = [0, 96], sizes = [4, 32], strides = [1, 1]} : vector<4x128xf32> to vector<4x32xf32>
    %1278 = arith.negf %1277 : vector<4x32xf32>
    %1279 = math.exp %1278 : vector<4x32xf32>
    %cst_575 = arith.constant 1.000000e+00 : f32
    %1280 = vector.broadcast %cst_575 : f32 to vector<4x32xf32>
    %1281 = arith.addf %1280, %1279 : vector<4x32xf32>
    %1282 = arith.divf %1280, %1281 : vector<4x32xf32>
    %1283 = arith.mulf %1274, %1262 : vector<4x32xf32>
    %1284 = arith.mulf %1268, %1276 : vector<4x32xf32>
    %1285 = arith.addf %1283, %1284 : vector<4x32xf32>
    %1286 = math.tanh %1285 : vector<4x32xf32>
    %1287 = arith.mulf %1282, %1286 : vector<4x32xf32>
    %c0_576 = arith.constant 0 : index
    %c32_577 = arith.constant 32 : index
    %1288 = vector.load %arg15[%c0_576, %c32_577] : memref<4x64xf32, #tpu.memory_space<vmem>>, vector<4x32xf32>
    %1289 = vector.extract_strided_slice %1261 {offsets = [0, 0], sizes = [4, 32], strides = [1, 1]} : vector<4x128xf32> to vector<4x32xf32>
    %1290 = arith.negf %1289 : vector<4x32xf32>
    %1291 = math.exp %1290 : vector<4x32xf32>
    %cst_578 = arith.constant 1.000000e+00 : f32
    %1292 = vector.broadcast %cst_578 : f32 to vector<4x32xf32>
    %1293 = arith.addf %1292, %1291 : vector<4x32xf32>
    %1294 = arith.divf %1292, %1293 : vector<4x32xf32>
    %1295 = vector.extract_strided_slice %1261 {offsets = [0, 32], sizes = [4, 32], strides = [1, 1]} : vector<4x128xf32> to vector<4x32xf32>
    %1296 = arith.negf %1295 : vector<4x32xf32>
    %1297 = math.exp %1296 : vector<4x32xf32>
    %cst_579 = arith.constant 1.000000e+00 : f32
    %1298 = vector.broadcast %cst_579 : f32 to vector<4x32xf32>
    %1299 = arith.addf %1298, %1297 : vector<4x32xf32>
    %1300 = arith.divf %1298, %1299 : vector<4x32xf32>
    %1301 = vector.extract_strided_slice %1261 {offsets = [0, 64], sizes = [4, 32], strides = [1, 1]} : vector<4x128xf32> to vector<4x32xf32>
    %1302 = math.tanh %1301 : vector<4x32xf32>
    %1303 = vector.extract_strided_slice %1261 {offsets = [0, 96], sizes = [4, 32], strides = [1, 1]} : vector<4x128xf32> to vector<4x32xf32>
    %1304 = arith.negf %1303 : vector<4x32xf32>
    %1305 = math.exp %1304 : vector<4x32xf32>
    %cst_580 = arith.constant 1.000000e+00 : f32
    %1306 = vector.broadcast %cst_580 : f32 to vector<4x32xf32>
    %1307 = arith.addf %1306, %1305 : vector<4x32xf32>
    %1308 = arith.divf %1306, %1307 : vector<4x32xf32>
    %1309 = arith.mulf %1300, %1288 : vector<4x32xf32>
    %1310 = arith.mulf %1294, %1302 : vector<4x32xf32>
    %1311 = arith.addf %1309, %1310 : vector<4x32xf32>
    %1312 = math.tanh %1311 : vector<4x32xf32>
    %1313 = arith.mulf %1308, %1312 : vector<4x32xf32>
    %c0_581 = arith.constant 0 : index
    %c0_582 = arith.constant 0 : index
    %1314 = vector.load %arg14[%c0_581, %c0_582] : memref<4x64xf32, #tpu.memory_space<vmem>>, vector<4x32xf32>
    tpu.vector_store %arg14[%c0_581, %c0_582], %1287 {strides = array<i32>} : memref<4x64xf32, #tpu.memory_space<vmem>>, vector<4x32xf32>,
    %c0_583 = arith.constant 0 : index
    %c32_584 = arith.constant 32 : index
    %1315 = vector.load %arg14[%c0_583, %c32_584] : memref<4x64xf32, #tpu.memory_space<vmem>>, vector<4x32xf32>
    tpu.vector_store %arg14[%c0_583, %c32_584], %1313 {strides = array<i32>} : memref<4x64xf32, #tpu.memory_space<vmem>>, vector<4x32xf32>,
    %c0_585 = arith.constant 0 : index
    %c0_586 = arith.constant 0 : index
    %1316 = vector.load %arg15[%c0_585, %c0_586] : memref<4x64xf32, #tpu.memory_space<vmem>>, vector<4x32xf32>
    tpu.vector_store %arg15[%c0_585, %c0_586], %1285 {strides = array<i32>} : memref<4x64xf32, #tpu.memory_space<vmem>>, vector<4x32xf32>,
    %c0_587 = arith.constant 0 : index
    %c32_588 = arith.constant 32 : index
    %1317 = vector.load %arg15[%c0_587, %c32_588] : memref<4x64xf32, #tpu.memory_space<vmem>>, vector<4x32xf32>
    tpu.vector_store %arg15[%c0_587, %c32_588], %1311 {strides = array<i32>} : memref<4x64xf32, #tpu.memory_space<vmem>>, vector<4x32xf32>,
    %c8_i32_589 = arith.constant 8 : i32
    %c0_590 = arith.constant 0 : index
    %c0_591 = arith.constant 0 : index
    %c0_592 = arith.constant 0 : index
    %1318 = vector.load %arg0[%c0_590, %c0_591, %c0_592] : memref<8x4x32xf32, #tpu.memory_space<vmem>>, vector<8x4x32xf32>
    %cst_593 = arith.constant dense<0.000000e+00> : vector<4x32xf32>
    %1319 = vector.multi_reduction <add>, %1318, %cst_593 [0] : vector<8x4x32xf32> to vector<4x32xf32>
    %cst_594 = arith.constant 8.000000e+00 : f32
    %1320 = vector.broadcast %cst_594 : f32 to vector<4x32xf32>
    %1321 = arith.divf %1319, %1320 : vector<4x32xf32>
    %cst_595 = arith.constant dense<0xFF800000> : vector<4x32xf32>
    %1322 = vector.multi_reduction <maximumf>, %1318, %cst_595 [0] : vector<8x4x32xf32> to vector<4x32xf32>
    %c0_596 = arith.constant 0 : index
    %c0_597 = arith.constant 0 : index
    %1323 = vector.load %arg14[%c0_596, %c0_597] : memref<4x64xf32, #tpu.memory_space<vmem>>, vector<4x64xf32>
    %c0_598 = arith.constant 0 : index
    %c0_599 = arith.constant 0 : index
    %1324 = vector.load %arg16[%c0_598, %c0_599] : memref<4x128xf32, #tpu.memory_space<vmem>>, vector<4x64xf32>
    tpu.vector_store %arg16[%c0_598, %c0_599], %1323 {strides = array<i32>} : memref<4x128xf32, #tpu.memory_space<vmem>>, vector<4x64xf32>,
    %c0_600 = arith.constant 0 : index
    %c64 = arith.constant 64 : index
    %1325 = vector.load %arg16[%c0_600, %c64] : memref<4x128xf32, #tpu.memory_space<vmem>>, vector<4x32xf32>
    tpu.vector_store %arg16[%c0_600, %c64], %1321 {strides = array<i32>} : memref<4x128xf32, #tpu.memory_space<vmem>>, vector<4x32xf32>,
    %c0_601 = arith.constant 0 : index
    %c96 = arith.constant 96 : index
    %1326 = vector.load %arg16[%c0_601, %c96] : memref<4x128xf32, #tpu.memory_space<vmem>>, vector<4x32xf32>
    tpu.vector_store %arg16[%c0_601, %c96], %1322 {strides = array<i32>} : memref<4x128xf32, #tpu.memory_space<vmem>>, vector<4x32xf32>,
    %c0_602 = arith.constant 0 : index
    %c0_603 = arith.constant 0 : index
    %1327 = vector.load %arg16[%c0_602, %c0_603] : memref<4x128xf32, #tpu.memory_space<vmem>>, vector<4x128xf32>
    %cst_604 = arith.constant dense<0.000000e+00> : vector<4xf32>
    %1328 = vector.multi_reduction <add>, %1327, %cst_604 [1] : vector<4x128xf32> to vector<4xf32>
    %1329 = vector.shape_cast %1328 : vector<4xf32> to vector<4x1xf32>
    %cst_605 = arith.constant 1.280000e+02 : f32
    %1330 = vector.broadcast %cst_605 : f32 to vector<4x1xf32>
    %1331 = arith.divf %1329, %1330 : vector<4x1xf32>
    %1332 = vector.broadcast %1331 : vector<4x1xf32> to vector<4x128xf32>
    %1333 = arith.subf %1327, %1332 : vector<4x128xf32>
    %1334 = arith.mulf %1333, %1333 : vector<4x128xf32>
    %cst_606 = arith.constant dense<0.000000e+00> : vector<4xf32>
    %1335 = vector.multi_reduction <add>, %1334, %cst_606 [1] : vector<4x128xf32> to vector<4xf32>
    %1336 = vector.shape_cast %1335 : vector<4xf32> to vector<4x1xf32>
    %cst_607 = arith.constant 1.280000e+02 : f32
    %1337 = vector.broadcast %cst_607 : f32 to vector<4x1xf32>
    %1338 = arith.divf %1336, %1337 : vector<4x1xf32>
    %1339 = vector.broadcast %1331 : vector<4x1xf32> to vector<4x128xf32>
    %1340 = arith.subf %1327, %1339 : vector<4x128xf32>
    %cst_608 = arith.constant 9.99999974E-6 : f32
    %1341 = vector.broadcast %cst_608 : f32 to vector<4x1xf32>
    %1342 = arith.addf %1338, %1341 : vector<4x1xf32>
    %1343 = math.rsqrt %1342 : vector<4x1xf32>
    %1344 = vector.broadcast %1343 : vector<4x1xf32> to vector<4x128xf32>
    %1345 = arith.mulf %1340, %1344 : vector<4x128xf32>
    %c0_609 = arith.constant 0 : index
    %c0_610 = arith.constant 0 : index
    %1346 = vector.load %arg7[%c0_609, %c0_610] : memref<1x128xf32, #tpu.memory_space<vmem>>, vector<1x128xf32>
    %1347 = vector.broadcast %1346 : vector<1x128xf32> to vector<4x128xf32>
    %1348 = arith.mulf %1345, %1347 : vector<4x128xf32>
    %c0_611 = arith.constant 0 : index
    %c0_612 = arith.constant 0 : index
    %1349 = vector.load %arg8[%c0_611, %c0_612] : memref<1x128xf32, #tpu.memory_space<vmem>>, vector<1x128xf32>
    %1350 = vector.broadcast %1349 : vector<1x128xf32> to vector<4x128xf32>
    %1351 = arith.addf %1348, %1350 : vector<4x128xf32>
    %cst_613 = arith.constant 0.000000e+00 : f32
    %1352 = vector.broadcast %cst_613 : f32 to vector<4x128xf32>
    %1353 = arith.maximumf %1351, %1352 : vector<4x128xf32>
    %c0_614 = arith.constant 0 : index
    %c0_615 = arith.constant 0 : index
    %1354 = vector.load %arg9[%c0_614, %c0_615] : memref<128x8xf32, #tpu.memory_space<vmem>>, vector<128x8xf32>
    %cst_616 = arith.constant dense<0.000000e+00> : vector<4x8xf32>
    %1355 = tpu.matmul %1353, %1354, %cst_616 {dimension_numbers = #tpu.dot_dimension_numbers<[1], [0], [0], [1], [0, 0, 1, 1], [], []>} : vector<4x128xf32>, vector<128x8xf32>, vector<4x8xf32> -> vector<4x8xf32>
    %c0_617 = arith.constant 0 : index
    %c0_618 = arith.constant 0 : index
    %1356 = vector.load %arg10[%c0_617, %c0_618] : memref<1x8xf32, #tpu.memory_space<vmem>>, vector<1x8xf32>
    %1357 = vector.broadcast %1356 : vector<1x8xf32> to vector<4x8xf32>
    %1358 = arith.addf %1355, %1357 : vector<4x8xf32>
    %c0_619 = arith.constant 0 : index
    %c0_620 = arith.constant 0 : index
    %1359 = vector.load %arg11[%c0_619, %c0_620] : memref<4x8xf32, #tpu.memory_space<vmem>>, vector<4x8xf32>
    tpu.vector_store %arg11[%c0_619, %c0_620], %1358 {strides = array<i32>} : memref<4x8xf32, #tpu.memory_space<vmem>>, vector<4x8xf32>,
    return
  }
}

</mosaic_0001>

<bundles_post_ra>
// kernel: lstm_model_forward.1
= control target key start
LH: loop header
LB: loop body
LE: loop exit
PB: predicated region body
PF: predicated region fallthrough
CT: control target
= control target key end

     0   :  { %vm485_vm0 = vcmask 519168   ;;  %v3983_v5 = vmov 0.0   ;;  %vm54_vm1 = vcmask 261120   ;;  %s5406_s0 = inlined_call_operand.vmem [shape: f32[8,4,32], index: 0, kind: input, shape index: {}]   ;;  %s5407_s1 = inlined_call_operand.vmem [shape: f32[32,256], index: 1, kind: input, shape index: {}]   ;;  %s5408_s2 = inlined_call_operand.vmem [shape: f32[64,256], index: 2, kind: input, shape index: {}]   ;;  %s5409_s3 = inlined_call_operand.vmem [shape: f32[1,256], index: 3, kind: input, shape index: {}]   ;;  %s5410_s4 = inlined_call_operand.vmem [shape: f32[64,256], index: 4, kind: input, shape index: {}]   ;;  %s5411_s5 = inlined_call_operand.vmem [shape: f32[64,256], index: 5, kind: input, shape index: {}]   ;;  %s5412_s6 = inlined_call_operand.vmem [shape: f32[1,256], index: 6, kind: input, shape index: {}]   ;;  %s5413_s7 = inlined_call_operand.vmem [shape: f32[1,128], index: 7, kind: input, shape index: {}]   ;;  %s5414_s8 = inlined_call_operand.vmem [shape: f32[1,128], index: 8, kind: input, shape index: {}]   ;;  %s5415_s9 = inlined_call_operand.vmem [shape: f32[128,8], index: 9, kind: input, shape index: {}]   ;;  %s5416_s10 = inlined_call_operand.vmem [shape: f32[1,8], index: 10, kind: input, shape index: {}]   ;;  %s5417_s11 = inlined_call_operand.hbm [shape: f32[4,8], index: 11, kind: output, shape index: {}]  }
   0x1   :  { %v4053_v0 = vld [vmem:[%s5407_s1 + $0x38] sm:$0xff]  ;;  %v4058_v1 = vld [vmem:[%s5407_s1 + $0x30] sm:$0xff]  ;;  %v4063_v2 = vld [vmem:[%s5407_s1 + $0x28] sm:$0xff]  ;;  %486 = vst.msk [vmem:[#allocation4] sm:$0xf] %vm485_vm0, %v3983_v5 }
   0x2   :  { %90 = vmatpush.msra.mxu3 %v4053_v0  ;;  %194 = vmatpush.msra.mxu1 %v4053_v0  ;;  %v4070_v3 = vld [vmem:[%s5407_s1 + $0x20] sm:$0xff]  ;;  %v4076_v4 = vld [vmem:[%s5407_s1 + $0x18] sm:$0xff]  ;;  %v4086_v6 = vld [vmem:[%s5407_s1 + $0x10] sm:$0xff]  ;;  %487 = vst.msk [vmem:[#allocation5] sm:$0xf] %vm485_vm0, %v3983_v5 }
   0x3   :  { %70 = vmatpush.msra.mxu2 %v4058_v1  ;;  %174 = vmatpush.msra.mxu0 %v4058_v1  ;;  %v4092_v7 = vld [vmem:[%s5407_s1 + $0x8] sm:$0xff]  ;;  %v48_v8 = vld [vmem:[%s5406_s0] sm:$0xf] }
   0x4   :  { %91 = vmatpush.msra.mxu3 %v4063_v2  ;;  %195 = vmatpush.msra.mxu1 %v4063_v2  ;;  %v4106_v9 = vld [vmem:[%s5407_s1] sm:$0xff] }
   0x5   :  { %71 = vmatpush.msra.mxu2 %v4070_v3  ;;  %175 = vmatpush.msra.mxu0 %v4070_v3 }
   0x6   :  { %92 = vmatpush.msra.mxu3 %v4076_v4  ;;  %196 = vmatpush.msra.mxu1 %v4076_v4 }
   0x7   :  { %72 = vmatpush.msra.mxu2 %v4086_v6  ;;  %176 = vmatpush.msra.mxu0 %v4086_v6 }
   0x8   :  { %93 = vmatpush.msra.mxu3 %v4092_v7  ;;  %197 = vmatpush.msra.mxu1 %v4092_v7 }
   0x9   :  { %3578 = vmatmul.msk.f32.vlgmr.msra.gmra.mxu3 %vm54_vm1, %v48_v8 }
   0xa   :  { %298 = vmatpush.msrb.mxu1 %v4053_v0 }
   0xb   :  { %16 = vsyncpa [#allocation8], 0  ;;  %73 = vmatpush.msra.mxu2 %v4106_v9  ;;  %142 = vmatpush.msrb.mxu3 %v4053_v0  ;;  %v3582_v10 = vld [vmem:[%s5406_s0 + $0x8] sm:$0xf]  ;;  %v3579_v11 = vld [vmem:[%s5406_s0 + $0x4] sm:$0xf] }
   0xc   :  { %3577 = vmatmul.msk.f32.vlgmr.msra.gmra.mxu2 %vm54_vm1, %v48_v8  ;;  %299 = vmatpush.msrb.mxu1 %v4063_v2  ;;  %v3588_v12 = vld [vmem:[%s5406_s0 + $0x10] sm:$0xf]  ;;  %v3585_v14 = vld [vmem:[%s5406_s0 + $0xc] sm:$0xf]  ;;  %v4167_v15 = vld [vmem:[%s5408_s2 + $0x60] sm:$0xff]  ;;  %vm489_vm2 = vcmask 523264  }
   0xd   :  { %122 = vmatpush.msrb.mxu2 %v4058_v1  ;;  %143 = vmatpush.msrb.mxu3 %v4063_v2  ;;  %v4153_v13 = vld [vmem:[%s5408_s2 + $0x70] sm:$0xff]  ;;  %v4185_v17 = vld [vmem:[%s5408_s2 + $0x40] sm:$0xff]  ;;  %v3594_v18 = vld [vmem:[%s5406_s0 + $0x18] sm:$0xf]  ;;  %s3984_s23 = smov 32   ;;  %vm101_vm3 = vcmask 1043456  }
   0xe   :  { %300 = vmatpush.msrb.mxu1 %v4076_v4  ;;  %177 = vmatpush.msra.mxu0 %v4106_v9  ;;  %v4176_v16 = vld [vmem:[%s5408_s2 + $0x50] sm:$0xff]  ;;  %v4211_v21 = vld [vmem:[%s5408_s2 + $0x20] sm:$0xff]  ;;  %v4231_v24 = vld [vmem:[#allocation5] sm:$0xf]  ;;  %s3986_s25 = smov 96   ;;  %vm622_vm12 = vcmask 257024  }
   0xf   :  { %123 = vmatpush.msrb.mxu2 %v4070_v3  ;;  %144 = vmatpush.msrb.mxu3 %v4076_v4  ;;  %v4199_v19 = vld [vmem:[%s5408_s2 + $0x30] sm:$0xff]  ;;  %v4229_v23 = vld [vmem:[%s5408_s2] sm:$0xff]  ;;  %v488_v25 = vld [vmem:[#allocation4] sm:$0xf]  ;;  %vm630_vm13 = vcmask 519424   ;;  %s3989_s20 = smov [#allocation7]  }
  0x10   :  { %3584 = vmatmul.msk.f32.vlgmr.msra.gmra.mxu1 %vm54_vm1, %v3582_v10  ;;  %3583 = vmatmul.msk.f32.vlgmr.msra.gmra.mxu0 %vm54_vm1, %v3582_v10  ;;  %v3591_v20 = vld [vmem:[%s5406_s0 + $0x14] sm:$0xf]  ;;  %v3597_v26 = vld [vmem:[%s5406_s0 + $0x1c] sm:$0xf]  ;;  %v4257_v28 = vld [vmem:[%s5408_s2 + $0x68] sm:$0xff]  ;;  %s3566_s21 = sshll.u32 %s3989_s20, 4  ;;  %s3567_s21 = int_to_ptr.vmem [resolvable:$true] %s3566_s21 }
  0x11   :  { %301 = vmatpush.msrb.mxu1 %v4092_v7  ;;  %124 = vmatpush.msrb.mxu2 %v4086_v6  ;;  %v4220_v22 = vld [vmem:[%s5408_s2 + $0x10] sm:$0xff]  ;;  %v4248_v27 = vld [vmem:[%s5408_s2 + $0x78] sm:$0xff]  ;;  %v4273_v30 = vld [vmem:[%s5408_s2 + $0x48] sm:$0xff] }
  0x12   :  { %145 = vmatpush.msrb.mxu3 %v4092_v7  ;;  %278 = vmatpush.msrb.mxu0 %v4058_v1  ;;  %v4265_v29 = vld [vmem:[%s5408_s2 + $0x58] sm:$0xff]  ;;  %v4291_v32 = vld [vmem:[%s5408_s2 + $0x28] sm:$0xff]  ;;  %v47_v35 = vld [vmem:[%s5409_s3] sm:$0x3]  ;;  %s3985_s3 = smov 64  }
  0x13   :  { %402 = vmatpush.msra.mxu1 %v4053_v0  ;;  %3581 = vmatmul.msk.f32.vlgmr.msrb.gmra.mxu3 %vm54_vm1, %v3579_v11  ;;  %v4282_v31 = vld [vmem:[%s5408_s2 + $0x38] sm:$0xff]  ;;  %v4309_v34 = vld [vmem:[%s5408_s2 + $0x8] sm:$0xff]  ;;  %v51_v36 = vperm.slane %v47_v35, 1  ;;  %v50_v37 = vperm.slane %v47_v35, 0 }
  0x14   :  { %125 = vmatpush.msrb.mxu2 %v4106_v9  ;;  %246 = vmatpush.msra.mxu3 %v4053_v0  ;;  %v4300_v33 = vld [vmem:[%s5408_s2 + $0x18] sm:$0xff] }
  0x15   :  { %403 = vmatpush.msra.mxu1 %v4063_v2  ;;  %3580 = vmatmul.msk.f32.vlgmr.msrb.gmra.mxu2 %vm54_vm1, %v3579_v11 }
  0x16   :  { %279 = vmatpush.msrb.mxu0 %v4070_v3  ;;  %226 = vmatpush.msra.mxu2 %v4058_v1 }
  0x17   :  { %247 = vmatpush.msra.mxu3 %v4063_v2  ;;  %404 = vmatpush.msra.mxu1 %v4076_v4 }
  0x18   :  { %280 = vmatpush.msrb.mxu0 %v4086_v6  ;;  %227 = vmatpush.msra.mxu2 %v4070_v3 }
  0x19   :  { %248 = vmatpush.msra.mxu3 %v4076_v4  ;;  %3590 = vmatmul.msk.f32.vlgmr.msrb.gmra.mxu1 %vm54_vm1, %v3588_v12 }
  0x1a   :  { %405 = vmatpush.msra.mxu1 %v4092_v7  ;;  %281 = vmatpush.msrb.mxu0 %v4106_v9 }
  0x1b   :  { %228 = vmatpush.msra.mxu2 %v4086_v6  ;;  %249 = vmatpush.msra.mxu3 %v4092_v7 }
  0x1c   :  { %501 = vmatpush.msrb.mxu1 %v4153_v13  ;;  %3589 = vmatmul.msk.f32.vlgmr.msrb.gmra.mxu0 %vm54_vm1, %v3588_v12 }
  0x1d   :  { %3587 = vmatmul.msk.f32.vlgmr.msra.gmra.mxu3 %vm54_vm1, %v3585_v14  ;;  %382 = vmatpush.msra.mxu0 %v4058_v1 }
  0x1e   :  { %502 = vmatpush.msrb.mxu1 %v4167_v15  ;;  %229 = vmatpush.msra.mxu2 %v4106_v9 }
  0x1f   :  { %350 = vmatpush.msrb.mxu3 %v4053_v0  ;;  %3586 = vmatmul.msk.f32.vlgmr.msra.gmra.mxu2 %vm54_vm1, %v3585_v14 }
  0x20   :  { %383 = vmatpush.msra.mxu0 %v4070_v3  ;;  %503 = vmatpush.msrb.mxu1 %v4176_v16 }
  0x21   :  { %330 = vmatpush.msrb.mxu2 %v4058_v1  ;;  %351 = vmatpush.msrb.mxu3 %v4063_v2 }
  0x22   :  { %384 = vmatpush.msra.mxu0 %v4086_v6  ;;  %504 = vmatpush.msrb.mxu1 %v4185_v17 }
  0x23   :  { %331 = vmatpush.msrb.mxu2 %v4070_v3  ;;  %352 = vmatpush.msrb.mxu3 %v4076_v4 }
  0x24   :  { %3596 = vmatmul.msk.f32.vlgmr.msra.gmra.mxu1 %vm54_vm1, %v3594_v18  ;;  %385 = vmatpush.msra.mxu0 %v4106_v9 }
  0x25   :  { %505 = vmatpush.msrb.mxu1 %v4199_v19  ;;  %332 = vmatpush.msrb.mxu2 %v4086_v6 }
  0x26   :  { %353 = vmatpush.msrb.mxu3 %v4092_v7  ;;  %3595 = vmatmul.msk.f32.vlgmr.msra.gmra.mxu0 %vm54_vm1, %v3594_v18 }
  0x27   :  { %3593 = vmatmul.msk.f32.vlgmr.msrb.gmra.mxu3 %vm54_vm1, %v3591_v20  ;;  %506 = vmatpush.msrb.mxu1 %v4211_v21 }
  0x28   :  { %333 = vmatpush.msrb.mxu2 %v4106_v9  ;;  %454 = vmatpush.msra.mxu3 %v4053_v0 }
  0x29   :  { %3592 = vmatmul.msk.f32.vlgmr.msrb.gmra.mxu2 %vm54_vm1, %v3591_v20  ;;  %507 = vmatpush.msrb.mxu1 %v4220_v22 }
  0x2a   :  { %434 = vmatpush.msra.mxu2 %v4058_v1  ;;  %455 = vmatpush.msra.mxu3 %v4063_v2 }
  0x2b   :  { %508 = vmatpush.msrb.mxu1 %v4229_v23  ;;  %559 = vrot.lane.b32.xlu1 %v4231_v24, %s3984_s23 }
  0x2c   :  { %435 = vmatpush.msra.mxu2 %v4070_v3  ;;  %456 = vmatpush.msra.mxu3 %v4076_v4 }
  0x2d   :  { %3600 = vmatmul.msk.f32.vlgmr.msrb.gmra.mxu1 %vm489_vm2, %v488_v25  ;;  %828 = vmatpush.msrb.mxu0 %v4153_v13 }
  0x2e   :  { %436 = vmatpush.msra.mxu2 %v4086_v6  ;;  %457 = vmatpush.msra.mxu3 %v4092_v7 }
  0x2f   :  { %3599 = vmatmul.msk.f32.vlgmr.msra.gmra.mxu3 %vm54_vm1, %v3597_v26  ;;  %521 = vmatpush.msra.mxu1 %v4248_v27 }
  0x30   :  { %437 = vmatpush.msra.mxu2 %v4106_v9  ;;  %685 = vmatpush.msrb.mxu3 %v4248_v27 }
  0x31   :  { %3598 = vmatmul.msk.f32.vlgmr.msra.gmra.mxu2 %vm54_vm1, %v3597_v26  ;;  %522 = vmatpush.msra.mxu1 %v4257_v28 }
  0x32   :  { %665 = vmatpush.msrb.mxu2 %v4153_v13  ;;  %686 = vmatpush.msrb.mxu3 %v4257_v28 }
  0x33   :  { %523 = vmatpush.msra.mxu1 %v4265_v29  ;;  %829 = vmatpush.msrb.mxu0 %v4167_v15 }
  0x34   :  { %666 = vmatpush.msrb.mxu2 %v4167_v15  ;;  %687 = vmatpush.msrb.mxu3 %v4265_v29 }
  0x35   :  { %524 = vmatpush.msra.mxu1 %v4273_v30  ;;  %830 = vmatpush.msrb.mxu0 %v4176_v16 }
  0x36   :  { %667 = vmatpush.msrb.mxu2 %v4176_v16  ;;  %688 = vmatpush.msrb.mxu3 %v4273_v30 }
  0x37   :  { %525 = vmatpush.msra.mxu1 %v4282_v31  ;;  %831 = vmatpush.msrb.mxu0 %v4185_v17 }
  0x38   :  { %668 = vmatpush.msrb.mxu2 %v4185_v17  ;;  %689 = vmatpush.msrb.mxu3 %v4282_v31 }
  0x39   :  { %526 = vmatpush.msra.mxu1 %v4291_v32  ;;  %832 = vmatpush.msrb.mxu0 %v4199_v19 }
  0x3a   :  { %669 = vmatpush.msrb.mxu2 %v4199_v19  ;;  %690 = vmatpush.msrb.mxu3 %v4291_v32 }
  0x3b   :  { %527 = vmatpush.msra.mxu1 %v4300_v33  ;;  %833 = vmatpush.msrb.mxu0 %v4211_v21 }
  0x3c   :  { %670 = vmatpush.msrb.mxu2 %v4211_v21  ;;  %691 = vmatpush.msrb.mxu3 %v4300_v33 }
  0x3d   :  { %528 = vmatpush.msra.mxu1 %v4309_v34  ;;  %834 = vmatpush.msrb.mxu0 %v4220_v22 }
  0x3e   :  { %3601 = vmatmul.msk.f32.vlgmr.msra.gmra.mxu1 %vm489_vm2, %v488_v25  ;;  %671 = vmatpush.msrb.mxu2 %v4220_v22 }
  0x3f   :  { %692 = vmatpush.msrb.mxu3 %v4309_v34  ;;  %848 = vmatpush.msrb.mxu1 %v4248_v27 }
  0x40   :  { %672 = vmatpush.msrb.mxu2 %v4229_v23  ;;  %835 = vmatpush.msrb.mxu0 %v4229_v23 }
  0x41   :  { %849 = vmatpush.msrb.mxu1 %v4257_v28  ;;  %1011 = vmatpush.msra.mxu3 %v4248_v27 }
  0x42   :  { %991 = vmatpush.msra.mxu2 %v4153_v13  ;;  %1154 = vmatpush.msra.mxu0 %v4153_v13 }
  0x43   :  { %850 = vmatpush.msrb.mxu1 %v4265_v29  ;;  %1012 = vmatpush.msra.mxu3 %v4257_v28 }
  0x44   :  { %992 = vmatpush.msra.mxu2 %v4167_v15  ;;  %1155 = vmatpush.msra.mxu0 %v4167_v15 }
  0x45   :  { %851 = vmatpush.msrb.mxu1 %v4273_v30  ;;  %1013 = vmatpush.msra.mxu3 %v4265_v29 }
  0x46   :  { %993 = vmatpush.msra.mxu2 %v4176_v16  ;;  %1156 = vmatpush.msra.mxu0 %v4176_v16 }
  0x47   :  { %852 = vmatpush.msrb.mxu1 %v4282_v31  ;;  %1014 = vmatpush.msra.mxu3 %v4273_v30 }
  0x48   :  { %994 = vmatpush.msra.mxu2 %v4185_v17  ;;  %1157 = vmatpush.msra.mxu0 %v4185_v17 }
  0x49   :  { %853 = vmatpush.msrb.mxu1 %v4291_v32  ;;  %1015 = vmatpush.msra.mxu3 %v4282_v31 }
  0x4a   :  { %995 = vmatpush.msra.mxu2 %v4199_v19  ;;  %1158 = vmatpush.msra.mxu0 %v4199_v19 }
  0x4b   :  { %854 = vmatpush.msrb.mxu1 %v4300_v33  ;;  %1016 = vmatpush.msra.mxu3 %v4291_v32 }
  0x4c   :  { %996 = vmatpush.msra.mxu2 %v4211_v21  ;;  %1159 = vmatpush.msra.mxu0 %v4211_v21 }
  0x4d   :  { %855 = vmatpush.msrb.mxu1 %v4309_v34  ;;  %1017 = vmatpush.msra.mxu3 %v4300_v33 }
  0x4e   :  { %997 = vmatpush.msra.mxu2 %v4220_v22  ;;  %1160 = vmatpush.msra.mxu0 %v4220_v22 }
  0x4f   :  { %1174 = vmatpush.msra.mxu1 %v4248_v27  ;;  %1018 = vmatpush.msra.mxu3 %v4309_v34 }
  0x50   :  { %998 = vmatpush.msra.mxu2 %v4229_v23  ;;  %1161 = vmatpush.msra.mxu0 %v4229_v23 }
  0x51   :  { %1175 = vmatpush.msra.mxu1 %v4257_v28 }
  0x53   :  { %1176 = vmatpush.msra.mxu1 %v4265_v29 }
  0x55   :  { %1177 = vmatpush.msra.mxu1 %v4273_v30 }
  0x57   :  { %1178 = vmatpush.msra.mxu1 %v4282_v31 }
  0x59   :  { %1179 = vmatpush.msra.mxu1 %v4291_v32 }
  0x5b   :  { %1180 = vmatpush.msra.mxu1 %v4300_v33 }
  0x5d   :  { %1181 = vmatpush.msra.mxu1 %v4309_v34 }
  0x8c   :  { %v95_v39 = vpop.f32.mrf.mxu3 }
  0x8d   :  { %v199_v38 = vpop.f32.mrf.mxu1  ;;  %v96_v41 = vadd.f32 %v95_v39, %v51_v36  ;;  %v179_v42 = vpop.f32.mrf.mxu0 }
  0x8e   :  { %v200_v40 = vadd.f32 %v199_v38, %v51_v36  ;;  %v180_v43 = vadd.f32 %v179_v42, %v50_v37 }
  0x8f   :  { %v75_v44 = vpop.f32.mrf.mxu2  ;;  %v100_v46 = vrot.slane %v96_v41, 4 }
  0x90   :  { %v204_v45 = vrot.slane %v200_v40, 4  ;;  %v76_v47 = vadd.f32 %v75_v44, %v50_v37 }
  0x92   :  { %v205_v48 = vsel %vm101_vm3, %v180_v43, %v204_v45  ;;  %v102_v49 = vsel %vm101_vm3, %v76_v47, %v100_v46 }
  0x93   :  { %208 = vst [vmem:[#allocation2 + $0x10] sm:$0xff] %v205_v48 }
  0x94   :  { %104 = vst [vmem:[#allocation2] sm:$0xff] %v102_v49 }
  0x96   :  { %v303_v50 = vpop.f32.mrf.mxu1  ;;  %v147_v51 = vpop.f32.mrf.mxu3 }
  0x97   :  { %v304_v52 = vadd.f32 %v303_v50, %v51_v36  ;;  %v148_v53 = vadd.f32 %v147_v51, %v51_v36 }
  0x98   :  { %v127_v54 = vpop.f32.mrf.mxu2 }
  0x99   :  { %v308_v55 = vrot.slane %v304_v52, 4  ;;  %v152_v56 = vrot.slane %v148_v53, 4  ;;  %v283_v57 = vpop.f32.mrf.mxu0  ;;  %v128_v58 = vadd.f32 %v127_v54, %v50_v37 }
  0x9a   :  { %v284_v59 = vadd.f32 %v283_v57, %v50_v37 }
  0x9b   :  { %v153_v60 = vsel %vm101_vm3, %v128_v58, %v152_v56  ;;  %v533_v12 = vld [vmem:[#allocation2] sm:$0xf] }
  0x9c   :  { %v309_v61 = vsel %vm101_vm3, %v284_v59, %v308_v55  ;;  %156 = vst [vmem:[#allocation2 + $0x8] sm:$0xff] %v153_v60 }
  0x9d   :  { %312 = vst [vmem:[#allocation2 + $0x20] sm:$0xff] %v309_v61 }
  0xa0   :  { %v251_v62 = vpop.f32.mrf.mxu3 }
  0xa1   :  { %v407_v63 = vpop.f32.mrf.mxu1  ;;  %v252_v0 = vadd.f32 %v251_v62, %v51_v36 }
  0xa2   :  { %v408_v1 = vadd.f32 %v407_v63, %v51_v36  ;;  %v231_v2 = vpop.f32.mrf.mxu2 }
  0xa3   :  { %v256_v3 = vrot.slane %v252_v0, 4  ;;  %v387_v4 = vpop.f32.mrf.mxu0  ;;  %v232_v6 = vadd.f32 %v231_v2, %v50_v37 }
  0xa4   :  { %v412_v7 = vrot.slane %v408_v1, 4  ;;  %v388_v8 = vadd.f32 %v387_v4, %v50_v37 }
  0xa5   :  { %v257_v9 = vsel %vm101_vm3, %v232_v6, %v256_v3 }
  0xa6   :  { %v413_v10 = vsel %vm101_vm3, %v388_v8, %v412_v7  ;;  %260 = vst [vmem:[#allocation2 + $0x18] sm:$0xff] %v257_v9 }
  0xa7   :  { %416 = vst [vmem:[#allocation2 + $0x30] sm:$0xff] %v413_v10 }
  0xaa   :  { %v510_v11 = vpop.f32.mrf.mxu1  ;;  %v355_v14 = vpop.f32.mrf.mxu3 }
  0xab   :  { %v534_v18 = vadd.f32 %v533_v12, %v510_v11  ;;  %v356_v20 = vadd.f32 %v355_v14, %v51_v36 }
  0xac   :  { %v335_v25 = vpop.f32.mrf.mxu2 }
  0xad   :  { %3690 = vtanh.f32 %v534_v18  ;;  %v360_v26 = vrot.slane %v356_v20, 4  ;;  %v336_v35 = vadd.f32 %v335_v25, %v50_v37  ;;  %v3602_v50 = vmul.f32 -1.442695, %v534_v18  ;;  %v560_v20 = vpop.permute.xlu1 %559 }
  0xaf   :  { %v361_v38 = vsel %vm101_vm3, %v336_v35, %v360_v26 }
  0xb0   :  { %364 = vst [vmem:[#allocation2 + $0x28] sm:$0xff] %v361_v38 }
  0xb2   :  { %v459_v39 = vpop.f32.mrf.mxu3 }
  0xb3   :  { %v3691_v40 = vpop.eup %3690  ;;  %v460_v41 = vadd.f32 %v459_v39, %v51_v36 }
  0xb4   :  { %564 = vrot.lane.b32.xlu0 %v3691_v40, %s3985_s3  ;;  %v439_v42 = vpop.f32.mrf.mxu2 }
  0xb5   :  { %v464_v43 = vrot.slane %v460_v41, 4  ;;  %v440_v44 = vadd.f32 %v439_v42, %v50_v37 }
  0xb7   :  { %v465_v45 = vsel %vm101_vm3, %v440_v44, %v464_v43 }
  0xb8   :  { %468 = vst [vmem:[#allocation2 + $0x38] sm:$0xff] %v465_v45 }
  0xbb   :  { %v530_v46 = vpop.f32.mrf.mxu1 }
  0xbf   :  { %v535_v47 = vld [vmem:[#allocation2 + $0x3c] sm:$0xf] }
  0xc0   :  { %v536_v48 = vadd.f32 %v535_v47, %v530_v46 }
  0xc2   :  { %3692 = vtanh.f32 %v536_v48  ;;  %v3603_v52 = vmul.f32 -1.442695, %v536_v48 }
  0xc3   :  { %3694 = vpow2.f32 %v3602_v50 }
  0xc8   :  { %v3693_v49 = vpop.eup %3692 }
  0xc9   :  { %601 = vrot.lane.b32.xlu0 %v3693_v49, %s3985_s3  ;;  %v3695_v51 = vpop.eup %3694 }
  0xca   :  { %v541_v36 = vadd.f32 1.0, %v3695_v51 }
  0xcc   :  { %3696 = vrcp.f32 %v541_v36  ;;  %v553_v59 = vand.u32 2147483648, %v541_v36  ;;  %vm547_vm5 = vweird.f32 %v541_v36  ;;  %v551_v60 = vand.u32 2147483647, %v541_v36 }
  0xcd   :  { %3698 = vpow2.f32 %v3603_v52 }
  0xce   :  { %v554_v62 = vor.u32 1.1754944e-38, %v553_v59  ;;  %vm552_vm7 = vcmp.eq.f32.partialorder %v551_v60, 8.507059e+37 }
  0xd2   :  { %v3697_v53 = vpop.eup %3696 }
  0xd3   :  { %v543_v54 = vmul.f32 %v3697_v53, %v541_v36  ;;  %v3699_v55 = vpop.eup %3698  ;;  %vm548_vm4 = vweird.f32 %v3697_v53 }
  0xd4   :  { %v582_v56 = vadd.f32 1.0, %v3699_v55  ;;  %vm549_vm6 = vmor %vm547_vm5, %vm548_vm4 }
  0xd5   :  { %v544_v37 = vsub.f32 1.0, %v543_v54 }
  0xd6   :  { %3700 = vrcp.f32 %v582_v56  ;;  %v594_v8 = vand.u32 2147483648, %v582_v56  ;;  %vm588_vm9 = vweird.f32 %v582_v56  ;;  %v592_v9 = vand.u32 2147483647, %v582_v56 }
  0xd7   :  { %v545_v57 = vmul.f32 %v3697_v53, %v544_v37  ;;  %v697_v37 = vld [vmem:[#allocation2 + $0x8] sm:$0xf] }
  0xd8   :  { %v595_v11 = vor.u32 1.1754944e-38, %v594_v8  ;;  %vm593_vm11 = vcmp.eq.f32.partialorder %v592_v9, 8.507059e+37 }
  0xd9   :  { %v546_v58 = vadd.f32 %v3697_v53, %v545_v57 }
  0xdb   :  { %v550_v61 = vsel %vm549_vm6, %v3697_v53, %v546_v58 }
  0xdc   :  { %v3701_v63 = vpop.eup %3700  ;;  %v555_v0 = vsel %vm552_vm7, %v554_v62, %v550_v61 }
  0xdd   :  { %v584_v3 = vmul.f32 %v3701_v63, %v582_v56  ;;  %vm589_vm8 = vweird.f32 %v3701_v63  ;;  %v562_v38 = vmul.f32 %v560_v20, %v555_v0  ;;  %v699_v56 = vld [vmem:[#allocation2 + $0x34] sm:$0xf] }
  0xde   :  { %vm590_vm10 = vmor %vm588_vm9, %vm589_vm8 }
  0xdf   :  { %v585_v4 = vsub.f32 1.0, %v584_v3 }
  0xe1   :  { %v586_v6 = vmul.f32 %v3701_v63, %v585_v4 }
  0xe3   :  { %v587_v7 = vadd.f32 %v3701_v63, %v586_v6 }
  0xe5   :  { %v591_v10 = vsel %vm590_vm10, %v3701_v63, %v587_v7 }
  0xe6   :  { %v596_v14 = vsel %vm593_vm11, %v595_v11, %v591_v10 }
  0xe7   :  { %v599_v25 = vmul.f32 %v596_v14, %v4231_v24 }
 0x126   :  { %v565_v1 = vpop.permute.xlu0 %564 }
 0x127   :  { %v567_v2 = vmul.f32 %v565_v1, %v555_v0 }
 0x129   :  { %569 = vrot.lane.b32.xlu1 %v567_v2, %s3984_s23 }
 0x13b   :  { %v602_v12 = vpop.permute.xlu0 %601 }
 0x13c   :  { %v604_v18 = vmul.f32 %v602_v12, %v596_v14 }
 0x13e   :  { %606 = vrot.lane.b32.xlu2 %v604_v18, %s3984_s23 }
 0x198   :  { %v607_v26 = vpop.permute.xlu2 %606 }
 0x199   :  { %v609_v35 = vadd.f32 %v607_v26, %v599_v25 }
 0x19b   :  { %3702 = vtanh.f32 %v609_v35  ;;  %v570_v39 = vpop.permute.xlu1 %569 }
 0x19c   :  { %v572_v40 = vadd.f32 %v570_v39, %v562_v38 }
 0x19e   :  { %3704 = vtanh.f32 %v572_v40 }
 0x1a1   :  { %v3703_v41 = vpop.eup %3702 }
 0x1a2   :  { %612 = vrot.lane.b32.xlu0 %v3703_v41, %s3985_s3 }
 0x1a4   :  { %v3705_v42 = vpop.eup %3704 }
 0x1a5   :  { %575 = vrot.lane.b32.xlu2 %v3705_v42, %s3985_s3 }
 0x1ff   :  { %v576_v43 = vpop.permute.xlu2 %575 }
 0x200   :  { %v578_v44 = vmul.f32 %v576_v43, %v555_v0 }
 0x202   :  { %617 = vst [vmem:[#allocation1] ss:$2 sm:$0xff] %v578_v44 }
 0x209   :  { %v618_v45 = vld.sshfl [vmem:[#allocation1] sm:$0xff pattern:$0x75316420] }
 0x20a   :  { %619 = vrot.lane.b32.xlu1 %v618_v45, %s3984_s23 }
 0x214   :  { %v613_v24 = vpop.permute.xlu0 %612 }
 0x215   :  { %v615_v46 = vmul.f32 %v613_v24, %v596_v14 }
 0x217   :  { %625 = vst [vmem:[#allocation1] ss:$2 sm:$0xff] %v615_v46 }
 0x21e   :  { %v626_v47 = vld.sshfl [vmem:[#allocation1] sm:$0xff pattern:$0x75316420] }
 0x21f   :  { %633 = vst [vmem:[#allocation1] ss:$2 sm:$0xff] %v572_v40  ;;  %627 = vrot.lane.b32.xlu2 %v626_v47, %s3985_s3 }
 0x226   :  { %v634_v48 = vld.sshfl [vmem:[#allocation1] sm:$0xff pattern:$0x75316420] }
 0x227   :  { %640 = vst [vmem:[#allocation1] ss:$2 sm:$0xff] %v578_v44  ;;  %635 = vrot.lane.b32.xlu0 %v634_v48, %s3986_s25 }
 0x22e   :  { %v4385_v49 = vld.sshfl [vmem:[#allocation1] sm:$0xff pattern:$0x75316420] }
 0x22f   :  { %646 = vst [vmem:[#allocation1] ss:$2 sm:$0xff] %v615_v46 }
 0x279   :  { %v628_v51 = vpop.permute.xlu2 %627 }
 0x27c   :  { %v620_v50 = vpop.permute.xlu1 %619 }
 0x27d   :  { %623 = vst.msk [vmem:[#allocation4] sm:$0xf] %vm622_vm12, %v620_v50 }
 0x27e   :  { %631 = vst.msk [vmem:[#allocation4] sm:$0xf] %vm630_vm13, %v628_v51 }
 0x285   :  { %v653_v36 = vld [vmem:[#allocation4] sm:$0xf] }
 0x286   :  { %3604 = vmatmul.msk.f32.vlgmr.msrb.gmra.mxu2 %vm489_vm2, %v653_v36  ;;  %3605 = vmatmul.msk.f32.vlgmr.msrb.gmra.mxu3 %vm489_vm2, %v653_v36 }
 0x287   :  { %1315 = vmatpush.msrb.mxu2 %v4153_v13  ;;  %1335 = vmatpush.msrb.mxu3 %v4248_v27 }
 0x289   :  { %1316 = vmatpush.msrb.mxu2 %v4167_v15  ;;  %1336 = vmatpush.msrb.mxu3 %v4257_v28 }
 0x28b   :  { %1317 = vmatpush.msrb.mxu2 %v4176_v16  ;;  %1337 = vmatpush.msrb.mxu3 %v4265_v29 }
 0x28d   :  { %1318 = vmatpush.msrb.mxu2 %v4185_v17  ;;  %1338 = vmatpush.msrb.mxu3 %v4273_v30 }
 0x28f   :  { %1319 = vmatpush.msrb.mxu2 %v4199_v19  ;;  %1339 = vmatpush.msrb.mxu3 %v4282_v31 }
 0x291   :  { %1320 = vmatpush.msrb.mxu2 %v4211_v21  ;;  %1340 = vmatpush.msrb.mxu3 %v4291_v32 }
 0x293   :  { %1321 = vmatpush.msrb.mxu2 %v4220_v22  ;;  %1341 = vmatpush.msrb.mxu3 %v4300_v33 }
 0x295   :  { %1322 = vmatpush.msrb.mxu2 %v4229_v23  ;;  %1342 = vmatpush.msrb.mxu3 %v4309_v34 }
 0x299   :  { %v636_v52 = vpop.permute.xlu0 %635 }
 0x29a   :  { %638 = vst.msk [vmem:[#allocation5] sm:$0xf] %vm622_vm12, %v636_v52 }
 0x29b   :  { %639 = vst.msk [vmem:[#allocation5] sm:$0xf] %vm630_vm13, %v609_v35 }
 0x2a2   :  { %v701_v53 = vld [vmem:[#allocation5] sm:$0xf] }
 0x2a3   :  { %723 = vrot.lane.b32.xlu0 %v701_v53, %s3984_s23 }
 0x309   :  { %v674_v54 = vpop.f32.mrf.mxu2  ;;  %v694_v55 = vpop.f32.mrf.mxu3 }
 0x30a   :  { %v698_v57 = vadd.f32 %v697_v37, %v674_v54  ;;  %v700_v58 = vadd.f32 %v699_v56, %v694_v55 }
 0x30c   :  { %3706 = vtanh.f32 %v698_v57  ;;  %v3607_v61 = vmul.f32 -1.442695, %v700_v58  ;;  %v3606_v1 = vmul.f32 -1.442695, %v698_v57 }
 0x30d   :  { %3708 = vtanh.f32 %v700_v58  ;;  %v4416_v57 = vld.sshfl [vmem:[#allocation1] sm:$0xff pattern:$0x75316420] }
 0x30e   :  { %3710 = vpow2.f32 %v3607_v61 }
 0x312   :  { %v3707_v59 = vpop.eup %3706 }
 0x313   :  { %v3709_v60 = vpop.eup %3708  ;;  %728 = vrot.lane.b32.xlu1 %v3707_v59, %s3985_s3 }
 0x314   :  { %765 = vrot.lane.b32.xlu2 %v3709_v60, %s3985_s3  ;;  %v3711_v62 = vpop.eup %3710 }
 0x315   :  { %v746_v63 = vadd.f32 1.0, %v3711_v62  ;;  %v724_v51 = vpop.permute.xlu0 %723 }
 0x317   :  { %3712 = vrcp.f32 %v746_v63  ;;  %v758_v9 = vand.u32 2147483648, %v746_v63  ;;  %vm752_vm15 = vweird.f32 %v746_v63  ;;  %v756_v10 = vand.u32 2147483647, %v746_v63 }
 0x318   :  { %3714 = vpow2.f32 %v3606_v1 }
 0x319   :  { %v759_v12 = vor.u32 1.1754944e-38, %v758_v9  ;;  %vm757_vm4 = vcmp.eq.f32.partialorder %v756_v10, 8.507059e+37 }
 0x31d   :  { %v3713_v0 = vpop.eup %3712 }
 0x31e   :  { %v748_v2 = vmul.f32 %v3713_v0, %v746_v63  ;;  %v3715_v4 = vpop.eup %3714  ;;  %vm753_vm14 = vweird.f32 %v3713_v0 }
 0x31f   :  { %v705_v7 = vadd.f32 1.0, %v3715_v4  ;;  %vm754_vm1 = vmor %vm752_vm15, %vm753_vm14 }
 0x320   :  { %v749_v3 = vsub.f32 1.0, %v748_v2 }
 0x321   :  { %3716 = vrcp.f32 %v705_v7  ;;  %v717_v40 = vand.u32 2147483648, %v705_v7  ;;  %vm711_vm6 = vweird.f32 %v705_v7  ;;  %v715_v41 = vand.u32 2147483647, %v705_v7 }
 0x322   :  { %v750_v6 = vmul.f32 %v3713_v0, %v749_v3 }
 0x323   :  { %v718_v43 = vor.u32 1.1754944e-38, %v717_v40  ;;  %vm716_vm8 = vcmp.eq.f32.partialorder %v715_v41, 8.507059e+37 }
 0x324   :  { %v751_v8 = vadd.f32 %v3713_v0, %v750_v6 }
 0x326   :  { %v755_v11 = vsel %vm754_vm1, %v3713_v0, %v751_v8 }
 0x327   :  { %v760_v18 = vsel %vm757_vm4, %v759_v12, %v755_v11  ;;  %v3717_v20 = vpop.eup %3716 }
 0x328   :  { %v707_v26 = vmul.f32 %v3717_v20, %v705_v7  ;;  %vm712_vm5 = vweird.f32 %v3717_v20  ;;  %v763_v46 = vmul.f32 %v760_v18, %v701_v53 }
 0x329   :  { %vm713_vm7 = vmor %vm711_vm6, %vm712_vm5 }
 0x32a   :  { %v708_v35 = vsub.f32 1.0, %v707_v26 }
 0x32c   :  { %v709_v38 = vmul.f32 %v3717_v20, %v708_v35 }
 0x32e   :  { %v710_v39 = vadd.f32 %v3717_v20, %v709_v38 }
 0x330   :  { %v714_v42 = vsel %vm713_vm7, %v3717_v20, %v710_v39 }
 0x331   :  { %v719_v44 = vsel %vm716_vm8, %v718_v43, %v714_v42 }
 0x332   :  { %v726_v36 = vmul.f32 %v724_v51, %v719_v44 }
 0x36e   :  { %v766_v14 = vpop.permute.xlu2 %765 }
 0x36f   :  { %v768_v25 = vmul.f32 %v766_v14, %v760_v18 }
 0x371   :  { %770 = vrot.lane.b32.xlu2 %v768_v25, %s3984_s23 }
 0x385   :  { %v729_v45 = vpop.permute.xlu1 %728 }
 0x386   :  { %v731_v24 = vmul.f32 %v729_v45, %v719_v44 }
 0x388   :  { %733 = vrot.lane.b32.xlu1 %v731_v24, %s3984_s23 }
 0x3cb   :  { %v771_v47 = vpop.permute.xlu2 %770 }
 0x3cc   :  { %v773_v48 = vadd.f32 %v771_v47, %v763_v46 }
 0x3ce   :  { %3718 = vtanh.f32 %v773_v48 }
 0x3d4   :  { %v3719_v50 = vpop.eup %3718 }
 0x3d5   :  { %776 = vrot.lane.b32.xlu1 %v3719_v50, %s3985_s3 }
 0x3fa   :  { %v734_v52 = vpop.permute.xlu1 %733 }
 0x3fb   :  { %v736_v54 = vadd.f32 %v734_v52, %v726_v36 }
 0x3fd   :  { %3720 = vtanh.f32 %v736_v54 }
 0x403   :  { %v3721_v37 = vpop.eup %3720 }
 0x404   :  { %739 = vrot.lane.b32.xlu0 %v3721_v37, %s3985_s3 }
 0x447   :  { %v777_v53 = vpop.permute.xlu1 %776 }
 0x448   :  { %v779_v58 = vmul.f32 %v777_v53, %v760_v18 }
 0x476   :  { %v740_v55 = vpop.permute.xlu0 %739 }
 0x477   :  { %v742_v56 = vmul.f32 %v740_v55, %v719_v44 }
 0x479   :  { %781 = vst [vmem:[#allocation1] ss:$2 sm:$0xff] %v742_v56 }
 0x480   :  { %v782_v59 = vld.sshfl [vmem:[#allocation1] sm:$0xff pattern:$0x75316420] }
 0x481   :  { %788 = vst [vmem:[#allocation1] ss:$2 sm:$0xff] %v779_v58  ;;  %783 = vrot.lane.b32.xlu2 %v782_v59, %s3984_s23 }
 0x488   :  { %v789_v60 = vld.sshfl [vmem:[#allocation1] sm:$0xff pattern:$0x75316420] }
 0x489   :  { %795 = vst [vmem:[#allocation1] ss:$2 sm:$0xff] %v736_v54  ;;  %790 = vrot.lane.b32.xlu0 %v789_v60, %s3985_s3 }
 0x490   :  { %v796_v61 = vld.sshfl [vmem:[#allocation1] sm:$0xff pattern:$0x75316420] }
 0x491   :  { %802 = vst [vmem:[#allocation1] ss:$2 sm:$0xff] %v742_v56  ;;  %797 = vrot.lane.b32.xlu1 %v796_v61, %s3986_s25 }
 0x498   :  { %v4421_v62 = vld.sshfl [vmem:[#allocation1] sm:$0xff pattern:$0x75316420] }
 0x499   :  { %809 = vst [vmem:[#allocation1] ss:$2 sm:$0xff] %v779_v58 }
 0x4db   :  { %v784_v63 = vpop.permute.xlu2 %783 }
 0x4dc   :  { %786 = vst.msk [vmem:[#allocation4] sm:$0xf] %vm622_vm12, %v784_v63 }
 0x4fb   :  { %v791_v0 = vpop.permute.xlu0 %790 }
 0x4fc   :  { %793 = vst.msk [vmem:[#allocation4] sm:$0xf] %vm630_vm13, %v791_v0 }
 0x503   :  { %v816_v1 = vld [vmem:[#allocation4] sm:$0xf]  ;;  %v798_v2 = vpop.permute.xlu1 %797 }
 0x504   :  { %800 = vst.msk [vmem:[#allocation5] sm:$0xf] %vm622_vm12, %v798_v2  ;;  %3608 = vmatmul.msk.f32.vlgmr.msrb.gmra.mxu0 %vm489_vm2, %v816_v1  ;;  %3609 = vmatmul.msk.f32.vlgmr.msrb.gmra.mxu1 %vm489_vm2, %v816_v1 }
 0x505   :  { %801 = vst.msk [vmem:[#allocation5] sm:$0xf] %vm630_vm13, %v773_v48  ;;  %1476 = vmatpush.msrb.mxu0 %v4153_v13  ;;  %1496 = vmatpush.msrb.mxu1 %v4248_v27 }
 0x507   :  { %1477 = vmatpush.msrb.mxu0 %v4167_v15  ;;  %1497 = vmatpush.msrb.mxu1 %v4257_v28  ;;  %v860_v15 = vld [vmem:[#allocation2 + $0x10] sm:$0xf] }
 0x509   :  { %1478 = vmatpush.msrb.mxu0 %v4176_v16  ;;  %1498 = vmatpush.msrb.mxu1 %v4265_v29 }
 0x50b   :  { %1479 = vmatpush.msrb.mxu0 %v4185_v17  ;;  %1499 = vmatpush.msrb.mxu1 %v4273_v30  ;;  %v862_v17 = vld [vmem:[#allocation2 + $0x2c] sm:$0xf] }
 0x50c   :  { %v4437_v3 = vld [vmem:[#allocation5] sm:$0xf] }
 0x50d   :  { %886 = vrot.lane.b32.xlu1 %v4437_v3, %s3984_s23  ;;  %1480 = vmatpush.msrb.mxu0 %v4199_v19 }
 0x50e   :  { %1500 = vmatpush.msrb.mxu1 %v4282_v31 }
 0x50f   :  { %1481 = vmatpush.msrb.mxu0 %v4211_v21 }
 0x510   :  { %1501 = vmatpush.msrb.mxu1 %v4291_v32 }
 0x511   :  { %1482 = vmatpush.msrb.mxu0 %v4220_v22 }
 0x512   :  { %1502 = vmatpush.msrb.mxu1 %v4300_v33 }
 0x513   :  { %1483 = vmatpush.msrb.mxu0 %v4229_v23 }
 0x514   :  { %1503 = vmatpush.msrb.mxu1 %v4309_v34 }
 0x57f   :  { %v887_v56 = vpop.permute.xlu1 %886 }
 0x581   :  { %v837_v13 = vpop.f32.mrf.mxu0  ;;  %v857_v16 = vpop.f32.mrf.mxu1 }
 0x582   :  { %v861_v4 = vadd.f32 %v860_v15, %v837_v13  ;;  %v863_v19 = vadd.f32 %v862_v17, %v857_v16  ;;  %v4456_v15 = vld.sshfl [vmem:[#allocation1] sm:$0xff pattern:$0x75316420] }
 0x584   :  { %3722 = vtanh.f32 %v861_v4  ;;  %v3610_v8 = vmul.f32 -1.442695, %v861_v4  ;;  %v3611_v12 = vmul.f32 -1.442695, %v863_v19 }
 0x585   :  { %3724 = vtanh.f32 %v863_v19 }
 0x586   :  { %3726 = vpow2.f32 %v3610_v8 }
 0x58a   :  { %v3723_v6 = vpop.eup %3722 }
 0x58b   :  { %v3725_v7 = vpop.eup %3724  ;;  %891 = vrot.lane.b32.xlu2 %v3723_v6, %s3985_s3 }
 0x58c   :  { %928 = vrot.lane.b32.xlu0 %v3725_v7, %s3985_s3  ;;  %v3727_v9 = vpop.eup %3726 }
 0x58d   :  { %v868_v10 = vadd.f32 1.0, %v3727_v9 }
 0x58f   :  { %3728 = vrcp.f32 %v868_v10  ;;  %v880_v38 = vand.u32 2147483648, %v868_v10  ;;  %vm874_vm10 = vweird.f32 %v868_v10  ;;  %v878_v39 = vand.u32 2147483647, %v868_v10 }
 0x590   :  { %3730 = vpow2.f32 %v3611_v12  ;;  %v3952_v12 = vld [vmem:[%s5408_s2 + $0x70] sm:$0xff] }
 0x591   :  { %v881_v41 = vor.u32 1.1754944e-38, %v880_v38  ;;  %vm879_vm14 = vcmp.eq.f32.partialorder %v878_v39, 8.507059e+37 }
 0x595   :  { %v3729_v11 = vpop.eup %3728 }
 0x596   :  { %v870_v14 = vmul.f32 %v3729_v11, %v868_v10  ;;  %v3731_v25 = vpop.eup %3730  ;;  %vm875_vm9 = vweird.f32 %v3729_v11 }
 0x597   :  { %v909_v26 = vadd.f32 1.0, %v3731_v25  ;;  %vm876_vm11 = vmor %vm874_vm10, %vm875_vm9  ;;  %v1025_v25 = vld [vmem:[#allocation2 + $0x24] sm:$0xf] }
 0x598   :  { %v871_v18 = vsub.f32 1.0, %v870_v14  ;;  %v3953_v14 = vld [vmem:[%s5408_s2 + $0x60] sm:$0xff] }
 0x599   :  { %3732 = vrcp.f32 %v909_v26  ;;  %v921_v50 = vand.u32 2147483648, %v909_v26  ;;  %vm915_vm1 = vweird.f32 %v909_v26  ;;  %v919_v51 = vand.u32 2147483647, %v909_v26 }
 0x59a   :  { %v872_v20 = vmul.f32 %v3729_v11, %v871_v18  ;;  %v3954_v18 = vld [vmem:[%s5408_s2 + $0x50] sm:$0xff] }
 0x59b   :  { %v922_v52 = vor.u32 1.1754944e-38, %v921_v50  ;;  %vm920_vm5 = vcmp.eq.f32.partialorder %v919_v51, 8.507059e+37 }
 0x59c   :  { %v873_v35 = vadd.f32 %v3729_v11, %v872_v20  ;;  %v3955_v20 = vld [vmem:[%s5408_s2 + $0x40] sm:$0xff] }
 0x59e   :  { %v877_v40 = vsel %vm876_vm11, %v3729_v11, %v873_v35 }
 0x59f   :  { %v882_v43 = vsel %vm879_vm14, %v881_v41, %v877_v40  ;;  %v3733_v45 = vpop.eup %3732 }
 0x5a0   :  { %v911_v24 = vmul.f32 %v3733_v45, %v909_v26  ;;  %vm916_vm15 = vweird.f32 %v3733_v45  ;;  %v889_v53 = vmul.f32 %v887_v56, %v882_v43 }
 0x5a1   :  { %vm917_vm4 = vmor %vm915_vm1, %vm916_vm15 }
 0x5a2   :  { %v912_v46 = vsub.f32 1.0, %v911_v24 }
 0x5a4   :  { %v913_v47 = vmul.f32 %v3733_v45, %v912_v46 }
 0x5a6   :  { %v914_v48 = vadd.f32 %v3733_v45, %v913_v47 }
 0x5a8   :  { %v918_v36 = vsel %vm917_vm4, %v3733_v45, %v914_v48 }
 0x5a9   :  { %v923_v37 = vsel %vm920_vm5, %v922_v52, %v918_v36 }
 0x5aa   :  { %v926_v61 = vmul.f32 %v923_v37, %v4437_v3 }
 0x5e5   :  { %v892_v42 = vpop.permute.xlu2 %891 }
 0x5e6   :  { %v894_v44 = vmul.f32 %v892_v42, %v882_v43 }
 0x5e8   :  { %896 = vrot.lane.b32.xlu2 %v894_v44, %s3984_s23 }
 0x5fe   :  { %v929_v54 = vpop.permute.xlu0 %928 }
 0x5ff   :  { %v931_v55 = vmul.f32 %v929_v54, %v923_v37 }
 0x601   :  { %933 = vrot.lane.b32.xlu0 %v931_v55, %s3984_s23 }
 0x642   :  { %v897_v58 = vpop.permute.xlu2 %896 }
 0x643   :  { %v899_v59 = vadd.f32 %v897_v58, %v889_v53 }
 0x645   :  { %3734 = vtanh.f32 %v899_v59 }
 0x64b   :  { %v3735_v60 = vpop.eup %3734 }
 0x64c   :  { %902 = vrot.lane.b32.xlu1 %v3735_v60, %s3985_s3 }
 0x673   :  { %v934_v63 = vpop.permute.xlu0 %933 }
 0x674   :  { %v936_v0 = vadd.f32 %v934_v63, %v926_v61 }
 0x676   :  { %3736 = vtanh.f32 %v936_v0 }
 0x67c   :  { %v3737_v1 = vpop.eup %3736 }
 0x67d   :  { %939 = vrot.lane.b32.xlu2 %v3737_v1, %s3985_s3 }
 0x6be   :  { %v903_v2 = vpop.permute.xlu1 %902 }
 0x6bf   :  { %v905_v13 = vmul.f32 %v903_v2, %v882_v43 }
 0x6c1   :  { %944 = vst [vmem:[#allocation1] ss:$2 sm:$0xff] %v905_v13 }
 0x6c8   :  { %v945_v16 = vld.sshfl [vmem:[#allocation1] sm:$0xff pattern:$0x75316420] }
 0x6c9   :  { %946 = vrot.lane.b32.xlu0 %v945_v16, %s3984_s23 }
 0x6d7   :  { %v940_v17 = vpop.permute.xlu2 %939 }
 0x6d8   :  { %v942_v4 = vmul.f32 %v940_v17, %v923_v37 }
 0x6da   :  { %951 = vst [vmem:[#allocation1] ss:$2 sm:$0xff] %v942_v4 }
 0x6e1   :  { %v952_v19 = vld.sshfl [vmem:[#allocation1] sm:$0xff pattern:$0x75316420] }
 0x6e2   :  { %958 = vst [vmem:[#allocation1] ss:$2 sm:$0xff] %v899_v59  ;;  %953 = vrot.lane.b32.xlu1 %v952_v19, %s3985_s3 }
 0x6e9   :  { %v959_v3 = vld.sshfl [vmem:[#allocation1] sm:$0xff pattern:$0x75316420] }
 0x6ea   :  { %965 = vst [vmem:[#allocation1] ss:$2 sm:$0xff] %v905_v13  ;;  %960 = vrot.lane.b32.xlu2 %v959_v3, %s3986_s25 }
 0x6f1   :  { %v4461_v6 = vld.sshfl [vmem:[#allocation1] sm:$0xff pattern:$0x75316420] }
 0x6f2   :  { %972 = vst [vmem:[#allocation1] ss:$2 sm:$0xff] %v942_v4 }
 0x73b   :  { %v947_v7 = vpop.permute.xlu0 %946 }
 0x73c   :  { %949 = vst.msk [vmem:[#allocation4] sm:$0xf] %vm622_vm12, %v947_v7 }
 0x744   :  { %v961_v8 = vpop.permute.xlu2 %960 }
 0x745   :  { %963 = vst.msk [vmem:[#allocation5] sm:$0xf] %vm622_vm12, %v961_v8  ;;  %v4506_v8 = vld.sshfl [vmem:[#allocation1] sm:$0xff pattern:$0x75316420] }
 0x746   :  { %964 = vst.msk [vmem:[#allocation5] sm:$0xf] %vm630_vm13, %v936_v0 }
 0x74d   :  { %v4466_v9 = vld [vmem:[#allocation5] sm:$0xf] }
 0x74e   :  { %1049 = vrot.lane.b32.xlu2 %v4466_v9, %s3984_s23 }
 0x754   :  { %v954_v10 = vpop.permute.xlu1 %953 }
 0x755   :  { %956 = vst.msk [vmem:[#allocation4] sm:$0xf] %vm630_vm13, %v954_v10 }
 0x75c   :  { %v979_v11 = vld [vmem:[#allocation4] sm:$0xf] }
 0x75d   :  { %3612 = vmatmul.msk.f32.vlgmr.msra.gmra.mxu2 %vm489_vm2, %v979_v11  ;;  %3613 = vmatmul.msk.f32.vlgmr.msra.gmra.mxu3 %vm489_vm2, %v979_v11 }
 0x75e   :  { %1637 = vmatpush.msra.mxu2 %v3952_v12  ;;  %1657 = vmatpush.msra.mxu3 %v4248_v27  ;;  %v3956_v27 = vld [vmem:[%s5408_s2 + $0x30] sm:$0xff] }
 0x760   :  { %1638 = vmatpush.msra.mxu2 %v3953_v14  ;;  %1658 = vmatpush.msra.mxu3 %v4257_v28 }
 0x762   :  { %1639 = vmatpush.msra.mxu2 %v3954_v18  ;;  %1659 = vmatpush.msra.mxu3 %v4265_v29  ;;  %v1023_v29 = vld [vmem:[#allocation2 + $0x18] sm:$0xf] }
 0x764   :  { %1640 = vmatpush.msra.mxu2 %v3955_v20  ;;  %1660 = vmatpush.msra.mxu3 %v4273_v30 }
 0x766   :  { %1641 = vmatpush.msra.mxu2 %v3956_v27  ;;  %1661 = vmatpush.msra.mxu3 %v4282_v31 }
 0x768   :  { %1642 = vmatpush.msra.mxu2 %v4211_v21  ;;  %1662 = vmatpush.msra.mxu3 %v4291_v32 }
 0x76a   :  { %1643 = vmatpush.msra.mxu2 %v4220_v22  ;;  %1663 = vmatpush.msra.mxu3 %v4300_v33 }
 0x76c   :  { %1644 = vmatpush.msra.mxu2 %v4229_v23  ;;  %1664 = vmatpush.msra.mxu3 %v4309_v34 }
 0x7a8   :  { %v1050_v63 = vpop.permute.xlu2 %1049 }
 0x7e0   :  { %v1000_v28 = vpop.f32.mrf.mxu2  ;;  %v1020_v30 = vpop.f32.mrf.mxu3 }
 0x7e1   :  { %v1024_v26 = vadd.f32 %v1023_v29, %v1000_v28  ;;  %v1026_v35 = vadd.f32 %v1025_v25, %v1020_v30 }
 0x7e3   :  { %3738 = vtanh.f32 %v1024_v26  ;;  %v3614_v22 = vmul.f32 -1.442695, %v1024_v26  ;;  %v3615_v32 = vmul.f32 -1.442695, %v1026_v35  ;;  %v1186_v26 = vld [vmem:[#allocation2 + $0x20] sm:$0xf] }
 0x7e4   :  { %3740 = vtanh.f32 %v1026_v35 }
 0x7e5   :  { %3742 = vpow2.f32 %v3614_v22 }
 0x7e6   :  { %3744 = vpow2.f32 %v3615_v32 }
 0x7e9   :  { %v3739_v31 = vpop.eup %3738 }
 0x7ea   :  { %v3741_v21 = vpop.eup %3740  ;;  %1054 = vrot.lane.b32.xlu0 %v3739_v31, %s3985_s3  ;;  %v1188_v31 = vld [vmem:[#allocation2 + $0x1c] sm:$0xf] }
 0x7eb   :  { %1091 = vrot.lane.b32.xlu1 %v3741_v21, %s3985_s3  ;;  %v3743_v23 = vpop.eup %3742 }
 0x7ec   :  { %v3745_v33 = vpop.eup %3744  ;;  %v1031_v34 = vadd.f32 1.0, %v3743_v23 }
 0x7ed   :  { %v1072_v38 = vadd.f32 1.0, %v3745_v33 }
 0x7ee   :  { %3746 = vrcp.f32 %v1031_v34  ;;  %v1043_v48 = vand.u32 2147483648, %v1031_v34  ;;  %vm1037_vm8 = vweird.f32 %v1031_v34  ;;  %v1041_v51 = vand.u32 2147483647, %v1031_v34 }
 0x7ef   :  { %3748 = vrcp.f32 %v1072_v38  ;;  %v1084_v50 = vand.u32 2147483648, %v1072_v38  ;;  %vm1078_vm9 = vweird.f32 %v1072_v38  ;;  %v1082_v36 = vand.u32 2147483647, %v1072_v38 }
 0x7f0   :  { %v1044_v37 = vor.u32 1.1754944e-38, %v1043_v48  ;;  %vm1042_vm14 = vcmp.eq.f32.partialorder %v1041_v51, 8.507059e+37 }
 0x7f1   :  { %v1085_v55 = vor.u32 1.1754944e-38, %v1084_v50  ;;  %vm1083_vm15 = vcmp.eq.f32.partialorder %v1082_v36, 8.507059e+37 }
 0x7f4   :  { %v3747_v39 = vpop.eup %3746 }
 0x7f5   :  { %v3749_v40 = vpop.eup %3748  ;;  %v1033_v41 = vmul.f32 %v3747_v39, %v1031_v34  ;;  %vm1038_vm6 = vweird.f32 %v3747_v39 }
 0x7f6   :  { %v1074_v42 = vmul.f32 %v3749_v40, %v1072_v38  ;;  %vm1079_vm7 = vweird.f32 %v3749_v40  ;;  %vm1039_vm10 = vmor %vm1037_vm8, %vm1038_vm6 }
 0x7f7   :  { %v1034_v43 = vsub.f32 1.0, %v1033_v41  ;;  %vm1080_vm11 = vmor %vm1078_vm9, %vm1079_vm7 }
 0x7f8   :  { %v1075_v44 = vsub.f32 1.0, %v1074_v42 }
 0x7f9   :  { %v1035_v45 = vmul.f32 %v3747_v39, %v1034_v43 }
 0x7fa   :  { %v1076_v24 = vmul.f32 %v3749_v40, %v1075_v44 }
 0x7fb   :  { %v1036_v46 = vadd.f32 %v3747_v39, %v1035_v45 }
 0x7fc   :  { %v1077_v47 = vadd.f32 %v3749_v40, %v1076_v24 }
 0x7fd   :  { %v1040_v52 = vsel %vm1039_vm10, %v3747_v39, %v1036_v46 }
 0x7fe   :  { %v1081_v54 = vsel %vm1080_vm11, %v3749_v40, %v1077_v47  ;;  %v1045_v53 = vsel %vm1042_vm14, %v1044_v37, %v1040_v52 }
 0x7ff   :  { %v1086_v59 = vsel %vm1083_vm15, %v1085_v55, %v1081_v54  ;;  %v1052_v0 = vmul.f32 %v1050_v63, %v1045_v53 }
 0x800   :  { %v1089_v1 = vmul.f32 %v1086_v59, %v4466_v9 }
 0x85c   :  { %v1055_v56 = vpop.permute.xlu0 %1054 }
 0x85d   :  { %v1092_v58 = vpop.permute.xlu1 %1091  ;;  %v1057_v60 = vmul.f32 %v1055_v56, %v1045_v53 }
 0x85e   :  { %v1094_v61 = vmul.f32 %v1092_v58, %v1086_v59 }
 0x85f   :  { %1059 = vrot.lane.b32.xlu0 %v1057_v60, %s3984_s23 }
 0x860   :  { %1096 = vrot.lane.b32.xlu1 %v1094_v61, %s3984_s23 }
 0x8d1   :  { %v1060_v2 = vpop.permute.xlu0 %1059 }
 0x8d2   :  { %v1097_v13 = vpop.permute.xlu1 %1096  ;;  %v1062_v16 = vadd.f32 %v1060_v2, %v1052_v0 }
 0x8d3   :  { %v1099_v17 = vadd.f32 %v1097_v13, %v1089_v1 }
 0x8d4   :  { %3750 = vtanh.f32 %v1062_v16 }
 0x8d5   :  { %3752 = vtanh.f32 %v1099_v17 }
 0x8da   :  { %v3751_v4 = vpop.eup %3750 }
 0x8db   :  { %v3753_v19 = vpop.eup %3752  ;;  %1065 = vrot.lane.b32.xlu2 %v3751_v4, %s3985_s3 }
 0x8dc   :  { %1102 = vrot.lane.b32.xlu0 %v3753_v19, %s3985_s3 }
 0x935   :  { %v1066_v3 = vpop.permute.xlu2 %1065 }
 0x936   :  { %v1068_v7 = vmul.f32 %v1066_v3, %v1045_v53 }
 0x938   :  { %1107 = vst [vmem:[#allocation1] ss:$2 sm:$0xff] %v1068_v7 }
 0x93f   :  { %v1108_v10 = vld.sshfl [vmem:[#allocation1] sm:$0xff pattern:$0x75316420] }
 0x940   :  { %1109 = vrot.lane.b32.xlu1 %v1108_v10, %s3984_s23 }
 0x94e   :  { %v1103_v9 = vpop.permute.xlu0 %1102 }
 0x94f   :  { %v1105_v11 = vmul.f32 %v1103_v9, %v1086_v59 }
 0x951   :  { %1114 = vst [vmem:[#allocation1] ss:$2 sm:$0xff] %v1105_v11 }
 0x958   :  { %v1115_v12 = vld.sshfl [vmem:[#allocation1] sm:$0xff pattern:$0x75316420] }
 0x959   :  { %1121 = vst [vmem:[#allocation1] ss:$2 sm:$0xff] %v1062_v16  ;;  %1116 = vrot.lane.b32.xlu2 %v1115_v12, %s3985_s3 }
 0x960   :  { %v1122_v14 = vld.sshfl [vmem:[#allocation1] sm:$0xff pattern:$0x75316420] }
 0x961   :  { %1128 = vst [vmem:[#allocation1] ss:$2 sm:$0xff] %v1068_v7  ;;  %1123 = vrot.lane.b32.xlu0 %v1122_v14, %s3986_s25 }
 0x968   :  { %v4511_v18 = vld.sshfl [vmem:[#allocation1] sm:$0xff pattern:$0x75316420] }
 0x969   :  { %1135 = vst [vmem:[#allocation1] ss:$2 sm:$0xff] %v1105_v11 }
 0x970   :  { %v4526_v12 = vld.sshfl [vmem:[#allocation1] sm:$0xff pattern:$0x75316420] }
 0x9b2   :  { %v1110_v20 = vpop.permute.xlu1 %1109 }
 0x9b3   :  { %1112 = vst.msk [vmem:[#allocation4] sm:$0xf] %vm622_vm12, %v1110_v20  ;;  %v1117_v27 = vpop.permute.xlu2 %1116 }
 0x9b4   :  { %1119 = vst.msk [vmem:[#allocation4] sm:$0xf] %vm630_vm13, %v1117_v27 }
 0x9bb   :  { %v1142_v28 = vld [vmem:[#allocation4] sm:$0xf] }
 0x9bc   :  { %3616 = vmatmul.msk.f32.vlgmr.msra.gmra.mxu0 %vm489_vm2, %v1142_v28  ;;  %3617 = vmatmul.msk.f32.vlgmr.msra.gmra.mxu1 %vm489_vm2, %v1142_v28 }
 0x9d3   :  { %v1124_v29 = vpop.permute.xlu0 %1123 }
 0x9d4   :  { %1126 = vst.msk [vmem:[#allocation5] sm:$0xf] %vm622_vm12, %v1124_v29 }
 0x9d5   :  { %1127 = vst.msk [vmem:[#allocation5] sm:$0xf] %vm630_vm13, %v1099_v17 }
 0x9dc   :  { %v1190_v30 = vld [vmem:[#allocation5] sm:$0xf] }
 0x9dd   :  { %1212 = vrot.lane.b32.xlu0 %v1190_v30, %s3984_s23 }
 0xa39   :  { %v1163_v25 = vpop.f32.mrf.mxu0  ;;  %v1183_v35 = vpop.f32.mrf.mxu1 }
 0xa3a   :  { %v1187_v21 = vadd.f32 %v1186_v26, %v1163_v25  ;;  %v1189_v22 = vadd.f32 %v1188_v31, %v1183_v35 }
 0xa3c   :  { %3754 = vtanh.f32 %v1187_v21  ;;  %v3619_v33 = vmul.f32 -1.442695, %v1189_v22  ;;  %v3618_v40 = vmul.f32 -1.442695, %v1187_v21 }
 0xa3d   :  { %3756 = vtanh.f32 %v1189_v22 }
 0xa3e   :  { %3758 = vpow2.f32 %v3619_v33  ;;  %v1349_v33 = vld [vmem:[#allocation2 + $0x14] sm:$0xf] }
 0xa42   :  { %v3755_v32 = vpop.eup %3754 }
 0xa43   :  { %v3757_v23 = vpop.eup %3756  ;;  %1217 = vrot.lane.b32.xlu1 %v3755_v32, %s3985_s3  ;;  %v1347_v32 = vld [vmem:[#allocation2 + $0x28] sm:$0xf] }
 0xa44   :  { %1254 = vrot.lane.b32.xlu2 %v3757_v23, %s3985_s3  ;;  %v3759_v34 = vpop.eup %3758 }
 0xa45   :  { %v1235_v38 = vadd.f32 1.0, %v3759_v34 }
 0xa47   :  { %3760 = vrcp.f32 %v1235_v38  ;;  %v1247_v46 = vand.u32 2147483648, %v1235_v38  ;;  %vm1241_vm4 = vweird.f32 %v1235_v38  ;;  %v1245_v47 = vand.u32 2147483647, %v1235_v38 }
 0xa48   :  { %3762 = vpow2.f32 %v3618_v40 }
 0xa49   :  { %v1248_v50 = vor.u32 1.1754944e-38, %v1247_v46  ;;  %vm1246_vm6 = vcmp.eq.f32.partialorder %v1245_v47, 8.507059e+37 }
 0xa4d   :  { %v3761_v39 = vpop.eup %3760 }
 0xa4e   :  { %v1237_v41 = vmul.f32 %v3761_v39, %v1235_v38  ;;  %v3763_v43 = vpop.eup %3762  ;;  %vm1242_vm1 = vweird.f32 %v3761_v39 }
 0xa4f   :  { %v1194_v45 = vadd.f32 1.0, %v3763_v43  ;;  %vm1243_vm5 = vmor %vm1241_vm4, %vm1242_vm1  ;;  %v1213_v4 = vpop.permute.xlu0 %1212 }
 0xa50   :  { %v1238_v42 = vsub.f32 1.0, %v1237_v41 }
 0xa51   :  { %3764 = vrcp.f32 %v1194_v45  ;;  %v1206_v58 = vand.u32 2147483648, %v1194_v45  ;;  %vm1200_vm8 = vweird.f32 %v1194_v45  ;;  %v1204_v59 = vand.u32 2147483647, %v1194_v45 }
 0xa52   :  { %v1239_v44 = vmul.f32 %v3761_v39, %v1238_v42 }
 0xa53   :  { %v1207_v61 = vor.u32 1.1754944e-38, %v1206_v58  ;;  %vm1205_vm10 = vcmp.eq.f32.partialorder %v1204_v59, 8.507059e+37 }
 0xa54   :  { %v1240_v24 = vadd.f32 %v3761_v39, %v1239_v44 }
 0xa56   :  { %v1244_v48 = vsel %vm1243_vm5, %v3761_v39, %v1240_v24 }
 0xa57   :  { %v1249_v36 = vsel %vm1246_vm6, %v1248_v50, %v1244_v48  ;;  %v3765_v52 = vpop.eup %3764 }
 0xa58   :  { %v1196_v37 = vmul.f32 %v3765_v52, %v1194_v45  ;;  %vm1201_vm7 = vweird.f32 %v3765_v52  ;;  %v1252_v2 = vmul.f32 %v1249_v36, %v1190_v30 }
 0xa59   :  { %vm1202_vm9 = vmor %vm1200_vm8, %vm1201_vm7 }
 0xa5a   :  { %v1197_v55 = vsub.f32 1.0, %v1196_v37 }
 0xa5c   :  { %v1198_v56 = vmul.f32 %v3765_v52, %v1197_v55 }
 0xa5e   :  { %v1199_v53 = vadd.f32 %v3765_v52, %v1198_v56 }
 0xa60   :  { %v1203_v60 = vsel %vm1202_vm9, %v3765_v52, %v1199_v53 }
 0xa61   :  { %v1208_v63 = vsel %vm1205_vm10, %v1207_v61, %v1203_v60 }
 0xa62   :  { %v1215_v19 = vmul.f32 %v1213_v4, %v1208_v63 }
 0xa9e   :  { %v1255_v51 = vpop.permute.xlu2 %1254 }
 0xa9f   :  { %v1257_v54 = vmul.f32 %v1255_v51, %v1249_v36 }
 0xaa1   :  { %1259 = vrot.lane.b32.xlu2 %v1257_v54, %s3984_s23 }
 0xab5   :  { %v1218_v0 = vpop.permute.xlu1 %1217 }
 0xab6   :  { %v1220_v1 = vmul.f32 %v1218_v0, %v1208_v63 }
 0xab8   :  { %1222 = vrot.lane.b32.xlu1 %v1220_v1, %s3984_s23 }
 0xafb   :  { %v1260_v13 = vpop.permute.xlu2 %1259 }
 0xafc   :  { %v1262_v16 = vadd.f32 %v1260_v13, %v1252_v2 }
 0xafe   :  { %3766 = vtanh.f32 %v1262_v16 }
 0xb04   :  { %v3767_v17 = vpop.eup %3766 }
 0xb05   :  { %1265 = vrot.lane.b32.xlu1 %v3767_v17, %s3985_s3 }
 0xb2a   :  { %v1223_v3 = vpop.permute.xlu1 %1222 }
 0xb2b   :  { %v1225_v7 = vadd.f32 %v1223_v3, %v1215_v19 }
 0xb2d   :  { %3768 = vtanh.f32 %v1225_v7 }
 0xb33   :  { %v3769_v10 = vpop.eup %3768 }
 0xb34   :  { %1228 = vrot.lane.b32.xlu0 %v3769_v10, %s3985_s3 }
 0xb77   :  { %v1266_v14 = vpop.permute.xlu1 %1265 }
 0xb78   :  { %v1268_v20 = vmul.f32 %v1266_v14, %v1249_v36 }
 0xba6   :  { %v1229_v9 = vpop.permute.xlu0 %1228 }
 0xba7   :  { %v1231_v11 = vmul.f32 %v1229_v9, %v1208_v63 }
 0xba9   :  { %1270 = vst [vmem:[#allocation1] ss:$2 sm:$0xff] %v1231_v11 }
 0xbb0   :  { %v1271_v27 = vld.sshfl [vmem:[#allocation1] sm:$0xff pattern:$0x75316420] }
 0xbb1   :  { %1277 = vst [vmem:[#allocation1] ss:$2 sm:$0xff] %v1268_v20  ;;  %1272 = vrot.lane.b32.xlu2 %v1271_v27, %s3984_s23 }
 0xbb8   :  { %v1278_v28 = vld.sshfl [vmem:[#allocation1] sm:$0xff pattern:$0x75316420] }
 0xbb9   :  { %1284 = vst [vmem:[#allocation1] ss:$2 sm:$0xff] %v1225_v7  ;;  %1279 = vrot.lane.b32.xlu0 %v1278_v28, %s3985_s3 }
 0xbc0   :  { %v1285_v29 = vld.sshfl [vmem:[#allocation1] sm:$0xff pattern:$0x75316420] }
 0xbc1   :  { %1291 = vst [vmem:[#allocation1] ss:$2 sm:$0xff] %v1231_v11  ;;  %1286 = vrot.lane.b32.xlu1 %v1285_v29, %s3986_s25 }
 0xbc8   :  { %v4531_v30 = vld.sshfl [vmem:[#allocation1] sm:$0xff pattern:$0x75316420] }
 0xbc9   :  { %1297 = vst [vmem:[#allocation1] ss:$2 sm:$0xff] %v1268_v20 }
 0xc0b   :  { %v1273_v25 = vpop.permute.xlu2 %1272 }
 0xc0c   :  { %1275 = vst.msk [vmem:[#allocation4] sm:$0xf] %vm622_vm12, %v1273_v25  ;;  %v4550_v25 = vld.sshfl [vmem:[#allocation1] sm:$0xff pattern:$0x75316420] }
 0xc2b   :  { %v1280_v26 = vpop.permute.xlu0 %1279 }
 0xc2c   :  { %1282 = vst.msk [vmem:[#allocation4] sm:$0xf] %vm630_vm13, %v1280_v26 }
 0xc33   :  { %v1303_v35 = vld [vmem:[#allocation4] sm:$0xf]  ;;  %v1287_v31 = vpop.permute.xlu1 %1286 }
 0xc34   :  { %1289 = vst.msk [vmem:[#allocation5] sm:$0xf] %vm622_vm12, %v1287_v31  ;;  %3620 = vmatmul.msk.f32.vlgmr.msrb.gmra.mxu2 %vm489_vm2, %v1303_v35  ;;  %3621 = vmatmul.msk.f32.vlgmr.msrb.gmra.mxu3 %vm489_vm2, %v1303_v35 }
 0xc35   :  { %1290 = vst.msk [vmem:[#allocation5] sm:$0xf] %vm630_vm13, %v1262_v16 }
 0xc3c   :  { %v4539_v21 = vld [vmem:[#allocation5] sm:$0xf] }
 0xc3d   :  { %1373 = vrot.lane.b32.xlu1 %v4539_v21, %s3984_s23 }
 0xcaf   :  { %v1374_v19 = vpop.permute.xlu1 %1373 }
 0xcb7   :  { %v1324_v22 = vpop.f32.mrf.mxu2  ;;  %v1344_v23 = vpop.f32.mrf.mxu3 }
 0xcb8   :  { %v1348_v34 = vadd.f32 %v1347_v32, %v1324_v22  ;;  %v1350_v38 = vadd.f32 %v1349_v33, %v1344_v23 }
 0xcba   :  { %3770 = vtanh.f32 %v1348_v34  ;;  %v3622_v41 = vmul.f32 -1.442695, %v1348_v34  ;;  %v3623_v45 = vmul.f32 -1.442695, %v1350_v38 }
 0xcbb   :  { %3772 = vtanh.f32 %v1350_v38 }
 0xcbc   :  { %3774 = vpow2.f32 %v3622_v41  ;;  %v1508_v41 = vld [vmem:[#allocation2 + $0x30] sm:$0xf] }
 0xcc0   :  { %v3771_v39 = vpop.eup %3770 }
 0xcc1   :  { %v3773_v40 = vpop.eup %3772  ;;  %1378 = vrot.lane.b32.xlu2 %v3771_v39, %s3985_s3 }
 0xcc2   :  { %1415 = vrot.lane.b32.xlu0 %v3773_v40, %s3985_s3  ;;  %v3775_v42 = vpop.eup %3774 }
 0xcc3   :  { %v1355_v43 = vadd.f32 1.0, %v3775_v42 }
 0xcc5   :  { %3776 = vrcp.f32 %v1355_v43  ;;  %v1367_v36 = vand.u32 2147483648, %v1355_v43  ;;  %vm1361_vm14 = vweird.f32 %v1355_v43  ;;  %v1365_v52 = vand.u32 2147483647, %v1355_v43 }
 0xcc6   :  { %3778 = vpow2.f32 %v3623_v45 }
 0xcc7   :  { %v1368_v37 = vor.u32 1.1754944e-38, %v1367_v36  ;;  %vm1366_vm1 = vcmp.eq.f32.partialorder %v1365_v52, 8.507059e+37 }
 0xccb   :  { %v3777_v44 = vpop.eup %3776 }
 0xccc   :  { %v1357_v24 = vmul.f32 %v3777_v44, %v1355_v43  ;;  %v3779_v48 = vpop.eup %3778  ;;  %vm1362_vm11 = vweird.f32 %v3777_v44  ;;  %v1510_v43 = vld [vmem:[#allocation2 + $0xc] sm:$0xf] }
 0xccd   :  { %v1396_v50 = vadd.f32 1.0, %v3779_v48  ;;  %vm1363_vm15 = vmor %vm1361_vm14, %vm1362_vm11 }
 0xcce   :  { %v1358_v46 = vsub.f32 1.0, %v1357_v24 }
 0xccf   :  { %3780 = vrcp.f32 %v1396_v50  ;;  %v1408_v0 = vand.u32 2147483648, %v1396_v50  ;;  %vm1402_vm5 = vweird.f32 %v1396_v50  ;;  %v1406_v1 = vand.u32 2147483647, %v1396_v50 }
 0xcd0   :  { %v1359_v47 = vmul.f32 %v3777_v44, %v1358_v46 }
 0xcd1   :  { %v1409_v13 = vor.u32 1.1754944e-38, %v1408_v0  ;;  %vm1407_vm7 = vcmp.eq.f32.partialorder %v1406_v1, 8.507059e+37 }
 0xcd2   :  { %v1360_v51 = vadd.f32 %v3777_v44, %v1359_v47 }
 0xcd4   :  { %v1364_v54 = vsel %vm1363_vm15, %v3777_v44, %v1360_v51 }
 0xcd5   :  { %v1369_v56 = vsel %vm1366_vm1, %v1368_v37, %v1364_v54  ;;  %v3781_v58 = vpop.eup %3780 }
 0xcd6   :  { %v1398_v59 = vmul.f32 %v3781_v58, %v1396_v50  ;;  %vm1403_vm4 = vweird.f32 %v3781_v58  ;;  %v1376_v3 = vmul.f32 %v1374_v19, %v1369_v56 }
 0xcd7   :  { %vm1404_vm6 = vmor %vm1402_vm5, %vm1403_vm4 }
 0xcd8   :  { %v1399_v60 = vsub.f32 1.0, %v1398_v59 }
 0xcda   :  { %v1400_v61 = vmul.f32 %v3781_v58, %v1399_v60 }
 0xcdc   :  { %v1401_v63 = vadd.f32 %v3781_v58, %v1400_v61 }
 0xcde   :  { %v1405_v2 = vsel %vm1404_vm6, %v3781_v58, %v1401_v63 }
 0xcdf   :  { %v1410_v17 = vsel %vm1407_vm7, %v1409_v13, %v1405_v2 }
 0xce0   :  { %v1413_v11 = vmul.f32 %v1410_v17, %v4539_v21 }
 0xd1b   :  { %v1379_v55 = vpop.permute.xlu2 %1378 }
 0xd1c   :  { %v1381_v53 = vmul.f32 %v1379_v55, %v1369_v56 }
 0xd1e   :  { %1383 = vrot.lane.b32.xlu2 %v1381_v53, %s3984_s23 }
 0xd34   :  { %v1416_v16 = vpop.permute.xlu0 %1415 }
 0xd35   :  { %v1418_v4 = vmul.f32 %v1416_v16, %v1410_v17 }
 0xd37   :  { %1420 = vrot.lane.b32.xlu0 %v1418_v4, %s3984_s23 }
 0xd78   :  { %v1384_v7 = vpop.permute.xlu2 %1383 }
 0xd79   :  { %v1386_v10 = vadd.f32 %v1384_v7, %v1376_v3 }
 0xd7b   :  { %3782 = vtanh.f32 %v1386_v10 }
 0xd81   :  { %v3783_v9 = vpop.eup %3782 }
 0xd82   :  { %1389 = vrot.lane.b32.xlu1 %v3783_v9, %s3985_s3 }
 0xda9   :  { %v1421_v14 = vpop.permute.xlu0 %1420 }
 0xdaa   :  { %v1423_v20 = vadd.f32 %v1421_v14, %v1413_v11 }
 0xdac   :  { %3784 = vtanh.f32 %v1423_v20 }
 0xdb2   :  { %v3785_v27 = vpop.eup %3784 }
 0xdb3   :  { %1426 = vrot.lane.b32.xlu2 %v3785_v27, %s3985_s3 }
 0xdf4   :  { %v1390_v28 = vpop.permute.xlu1 %1389 }
 0xdf5   :  { %v1392_v29 = vmul.f32 %v1390_v28, %v1369_v56 }
 0xdf7   :  { %1431 = vst [vmem:[#allocation1] ss:$2 sm:$0xff] %v1392_v29 }
 0xdfe   :  { %v1432_v26 = vld.sshfl [vmem:[#allocation1] sm:$0xff pattern:$0x75316420] }
 0xdff   :  { %1433 = vrot.lane.b32.xlu0 %v1432_v26, %s3984_s23 }
 0xe0d   :  { %v1427_v35 = vpop.permute.xlu2 %1426 }
 0xe0e   :  { %v1429_v31 = vmul.f32 %v1427_v35, %v1410_v17 }
 0xe10   :  { %1438 = vst [vmem:[#allocation1] ss:$2 sm:$0xff] %v1429_v31 }
 0xe17   :  { %v1439_v22 = vld.sshfl [vmem:[#allocation1] sm:$0xff pattern:$0x75316420] }
 0xe18   :  { %1440 = vrot.lane.b32.xlu1 %v1439_v22, %s3985_s3  ;;  %1445 = vst [vmem:[#allocation1] ss:$2 sm:$0xff] %v1386_v10 }
 0xe1f   :  { %v1446_v21 = vld.sshfl [vmem:[#allocation1] sm:$0xff pattern:$0x75316420] }
 0xe20   :  { %1447 = vrot.lane.b32.xlu2 %v1446_v21, %s3986_s25  ;;  %1452 = vst [vmem:[#allocation1] ss:$2 sm:$0xff] %v1392_v29 }
 0xe27   :  { %v4555_v32 = vld.sshfl [vmem:[#allocation1] sm:$0xff pattern:$0x75316420] }
 0xe28   :  { %1458 = vst [vmem:[#allocation1] ss:$2 sm:$0xff] %v1429_v31 }
 0xe71   :  { %v1434_v23 = vpop.permute.xlu0 %1433 }
 0xe72   :  { %1436 = vst.msk [vmem:[#allocation4] sm:$0xf] %vm622_vm12, %v1434_v23 }
 0xe7a   :  { %v1448_v33 = vpop.permute.xlu2 %1447 }
 0xe7b   :  { %1450 = vst.msk [vmem:[#allocation5] sm:$0xf] %vm622_vm12, %v1448_v33 }
 0xe7c   :  { %1451 = vst.msk [vmem:[#allocation5] sm:$0xf] %vm630_vm13, %v1423_v20 }
 0xe83   :  { %v4560_v34 = vld [vmem:[#allocation5] sm:$0xf] }
 0xe84   :  { %1534 = vrot.lane.b32.xlu2 %v4560_v34, %s3984_s23 }
 0xe8a   :  { %v1441_v38 = vpop.permute.xlu1 %1440 }
 0xe8b   :  { %1443 = vst.msk [vmem:[#allocation4] sm:$0xf] %vm630_vm13, %v1441_v38  ;;  %v4574_v38 = vld.sshfl [vmem:[#allocation1] sm:$0xff pattern:$0x75316420] }
 0xe92   :  { %v1464_v39 = vld [vmem:[#allocation4] sm:$0xf] }
 0xe93   :  { %3624 = vmatmul.msk.f32.vlgmr.msrb.gmra.mxu0 %vm489_vm2, %v1464_v39  ;;  %3625 = vmatmul.msk.f32.vlgmr.msrb.gmra.mxu1 %vm489_vm2, %v1464_v39 }
 0xede   :  { %v1535_v20 = vpop.permute.xlu2 %1534 }
 0xf10   :  { %v1485_v40 = vpop.f32.mrf.mxu0  ;;  %v1505_v42 = vpop.f32.mrf.mxu1 }
 0xf11   :  { %v1509_v44 = vadd.f32 %v1508_v41, %v1485_v40  ;;  %v1511_v45 = vadd.f32 %v1510_v43, %v1505_v42 }
 0xf13   :  { %3786 = vtanh.f32 %v1509_v44  ;;  %v3626_v47 = vmul.f32 -1.442695, %v1509_v44  ;;  %v3627_v48 = vmul.f32 -1.442695, %v1511_v45 }
 0xf14   :  { %3788 = vtanh.f32 %v1511_v45 }
 0xf15   :  { %3790 = vpow2.f32 %v3626_v47 }
 0xf16   :  { %3792 = vpow2.f32 %v3627_v48 }
 0xf19   :  { %v3787_v24 = vpop.eup %3786 }
 0xf1a   :  { %v3789_v46 = vpop.eup %3788  ;;  %1539 = vrot.lane.b32.xlu0 %v3787_v24, %s3985_s3 }
 0xf1b   :  { %1576 = vrot.lane.b32.xlu1 %v3789_v46, %s3985_s3  ;;  %v3791_v50 = vpop.eup %3790 }
 0xf1c   :  { %v3793_v51 = vpop.eup %3792  ;;  %v1516_v36 = vadd.f32 1.0, %v3791_v50  ;;  %v1669_v50 = vld [vmem:[#allocation2 + $0x38] sm:$0xf] }
 0xf1d   :  { %v1557_v52 = vadd.f32 1.0, %v3793_v51 }
 0xf1e   :  { %3794 = vrcp.f32 %v1516_v36  ;;  %v1528_v0 = vand.u32 2147483648, %v1516_v36  ;;  %vm1522_vm10 = vweird.f32 %v1516_v36  ;;  %v1526_v2 = vand.u32 2147483647, %v1516_v36 }
 0xf1f   :  { %3796 = vrcp.f32 %v1557_v52  ;;  %v1569_v1 = vand.u32 2147483648, %v1557_v52  ;;  %vm1563_vm11 = vweird.f32 %v1557_v52  ;;  %v1567_v13 = vand.u32 2147483647, %v1557_v52 }
 0xf20   :  { %v1529_v4 = vor.u32 1.1754944e-38, %v1528_v0  ;;  %vm1527_vm1 = vcmp.eq.f32.partialorder %v1526_v2, 8.507059e+37 }
 0xf21   :  { %v1570_v19 = vor.u32 1.1754944e-38, %v1569_v1  ;;  %vm1568_vm4 = vcmp.eq.f32.partialorder %v1567_v13, 8.507059e+37 }
 0xf24   :  { %v3795_v54 = vpop.eup %3794 }
 0xf25   :  { %v3797_v37 = vpop.eup %3796  ;;  %v1518_v55 = vmul.f32 %v3795_v54, %v1516_v36  ;;  %vm1523_vm8 = vweird.f32 %v3795_v54  ;;  %v1671_v36 = vld [vmem:[#allocation2 + $0x4] sm:$0xf] }
 0xf26   :  { %v1559_v56 = vmul.f32 %v3797_v37, %v1557_v52  ;;  %vm1564_vm9 = vweird.f32 %v3797_v37  ;;  %vm1524_vm14 = vmor %vm1522_vm10, %vm1523_vm8 }
 0xf27   :  { %v1519_v53 = vsub.f32 1.0, %v1518_v55  ;;  %vm1565_vm15 = vmor %vm1563_vm11, %vm1564_vm9 }
 0xf28   :  { %v1560_v58 = vsub.f32 1.0, %v1559_v56 }
 0xf29   :  { %v1520_v59 = vmul.f32 %v3795_v54, %v1519_v53 }
 0xf2a   :  { %v1561_v60 = vmul.f32 %v3797_v37, %v1560_v58 }
 0xf2b   :  { %v1521_v61 = vadd.f32 %v3795_v54, %v1520_v59 }
 0xf2c   :  { %v1562_v63 = vadd.f32 %v3797_v37, %v1561_v60 }
 0xf2d   :  { %v1525_v16 = vsel %vm1524_vm14, %v3795_v54, %v1521_v61 }
 0xf2e   :  { %v1566_v17 = vsel %vm1565_vm15, %v3797_v37, %v1562_v63  ;;  %v1530_v7 = vsel %vm1527_vm1, %v1529_v4, %v1525_v16 }
 0xf2f   :  { %v1571_v9 = vsel %vm1568_vm4, %v1570_v19, %v1566_v17  ;;  %v1537_v27 = vmul.f32 %v1535_v20, %v1530_v7 }
 0xf30   :  { %v1574_v28 = vmul.f32 %v1571_v9, %v4560_v34 }
 0xf8c   :  { %v1540_v3 = vpop.permute.xlu0 %1539 }
 0xf8d   :  { %v1577_v10 = vpop.permute.xlu1 %1576  ;;  %v1542_v11 = vmul.f32 %v1540_v3, %v1530_v7 }
 0xf8e   :  { %v1579_v14 = vmul.f32 %v1577_v10, %v1571_v9 }
 0xf8f   :  { %1544 = vrot.lane.b32.xlu0 %v1542_v11, %s3984_s23 }
 0xf90   :  { %1581 = vrot.lane.b32.xlu1 %v1579_v14, %s3984_s23 }
0x1001   :  { %v1545_v29 = vpop.permute.xlu0 %1544 }
0x1002   :  { %v1582_v26 = vpop.permute.xlu1 %1581  ;;  %v1547_v35 = vadd.f32 %v1545_v29, %v1537_v27 }
0x1003   :  { %v1584_v31 = vadd.f32 %v1582_v26, %v1574_v28 }
0x1004   :  { %3798 = vtanh.f32 %v1547_v35 }
0x1005   :  { %3800 = vtanh.f32 %v1584_v31 }
0x100a   :  { %v3799_v22 = vpop.eup %3798 }
0x100b   :  { %v3801_v21 = vpop.eup %3800  ;;  %1550 = vrot.lane.b32.xlu2 %v3799_v22, %s3985_s3 }
0x100c   :  { %1587 = vrot.lane.b32.xlu0 %v3801_v21, %s3985_s3 }
0x1065   :  { %v1551_v23 = vpop.permute.xlu2 %1550 }
0x1066   :  { %v1553_v33 = vmul.f32 %v1551_v23, %v1530_v7 }
0x1068   :  { %1592 = vst [vmem:[#allocation1] ss:$2 sm:$0xff] %v1553_v33 }
0x106f   :  { %v1593_v39 = vld.sshfl [vmem:[#allocation1] sm:$0xff pattern:$0x75316420] }
0x1070   :  { %1594 = vrot.lane.b32.xlu1 %v1593_v39, %s3984_s23 }
0x107e   :  { %v1588_v34 = vpop.permute.xlu0 %1587 }
0x107f   :  { %v1590_v40 = vmul.f32 %v1588_v34, %v1571_v9 }
0x1081   :  { %1599 = vst [vmem:[#allocation1] ss:$2 sm:$0xff] %v1590_v40 }
0x1088   :  { %v1600_v41 = vld.sshfl [vmem:[#allocation1] sm:$0xff pattern:$0x75316420] }
0x1089   :  { %1601 = vrot.lane.b32.xlu2 %v1600_v41, %s3985_s3  ;;  %1606 = vst [vmem:[#allocation1] ss:$2 sm:$0xff] %v1547_v35 }
0x1090   :  { %v1607_v42 = vld.sshfl [vmem:[#allocation1] sm:$0xff pattern:$0x75316420] }
0x1091   :  { %1608 = vrot.lane.b32.xlu0 %v1607_v42, %s3986_s25  ;;  %1613 = vst [vmem:[#allocation1] ss:$2 sm:$0xff] %v1553_v33 }
0x1098   :  { %v4579_v43 = vld.sshfl [vmem:[#allocation1] sm:$0xff pattern:$0x75316420] }
0x1099   :  { %1619 = vst [vmem:[#allocation1] ss:$2 sm:$0xff] %v1590_v40 }
0x10e2   :  { %v1595_v44 = vpop.permute.xlu1 %1594 }
0x10e3   :  { %1597 = vst.msk [vmem:[#allocation4] sm:$0xf] %vm622_vm12, %v1595_v44  ;;  %v1602_v45 = vpop.permute.xlu2 %1601 }
0x10e4   :  { %1604 = vst.msk [vmem:[#allocation4] sm:$0xf] %vm630_vm13, %v1602_v45  ;;  %v4659_v45 = vld [vmem:[%s5410_s4 + $0x50] sm:$0xff] }
0x10eb   :  { %v1625_v24 = vld [vmem:[#allocation4] sm:$0xf] }
0x10ec   :  { %3628 = vmatmul.msk.f32.vlgmr.msra.gmra.mxu2 %vm489_vm2, %v1625_v24  ;;  %3629 = vmatmul.msk.f32.vlgmr.msra.gmra.mxu3 %vm489_vm2, %v1625_v24  ;;  %v4664_v24 = vld [vmem:[%s5410_s4 + $0x58] sm:$0xff] }
0x1103   :  { %v1609_v46 = vpop.permute.xlu0 %1608 }
0x1104   :  { %1611 = vst.msk [vmem:[#allocation5] sm:$0xf] %vm622_vm12, %v1609_v46 }
0x1105   :  { %1612 = vst.msk [vmem:[#allocation5] sm:$0xf] %vm630_vm13, %v1584_v31 }
0x110c   :  { %v1673_v47 = vld [vmem:[#allocation5] sm:$0xf] }
0x110d   :  { %1695 = vrot.lane.b32.xlu0 %v1673_v47, %s3984_s23 }
0x116f   :  { %v1646_v48 = vpop.f32.mrf.mxu2  ;;  %v1666_v51 = vpop.f32.mrf.mxu3 }
0x1170   :  { %v1670_v52 = vadd.f32 %v1669_v50, %v1646_v48  ;;  %v1672_v54 = vadd.f32 %v1671_v36, %v1666_v51  ;;  %v4686_v48 = vld [vmem:[%s5410_s4 + $0x48] sm:$0xff]  ;;  %v4693_v50 = vld [vmem:[%s5410_s4 + $0x30] sm:$0xff]  ;;  %v4698_v51 = vld [vmem:[%s5410_s4 + $0x38] sm:$0xff] }
0x1171   :  { %v4703_v36 = vld [vmem:[%s5410_s4 + $0x20] sm:$0xff] }
0x1172   :  { %3802 = vtanh.f32 %v1670_v52  ;;  %v3631_v56 = vmul.f32 -1.442695, %v1672_v54  ;;  %v3630_v60 = vmul.f32 -1.442695, %v1670_v52  ;;  %v4708_v52 = vld [vmem:[%s5410_s4 + $0x28] sm:$0xff] }
0x1173   :  { %3804 = vtanh.f32 %v1672_v54  ;;  %v4717_v54 = vld [vmem:[%s5410_s4 + $0x10] sm:$0xff] }
0x1174   :  { %3806 = vpow2.f32 %v3631_v56  ;;  %v4735_v56 = vld [vmem:[%s5410_s4] sm:$0xff] }
0x1178   :  { %v3803_v37 = vpop.eup %3802 }
0x1179   :  { %v3805_v55 = vpop.eup %3804  ;;  %1700 = vrot.lane.b32.xlu1 %v3803_v37, %s3985_s3  ;;  %v4722_v37 = vld [vmem:[%s5410_s4 + $0x18] sm:$0xff] }
0x117a   :  { %1737 = vrot.lane.b32.xlu2 %v3805_v55, %s3985_s3  ;;  %v3807_v53 = vpop.eup %3806 }
0x117b   :  { %v1718_v58 = vadd.f32 1.0, %v3807_v53  ;;  %v4740_v53 = vld [vmem:[%s5410_s4 + $0x8] sm:$0xff] }
0x117d   :  { %3808 = vrcp.f32 %v1718_v58  ;;  %v1730_v16 = vand.u32 2147483648, %v1718_v58  ;;  %vm1724_vm6 = vweird.f32 %v1718_v58  ;;  %v1728_v17 = vand.u32 2147483647, %v1718_v58 }
0x117e   :  { %3810 = vpow2.f32 %v3630_v60 }
0x117f   :  { %v1731_v19 = vor.u32 1.1754944e-38, %v1730_v16  ;;  %vm1729_vm8 = vcmp.eq.f32.partialorder %v1728_v17, 8.507059e+37  ;;  %v1696_v40 = vpop.permute.xlu0 %1695 }
0x1183   :  { %v3809_v59 = vpop.eup %3808 }
0x1184   :  { %v1720_v61 = vmul.f32 %v3809_v59, %v1718_v58  ;;  %v3811_v0 = vpop.eup %3810  ;;  %vm1725_vm5 = vweird.f32 %v3809_v59 }
0x1185   :  { %v1677_v2 = vadd.f32 1.0, %v3811_v0  ;;  %vm1726_vm7 = vmor %vm1724_vm6, %vm1725_vm5 }
0x1186   :  { %v1721_v63 = vsub.f32 1.0, %v1720_v61 }
0x1187   :  { %3812 = vrcp.f32 %v1677_v2  ;;  %v1689_v28 = vand.u32 2147483648, %v1677_v2  ;;  %vm1683_vm10 = vweird.f32 %v1677_v2  ;;  %v1687_v29 = vand.u32 2147483647, %v1677_v2 }
0x1188   :  { %v1722_v1 = vmul.f32 %v3809_v59, %v1721_v63 }
0x1189   :  { %v1690_v35 = vor.u32 1.1754944e-38, %v1689_v28  ;;  %vm1688_vm14 = vcmp.eq.f32.partialorder %v1687_v29, 8.507059e+37 }
0x118a   :  { %v1723_v13 = vadd.f32 %v3809_v59, %v1722_v1 }
0x118c   :  { %v1727_v4 = vsel %vm1726_vm7, %v3809_v59, %v1723_v13 }
0x118d   :  { %v4590_v7 = vsel %vm1729_vm8, %v1731_v19, %v1727_v4  ;;  %v3813_v10 = vpop.eup %3812 }
0x118e   :  { %v1679_v11 = vmul.f32 %v3813_v10, %v1677_v2  ;;  %vm1684_vm9 = vweird.f32 %v3813_v10 }
0x118f   :  { %vm1685_vm11 = vmor %vm1683_vm10, %vm1684_vm9 }
0x1190   :  { %v1680_v14 = vsub.f32 1.0, %v1679_v11 }
0x1192   :  { %v1681_v20 = vmul.f32 %v3813_v10, %v1680_v14 }
0x1194   :  { %v1682_v27 = vadd.f32 %v3813_v10, %v1681_v20 }
0x1196   :  { %v1686_v26 = vsel %vm1685_vm11, %v3813_v10, %v1682_v27 }
0x1197   :  { %v4598_v31 = vsel %vm1688_vm14, %v1690_v35, %v1686_v26 }
0x1198   :  { %v1698_v41 = vmul.f32 %v1696_v40, %v4598_v31 }
0x11d4   :  { %v1738_v3 = vpop.permute.xlu2 %1737 }
0x11d5   :  { %v1740_v9 = vmul.f32 %v1738_v3, %v4590_v7 }
0x11d7   :  { %1742 = vrot.lane.b32.xlu2 %v1740_v9, %s3984_s23 }
0x11df   :  { %804 = vrot.lane.b32.xlu2 %v4421_v62, %s3984_s23  ;;  %v1735_v62 = vmul.f32 %v4590_v7, %v1673_v47  ;;  %v4681_v47 = vld [vmem:[%s5410_s4 + $0x40] sm:$0xff] }
0x11e7   :  { %967 = vrot.lane.b32.xlu2 %v4461_v6, %s3984_s23 }
0x11eb   :  { %v1701_v22 = vpop.permute.xlu1 %1700 }
0x11ec   :  { %v1703_v21 = vmul.f32 %v1701_v22, %v4598_v31 }
0x11ee   :  { %1705 = vrot.lane.b32.xlu1 %v1703_v21, %s3984_s23 }
0x1231   :  { %v1743_v23 = vpop.permute.xlu2 %1742 }
0x1232   :  { %v4603_v33 = vadd.f32 %v1743_v23, %v1735_v62  ;;  %v4878_v23 = vld [vmem:[%s5411_s5 + $0x70] sm:$0xff] }
0x1234   :  { %3814 = vtanh.f32 %v4603_v33 }
0x1239   :  { %v805_v39 = vpop.permute.xlu2 %804 }
0x123a   :  { %v3815_v34 = vpop.eup %3814  ;;  %808 = vst.msk [vmem:[#allocation3 + $0x4] sm:$0xf] %vm622_vm12, %v805_v39  ;;  %v4883_v39 = vld [vmem:[%s5411_s5 + $0x78] sm:$0xff] }
0x123b   :  { %1748 = vrot.lane.b32.xlu1 %v3815_v34, %s3985_s3  ;;  %v4892_v34 = vld [vmem:[%s5411_s5 + $0x60] sm:$0xff] }
0x1241   :  { %v968_v6 = vpop.permute.xlu2 %967 }
0x1242   :  { %971 = vst.msk [vmem:[#allocation3 + $0x8] sm:$0xf] %vm622_vm12, %v968_v6  ;;  %v4897_v6 = vld [vmem:[%s5411_s5 + $0x68] sm:$0xff] }
0x1243   :  { %642 = vrot.lane.b32.xlu1 %v4385_v49, %s3984_s23 }
0x124b   :  { %1299 = vrot.lane.b32.xlu1 %v4550_v25, %s3985_s3  ;;  %v1620_v25 = vld.sshfl [vmem:[#allocation1] sm:$0xff pattern:$0x75316420] }
0x1253   :  { %974 = vrot.lane.b32.xlu1 %v4506_v8, %s3985_s3 }
0x125b   :  { %1293 = vrot.lane.b32.xlu1 %v4531_v30, %s3984_s23 }
0x1260   :  { %v1706_v42 = vpop.permute.xlu1 %1705 }
0x1261   :  { %v4618_v44 = vadd.f32 %v1706_v42, %v1698_v41 }
0x1263   :  { %3816 = vtanh.f32 %v4618_v44  ;;  %811 = vrot.lane.b32.xlu1 %v4456_v15, %s3985_s3  ;;  %v4637_v15 = vld [vmem:[%s5410_s4 + $0x70] sm:$0xff] }
0x1264   :  { %1870 = vmatpush.msrb.mxu2 %v4637_v15  ;;  %1820 = vmatpush.msra.mxu0 %v4637_v15 }
0x1269   :  { %v3817_v49 = vpop.eup %3816 }
0x126a   :  { %1711 = vrot.lane.b32.xlu0 %v3817_v49, %s3985_s3 }
0x1272   :  { %1621 = vrot.lane.b32.xlu0 %v1620_v25, %s3985_s3 }
0x127a   :  { %1130 = vrot.lane.b32.xlu0 %v4511_v18, %s3984_s23  ;;  %v4642_v18 = vld [vmem:[%s5410_s4 + $0x78] sm:$0xff] }
0x127b   :  { %1890 = vmatpush.msrb.mxu3 %v4642_v18  ;;  %1840 = vmatpush.msra.mxu1 %v4642_v18 }
0x1282   :  { %1460 = vrot.lane.b32.xlu0 %v4574_v38, %s3985_s3  ;;  %v4647_v38 = vld [vmem:[%s5410_s4 + $0x60] sm:$0xff] }
0x1283   :  { %1871 = vmatpush.msrb.mxu2 %v4647_v38  ;;  %1821 = vmatpush.msra.mxu0 %v4647_v38 }
0x1285   :  { %1872 = vmatpush.msrb.mxu2 %v4659_v45  ;;  %1822 = vmatpush.msra.mxu0 %v4659_v45 }
0x1287   :  { %1873 = vmatpush.msrb.mxu2 %v4681_v47  ;;  %1823 = vmatpush.msra.mxu0 %v4681_v47 }
0x1289   :  { %1874 = vmatpush.msrb.mxu2 %v4693_v50  ;;  %1824 = vmatpush.msra.mxu0 %v4693_v50 }
0x128a   :  { %1137 = vrot.lane.b32.xlu0 %v4526_v12, %s3985_s3  ;;  %v4654_v12 = vld [vmem:[%s5410_s4 + $0x68] sm:$0xff] }
0x128b   :  { %1891 = vmatpush.msrb.mxu3 %v4654_v12  ;;  %1841 = vmatpush.msra.mxu1 %v4654_v12 }
0x128c   :  { %1875 = vmatpush.msrb.mxu2 %v4703_v36  ;;  %1825 = vmatpush.msra.mxu0 %v4703_v36 }
0x128d   :  { %1892 = vmatpush.msrb.mxu3 %v4664_v24  ;;  %1842 = vmatpush.msra.mxu1 %v4664_v24 }
0x128e   :  { %1876 = vmatpush.msrb.mxu2 %v4717_v54  ;;  %1826 = vmatpush.msra.mxu0 %v4717_v54 }
0x128f   :  { %1893 = vmatpush.msrb.mxu3 %v4686_v48  ;;  %1843 = vmatpush.msra.mxu1 %v4686_v48 }
0x1290   :  { %1877 = vmatpush.msrb.mxu2 %v4735_v56  ;;  %1827 = vmatpush.msra.mxu0 %v4735_v56 }
0x1291   :  { %1894 = vmatpush.msrb.mxu3 %v4698_v51  ;;  %1844 = vmatpush.msra.mxu1 %v4698_v51 }
0x1292   :  { %1970 = vmatpush.msra.mxu2 %v4637_v15  ;;  %1920 = vmatpush.msrb.mxu0 %v4637_v15 }
0x1293   :  { %1895 = vmatpush.msrb.mxu3 %v4708_v52  ;;  %1845 = vmatpush.msra.mxu1 %v4708_v52 }
0x1294   :  { %1971 = vmatpush.msra.mxu2 %v4647_v38  ;;  %1921 = vmatpush.msrb.mxu0 %v4647_v38 }
0x1295   :  { %1896 = vmatpush.msrb.mxu3 %v4722_v37  ;;  %1846 = vmatpush.msra.mxu1 %v4722_v37 }
0x1296   :  { %1972 = vmatpush.msra.mxu2 %v4659_v45  ;;  %1922 = vmatpush.msrb.mxu0 %v4659_v45 }
0x1297   :  { %1897 = vmatpush.msrb.mxu3 %v4740_v53  ;;  %1847 = vmatpush.msra.mxu1 %v4740_v53 }
0x1298   :  { %1973 = vmatpush.msra.mxu2 %v4681_v47  ;;  %1923 = vmatpush.msrb.mxu0 %v4681_v47 }
0x1299   :  { %1990 = vmatpush.msra.mxu3 %v4642_v18  ;;  %1940 = vmatpush.msrb.mxu1 %v4642_v18 }
0x129a   :  { %1974 = vmatpush.msra.mxu2 %v4693_v50  ;;  %1924 = vmatpush.msrb.mxu0 %v4693_v50 }
0x129b   :  { %1991 = vmatpush.msra.mxu3 %v4654_v12  ;;  %1941 = vmatpush.msrb.mxu1 %v4654_v12 }
0x129c   :  { %1975 = vmatpush.msra.mxu2 %v4703_v36  ;;  %1925 = vmatpush.msrb.mxu0 %v4703_v36 }
0x129d   :  { %1992 = vmatpush.msra.mxu3 %v4664_v24  ;;  %1942 = vmatpush.msrb.mxu1 %v4664_v24 }
0x129e   :  { %1976 = vmatpush.msra.mxu2 %v4717_v54  ;;  %1926 = vmatpush.msrb.mxu0 %v4717_v54 }
0x129f   :  { %1993 = vmatpush.msra.mxu3 %v4686_v48  ;;  %1943 = vmatpush.msrb.mxu1 %v4686_v48 }
0x12a0   :  { %1977 = vmatpush.msra.mxu2 %v4735_v56  ;;  %1927 = vmatpush.msrb.mxu0 %v4735_v56 }
0x12a1   :  { %1994 = vmatpush.msra.mxu3 %v4698_v51  ;;  %1944 = vmatpush.msrb.mxu1 %v4698_v51 }
0x12a3   :  { %1995 = vmatpush.msra.mxu3 %v4708_v52  ;;  %1945 = vmatpush.msrb.mxu1 %v4708_v52 }
0x12a5   :  { %1996 = vmatpush.msra.mxu3 %v4722_v37  ;;  %1946 = vmatpush.msrb.mxu1 %v4722_v37 }
0x12a7   :  { %1997 = vmatpush.msra.mxu3 %v4740_v53  ;;  %1947 = vmatpush.msrb.mxu1 %v4740_v53 }
0x12ad   :  { %v4631_v8 = vpop.permute.xlu1 %1748 }
0x12ae   :  { %v1751_v0 = vmul.f32 %v4631_v8, %v4590_v7 }
0x12b5   :  { %v643_v30 = vpop.permute.xlu1 %642 }
0x12b6   :  { %645 = vst.msk [vmem:[#allocation3] sm:$0xf] %vm622_vm12, %v643_v30 }
0x12bd   :  { %v4676_v46 = vpop.permute.xlu1 %1299 }
0x12c5   :  { %v975_v55 = vpop.permute.xlu1 %974 }
0x12c6   :  { %978 = vst.msk [vmem:[#allocation3 + $0x14] sm:$0xf] %vm630_vm13, %v975_v55 }
0x12cd   :  { %v4757_v58 = vpop.permute.xlu1 %1293 }
0x12d5   :  { %v812_v59 = vpop.permute.xlu1 %811 }
0x12d6   :  { %815 = vst.msk [vmem:[#allocation3 + $0x18] sm:$0xf] %vm630_vm13, %v812_v59 }
0x12dc   :  { %v1712_v60 = vpop.permute.xlu0 %1711 }
0x12dd   :  { %v1714_v61 = vmul.f32 %v1712_v60, %v4598_v31 }
0x12df   :  { %1753 = vst [vmem:[#allocation1] ss:$2 sm:$0xff] %v1714_v61 }
0x12e4   :  { %v1622_v63 = vpop.permute.xlu0 %1621 }
0x12e5   :  { %1624 = vst.msk [vmem:[#allocation3 + $0x4] sm:$0xf] %vm630_vm13, %v1622_v63 }
0x12e6   :  { %v1754_v1 = vld.sshfl [vmem:[#allocation1] sm:$0xff pattern:$0x75316420] }
0x12e7   :  { %1760 = vst [vmem:[#allocation1] ss:$2 sm:$0xff] %v1751_v0 }
0x12ec   :  { %v1131_v2 = vpop.permute.xlu0 %1130  ;;  %v1858_v13 = vld [vmem:[#allocation3 + $0x4] sm:$0xf] }
0x12ed   :  { %1134 = vst.msk [vmem:[#allocation3 + $0xc] sm:$0xf] %vm622_vm12, %v1131_v2  ;;  %3634 = vmatmul.msk.f32.vlgmr.msrb.gmra.mxu2 %vm489_vm2, %v1858_v13  ;;  %3635 = vmatmul.msk.f32.vlgmr.msrb.gmra.mxu3 %vm489_vm2, %v1858_v13 }
0x12ee   :  { %1302 = vst.msk [vmem:[#allocation3 + $0xc] sm:$0xf] %vm630_vm13, %v4676_v46  ;;  %v1761_v16 = vld.sshfl [vmem:[#allocation1] sm:$0xff pattern:$0x75316420]  ;;  %2070 = vmatpush.msrb.mxu2 %v4637_v15  ;;  %2090 = vmatpush.msrb.mxu3 %v4642_v18 }
0x12ef   :  { %1762 = vrot.lane.b32.xlu1 %v1761_v16, %s3985_s3  ;;  %1767 = vst [vmem:[#allocation1] ss:$2 sm:$0xff] %v4618_v44 }
0x12f0   :  { %2071 = vmatpush.msrb.mxu2 %v4647_v38  ;;  %2091 = vmatpush.msrb.mxu3 %v4654_v12 }
0x12f2   :  { %2072 = vmatpush.msrb.mxu2 %v4659_v45  ;;  %2092 = vmatpush.msrb.mxu3 %v4664_v24 }
0x12f4   :  { %v1461_v17 = vpop.permute.xlu0 %1460  ;;  %2073 = vmatpush.msrb.mxu2 %v4681_v47  ;;  %2093 = vmatpush.msrb.mxu3 %v4686_v48 }
0x12f5   :  { %1463 = vst.msk [vmem:[#allocation3 + $0x8] sm:$0xf] %vm630_vm13, %v1461_v17  ;;  %v1958_v4 = vld [vmem:[#allocation3 + $0xc] sm:$0xf] }
0x12f6   :  { %3638 = vmatmul.msk.f32.vlgmr.msra.gmra.mxu2 %vm489_vm2, %v1958_v4  ;;  %3639 = vmatmul.msk.f32.vlgmr.msra.gmra.mxu3 %vm489_vm2, %v1958_v4  ;;  %v1768_v19 = vld.sshfl [vmem:[#allocation1] sm:$0xff pattern:$0x75316420] }
0x12f7   :  { %1774 = vst [vmem:[#allocation1] ss:$2 sm:$0xff] %v1714_v61  ;;  %2074 = vmatpush.msrb.mxu2 %v4693_v50  ;;  %2094 = vmatpush.msrb.mxu3 %v4698_v51 }
0x12f9   :  { %2075 = vmatpush.msrb.mxu2 %v4703_v36  ;;  %2095 = vmatpush.msrb.mxu3 %v4708_v52 }
0x12fb   :  { %2076 = vmatpush.msrb.mxu2 %v4717_v54  ;;  %2096 = vmatpush.msrb.mxu3 %v4722_v37 }
0x12fc   :  { %v1138_v3 = vpop.permute.xlu0 %1137  ;;  %v1908_v35 = vld [vmem:[#allocation3 + $0x8] sm:$0xf] }
0x12fd   :  { %1141 = vst.msk [vmem:[#allocation3 + $0x10] sm:$0xf] %vm630_vm13, %v1138_v3  ;;  %2077 = vmatpush.msrb.mxu2 %v4735_v56  ;;  %2097 = vmatpush.msrb.mxu3 %v4740_v53 }
0x12fe   :  { %1296 = vst.msk [vmem:[#allocation3 + $0x10] sm:$0xf] %vm622_vm12, %v4757_v58  ;;  %v1775_v7 = vld.sshfl [vmem:[#allocation1] sm:$0xff pattern:$0x75316420] }
0x12ff   :  { %2170 = vmatpush.msra.mxu2 %v4637_v15  ;;  %2190 = vmatpush.msra.mxu3 %v4642_v18  ;;  %1780 = vst [vmem:[#allocation1] ss:$2 sm:$0xff] %v1751_v0 }
0x1300   :  { %1776 = vrot.lane.b32.xlu0 %v1775_v7, %s3984_s23 }
0x1301   :  { %2171 = vmatpush.msra.mxu2 %v4647_v38  ;;  %2191 = vmatpush.msra.mxu3 %v4654_v12 }
0x1303   :  { %2172 = vmatpush.msra.mxu2 %v4659_v45  ;;  %2192 = vmatpush.msra.mxu3 %v4664_v24 }
0x1305   :  { %2173 = vmatpush.msra.mxu2 %v4681_v47  ;;  %2193 = vmatpush.msra.mxu3 %v4686_v48  ;;  %v2008_v25 = vld [vmem:[#allocation3 + $0x10] sm:$0xf] }
0x1306   :  { %v1781_v10 = vld.sshfl [vmem:[#allocation1] sm:$0xff pattern:$0x75316420] }
0x1307   :  { %2174 = vmatpush.msra.mxu2 %v4693_v50  ;;  %2194 = vmatpush.msra.mxu3 %v4698_v51 }
0x1308   :  { %1755 = vrot.lane.b32.xlu0 %v1754_v1, %s3984_s23  ;;  %1782 = vrot.lane.b32.xlu2 %v1781_v10, %s3985_s3 }
0x1309   :  { %2175 = vmatpush.msra.mxu2 %v4703_v36  ;;  %2195 = vmatpush.msra.mxu3 %v4708_v52 }
0x130b   :  { %2176 = vmatpush.msra.mxu2 %v4717_v54  ;;  %2196 = vmatpush.msra.mxu3 %v4722_v37 }
0x130d   :  { %2177 = vmatpush.msra.mxu2 %v4735_v56  ;;  %2197 = vmatpush.msra.mxu3 %v4740_v53 }
0x1310   :  { %1454 = vrot.lane.b32.xlu2 %v4555_v32, %s3984_s23 }
0x1318   :  { %648 = vrot.lane.b32.xlu2 %v4416_v57, %s3985_s3  ;;  %v1802_v57 = vld [vmem:[%s5412_s6] sm:$0x3] }
0x1319   :  { %v4854_v32 = vperm.slane %v1802_v57, 1 }
0x1320   :  { %1615 = vrot.lane.b32.xlu2 %v4579_v43, %s3984_s23  ;;  %v4858_v43 = vperm.slane %v1802_v57, 0 }
0x1328   :  { %1769 = vrot.lane.b32.xlu2 %v1768_v19, %s3986_s25 }
0x1361   :  { %v1763_v30 = vpop.permute.xlu1 %1762 }
0x1362   :  { %v1783_v9 = vpop.permute.xlu2 %1782 }
0x1363   :  { %1785 = vst.msk [vmem:[#allocation3] sm:$0xf] %vm630_vm13, %v1783_v9 }
0x136a   :  { %v1455_v11 = vpop.permute.xlu2 %1454  ;;  %v1803_v14 = vld [vmem:[#allocation3] sm:$0xf] }
0x136b   :  { %1457 = vst.msk [vmem:[#allocation3 + $0x14] sm:$0xf] %vm622_vm12, %v1455_v11  ;;  %3632 = vmatmul.msk.f32.vlgmr.msra.gmra.mxu0 %vm489_vm2, %v1803_v14  ;;  %3633 = vmatmul.msk.f32.vlgmr.msra.gmra.mxu1 %vm489_vm2, %v1803_v14 }
0x136c   :  { %2020 = vmatpush.msra.mxu0 %v4637_v15  ;;  %2040 = vmatpush.msra.mxu1 %v4642_v18 }
0x136e   :  { %2021 = vmatpush.msra.mxu0 %v4647_v38  ;;  %2041 = vmatpush.msra.mxu1 %v4654_v12 }
0x1370   :  { %2022 = vmatpush.msra.mxu0 %v4659_v45  ;;  %2042 = vmatpush.msra.mxu1 %v4664_v24  ;;  %v1879_v20 = vpop.f32.mrf.mxu2  ;;  %v1899_v27 = vpop.f32.mrf.mxu3 }
0x1371   :  { %v1900_v28 = vadd.f32 %v1899_v27, %v4854_v32  ;;  %v1880_v22 = vadd.f32 %v1879_v20, %v4858_v43 }
0x1372   :  { %2023 = vmatpush.msra.mxu0 %v4681_v47  ;;  %2043 = vmatpush.msra.mxu1 %v4686_v48  ;;  %v1777_v29 = vpop.permute.xlu0 %1776  ;;  %v649_v26 = vpop.permute.xlu2 %648  ;;  %v2058_v31 = vld [vmem:[#allocation3 + $0x14] sm:$0xf] }
0x1373   :  { %652 = vst.msk [vmem:[#allocation3 + $0x1c] sm:$0xf] %vm630_vm13, %v649_v26  ;;  %3636 = vmatmul.msk.f32.vlgmr.msrb.gmra.mxu0 %vm489_vm2, %v1908_v35  ;;  %3637 = vmatmul.msk.f32.vlgmr.msrb.gmra.mxu1 %vm489_vm2, %v1908_v35  ;;  %v1904_v21 = vrot.slane %v1900_v28, 4 }
0x1374   :  { %1779 = vst.msk [vmem:[#allocation3 + $0x1c] sm:$0xf] %vm622_vm12, %v1777_v29  ;;  %2024 = vmatpush.msra.mxu0 %v4693_v50  ;;  %2044 = vmatpush.msra.mxu1 %v4698_v51 }
0x1375   :  { %3642 = vmatmul.msk.f32.vlgmr.msrb.gmra.mxu2 %vm489_vm2, %v2058_v31  ;;  %3643 = vmatmul.msk.f32.vlgmr.msrb.gmra.mxu3 %vm489_vm2, %v2058_v31  ;;  %v1905_v62 = vsel %vm101_vm3, %v1880_v22, %v1904_v21 }
0x1376   :  { %2025 = vmatpush.msra.mxu0 %v4703_v36  ;;  %2045 = vmatpush.msra.mxu1 %v4708_v52  ;;  %1907 = vst [vmem:[#allocation2 + $0x8] sm:$0xff] %v1905_v62 }
0x1377   :  { %2387 = vmatpush.msrb.mxu2 %v4878_v23  ;;  %2407 = vmatpush.msrb.mxu3 %v4883_v39 }
0x1378   :  { %2026 = vmatpush.msra.mxu0 %v4717_v54  ;;  %2046 = vmatpush.msra.mxu1 %v4722_v37 }
0x1379   :  { %2388 = vmatpush.msrb.mxu2 %v4892_v34  ;;  %2408 = vmatpush.msrb.mxu3 %v4897_v6  ;;  %v1979_v40 = vpop.f32.mrf.mxu2  ;;  %v1999_v41 = vpop.f32.mrf.mxu3 }
0x137a   :  { %2027 = vmatpush.msra.mxu0 %v4735_v56  ;;  %2047 = vmatpush.msra.mxu1 %v4740_v53  ;;  %v2000_v42 = vadd.f32 %v1999_v41, %v4854_v32  ;;  %v1756_v44 = vpop.permute.xlu0 %1755  ;;  %v1616_v49 = vpop.permute.xlu2 %1615  ;;  %v1980_v46 = vadd.f32 %v1979_v40, %v4858_v43 }
0x137b   :  { %v2158_v8 = vld [vmem:[#allocation3 + $0x1c] sm:$0xf]  ;;  %1758 = vst.msk [vmem:[#allocation4] sm:$0xf] %vm622_vm12, %v1756_v44  ;;  %3640 = vmatmul.msk.f32.vlgmr.msra.gmra.mxu0 %vm489_vm2, %v2008_v25  ;;  %3641 = vmatmul.msk.f32.vlgmr.msra.gmra.mxu1 %vm489_vm2, %v2008_v25 }
0x137c   :  { %2120 = vmatpush.msrb.mxu0 %v4637_v15  ;;  %2140 = vmatpush.msrb.mxu1 %v4642_v18  ;;  %v2004_v55 = vrot.slane %v2000_v42, 4  ;;  %1765 = vst.msk [vmem:[#allocation4] sm:$0xf] %vm630_vm13, %v1763_v30  ;;  %v4924_v18 = vld [vmem:[%s5411_s5 + $0x50] sm:$0xff] }
0x137d   :  { %2224 = vst.msk [vmem:[#allocation4] sm:$0xf] %vm485_vm0, %v3983_v5  ;;  %3646 = vmatmul.msk.f32.vlgmr.msra.gmra.mxu2 %vm489_vm2, %v2158_v8  ;;  %3647 = vmatmul.msk.f32.vlgmr.msra.gmra.mxu3 %vm489_vm2, %v2158_v8 }
0x137e   :  { %2121 = vmatpush.msrb.mxu0 %v4647_v38  ;;  %2141 = vmatpush.msrb.mxu1 %v4654_v12  ;;  %v2005_v15 = vsel %vm101_vm3, %v1980_v46, %v2004_v55  ;;  %1618 = vst.msk [vmem:[#allocation3 + $0x18] sm:$0xf] %vm622_vm12, %v1616_v49  ;;  %v4929_v38 = vld [vmem:[%s5411_s5 + $0x58] sm:$0xff]  ;;  %v4938_v12 = vld [vmem:[%s5411_s5 + $0x40] sm:$0xff] }
0x137f   :  { %2007 = vst [vmem:[#allocation2 + $0x18] sm:$0xff] %v2005_v15  ;;  %2389 = vmatpush.msrb.mxu2 %v4924_v18  ;;  %2409 = vmatpush.msrb.mxu3 %v4929_v38 }
0x1380   :  { %2122 = vmatpush.msrb.mxu0 %v4659_v45  ;;  %2142 = vmatpush.msrb.mxu1 %v4664_v24  ;;  %v4943_v45 = vld [vmem:[%s5411_s5 + $0x48] sm:$0xff] }
0x1381   :  { %2390 = vmatpush.msrb.mxu2 %v4938_v12  ;;  %2410 = vmatpush.msrb.mxu3 %v4943_v45 }
0x1382   :  { %2123 = vmatpush.msrb.mxu0 %v4681_v47  ;;  %2143 = vmatpush.msrb.mxu1 %v4686_v48  ;;  %v1770_v24 = vpop.permute.xlu2 %1769  ;;  %v4952_v47 = vld [vmem:[%s5411_s5 + $0x30] sm:$0xff]  ;;  %v4957_v48 = vld [vmem:[%s5411_s5 + $0x38] sm:$0xff] }
0x1383   :  { %1772 = vst.msk [vmem:[#allocation5] sm:$0xf] %vm622_vm12, %v1770_v24  ;;  %2391 = vmatpush.msrb.mxu2 %v4952_v47  ;;  %2411 = vmatpush.msrb.mxu3 %v4957_v48 }
0x1384   :  { %2124 = vmatpush.msrb.mxu0 %v4693_v50  ;;  %2144 = vmatpush.msrb.mxu1 %v4698_v51  ;;  %1773 = vst.msk [vmem:[#allocation5] sm:$0xf] %vm630_vm13, %v4603_v33  ;;  %v4969_v50 = vld [vmem:[%s5411_s5 + $0x20] sm:$0xff]  ;;  %v4974_v51 = vld [vmem:[%s5411_s5 + $0x28] sm:$0xff]  ;;  %v4985_v33 = vld [vmem:[%s5411_s5 + $0x10] sm:$0xff] }
0x1385   :  { %2225 = vst.msk [vmem:[#allocation5] sm:$0xf] %vm485_vm0, %v3983_v5  ;;  %2392 = vmatpush.msrb.mxu2 %v4969_v50  ;;  %2412 = vmatpush.msrb.mxu3 %v4974_v51  ;;  %v2108_v5 = vld [vmem:[#allocation3 + $0x18] sm:$0xf] }
0x1386   :  { %2125 = vmatpush.msrb.mxu0 %v4703_v36  ;;  %2145 = vmatpush.msrb.mxu1 %v4708_v52  ;;  %v4990_v36 = vld [vmem:[%s5411_s5 + $0x18] sm:$0xff]  ;;  %v5003_v52 = vld [vmem:[%s5411_s5] sm:$0xff] }
0x1387   :  { %2393 = vmatpush.msrb.mxu2 %v4985_v33  ;;  %2413 = vmatpush.msrb.mxu3 %v4990_v36 }
0x1388   :  { %2126 = vmatpush.msrb.mxu0 %v4717_v54  ;;  %2146 = vmatpush.msrb.mxu1 %v4722_v37  ;;  %v5008_v54 = vld [vmem:[%s5411_s5 + $0x8] sm:$0xff] }
0x1389   :  { %2394 = vmatpush.msrb.mxu2 %v5003_v52  ;;  %2414 = vmatpush.msrb.mxu3 %v5008_v54 }
0x138a   :  { %2127 = vmatpush.msrb.mxu0 %v4735_v56  ;;  %2147 = vmatpush.msrb.mxu1 %v4740_v53  ;;  %v2226_v56 = vld [vmem:[#allocation4] sm:$0xf] }
0x138b   :  { %3644 = vmatmul.msk.f32.vlgmr.msrb.gmra.mxu0 %vm489_vm2, %v2108_v5  ;;  %3645 = vmatmul.msk.f32.vlgmr.msrb.gmra.mxu1 %vm489_vm2, %v2108_v5 }
0x138c   :  { %2238 = vmatpush.msra.mxu0 %v4878_v23  ;;  %2258 = vmatpush.msra.mxu1 %v4883_v39  ;;  %v5014_v37 = vld [vmem:[#allocation5] sm:$0xf] }
0x138d   :  { %2296 = vrot.lane.b32.xlu2 %v5014_v37, %s3984_s23  ;;  %2685 = vmatpush.msra.mxu2 %v4878_v23 }
0x138e   :  { %2239 = vmatpush.msra.mxu0 %v4892_v34  ;;  %2259 = vmatpush.msra.mxu1 %v4897_v6 }
0x138f   :  { %2705 = vmatpush.msra.mxu3 %v4883_v39  ;;  %2686 = vmatpush.msra.mxu2 %v4892_v34 }
0x1390   :  { %2240 = vmatpush.msra.mxu0 %v4924_v18  ;;  %2260 = vmatpush.msra.mxu1 %v4929_v38 }
0x1391   :  { %2706 = vmatpush.msra.mxu3 %v4897_v6  ;;  %2687 = vmatpush.msra.mxu2 %v4924_v18 }
0x1392   :  { %2241 = vmatpush.msra.mxu0 %v4938_v12  ;;  %2261 = vmatpush.msra.mxu1 %v4943_v45 }
0x1393   :  { %2707 = vmatpush.msra.mxu3 %v4929_v38  ;;  %2688 = vmatpush.msra.mxu2 %v4938_v12 }
0x1394   :  { %2242 = vmatpush.msra.mxu0 %v4952_v47  ;;  %2262 = vmatpush.msra.mxu1 %v4957_v48 }
0x1395   :  { %2708 = vmatpush.msra.mxu3 %v4943_v45  ;;  %2689 = vmatpush.msra.mxu2 %v4952_v47 }
0x1396   :  { %2243 = vmatpush.msra.mxu0 %v4969_v50  ;;  %2263 = vmatpush.msra.mxu1 %v4974_v51 }
0x1397   :  { %2709 = vmatpush.msra.mxu3 %v4957_v48  ;;  %2690 = vmatpush.msra.mxu2 %v4969_v50 }
0x1398   :  { %2244 = vmatpush.msra.mxu0 %v4985_v33  ;;  %2264 = vmatpush.msra.mxu1 %v4990_v36 }
0x1399   :  { %2710 = vmatpush.msra.mxu3 %v4974_v51  ;;  %2691 = vmatpush.msra.mxu2 %v4985_v33 }
0x139a   :  { %2245 = vmatpush.msra.mxu0 %v5003_v52  ;;  %2265 = vmatpush.msra.mxu1 %v5008_v54 }
0x139b   :  { %3648 = vmatmul.msk.f32.vlgmr.msra.gmra.mxu0 %vm489_vm2, %v2226_v56  ;;  %3649 = vmatmul.msk.f32.vlgmr.msra.gmra.mxu1 %vm489_vm2, %v2226_v56 }
0x139c   :  { %2536 = vmatpush.msrb.mxu0 %v4878_v23  ;;  %2556 = vmatpush.msrb.mxu1 %v4883_v39 }
0x139d   :  { %2711 = vmatpush.msra.mxu3 %v4990_v36  ;;  %2692 = vmatpush.msra.mxu2 %v5003_v52 }
0x139e   :  { %2537 = vmatpush.msrb.mxu0 %v4892_v34  ;;  %2557 = vmatpush.msrb.mxu1 %v4897_v6 }
0x139f   :  { %2712 = vmatpush.msra.mxu3 %v5008_v54 }
0x13a0   :  { %2538 = vmatpush.msrb.mxu0 %v4924_v18  ;;  %2558 = vmatpush.msrb.mxu1 %v4929_v38 }
0x13a2   :  { %2539 = vmatpush.msrb.mxu0 %v4938_v12  ;;  %2559 = vmatpush.msrb.mxu1 %v4943_v45 }
0x13a4   :  { %2540 = vmatpush.msrb.mxu0 %v4952_v47  ;;  %2560 = vmatpush.msrb.mxu1 %v4957_v48 }
0x13a6   :  { %2541 = vmatpush.msrb.mxu0 %v4969_v50  ;;  %2561 = vmatpush.msrb.mxu1 %v4974_v51 }
0x13a8   :  { %2542 = vmatpush.msrb.mxu0 %v4985_v33  ;;  %2562 = vmatpush.msrb.mxu1 %v4990_v36 }
0x13aa   :  { %2543 = vmatpush.msrb.mxu0 %v5003_v52  ;;  %2563 = vmatpush.msrb.mxu1 %v5008_v54 }
0x13ac   :  { %2834 = vmatpush.msra.mxu0 %v4878_v23  ;;  %2854 = vmatpush.msra.mxu1 %v4883_v39 }
0x13ae   :  { %2835 = vmatpush.msra.mxu0 %v4892_v34  ;;  %2855 = vmatpush.msra.mxu1 %v4897_v6 }
0x13b0   :  { %2836 = vmatpush.msra.mxu0 %v4924_v18  ;;  %2856 = vmatpush.msra.mxu1 %v4929_v38 }
0x13b2   :  { %2837 = vmatpush.msra.mxu0 %v4938_v12  ;;  %2857 = vmatpush.msra.mxu1 %v4943_v45 }
0x13b4   :  { %2838 = vmatpush.msra.mxu0 %v4952_v47  ;;  %2858 = vmatpush.msra.mxu1 %v4957_v48 }
0x13b6   :  { %2839 = vmatpush.msra.mxu0 %v4969_v50  ;;  %2859 = vmatpush.msra.mxu1 %v4974_v51 }
0x13b8   :  { %2840 = vmatpush.msra.mxu0 %v4985_v33  ;;  %2860 = vmatpush.msra.mxu1 %v4990_v36 }
0x13ba   :  { %2841 = vmatpush.msra.mxu0 %v5003_v52  ;;  %2861 = vmatpush.msra.mxu1 %v5008_v54 }
0x13e8   :  { %v1829_v53 = vpop.f32.mrf.mxu0  ;;  %v1849_v58 = vpop.f32.mrf.mxu1 }
0x13e9   :  { %v1850_v59 = vadd.f32 %v1849_v58, %v4854_v32  ;;  %v1830_v60 = vadd.f32 %v1829_v53, %v4858_v43 }
0x13eb   :  { %v1854_v61 = vrot.slane %v1850_v59, 4 }
0x13ed   :  { %v1855_v63 = vsel %vm101_vm3, %v1830_v60, %v1854_v61 }
0x13ee   :  { %1857 = vst [vmem:[#allocation2] sm:$0xff] %v1855_v63 }
0x13f0   :  { %v1929_v0 = vpop.f32.mrf.mxu0  ;;  %v1949_v1 = vpop.f32.mrf.mxu1 }
0x13f1   :  { %v1950_v2 = vadd.f32 %v1949_v1, %v4854_v32  ;;  %v1930_v13 = vadd.f32 %v1929_v0, %v4858_v43 }
0x13f3   :  { %v1954_v16 = vrot.slane %v1950_v2, 4 }
0x13f5   :  { %v1955_v17 = vsel %vm101_vm3, %v1930_v13, %v1954_v16  ;;  %v2270_v8 = vld [vmem:[#allocation2] sm:$0xf] }
0x13f6   :  { %1957 = vst [vmem:[#allocation2 + $0x10] sm:$0xff] %v1955_v17 }
0x13f8   :  { %v2079_v4 = vpop.f32.mrf.mxu2  ;;  %v2099_v19 = vpop.f32.mrf.mxu3 }
0x13f9   :  { %v2100_v3 = vadd.f32 %v2099_v19, %v4854_v32  ;;  %v2029_v7 = vpop.f32.mrf.mxu0  ;;  %v2049_v10 = vpop.f32.mrf.mxu1  ;;  %v2080_v11 = vadd.f32 %v2079_v4, %v4858_v43 }
0x13fa   :  { %v2050_v9 = vadd.f32 %v2049_v10, %v4854_v32  ;;  %v2030_v57 = vadd.f32 %v2029_v7, %v4858_v43 }
0x13fb   :  { %v2104_v14 = vrot.slane %v2100_v3, 4 }
0x13fc   :  { %v2054_v20 = vrot.slane %v2050_v9, 4 }
0x13fd   :  { %v2105_v27 = vsel %vm101_vm3, %v2080_v11, %v2104_v14 }
0x13fe   :  { %2107 = vst [vmem:[#allocation2 + $0x28] sm:$0xff] %v2105_v27  ;;  %v2055_v28 = vsel %vm101_vm3, %v2030_v57, %v2054_v20 }
0x13ff   :  { %2057 = vst [vmem:[#allocation2 + $0x20] sm:$0xff] %v2055_v28 }
0x1400   :  { %v2179_v29 = vpop.f32.mrf.mxu2  ;;  %v2199_v26 = vpop.f32.mrf.mxu3 }
0x1401   :  { %v2200_v35 = vadd.f32 %v2199_v26, %v4854_v32  ;;  %v2180_v31 = vadd.f32 %v2179_v29, %v4858_v43 }
0x1403   :  { %v2204_v22 = vrot.slane %v2200_v35, 4 }
0x1405   :  { %v2205_v21 = vsel %vm101_vm3, %v2180_v31, %v2204_v22  ;;  %v2297_v31 = vpop.permute.xlu2 %2296 }
0x1406   :  { %2207 = vst [vmem:[#allocation2 + $0x38] sm:$0xff] %v2205_v21 }
0x1408   :  { %v2129_v62 = vpop.f32.mrf.mxu0  ;;  %v2149_v40 = vpop.f32.mrf.mxu1 }
0x1409   :  { %v2150_v41 = vadd.f32 %v2149_v40, %v4854_v32  ;;  %v2130_v42 = vadd.f32 %v2129_v62, %v4858_v43 }
0x140b   :  { %v2154_v44 = vrot.slane %v2150_v41, 4 }
0x140d   :  { %v2155_v49 = vsel %vm101_vm3, %v2130_v42, %v2154_v44  ;;  %v2272_v46 = vld [vmem:[#allocation2 + $0x3c] sm:$0xf] }
0x140e   :  { %2157 = vst [vmem:[#allocation2 + $0x30] sm:$0xff] %v2155_v49 }
0x1418   :  { %v2247_v25 = vpop.f32.mrf.mxu0  ;;  %v2267_v30 = vpop.f32.mrf.mxu1 }
0x1419   :  { %v2271_v55 = vadd.f32 %v2270_v8, %v2247_v25  ;;  %v2273_v15 = vadd.f32 %v2272_v46, %v2267_v30 }
0x141b   :  { %3818 = vtanh.f32 %v2271_v55  ;;  %v3650_v32 = vmul.f32 -1.442695, %v2271_v55  ;;  %v3651_v43 = vmul.f32 -1.442695, %v2273_v15 }
0x141c   :  { %3820 = vtanh.f32 %v2273_v15 }
0x141d   :  { %3822 = vpow2.f32 %v3650_v32 }
0x141e   :  { %3824 = vpow2.f32 %v3651_v43 }
0x1421   :  { %v3819_v24 = vpop.eup %3818 }
0x1422   :  { %v3821_v5 = vpop.eup %3820  ;;  %2301 = vrot.lane.b32.xlu0 %v3819_v24, %s3985_s3 }
0x1423   :  { %2338 = vrot.lane.b32.xlu1 %v3821_v5, %s3985_s3  ;;  %v3823_v56 = vpop.eup %3822 }
0x1424   :  { %v3825_v53 = vpop.eup %3824  ;;  %v2278_v58 = vadd.f32 1.0, %v3823_v56 }
0x1425   :  { %v2319_v59 = vadd.f32 1.0, %v3825_v53 }
0x1426   :  { %3826 = vrcp.f32 %v2278_v58  ;;  %v2290_v4 = vand.u32 2147483648, %v2278_v58  ;;  %vm2284_vm4 = vweird.f32 %v2278_v58  ;;  %v2288_v3 = vand.u32 2147483647, %v2278_v58 }
0x1427   :  { %3828 = vrcp.f32 %v2319_v59  ;;  %v2331_v7 = vand.u32 2147483648, %v2319_v59  ;;  %vm2325_vm6 = vweird.f32 %v2319_v59  ;;  %v2329_v10 = vand.u32 2147483647, %v2319_v59 }
0x1428   :  { %v2291_v11 = vor.u32 1.1754944e-38, %v2290_v4  ;;  %vm2289_vm8 = vcmp.eq.f32.partialorder %v2288_v3, 8.507059e+37 }
0x1429   :  { %v2332_v57 = vor.u32 1.1754944e-38, %v2331_v7  ;;  %vm2330_vm9 = vcmp.eq.f32.partialorder %v2329_v10, 8.507059e+37 }
0x142c   :  { %v3827_v60 = vpop.eup %3826 }
0x142d   :  { %v3829_v61 = vpop.eup %3828  ;;  %v2280_v63 = vmul.f32 %v3827_v60, %v2278_v58  ;;  %vm2285_vm15 = vweird.f32 %v3827_v60  ;;  %v2419_v58 = vld [vmem:[#allocation2 + $0x8] sm:$0xf] }
0x142e   :  { %v2321_v0 = vmul.f32 %v3829_v61, %v2319_v59  ;;  %vm2326_vm1 = vweird.f32 %v3829_v61  ;;  %vm2286_vm5 = vmor %vm2284_vm4, %vm2285_vm15 }
0x142f   :  { %v2281_v1 = vsub.f32 1.0, %v2280_v63  ;;  %vm2327_vm7 = vmor %vm2325_vm6, %vm2326_vm1 }
0x1430   :  { %v2322_v2 = vsub.f32 1.0, %v2321_v0 }
0x1431   :  { %v2282_v13 = vmul.f32 %v3827_v60, %v2281_v1 }
0x1432   :  { %v2323_v16 = vmul.f32 %v3829_v61, %v2322_v2 }
0x1433   :  { %v2283_v17 = vadd.f32 %v3827_v60, %v2282_v13 }
0x1434   :  { %v2324_v19 = vadd.f32 %v3829_v61, %v2323_v16 }
0x1435   :  { %v2287_v9 = vsel %vm2286_vm5, %v3827_v60, %v2283_v17  ;;  %v2421_v60 = vld [vmem:[#allocation2 + $0x34] sm:$0xf] }
0x1436   :  { %v2328_v14 = vsel %vm2327_vm7, %v3829_v61, %v2324_v19  ;;  %v2292_v20 = vsel %vm2289_vm8, %v2291_v11, %v2287_v9 }
0x1437   :  { %v2333_v29 = vsel %vm2330_vm9, %v2332_v57, %v2328_v14  ;;  %v2299_v22 = vmul.f32 %v2297_v31, %v2292_v20 }
0x1438   :  { %v2336_v21 = vmul.f32 %v2333_v29, %v5014_v37 }
0x1494   :  { %v2302_v27 = vpop.permute.xlu0 %2301 }
0x1495   :  { %v2339_v28 = vpop.permute.xlu1 %2338  ;;  %v2304_v26 = vmul.f32 %v2302_v27, %v2292_v20 }
0x1496   :  { %v2341_v35 = vmul.f32 %v2339_v28, %v2333_v29 }
0x1497   :  { %2306 = vrot.lane.b32.xlu0 %v2304_v26, %s3984_s23 }
0x1498   :  { %2343 = vrot.lane.b32.xlu1 %v2341_v35, %s3984_s23 }
0x1509   :  { %v2307_v62 = vpop.permute.xlu0 %2306 }
0x150a   :  { %v2344_v40 = vpop.permute.xlu1 %2343  ;;  %v2309_v41 = vadd.f32 %v2307_v62, %v2299_v22 }
0x150b   :  { %v2346_v42 = vadd.f32 %v2344_v40, %v2336_v21 }
0x150c   :  { %3830 = vtanh.f32 %v2309_v41 }
0x150d   :  { %3832 = vtanh.f32 %v2346_v42 }
0x1512   :  { %v3831_v44 = vpop.eup %3830 }
0x1513   :  { %v3833_v49 = vpop.eup %3832  ;;  %2312 = vrot.lane.b32.xlu2 %v3831_v44, %s3985_s3 }
0x1514   :  { %2349 = vrot.lane.b32.xlu0 %v3833_v49, %s3985_s3 }
0x156d   :  { %v2313_v25 = vpop.permute.xlu2 %2312 }
0x156e   :  { %v2315_v8 = vmul.f32 %v2313_v25, %v2292_v20 }
0x1570   :  { %2354 = vst [vmem:[#allocation1] ss:$2 sm:$0xff] %v2315_v8 }
0x1577   :  { %v2355_v30 = vld.sshfl [vmem:[#allocation1] sm:$0xff pattern:$0x75316420] }
0x1578   :  { %2356 = vrot.lane.b32.xlu1 %v2355_v30, %s3984_s23 }
0x1586   :  { %v2350_v46 = vpop.permute.xlu0 %2349 }
0x1587   :  { %v2352_v37 = vmul.f32 %v2350_v46, %v2333_v29 }
0x1589   :  { %2361 = vst [vmem:[#allocation1] ss:$2 sm:$0xff] %v2352_v37 }
0x1590   :  { %v2362_v55 = vld.sshfl [vmem:[#allocation1] sm:$0xff pattern:$0x75316420] }
0x1591   :  { %2363 = vrot.lane.b32.xlu2 %v2362_v55, %s3985_s3  ;;  %2368 = vst [vmem:[#allocation1] ss:$2 sm:$0xff] %v2309_v41 }
0x1598   :  { %v2369_v15 = vld.sshfl [vmem:[#allocation1] sm:$0xff pattern:$0x75316420] }
0x1599   :  { %2370 = vrot.lane.b32.xlu0 %v2369_v15, %s3986_s25 }
0x15ea   :  { %v2357_v24 = vpop.permute.xlu1 %2356 }
0x15eb   :  { %2359 = vst.msk [vmem:[#allocation4] sm:$0xf] %vm622_vm12, %v2357_v24  ;;  %v2364_v5 = vpop.permute.xlu2 %2363 }
0x15ec   :  { %2366 = vst.msk [vmem:[#allocation4] sm:$0xf] %vm630_vm13, %v2364_v5 }
0x15f3   :  { %v2375_v32 = vld [vmem:[#allocation4] sm:$0xf] }
0x15f4   :  { %3652 = vmatmul.msk.f32.vlgmr.msrb.gmra.mxu2 %vm489_vm2, %v2375_v32  ;;  %3653 = vmatmul.msk.f32.vlgmr.msrb.gmra.mxu3 %vm489_vm2, %v2375_v32 }
0x15f5   :  { %2983 = vmatpush.msrb.mxu2 %v4878_v23  ;;  %3003 = vmatpush.msrb.mxu3 %v4883_v39 }
0x15f7   :  { %2984 = vmatpush.msrb.mxu2 %v4892_v34  ;;  %3004 = vmatpush.msrb.mxu3 %v4897_v6 }
0x15f9   :  { %2985 = vmatpush.msrb.mxu2 %v4924_v18  ;;  %3005 = vmatpush.msrb.mxu3 %v4929_v38 }
0x15fb   :  { %2986 = vmatpush.msrb.mxu2 %v4938_v12  ;;  %3006 = vmatpush.msrb.mxu3 %v4943_v45 }
0x15fd   :  { %2987 = vmatpush.msrb.mxu2 %v4952_v47  ;;  %3007 = vmatpush.msrb.mxu3 %v4957_v48 }
0x15ff   :  { %2988 = vmatpush.msrb.mxu2 %v4969_v50  ;;  %3008 = vmatpush.msrb.mxu3 %v4974_v51 }
0x1601   :  { %2989 = vmatpush.msrb.mxu2 %v4985_v33  ;;  %3009 = vmatpush.msrb.mxu3 %v4990_v36 }
0x1603   :  { %2990 = vmatpush.msrb.mxu2 %v5003_v52  ;;  %3010 = vmatpush.msrb.mxu3 %v5008_v54 }
0x160b   :  { %v2371_v43 = vpop.permute.xlu0 %2370 }
0x160c   :  { %2373 = vst.msk [vmem:[#allocation5] sm:$0xf] %vm622_vm12, %v2371_v43 }
0x160d   :  { %2374 = vst.msk [vmem:[#allocation5] sm:$0xf] %vm630_vm13, %v2346_v42 }
0x1614   :  { %v2423_v56 = vld [vmem:[#allocation5] sm:$0xf] }
0x1615   :  { %2445 = vrot.lane.b32.xlu0 %v2423_v56, %s3984_s23 }
0x1677   :  { %v2396_v53 = vpop.f32.mrf.mxu2  ;;  %v2416_v59 = vpop.f32.mrf.mxu3 }
0x1678   :  { %v2420_v61 = vadd.f32 %v2419_v58, %v2396_v53  ;;  %v2422_v63 = vadd.f32 %v2421_v60, %v2416_v59 }
0x167a   :  { %3834 = vtanh.f32 %v2420_v61  ;;  %v3655_v2 = vmul.f32 -1.442695, %v2422_v63  ;;  %v3654_v4 = vmul.f32 -1.442695, %v2420_v61 }
0x167b   :  { %3836 = vtanh.f32 %v2422_v63 }
0x167c   :  { %3838 = vpow2.f32 %v3655_v2 }
0x1680   :  { %v3835_v0 = vpop.eup %3834 }
0x1681   :  { %v3837_v1 = vpop.eup %3836  ;;  %2450 = vrot.lane.b32.xlu1 %v3835_v0, %s3985_s3 }
0x1682   :  { %2487 = vrot.lane.b32.xlu2 %v3837_v1, %s3985_s3  ;;  %v3839_v13 = vpop.eup %3838 }
0x1683   :  { %v2468_v16 = vadd.f32 1.0, %v3839_v13 }
0x1685   :  { %3840 = vrcp.f32 %v2468_v16  ;;  %v2480_v14 = vand.u32 2147483648, %v2468_v16  ;;  %vm2474_vm11 = vweird.f32 %v2468_v16  ;;  %v2478_v57 = vand.u32 2147483647, %v2468_v16 }
0x1686   :  { %3842 = vpow2.f32 %v3654_v4  ;;  %v2568_v4 = vld [vmem:[#allocation2 + $0x10] sm:$0xf] }
0x1687   :  { %v2481_v27 = vor.u32 1.1754944e-38, %v2480_v14  ;;  %vm2479_vm15 = vcmp.eq.f32.partialorder %v2478_v57, 8.507059e+37  ;;  %v2446_v15 = vpop.permute.xlu0 %2445 }
0x168b   :  { %v3841_v17 = vpop.eup %3840 }
0x168c   :  { %v2470_v19 = vmul.f32 %v3841_v17, %v2468_v16  ;;  %v3843_v7 = vpop.eup %3842  ;;  %vm2475_vm10 = vweird.f32 %v3841_v17 }
0x168d   :  { %v2427_v9 = vadd.f32 1.0, %v3843_v7  ;;  %vm2476_vm14 = vmor %vm2474_vm11, %vm2475_vm10 }
0x168e   :  { %v2471_v3 = vsub.f32 1.0, %v2470_v19 }
0x168f   :  { %3844 = vrcp.f32 %v2427_v9  ;;  %v2439_v40 = vand.u32 2147483648, %v2427_v9  ;;  %vm2433_vm4 = vweird.f32 %v2427_v9  ;;  %v2437_v41 = vand.u32 2147483647, %v2427_v9 }
0x1690   :  { %v2472_v10 = vmul.f32 %v3841_v17, %v2471_v3  ;;  %v2570_v3 = vld [vmem:[#allocation2 + $0x2c] sm:$0xf] }
0x1691   :  { %v2440_v44 = vor.u32 1.1754944e-38, %v2439_v40  ;;  %vm2438_vm6 = vcmp.eq.f32.partialorder %v2437_v41, 8.507059e+37 }
0x1692   :  { %v2473_v11 = vadd.f32 %v3841_v17, %v2472_v10 }
0x1694   :  { %v2477_v20 = vsel %vm2476_vm14, %v3841_v17, %v2473_v11 }
0x1695   :  { %v2482_v29 = vsel %vm2479_vm15, %v2481_v27, %v2477_v20  ;;  %v3845_v26 = vpop.eup %3844 }
0x1696   :  { %v2429_v31 = vmul.f32 %v3845_v26, %v2427_v9  ;;  %vm2434_vm1 = vweird.f32 %v3845_v26  ;;  %v2485_v30 = vmul.f32 %v2482_v29, %v2423_v56 }
0x1697   :  { %vm2435_vm5 = vmor %vm2433_vm4, %vm2434_vm1 }
0x1698   :  { %v2430_v22 = vsub.f32 1.0, %v2429_v31 }
0x169a   :  { %v2431_v21 = vmul.f32 %v3845_v26, %v2430_v22 }
0x169c   :  { %v2432_v62 = vadd.f32 %v3845_v26, %v2431_v21 }
0x169e   :  { %v2436_v42 = vsel %vm2435_vm5, %v3845_v26, %v2432_v62 }
0x169f   :  { %v2441_v49 = vsel %vm2438_vm6, %v2440_v44, %v2436_v42 }
0x16a0   :  { %v2448_v24 = vmul.f32 %v2446_v15, %v2441_v49 }
0x16dc   :  { %v2488_v28 = vpop.permute.xlu2 %2487 }
0x16dd   :  { %v2490_v35 = vmul.f32 %v2488_v28, %v2482_v29 }
0x16df   :  { %2492 = vrot.lane.b32.xlu2 %v2490_v35, %s3984_s23 }
0x16f3   :  { %v2451_v25 = vpop.permute.xlu1 %2450 }
0x16f4   :  { %v2453_v8 = vmul.f32 %v2451_v25, %v2441_v49 }
0x16f6   :  { %2455 = vrot.lane.b32.xlu1 %v2453_v8, %s3984_s23 }
0x1739   :  { %v2493_v46 = vpop.permute.xlu2 %2492 }
0x173a   :  { %v2495_v37 = vadd.f32 %v2493_v46, %v2485_v30 }
0x173c   :  { %3846 = vtanh.f32 %v2495_v37 }
0x1742   :  { %v3847_v55 = vpop.eup %3846 }
0x1743   :  { %2498 = vrot.lane.b32.xlu1 %v3847_v55, %s3985_s3 }
0x1768   :  { %v2456_v5 = vpop.permute.xlu1 %2455 }
0x1769   :  { %v2458_v32 = vadd.f32 %v2456_v5, %v2448_v24 }
0x176b   :  { %3848 = vtanh.f32 %v2458_v32 }
0x1771   :  { %v3849_v43 = vpop.eup %3848 }
0x1772   :  { %2461 = vrot.lane.b32.xlu0 %v3849_v43, %s3985_s3 }
0x17b5   :  { %v2499_v59 = vpop.permute.xlu1 %2498 }
0x17b6   :  { %v2501_v60 = vmul.f32 %v2499_v59, %v2482_v29 }
0x17e4   :  { %v2462_v53 = vpop.permute.xlu0 %2461 }
0x17e5   :  { %v2464_v58 = vmul.f32 %v2462_v53, %v2441_v49 }
0x17e7   :  { %2503 = vst [vmem:[#allocation1] ss:$2 sm:$0xff] %v2464_v58 }
0x17ee   :  { %v2504_v56 = vld.sshfl [vmem:[#allocation1] sm:$0xff pattern:$0x75316420] }
0x17ef   :  { %2505 = vrot.lane.b32.xlu2 %v2504_v56, %s3984_s23  ;;  %2510 = vst [vmem:[#allocation1] ss:$2 sm:$0xff] %v2501_v60 }
0x17f6   :  { %v2511_v61 = vld.sshfl [vmem:[#allocation1] sm:$0xff pattern:$0x75316420] }
0x17f7   :  { %2512 = vrot.lane.b32.xlu0 %v2511_v61, %s3985_s3  ;;  %2517 = vst [vmem:[#allocation1] ss:$2 sm:$0xff] %v2458_v32 }
0x17fe   :  { %v2518_v63 = vld.sshfl [vmem:[#allocation1] sm:$0xff pattern:$0x75316420] }
0x17ff   :  { %2519 = vrot.lane.b32.xlu1 %v2518_v63, %s3986_s25 }
0x1849   :  { %v2506_v0 = vpop.permute.xlu2 %2505 }
0x184a   :  { %2508 = vst.msk [vmem:[#allocation4] sm:$0xf] %vm622_vm12, %v2506_v0 }
0x1869   :  { %v2513_v1 = vpop.permute.xlu0 %2512 }
0x186a   :  { %2515 = vst.msk [vmem:[#allocation4] sm:$0xf] %vm630_vm13, %v2513_v1 }
0x1871   :  { %v2520_v2 = vpop.permute.xlu1 %2519  ;;  %v2524_v13 = vld [vmem:[#allocation4] sm:$0xf] }
0x1872   :  { %2522 = vst.msk [vmem:[#allocation5] sm:$0xf] %vm622_vm12, %v2520_v2  ;;  %3656 = vmatmul.msk.f32.vlgmr.msrb.gmra.mxu0 %vm489_vm2, %v2524_v13  ;;  %3657 = vmatmul.msk.f32.vlgmr.msrb.gmra.mxu1 %vm489_vm2, %v2524_v13 }
0x1873   :  { %2523 = vst.msk [vmem:[#allocation5] sm:$0xf] %vm630_vm13, %v2495_v37  ;;  %3132 = vmatpush.msrb.mxu0 %v4878_v23  ;;  %3152 = vmatpush.msrb.mxu1 %v4883_v39 }
0x1875   :  { %3133 = vmatpush.msrb.mxu0 %v4892_v34  ;;  %3153 = vmatpush.msrb.mxu1 %v4897_v6 }
0x1877   :  { %3134 = vmatpush.msrb.mxu0 %v4924_v18  ;;  %3154 = vmatpush.msrb.mxu1 %v4929_v38 }
0x1879   :  { %3135 = vmatpush.msrb.mxu0 %v4938_v12  ;;  %3155 = vmatpush.msrb.mxu1 %v4943_v45 }
0x187a   :  { %v5154_v16 = vld [vmem:[#allocation5] sm:$0xf] }
0x187b   :  { %2594 = vrot.lane.b32.xlu1 %v5154_v16, %s3984_s23  ;;  %3136 = vmatpush.msrb.mxu0 %v4952_v47 }
0x187c   :  { %3156 = vmatpush.msrb.mxu1 %v4957_v48 }
0x187d   :  { %3137 = vmatpush.msrb.mxu0 %v4969_v50 }
0x187e   :  { %3157 = vmatpush.msrb.mxu1 %v4974_v51 }
0x187f   :  { %3138 = vmatpush.msrb.mxu0 %v4985_v33 }
0x1880   :  { %3158 = vmatpush.msrb.mxu1 %v4990_v36 }
0x1881   :  { %3139 = vmatpush.msrb.mxu0 %v5003_v52 }
0x1882   :  { %3159 = vmatpush.msrb.mxu1 %v5008_v54 }
0x18ed   :  { %v2595_v59 = vpop.permute.xlu1 %2594 }
0x18ef   :  { %v2545_v17 = vpop.f32.mrf.mxu0  ;;  %v2565_v19 = vpop.f32.mrf.mxu1 }
0x18f0   :  { %v2569_v7 = vadd.f32 %v2568_v4, %v2545_v17  ;;  %v2571_v10 = vadd.f32 %v2570_v3, %v2565_v19 }
0x18f2   :  { %3850 = vtanh.f32 %v2569_v7  ;;  %v3658_v14 = vmul.f32 -1.442695, %v2569_v7  ;;  %v3659_v28 = vmul.f32 -1.442695, %v2571_v10 }
0x18f3   :  { %3852 = vtanh.f32 %v2571_v10 }
0x18f4   :  { %3854 = vpow2.f32 %v3658_v14 }
0x18f8   :  { %v3851_v9 = vpop.eup %3850 }
0x18f9   :  { %v3853_v11 = vpop.eup %3852  ;;  %2599 = vrot.lane.b32.xlu2 %v3851_v9, %s3985_s3 }
0x18fa   :  { %2636 = vrot.lane.b32.xlu0 %v3853_v11, %s3985_s3  ;;  %v3855_v57 = vpop.eup %3854 }
0x18fb   :  { %v2576_v20 = vadd.f32 1.0, %v3855_v57 }
0x18fd   :  { %3856 = vrcp.f32 %v2576_v20  ;;  %v2588_v62 = vand.u32 2147483648, %v2576_v20  ;;  %vm2582_vm8 = vweird.f32 %v2576_v20  ;;  %v2586_v40 = vand.u32 2147483647, %v2576_v20 }
0x18fe   :  { %3858 = vpow2.f32 %v3659_v28 }
0x18ff   :  { %v2589_v42 = vor.u32 1.1754944e-38, %v2588_v62  ;;  %vm2587_vm10 = vcmp.eq.f32.partialorder %v2586_v40, 8.507059e+37 }
0x1903   :  { %v3857_v27 = vpop.eup %3856 }
0x1904   :  { %v2578_v29 = vmul.f32 %v3857_v27, %v2576_v20  ;;  %v3859_v31 = vpop.eup %3858  ;;  %vm2583_vm7 = vweird.f32 %v3857_v27 }
0x1905   :  { %v2617_v22 = vadd.f32 1.0, %v3859_v31  ;;  %vm2584_vm9 = vmor %vm2582_vm8, %vm2583_vm7 }
0x1906   :  { %v2579_v26 = vsub.f32 1.0, %v2578_v29 }
0x1907   :  { %3860 = vrcp.f32 %v2617_v22  ;;  %v2629_v15 = vand.u32 2147483648, %v2617_v22  ;;  %vm2623_vm14 = vweird.f32 %v2617_v22  ;;  %v2627_v24 = vand.u32 2147483647, %v2617_v22 }
0x1908   :  { %v2580_v35 = vmul.f32 %v3857_v27, %v2579_v26 }
0x1909   :  { %v2630_v32 = vor.u32 1.1754944e-38, %v2629_v15  ;;  %vm2628_vm1 = vcmp.eq.f32.partialorder %v2627_v24, 8.507059e+37 }
0x190a   :  { %v2581_v21 = vadd.f32 %v3857_v27, %v2580_v35 }
0x190c   :  { %v2585_v41 = vsel %vm2584_vm9, %v3857_v27, %v2581_v21 }
0x190d   :  { %v2590_v49 = vsel %vm2587_vm10, %v2589_v42, %v2585_v41  ;;  %v3861_v8 = vpop.eup %3860 }
0x190e   :  { %v2619_v30 = vmul.f32 %v3861_v8, %v2617_v22  ;;  %vm2624_vm11 = vweird.f32 %v3861_v8  ;;  %v2597_v60 = vmul.f32 %v2595_v59, %v2590_v49 }
0x190f   :  { %vm2625_vm15 = vmor %vm2623_vm14, %vm2624_vm11 }
0x1910   :  { %v2620_v46 = vsub.f32 1.0, %v2619_v30 }
0x1912   :  { %v2621_v37 = vmul.f32 %v3861_v8, %v2620_v46 }
0x1914   :  { %v2622_v55 = vadd.f32 %v3861_v8, %v2621_v37 }
0x1916   :  { %v2626_v5 = vsel %vm2625_vm15, %v3861_v8, %v2622_v55 }
0x1917   :  { %v2631_v53 = vsel %vm2628_vm1, %v2630_v32, %v2626_v5 }
0x1918   :  { %v2634_v0 = vmul.f32 %v2631_v53, %v5154_v16 }
0x1953   :  { %v2600_v44 = vpop.permute.xlu2 %2599 }
0x1954   :  { %v2602_v25 = vmul.f32 %v2600_v44, %v2590_v49 }
0x1956   :  { %2604 = vrot.lane.b32.xlu2 %v2602_v25, %s3984_s23 }
0x196c   :  { %v2637_v43 = vpop.permute.xlu0 %2636 }
0x196d   :  { %v2639_v58 = vmul.f32 %v2637_v43, %v2631_v53 }
0x196f   :  { %2641 = vrot.lane.b32.xlu0 %v2639_v58, %s3984_s23 }
0x19b0   :  { %v2605_v56 = vpop.permute.xlu2 %2604 }
0x19b1   :  { %v2607_v61 = vadd.f32 %v2605_v56, %v2597_v60 }
0x19b3   :  { %3862 = vtanh.f32 %v2607_v61 }
0x19b9   :  { %v3863_v63 = vpop.eup %3862 }
0x19ba   :  { %2610 = vrot.lane.b32.xlu1 %v3863_v63, %s3985_s3 }
0x19e1   :  { %v2642_v1 = vpop.permute.xlu0 %2641 }
0x19e2   :  { %v2644_v2 = vadd.f32 %v2642_v1, %v2634_v0 }
0x19e4   :  { %3864 = vtanh.f32 %v2644_v2 }
0x19ea   :  { %v3865_v13 = vpop.eup %3864 }
0x19eb   :  { %2647 = vrot.lane.b32.xlu2 %v3865_v13, %s3985_s3 }
0x1a2c   :  { %v2611_v17 = vpop.permute.xlu1 %2610 }
0x1a2d   :  { %v2613_v4 = vmul.f32 %v2611_v17, %v2590_v49 }
0x1a2f   :  { %2652 = vst [vmem:[#allocation1] ss:$2 sm:$0xff] %v2613_v4 }
0x1a36   :  { %v2653_v19 = vld.sshfl [vmem:[#allocation1] sm:$0xff pattern:$0x75316420] }
0x1a37   :  { %2654 = vrot.lane.b32.xlu0 %v2653_v19, %s3984_s23 }
0x1a45   :  { %v2648_v3 = vpop.permute.xlu2 %2647 }
0x1a46   :  { %v2650_v7 = vmul.f32 %v2648_v3, %v2631_v53 }
0x1a48   :  { %2659 = vst [vmem:[#allocation1] ss:$2 sm:$0xff] %v2650_v7 }
0x1a4f   :  { %v2660_v10 = vld.sshfl [vmem:[#allocation1] sm:$0xff pattern:$0x75316420] }
0x1a50   :  { %2661 = vrot.lane.b32.xlu1 %v2660_v10, %s3985_s3  ;;  %2666 = vst [vmem:[#allocation1] ss:$2 sm:$0xff] %v2607_v61 }
0x1a57   :  { %v2667_v16 = vld.sshfl [vmem:[#allocation1] sm:$0xff pattern:$0x75316420] }
0x1a58   :  { %2668 = vrot.lane.b32.xlu2 %v2667_v16, %s3986_s25 }
0x1aa9   :  { %v2655_v9 = vpop.permute.xlu0 %2654 }
0x1aaa   :  { %2657 = vst.msk [vmem:[#allocation4] sm:$0xf] %vm622_vm12, %v2655_v9 }
0x1ab2   :  { %v2669_v11 = vpop.permute.xlu2 %2668 }
0x1ab3   :  { %2671 = vst.msk [vmem:[#allocation5] sm:$0xf] %vm622_vm12, %v2669_v11  ;;  %v2866_v11 = vld [vmem:[#allocation2 + $0x20] sm:$0xf] }
0x1ab4   :  { %2672 = vst.msk [vmem:[#allocation5] sm:$0xf] %vm630_vm13, %v2644_v2 }
0x1abb   :  { %v5179_v14 = vld [vmem:[#allocation5] sm:$0xf] }
0x1abc   :  { %2743 = vrot.lane.b32.xlu2 %v5179_v14, %s3984_s23 }
0x1ac2   :  { %v2662_v57 = vpop.permute.xlu1 %2661 }
0x1ac3   :  { %2664 = vst.msk [vmem:[#allocation4] sm:$0xf] %vm630_vm13, %v2662_v57  ;;  %v2868_v57 = vld [vmem:[#allocation2 + $0x1c] sm:$0xf] }
0x1aca   :  { %v2673_v20 = vld [vmem:[#allocation4] sm:$0xf] }
0x1acb   :  { %3660 = vmatmul.msk.f32.vlgmr.msra.gmra.mxu2 %vm489_vm2, %v2673_v20  ;;  %3661 = vmatmul.msk.f32.vlgmr.msra.gmra.mxu3 %vm489_vm2, %v2673_v20 }
0x1acc   :  { %3281 = vmatpush.msra.mxu2 %v4878_v23  ;;  %3301 = vmatpush.msra.mxu3 %v4883_v39  ;;  %v2717_v39 = vld [vmem:[#allocation2 + $0x18] sm:$0xf] }
0x1ace   :  { %3282 = vmatpush.msra.mxu2 %v4892_v34  ;;  %3302 = vmatpush.msra.mxu3 %v4897_v6  ;;  %v2719_v6 = vld [vmem:[#allocation2 + $0x24] sm:$0xf] }
0x1ad0   :  { %3283 = vmatpush.msra.mxu2 %v4924_v18  ;;  %3303 = vmatpush.msra.mxu3 %v4929_v38 }
0x1ad2   :  { %3284 = vmatpush.msra.mxu2 %v4938_v12  ;;  %3304 = vmatpush.msra.mxu3 %v4943_v45 }
0x1ad4   :  { %3285 = vmatpush.msra.mxu2 %v4952_v47  ;;  %3305 = vmatpush.msra.mxu3 %v4957_v48 }
0x1ad6   :  { %3286 = vmatpush.msra.mxu2 %v4969_v50  ;;  %3306 = vmatpush.msra.mxu3 %v4974_v51 }
0x1ad8   :  { %3287 = vmatpush.msra.mxu2 %v4985_v33  ;;  %3307 = vmatpush.msra.mxu3 %v4990_v36 }
0x1ada   :  { %3288 = vmatpush.msra.mxu2 %v5003_v52  ;;  %3308 = vmatpush.msra.mxu3 %v5008_v54 }
0x1b16   :  { %v2744_v5 = vpop.permute.xlu2 %2743 }
0x1b4e   :  { %v2694_v23 = vpop.f32.mrf.mxu2  ;;  %v2714_v34 = vpop.f32.mrf.mxu3 }
0x1b4f   :  { %v2718_v18 = vadd.f32 %v2717_v39, %v2694_v23  ;;  %v2720_v38 = vadd.f32 %v2719_v6, %v2714_v34 }
0x1b51   :  { %3866 = vtanh.f32 %v2718_v18  ;;  %v3662_v47 = vmul.f32 -1.442695, %v2718_v18  ;;  %v3663_v48 = vmul.f32 -1.442695, %v2720_v38 }
0x1b52   :  { %3868 = vtanh.f32 %v2720_v38 }
0x1b53   :  { %3870 = vpow2.f32 %v3662_v47 }
0x1b54   :  { %3872 = vpow2.f32 %v3663_v48 }
0x1b57   :  { %v3867_v12 = vpop.eup %3866 }
0x1b58   :  { %v3869_v45 = vpop.eup %3868  ;;  %2748 = vrot.lane.b32.xlu0 %v3867_v12, %s3985_s3 }
0x1b59   :  { %2785 = vrot.lane.b32.xlu1 %v3869_v45, %s3985_s3  ;;  %v3871_v50 = vpop.eup %3870 }
0x1b5a   :  { %v3873_v51 = vpop.eup %3872  ;;  %v2725_v33 = vadd.f32 1.0, %v3871_v50 }
0x1b5b   :  { %v2766_v36 = vadd.f32 1.0, %v3873_v51 }
0x1b5c   :  { %3874 = vrcp.f32 %v2725_v33  ;;  %v2737_v62 = vand.u32 2147483648, %v2725_v33  ;;  %vm2731_vm6 = vweird.f32 %v2725_v33  ;;  %v2735_v41 = vand.u32 2147483647, %v2725_v33 }
0x1b5d   :  { %3876 = vrcp.f32 %v2766_v36  ;;  %v2778_v40 = vand.u32 2147483648, %v2766_v36  ;;  %vm2772_vm7 = vweird.f32 %v2766_v36  ;;  %v2776_v42 = vand.u32 2147483647, %v2766_v36 }
0x1b5e   :  { %v2738_v25 = vor.u32 1.1754944e-38, %v2737_v62  ;;  %vm2736_vm10 = vcmp.eq.f32.partialorder %v2735_v41, 8.507059e+37 }
0x1b5f   :  { %v2779_v8 = vor.u32 1.1754944e-38, %v2778_v40  ;;  %vm2777_vm11 = vcmp.eq.f32.partialorder %v2776_v42, 8.507059e+37 }
0x1b62   :  { %v3875_v52 = vpop.eup %3874 }
0x1b63   :  { %v3877_v54 = vpop.eup %3876  ;;  %v2727_v27 = vmul.f32 %v3875_v52, %v2725_v33  ;;  %vm2732_vm4 = vweird.f32 %v3875_v52 }
0x1b64   :  { %v2768_v28 = vmul.f32 %v3877_v54, %v2766_v36  ;;  %vm2773_vm5 = vweird.f32 %v3877_v54  ;;  %vm2733_vm8 = vmor %vm2731_vm6, %vm2732_vm4 }
0x1b65   :  { %v2728_v29 = vsub.f32 1.0, %v2727_v27  ;;  %vm2774_vm9 = vmor %vm2772_vm7, %vm2773_vm5 }
0x1b66   :  { %v2769_v26 = vsub.f32 1.0, %v2768_v28 }
0x1b67   :  { %v2729_v35 = vmul.f32 %v3875_v52, %v2728_v29 }
0x1b68   :  { %v2770_v31 = vmul.f32 %v3877_v54, %v2769_v26 }
0x1b69   :  { %v2730_v22 = vadd.f32 %v3875_v52, %v2729_v35 }
0x1b6a   :  { %v2771_v21 = vadd.f32 %v3877_v54, %v2770_v31 }
0x1b6b   :  { %v2734_v44 = vsel %vm2733_vm8, %v3875_v52, %v2730_v22 }
0x1b6c   :  { %v2775_v49 = vsel %vm2774_vm9, %v3877_v54, %v2771_v21  ;;  %v2739_v46 = vsel %vm2736_vm10, %v2738_v25, %v2734_v44 }
0x1b6d   :  { %v2780_v55 = vsel %vm2777_vm11, %v2779_v8, %v2775_v49  ;;  %v2746_v32 = vmul.f32 %v2744_v5, %v2739_v46 }
0x1b6e   :  { %v2783_v43 = vmul.f32 %v2780_v55, %v5179_v14 }
0x1bca   :  { %v2749_v30 = vpop.permute.xlu0 %2748 }
0x1bcb   :  { %v2786_v37 = vpop.permute.xlu1 %2785  ;;  %v2751_v15 = vmul.f32 %v2749_v30, %v2739_v46 }
0x1bcc   :  { %v2788_v24 = vmul.f32 %v2786_v37, %v2780_v55 }
0x1bcd   :  { %2753 = vrot.lane.b32.xlu0 %v2751_v15, %s3984_s23 }
0x1bce   :  { %2790 = vrot.lane.b32.xlu1 %v2788_v24, %s3984_s23 }
0x1c3f   :  { %v2754_v53 = vpop.permute.xlu0 %2753 }
0x1c40   :  { %v2791_v58 = vpop.permute.xlu1 %2790  ;;  %v2756_v59 = vadd.f32 %v2754_v53, %v2746_v32 }
0x1c41   :  { %v2793_v60 = vadd.f32 %v2791_v58, %v2783_v43 }
0x1c42   :  { %3878 = vtanh.f32 %v2756_v59 }
0x1c43   :  { %3880 = vtanh.f32 %v2793_v60 }
0x1c48   :  { %v3879_v56 = vpop.eup %3878 }
0x1c49   :  { %v3881_v61 = vpop.eup %3880  ;;  %2759 = vrot.lane.b32.xlu2 %v3879_v56, %s3985_s3 }
0x1c4a   :  { %2796 = vrot.lane.b32.xlu0 %v3881_v61, %s3985_s3 }
0x1ca3   :  { %v2760_v63 = vpop.permute.xlu2 %2759 }
0x1ca4   :  { %v2762_v0 = vmul.f32 %v2760_v63, %v2739_v46 }
0x1ca6   :  { %2801 = vst [vmem:[#allocation1] ss:$2 sm:$0xff] %v2762_v0 }
0x1cad   :  { %v2802_v1 = vld.sshfl [vmem:[#allocation1] sm:$0xff pattern:$0x75316420] }
0x1cae   :  { %2803 = vrot.lane.b32.xlu1 %v2802_v1, %s3984_s23 }
0x1cbc   :  { %v2797_v2 = vpop.permute.xlu0 %2796 }
0x1cbd   :  { %v2799_v13 = vmul.f32 %v2797_v2, %v2780_v55 }
0x1cbf   :  { %2808 = vst [vmem:[#allocation1] ss:$2 sm:$0xff] %v2799_v13 }
0x1cc6   :  { %v2809_v17 = vld.sshfl [vmem:[#allocation1] sm:$0xff pattern:$0x75316420] }
0x1cc7   :  { %2810 = vrot.lane.b32.xlu2 %v2809_v17, %s3985_s3  ;;  %2815 = vst [vmem:[#allocation1] ss:$2 sm:$0xff] %v2756_v59 }
0x1cce   :  { %v2816_v4 = vld.sshfl [vmem:[#allocation1] sm:$0xff pattern:$0x75316420] }
0x1ccf   :  { %2817 = vrot.lane.b32.xlu0 %v2816_v4, %s3986_s25 }
0x1d20   :  { %v2804_v19 = vpop.permute.xlu1 %2803 }
0x1d21   :  { %2806 = vst.msk [vmem:[#allocation4] sm:$0xf] %vm622_vm12, %v2804_v19  ;;  %v2811_v3 = vpop.permute.xlu2 %2810 }
0x1d22   :  { %2813 = vst.msk [vmem:[#allocation4] sm:$0xf] %vm630_vm13, %v2811_v3  ;;  %v3015_v3 = vld [vmem:[#allocation2 + $0x28] sm:$0xf] }
0x1d29   :  { %v2822_v7 = vld [vmem:[#allocation4] sm:$0xf] }
0x1d2a   :  { %3664 = vmatmul.msk.f32.vlgmr.msra.gmra.mxu0 %vm489_vm2, %v2822_v7  ;;  %3665 = vmatmul.msk.f32.vlgmr.msra.gmra.mxu1 %vm489_vm2, %v2822_v7 }
0x1d41   :  { %v2818_v10 = vpop.permute.xlu0 %2817 }
0x1d42   :  { %2820 = vst.msk [vmem:[#allocation5] sm:$0xf] %vm622_vm12, %v2818_v10  ;;  %v3017_v10 = vld [vmem:[#allocation2 + $0x14] sm:$0xf] }
0x1d43   :  { %2821 = vst.msk [vmem:[#allocation5] sm:$0xf] %vm630_vm13, %v2793_v60 }
0x1d4a   :  { %v2870_v16 = vld [vmem:[#allocation5] sm:$0xf] }
0x1d4b   :  { %2892 = vrot.lane.b32.xlu0 %v2870_v16, %s3984_s23 }
0x1da7   :  { %v2843_v9 = vpop.f32.mrf.mxu0  ;;  %v2863_v14 = vpop.f32.mrf.mxu1 }
0x1da8   :  { %v2867_v20 = vadd.f32 %v2866_v11, %v2843_v9  ;;  %v2869_v23 = vadd.f32 %v2868_v57, %v2863_v14 }
0x1daa   :  { %3882 = vtanh.f32 %v2867_v20  ;;  %v3667_v6 = vmul.f32 -1.442695, %v2869_v23  ;;  %v3666_v45 = vmul.f32 -1.442695, %v2867_v20 }
0x1dab   :  { %3884 = vtanh.f32 %v2869_v23 }
0x1dac   :  { %3886 = vpow2.f32 %v3667_v6 }
0x1db0   :  { %v3883_v39 = vpop.eup %3882 }
0x1db1   :  { %v3885_v34 = vpop.eup %3884  ;;  %2897 = vrot.lane.b32.xlu1 %v3883_v39, %s3985_s3 }
0x1db2   :  { %2934 = vrot.lane.b32.xlu2 %v3885_v34, %s3985_s3  ;;  %v3887_v18 = vpop.eup %3886 }
0x1db3   :  { %v2915_v38 = vadd.f32 1.0, %v3887_v18 }
0x1db5   :  { %3888 = vrcp.f32 %v2915_v38  ;;  %v2927_v52 = vand.u32 2147483648, %v2915_v38  ;;  %vm2921_vm15 = vweird.f32 %v2915_v38  ;;  %v2925_v54 = vand.u32 2147483647, %v2915_v38 }
0x1db6   :  { %3890 = vpow2.f32 %v3666_v45 }
0x1db7   :  { %v2928_v28 = vor.u32 1.1754944e-38, %v2927_v52  ;;  %vm2926_vm4 = vcmp.eq.f32.partialorder %v2925_v54, 8.507059e+37 }
0x1dbb   :  { %v3889_v12 = vpop.eup %3888 }
0x1dbc   :  { %v2917_v47 = vmul.f32 %v3889_v12, %v2915_v38  ;;  %v3891_v50 = vpop.eup %3890  ;;  %vm2922_vm14 = vweird.f32 %v3889_v12 }
0x1dbd   :  { %v2874_v33 = vadd.f32 1.0, %v3891_v50  ;;  %vm2923_vm1 = vmor %vm2921_vm15, %vm2922_vm14  ;;  %v2893_v24 = vpop.permute.xlu0 %2892 }
0x1dbe   :  { %v2918_v48 = vsub.f32 1.0, %v2917_v47 }
0x1dbf   :  { %3892 = vrcp.f32 %v2874_v33  ;;  %v2886_v41 = vand.u32 2147483648, %v2874_v33  ;;  %vm2880_vm6 = vweird.f32 %v2874_v33  ;;  %v2884_v42 = vand.u32 2147483647, %v2874_v33 }
0x1dc0   :  { %v2919_v51 = vmul.f32 %v3889_v12, %v2918_v48 }
0x1dc1   :  { %v2887_v49 = vor.u32 1.1754944e-38, %v2886_v41  ;;  %vm2885_vm8 = vcmp.eq.f32.partialorder %v2884_v42, 8.507059e+37 }
0x1dc2   :  { %v2920_v36 = vadd.f32 %v3889_v12, %v2919_v51 }
0x1dc4   :  { %v2924_v27 = vsel %vm2923_vm1, %v3889_v12, %v2920_v36 }
0x1dc5   :  { %v2929_v26 = vsel %vm2926_vm4, %v2928_v28, %v2924_v27  ;;  %v3893_v35 = vpop.eup %3892 }
0x1dc6   :  { %v2876_v22 = vmul.f32 %v3893_v35, %v2874_v33  ;;  %vm2881_vm5 = vweird.f32 %v3893_v35  ;;  %v2932_v46 = vmul.f32 %v2929_v26, %v2870_v16 }
0x1dc7   :  { %vm2882_vm7 = vmor %vm2880_vm6, %vm2881_vm5 }
0x1dc8   :  { %v2877_v21 = vsub.f32 1.0, %v2876_v22 }
0x1dca   :  { %v2878_v62 = vmul.f32 %v3893_v35, %v2877_v21 }
0x1dcc   :  { %v2879_v40 = vadd.f32 %v3893_v35, %v2878_v62 }
0x1dce   :  { %v2883_v44 = vsel %vm2882_vm7, %v3893_v35, %v2879_v40 }
0x1dcf   :  { %v2888_v25 = vsel %vm2885_vm8, %v2887_v49, %v2883_v44 }
0x1dd0   :  { %v2895_v5 = vmul.f32 %v2893_v24, %v2888_v25 }
0x1e0c   :  { %v2935_v29 = vpop.permute.xlu2 %2934 }
0x1e0d   :  { %v2937_v31 = vmul.f32 %v2935_v29, %v2929_v26 }
0x1e0f   :  { %2939 = vrot.lane.b32.xlu2 %v2937_v31, %s3984_s23 }
0x1e23   :  { %v2898_v8 = vpop.permute.xlu1 %2897 }
0x1e24   :  { %v2900_v30 = vmul.f32 %v2898_v8, %v2888_v25 }
0x1e26   :  { %2902 = vrot.lane.b32.xlu1 %v2900_v30, %s3984_s23 }
0x1e69   :  { %v2940_v37 = vpop.permute.xlu2 %2939 }
0x1e6a   :  { %v2942_v55 = vadd.f32 %v2940_v37, %v2932_v46 }
0x1e6c   :  { %3894 = vtanh.f32 %v2942_v55 }
0x1e72   :  { %v3895_v15 = vpop.eup %3894 }
0x1e73   :  { %2945 = vrot.lane.b32.xlu1 %v3895_v15, %s3985_s3 }
0x1e98   :  { %v2903_v32 = vpop.permute.xlu1 %2902 }
0x1e99   :  { %v2905_v43 = vadd.f32 %v2903_v32, %v2895_v5 }
0x1e9b   :  { %3896 = vtanh.f32 %v2905_v43 }
0x1ea1   :  { %v3897_v53 = vpop.eup %3896 }
0x1ea2   :  { %2908 = vrot.lane.b32.xlu0 %v3897_v53, %s3985_s3 }
0x1ee5   :  { %v2946_v60 = vpop.permute.xlu1 %2945 }
0x1ee6   :  { %v2948_v56 = vmul.f32 %v2946_v60, %v2929_v26 }
0x1f14   :  { %v2909_v58 = vpop.permute.xlu0 %2908 }
0x1f15   :  { %v2911_v59 = vmul.f32 %v2909_v58, %v2888_v25 }
0x1f17   :  { %2950 = vst [vmem:[#allocation1] ss:$2 sm:$0xff] %v2911_v59 }
0x1f1e   :  { %v2951_v61 = vld.sshfl [vmem:[#allocation1] sm:$0xff pattern:$0x75316420] }
0x1f1f   :  { %2952 = vrot.lane.b32.xlu2 %v2951_v61, %s3984_s23  ;;  %2957 = vst [vmem:[#allocation1] ss:$2 sm:$0xff] %v2948_v56 }
0x1f26   :  { %v2958_v63 = vld.sshfl [vmem:[#allocation1] sm:$0xff pattern:$0x75316420] }
0x1f27   :  { %2959 = vrot.lane.b32.xlu0 %v2958_v63, %s3985_s3  ;;  %2964 = vst [vmem:[#allocation1] ss:$2 sm:$0xff] %v2905_v43 }
0x1f2e   :  { %v2965_v0 = vld.sshfl [vmem:[#allocation1] sm:$0xff pattern:$0x75316420] }
0x1f2f   :  { %2966 = vrot.lane.b32.xlu1 %v2965_v0, %s3986_s25 }
0x1f79   :  { %v2953_v1 = vpop.permute.xlu2 %2952 }
0x1f7a   :  { %2955 = vst.msk [vmem:[#allocation4] sm:$0xf] %vm622_vm12, %v2953_v1 }
0x1f99   :  { %v2960_v2 = vpop.permute.xlu0 %2959 }
0x1f9a   :  { %2962 = vst.msk [vmem:[#allocation4] sm:$0xf] %vm630_vm13, %v2960_v2  ;;  %v3164_v2 = vld [vmem:[#allocation2 + $0x30] sm:$0xf] }
0x1fa1   :  { %v2967_v13 = vpop.permute.xlu1 %2966  ;;  %v2971_v17 = vld [vmem:[#allocation4] sm:$0xf] }
0x1fa2   :  { %2969 = vst.msk [vmem:[#allocation5] sm:$0xf] %vm622_vm12, %v2967_v13  ;;  %3668 = vmatmul.msk.f32.vlgmr.msrb.gmra.mxu2 %vm489_vm2, %v2971_v17  ;;  %3669 = vmatmul.msk.f32.vlgmr.msrb.gmra.mxu3 %vm489_vm2, %v2971_v17  ;;  %v3166_v17 = vld [vmem:[#allocation2 + $0xc] sm:$0xf] }
0x1fa3   :  { %2970 = vst.msk [vmem:[#allocation5] sm:$0xf] %vm630_vm13, %v2942_v55 }
0x1faa   :  { %v5234_v4 = vld [vmem:[#allocation5] sm:$0xf] }
0x1fab   :  { %3041 = vrot.lane.b32.xlu1 %v5234_v4, %s3984_s23 }
0x201d   :  { %v3042_v44 = vpop.permute.xlu1 %3041 }
0x2025   :  { %v2992_v19 = vpop.f32.mrf.mxu2  ;;  %v3012_v7 = vpop.f32.mrf.mxu3 }
0x2026   :  { %v3016_v16 = vadd.f32 %v3015_v3, %v2992_v19  ;;  %v3018_v9 = vadd.f32 %v3017_v10, %v3012_v7 }
0x2028   :  { %3898 = vtanh.f32 %v3016_v16  ;;  %v3670_v57 = vmul.f32 -1.442695, %v3016_v16  ;;  %v3671_v34 = vmul.f32 -1.442695, %v3018_v9 }
0x2029   :  { %3900 = vtanh.f32 %v3018_v9 }
0x202a   :  { %3902 = vpow2.f32 %v3670_v57 }
0x202e   :  { %v3899_v11 = vpop.eup %3898 }
0x202f   :  { %v3901_v14 = vpop.eup %3900  ;;  %3046 = vrot.lane.b32.xlu2 %v3899_v11, %s3985_s3 }
0x2030   :  { %3083 = vrot.lane.b32.xlu0 %v3901_v14, %s3985_s3  ;;  %v3903_v20 = vpop.eup %3902 }
0x2031   :  { %v3023_v23 = vadd.f32 1.0, %v3903_v20 }
0x2033   :  { %3904 = vrcp.f32 %v3023_v23  ;;  %v3035_v48 = vand.u32 2147483648, %v3023_v23  ;;  %vm3029_vm10 = vweird.f32 %v3023_v23  ;;  %v3033_v50 = vand.u32 2147483647, %v3023_v23 }
0x2034   :  { %3906 = vpow2.f32 %v3671_v34 }
0x2035   :  { %v3036_v33 = vor.u32 1.1754944e-38, %v3035_v48  ;;  %vm3034_vm14 = vcmp.eq.f32.partialorder %v3033_v50, 8.507059e+37 }
0x2039   :  { %v3905_v39 = vpop.eup %3904 }
0x203a   :  { %v3025_v6 = vmul.f32 %v3905_v39, %v3023_v23  ;;  %v3907_v12 = vpop.eup %3906  ;;  %vm3030_vm9 = vweird.f32 %v3905_v39 }
0x203b   :  { %v3064_v45 = vadd.f32 1.0, %v3907_v12  ;;  %vm3031_vm11 = vmor %vm3029_vm10, %vm3030_vm9 }
0x203c   :  { %v3026_v18 = vsub.f32 1.0, %v3025_v6 }
0x203d   :  { %3908 = vrcp.f32 %v3064_v45  ;;  %v3076_v31 = vand.u32 2147483648, %v3064_v45  ;;  %vm3070_vm1 = vweird.f32 %v3064_v45  ;;  %v3074_v22 = vand.u32 2147483647, %v3064_v45 }
0x203e   :  { %v3027_v38 = vmul.f32 %v3905_v39, %v3026_v18 }
0x203f   :  { %v3077_v62 = vor.u32 1.1754944e-38, %v3076_v31  ;;  %vm3075_vm5 = vcmp.eq.f32.partialorder %v3074_v22, 8.507059e+37 }
0x2040   :  { %v3028_v47 = vadd.f32 %v3905_v39, %v3027_v38 }
0x2042   :  { %v3032_v51 = vsel %vm3031_vm11, %v3905_v39, %v3028_v47 }
0x2043   :  { %v3037_v52 = vsel %vm3034_vm14, %v3036_v33, %v3032_v51  ;;  %v3909_v27 = vpop.eup %3908 }
0x2044   :  { %v3066_v28 = vmul.f32 %v3909_v27, %v3064_v45  ;;  %vm3071_vm15 = vweird.f32 %v3909_v27  ;;  %v3044_v49 = vmul.f32 %v3042_v44, %v3037_v52 }
0x2045   :  { %vm3072_vm4 = vmor %vm3070_vm1, %vm3071_vm15 }
0x2046   :  { %v3067_v29 = vsub.f32 1.0, %v3066_v28 }
0x2048   :  { %v3068_v26 = vmul.f32 %v3909_v27, %v3067_v29 }
0x204a   :  { %v3069_v35 = vadd.f32 %v3909_v27, %v3068_v26 }
0x204c   :  { %v3073_v21 = vsel %vm3072_vm4, %v3909_v27, %v3069_v35 }
0x204d   :  { %v3078_v41 = vsel %vm3075_vm5, %v3077_v62, %v3073_v21 }
0x204e   :  { %v3081_v46 = vmul.f32 %v3078_v41, %v5234_v4 }
0x2089   :  { %v3047_v36 = vpop.permute.xlu2 %3046 }
0x208a   :  { %v3049_v54 = vmul.f32 %v3047_v36, %v3037_v52 }
0x208c   :  { %3051 = vrot.lane.b32.xlu2 %v3049_v54, %s3984_s23 }
0x20a2   :  { %v3084_v40 = vpop.permute.xlu0 %3083 }
0x20a3   :  { %v3086_v42 = vmul.f32 %v3084_v40, %v3078_v41 }
0x20a5   :  { %3088 = vrot.lane.b32.xlu0 %v3086_v42, %s3984_s23 }
0x20e6   :  { %v3052_v25 = vpop.permute.xlu2 %3051 }
0x20e7   :  { %v3054_v8 = vadd.f32 %v3052_v25, %v3044_v49 }
0x20e9   :  { %3910 = vtanh.f32 %v3054_v8 }
0x20ef   :  { %v3911_v30 = vpop.eup %3910 }
0x20f0   :  { %3057 = vrot.lane.b32.xlu1 %v3911_v30, %s3985_s3 }
0x2117   :  { %v3089_v37 = vpop.permute.xlu0 %3088 }
0x2118   :  { %v3091_v55 = vadd.f32 %v3089_v37, %v3081_v46 }
0x211a   :  { %3912 = vtanh.f32 %v3091_v55 }
0x2120   :  { %v3913_v15 = vpop.eup %3912 }
0x2121   :  { %3094 = vrot.lane.b32.xlu2 %v3913_v15, %s3985_s3 }
0x2162   :  { %v3058_v24 = vpop.permute.xlu1 %3057 }
0x2163   :  { %v3060_v5 = vmul.f32 %v3058_v24, %v3037_v52 }
0x2165   :  { %3099 = vst [vmem:[#allocation1] ss:$2 sm:$0xff] %v3060_v5 }
0x216c   :  { %v3100_v32 = vld.sshfl [vmem:[#allocation1] sm:$0xff pattern:$0x75316420] }
0x216d   :  { %3101 = vrot.lane.b32.xlu0 %v3100_v32, %s3984_s23 }
0x217b   :  { %v3095_v43 = vpop.permute.xlu2 %3094 }
0x217c   :  { %v3097_v53 = vmul.f32 %v3095_v43, %v3078_v41 }
0x217e   :  { %3106 = vst [vmem:[#allocation1] ss:$2 sm:$0xff] %v3097_v53 }
0x2185   :  { %v3107_v58 = vld.sshfl [vmem:[#allocation1] sm:$0xff pattern:$0x75316420] }
0x2186   :  { %3108 = vrot.lane.b32.xlu1 %v3107_v58, %s3985_s3  ;;  %3113 = vst [vmem:[#allocation1] ss:$2 sm:$0xff] %v3054_v8 }
0x218d   :  { %v3114_v59 = vld.sshfl [vmem:[#allocation1] sm:$0xff pattern:$0x75316420] }
0x218e   :  { %3115 = vrot.lane.b32.xlu2 %v3114_v59, %s3986_s25 }
0x21df   :  { %v3102_v60 = vpop.permute.xlu0 %3101 }
0x21e0   :  { %3104 = vst.msk [vmem:[#allocation4] sm:$0xf] %vm622_vm12, %v3102_v60 }
0x21e8   :  { %v3116_v56 = vpop.permute.xlu2 %3115 }
0x21e9   :  { %3118 = vst.msk [vmem:[#allocation5] sm:$0xf] %vm622_vm12, %v3116_v56  ;;  %v3313_v56 = vld [vmem:[#allocation2 + $0x38] sm:$0xf] }
0x21ea   :  { %3119 = vst.msk [vmem:[#allocation5] sm:$0xf] %vm630_vm13, %v3091_v55 }
0x21f1   :  { %v5251_v61 = vld [vmem:[#allocation5] sm:$0xf] }
0x21f2   :  { %3190 = vrot.lane.b32.xlu2 %v5251_v61, %s3984_s23 }
0x21f8   :  { %v3109_v63 = vpop.permute.xlu1 %3108 }
0x21f9   :  { %3111 = vst.msk [vmem:[#allocation4] sm:$0xf] %vm630_vm13, %v3109_v63  ;;  %v3315_v63 = vld [vmem:[#allocation2 + $0x4] sm:$0xf] }
0x2200   :  { %v3120_v0 = vld [vmem:[#allocation4] sm:$0xf] }
0x2201   :  { %3672 = vmatmul.msk.f32.vlgmr.msrb.gmra.mxu0 %vm489_vm2, %v3120_v0  ;;  %3673 = vmatmul.msk.f32.vlgmr.msrb.gmra.mxu1 %vm489_vm2, %v3120_v0 }
0x224c   :  { %v3191_v21 = vpop.permute.xlu2 %3190 }
0x227e   :  { %v3141_v1 = vpop.f32.mrf.mxu0  ;;  %v3161_v13 = vpop.f32.mrf.mxu1 }
0x227f   :  { %v3165_v4 = vadd.f32 %v3164_v2, %v3141_v1  ;;  %v3167_v19 = vadd.f32 %v3166_v17, %v3161_v13 }
0x2281   :  { %3914 = vtanh.f32 %v3165_v4  ;;  %v3674_v10 = vmul.f32 -1.442695, %v3165_v4  ;;  %v3675_v16 = vmul.f32 -1.442695, %v3167_v19 }
0x2282   :  { %3916 = vtanh.f32 %v3167_v19 }
0x2283   :  { %3918 = vpow2.f32 %v3674_v10 }
0x2284   :  { %3920 = vpow2.f32 %v3675_v16 }
0x2287   :  { %v3915_v3 = vpop.eup %3914 }
0x2288   :  { %v3917_v7 = vpop.eup %3916  ;;  %3195 = vrot.lane.b32.xlu0 %v3915_v3, %s3985_s3 }
0x2289   :  { %3232 = vrot.lane.b32.xlu1 %v3917_v7, %s3985_s3  ;;  %v3919_v9 = vpop.eup %3918 }
0x228a   :  { %v3921_v11 = vpop.eup %3920  ;;  %v3172_v14 = vadd.f32 1.0, %v3919_v9 }
0x228b   :  { %v3213_v57 = vadd.f32 1.0, %v3921_v11 }
0x228c   :  { %3922 = vrcp.f32 %v3172_v14  ;;  %v3184_v48 = vand.u32 2147483648, %v3172_v14  ;;  %vm3178_vm8 = vweird.f32 %v3172_v14  ;;  %v3182_v51 = vand.u32 2147483647, %v3172_v14 }
0x228d   :  { %3924 = vrcp.f32 %v3213_v57  ;;  %v3225_v50 = vand.u32 2147483648, %v3213_v57  ;;  %vm3219_vm9 = vweird.f32 %v3213_v57  ;;  %v3223_v33 = vand.u32 2147483647, %v3213_v57 }
0x228e   :  { %v3185_v54 = vor.u32 1.1754944e-38, %v3184_v48  ;;  %vm3183_vm14 = vcmp.eq.f32.partialorder %v3182_v51, 8.507059e+37 }
0x228f   :  { %v3226_v27 = vor.u32 1.1754944e-38, %v3225_v50  ;;  %vm3224_vm15 = vcmp.eq.f32.partialorder %v3223_v33, 8.507059e+37 }
0x2292   :  { %v3923_v20 = vpop.eup %3922 }
0x2293   :  { %v3925_v23 = vpop.eup %3924  ;;  %v3174_v39 = vmul.f32 %v3923_v20, %v3172_v14  ;;  %vm3179_vm6 = vweird.f32 %v3923_v20 }
0x2294   :  { %v3215_v34 = vmul.f32 %v3925_v23, %v3213_v57  ;;  %vm3220_vm7 = vweird.f32 %v3925_v23  ;;  %vm3180_vm10 = vmor %vm3178_vm8, %vm3179_vm6 }
0x2295   :  { %v3175_v6 = vsub.f32 1.0, %v3174_v39  ;;  %vm3221_vm11 = vmor %vm3219_vm9, %vm3220_vm7 }
0x2296   :  { %v3216_v18 = vsub.f32 1.0, %v3215_v34 }
0x2297   :  { %v3176_v38 = vmul.f32 %v3923_v20, %v3175_v6 }
0x2298   :  { %v3217_v12 = vmul.f32 %v3925_v23, %v3216_v18 }
0x2299   :  { %v3177_v45 = vadd.f32 %v3923_v20, %v3176_v38 }
0x229a   :  { %v3218_v47 = vadd.f32 %v3925_v23, %v3217_v12 }
0x229b   :  { %v3181_v36 = vsel %vm3180_vm10, %v3923_v20, %v3177_v45 }
0x229c   :  { %v3222_v52 = vsel %vm3221_vm11, %v3925_v23, %v3218_v47  ;;  %v3186_v29 = vsel %vm3183_vm14, %v3185_v54, %v3181_v36  ;;  %vm3470_vm11 = vcmask 781824   ;;  %vm3476_vm14 = vcmask 1044224  }
0x229d   :  { %v3227_v35 = vsel %vm3224_vm15, %v3226_v27, %v3222_v52  ;;  %v3193_v62 = vmul.f32 %v3191_v21, %v3186_v29  ;;  %vm3559_vm15 = vcmask 60416  }
0x229e   :  { %v3230_v40 = vmul.f32 %v3227_v35, %v5251_v61 }
0x22fa   :  { %v3196_v28 = vpop.permute.xlu0 %3195 }
0x22fb   :  { %v3233_v26 = vpop.permute.xlu1 %3232  ;;  %v3198_v31 = vmul.f32 %v3196_v28, %v3186_v29 }
0x22fc   :  { %v3235_v22 = vmul.f32 %v3233_v26, %v3227_v35 }
0x22fd   :  { %3200 = vrot.lane.b32.xlu0 %v3198_v31, %s3984_s23 }
0x22fe   :  { %3237 = vrot.lane.b32.xlu1 %v3235_v22, %s3984_s23 }
0x236f   :  { %v3201_v41 = vpop.permute.xlu0 %3200 }
0x2370   :  { %v3238_v42 = vpop.permute.xlu1 %3237  ;;  %v3203_v44 = vadd.f32 %v3201_v41, %v3193_v62 }
0x2371   :  { %v3240_v49 = vadd.f32 %v3238_v42, %v3230_v40  ;;  %v3418_v42 = vld [vmem:[%s5406_s0] sm:$0xf] }
0x2372   :  { %3926 = vtanh.f32 %v3203_v44 }
0x2373   :  { %3928 = vtanh.f32 %v3240_v49 }
0x2378   :  { %v3927_v25 = vpop.eup %3926 }
0x2379   :  { %v3929_v8 = vpop.eup %3928  ;;  %3206 = vrot.lane.b32.xlu2 %v3927_v25, %s3985_s3  ;;  %v3987_v25 = vmov 8.0  }
0x237a   :  { %3243 = vrot.lane.b32.xlu0 %v3929_v8, %s3985_s3  ;;  %v3426_v8 = vsel %vm622_vm12, %v3418_v42, 0.0 }
0x23d3   :  { %v3207_v30 = vpop.permute.xlu2 %3206 }
0x23d4   :  { %v3209_v46 = vmul.f32 %v3207_v30, %v3186_v29 }
0x23d6   :  { %3248 = vst [vmem:[#allocation1] ss:$2 sm:$0xff] %v3209_v46  ;;  %v3421_v46 = vld [vmem:[%s5406_s0 + $0xc] sm:$0xf] }
0x23dd   :  { %v3249_v37 = vld.sshfl [vmem:[#allocation1] sm:$0xff pattern:$0x75316420] }
0x23de   :  { %3250 = vrot.lane.b32.xlu1 %v3249_v37, %s3984_s23 }
0x23ec   :  { %v3244_v55 = vpop.permute.xlu0 %3243 }
0x23ed   :  { %v3246_v15 = vmul.f32 %v3244_v55, %v3227_v35 }
0x23ef   :  { %3255 = vst [vmem:[#allocation1] ss:$2 sm:$0xff] %v3246_v15  ;;  %v3431_v15 = vsel %vm622_vm12, %v3421_v46, 0.0 }
0x23f6   :  { %v3256_v24 = vld.sshfl [vmem:[#allocation1] sm:$0xff pattern:$0x75316420] }
0x23f7   :  { %3257 = vrot.lane.b32.xlu2 %v3256_v24, %s3985_s3  ;;  %3262 = vst [vmem:[#allocation1] ss:$2 sm:$0xff] %v3203_v44  ;;  %v3419_v44 = vld [vmem:[%s5406_s0 + $0x4] sm:$0xf]  ;;  %v3422_v24 = vld [vmem:[%s5406_s0 + $0x10] sm:$0xf] }
0x23f8   :  { %v3427_v30 = vsel %vm622_vm12, %v3419_v44, 0.0 }
0x23f9   :  { %v3428_v37 = vadd.f32 %v3427_v30, %v3426_v8 }
0x23fe   :  { %v3263_v5 = vld.sshfl [vmem:[#allocation1] sm:$0xff pattern:$0x75316420] }
0x23ff   :  { %3264 = vrot.lane.b32.xlu0 %v3263_v5, %s3986_s25 }
0x2450   :  { %v3251_v32 = vpop.permute.xlu1 %3250 }
0x2451   :  { %3253 = vst.msk [vmem:[#allocation4] sm:$0xf] %vm622_vm12, %v3251_v32  ;;  %v3258_v43 = vpop.permute.xlu2 %3257 }
0x2452   :  { %3260 = vst.msk [vmem:[#allocation4] sm:$0xf] %vm630_vm13, %v3258_v43  ;;  %v3433_v43 = vsel %vm622_vm12, %v3422_v24, 0.0 }
0x2459   :  { %v3269_v53 = vld [vmem:[#allocation4] sm:$0xf] }
0x245a   :  { %3676 = vmatmul.msk.f32.vlgmr.msra.gmra.mxu2 %vm489_vm2, %v3269_v53  ;;  %3677 = vmatmul.msk.f32.vlgmr.msra.gmra.mxu3 %vm489_vm2, %v3269_v53 }
0x2471   :  { %v3265_v58 = vpop.permute.xlu0 %3264 }
0x2472   :  { %3267 = vst.msk [vmem:[#allocation5] sm:$0xf] %vm622_vm12, %v3265_v58 }
0x2473   :  { %3268 = vst.msk [vmem:[#allocation5] sm:$0xf] %vm630_vm13, %v3240_v49  ;;  %v3420_v49 = vld [vmem:[%s5406_s0 + $0x8] sm:$0xf] }
0x2474   :  { %v3429_v55 = vsel %vm622_vm12, %v3420_v49, 0.0 }
0x2475   :  { %v3430_v5 = vadd.f32 %v3429_v55, %v3428_v37 }
0x2477   :  { %v3432_v53 = vadd.f32 %v3431_v15, %v3430_v5  ;;  %v3532_v5 = vld [vmem:[%s5415_s9 + $0x68] sm:$0xff] }
0x247a   :  { %v3317_v59 = vld [vmem:[#allocation5] sm:$0xf] }
0x247b   :  { %3339 = vrot.lane.b32.xlu0 %v3317_v59, %s3984_s23 }
0x24dd   :  { %v3290_v60 = vpop.f32.mrf.mxu2  ;;  %v3310_v61 = vpop.f32.mrf.mxu3 }
0x24de   :  { %v3314_v0 = vadd.f32 %v3313_v56, %v3290_v60  ;;  %v3316_v1 = vadd.f32 %v3315_v63, %v3310_v61  ;;  %v3434_v60 = vadd.f32 %v3433_v43, %v3432_v53  ;;  %v3424_v63 = vld [vmem:[%s5406_s0 + $0x18] sm:$0xf]  ;;  %v3529_v53 = vld [vmem:[%s5415_s9 + $0x50] sm:$0xff] }
0x24df   :  { %v3530_v43 = vld [vmem:[%s5415_s9 + $0x58] sm:$0xff] }
0x24e0   :  { %3930 = vtanh.f32 %v3314_v0  ;;  %v3679_v17 = vmul.f32 -1.442695, %v3316_v1  ;;  %v3678_v7 = vmul.f32 -1.442695, %v3314_v0 }
0x24e1   :  { %3932 = vtanh.f32 %v3316_v1  ;;  %v3437_v1 = vsel %vm622_vm12, %v3424_v63, 0.0 }
0x24e2   :  { %3934 = vpow2.f32 %v3679_v17 }
0x24e6   :  { %v3931_v2 = vpop.eup %3930 }
0x24e7   :  { %v3933_v13 = vpop.eup %3932  ;;  %3344 = vrot.lane.b32.xlu1 %v3931_v2, %s3985_s3 }
0x24e8   :  { %3381 = vrot.lane.b32.xlu2 %v3933_v13, %s3985_s3  ;;  %v3935_v4 = vpop.eup %3934  ;;  %v3425_v13 = vld [vmem:[%s5406_s0 + $0x1c] sm:$0xf] }
0x24e9   :  { %v3362_v19 = vadd.f32 1.0, %v3935_v4  ;;  %v3439_v4 = vsel %vm622_vm12, %v3425_v13, 0.0 }
0x24eb   :  { %3936 = vrcp.f32 %v3362_v19  ;;  %v3374_v20 = vand.u32 2147483648, %v3362_v19  ;;  %vm3368_vm1 = vweird.f32 %v3362_v19  ;;  %v3372_v23 = vand.u32 2147483647, %v3362_v19 }
0x24ec   :  { %3938 = vpow2.f32 %v3678_v7 }
0x24ed   :  { %v3375_v34 = vor.u32 1.1754944e-38, %v3374_v20  ;;  %vm3373_vm5 = vcmp.eq.f32.partialorder %v3372_v23, 8.507059e+37  ;;  %v3340_v22 = vpop.permute.xlu0 %3339  ;;  %v3452_v20 = vsel %vm622_vm12, %v3421_v46, -inf  ;;  %v3453_v23 = vsel %vm622_vm12, %v3422_v24, -inf  ;;  %v3533_v24 = vld [vmem:[%s5415_s9 + $0x70] sm:$0xff] }
0x24f1   :  { %v3937_v3 = vpop.eup %3936 }
0x24f2   :  { %v3364_v10 = vmul.f32 %v3937_v3, %v3362_v19  ;;  %v3939_v9 = vpop.eup %3938  ;;  %vm3369_vm2 = vweird.f32 %v3937_v3 }
0x24f3   :  { %v3321_v14 = vadd.f32 1.0, %v3939_v9  ;;  %vm3370_vm4 = vmor %vm3368_vm1, %vm3369_vm2 }
0x24f4   :  { %v3365_v16 = vsub.f32 1.0, %v3364_v10 }
0x24f5   :  { %3940 = vrcp.f32 %v3321_v14  ;;  %v3333_v51 = vand.u32 2147483648, %v3321_v14  ;;  %vm3327_vm7 = vweird.f32 %v3321_v14  ;;  %v3331_v33 = vand.u32 2147483647, %v3321_v14 }
0x24f6   :  { %v3366_v11 = vmul.f32 %v3937_v3, %v3365_v16 }
0x24f7   :  { %v3334_v52 = vor.u32 1.1754944e-38, %v3333_v51  ;;  %vm3332_vm9 = vcmp.eq.f32.partialorder %v3331_v33, 8.507059e+37 }
0x24f8   :  { %v3367_v57 = vadd.f32 %v3937_v3, %v3366_v11  ;;  %v3449_v11 = vsel %vm622_vm12, %v3418_v42, -inf }
0x24fa   :  { %v3371_v39 = vsel %vm3370_vm4, %v3937_v3, %v3367_v57  ;;  %v3451_v57 = vsel %vm622_vm12, %v3420_v49, -inf }
0x24fb   :  { %v5277_v18 = vsel %vm3373_vm5, %v3375_v34, %v3371_v39  ;;  %v3941_v38 = vpop.eup %3940  ;;  %v3457_v34 = vsel %vm622_vm12, %v3424_v63, -inf  ;;  %v3523_v63 = vld [vmem:[%s5415_s9 + $0x20] sm:$0xff] }
0x24fc   :  { %v3323_v45 = vmul.f32 %v3941_v38, %v3321_v14  ;;  %vm3328_vm6 = vweird.f32 %v3941_v38  ;;  %v3379_v29 = vmul.f32 %v5277_v18, %v3317_v59  ;;  %v3423_v59 = vld [vmem:[%s5406_s0 + $0x14] sm:$0xf]  ;;  %v3450_v14 = vsel %vm622_vm12, %v3419_v44, -inf }
0x24fd   :  { %vm3329_vm8 = vmor %vm3327_vm7, %vm3328_vm6  ;;  %v3435_v56 = vsel %vm622_vm12, %v3423_v59, 0.0  ;;  %v3455_v39 = vsel %vm622_vm12, %v3423_v59, -inf  ;;  %v3527_v59 = vld [vmem:[%s5415_s9 + $0x40] sm:$0xff] }
0x24fe   :  { %v3324_v47 = vsub.f32 1.0, %v3323_v45  ;;  %v3436_v0 = vadd.f32 %v3435_v56, %v3434_v60  ;;  %v3456_v45 = vmax.f32 %v3450_v14, %v3455_v39  ;;  %v3526_v60 = vld [vmem:[%s5415_s9 + $0x38] sm:$0xff]  ;;  %v3525_v56 = vld [vmem:[%s5415_s9 + $0x30] sm:$0xff]  ;;  %v3687_v14 = vld [vmem:[%s5413_s7] ss:$0 sm:$0xff]  ;;  %s3568_s7 = sshll.u32 %s5417_s11, 4  ;;  %s3569_s7 = int_to_ptr.hbm [resolvable:$true] %s3568_s7 }
0x2500   :  { %v3325_v48 = vmul.f32 %v3941_v38, %v3324_v47  ;;  %v3438_v17 = vadd.f32 %v3437_v1, %v3436_v0  ;;  %v3458_v47 = vmax.f32 %v3451_v57, %v3457_v34  ;;  %v3522_v0 = vld [vmem:[%s5415_s9 + $0x18] sm:$0xff]  ;;  %v3521_v1 = vld [vmem:[%s5415_s9 + $0x10] sm:$0xff] }
0x2502   :  { %v3326_v50 = vadd.f32 %v3941_v38, %v3325_v48  ;;  %v3440_v3 = vadd.f32 %v3439_v4, %v3438_v17 }
0x2504   :  { %v3330_v36 = vsel %vm3329_vm8, %v3941_v38, %v3326_v50 }
0x2505   :  { %v3335_v54 = vsel %vm3332_vm9, %v3334_v52, %v3330_v36 }
0x2506   :  { %v3342_v21 = vmul.f32 %v3340_v22, %v3335_v54 }
0x2542   :  { %v3382_v6 = vpop.permute.xlu2 %3381 }
0x2543   :  { %v3384_v12 = vmul.f32 %v3382_v6, %v5277_v18  ;;  %v3459_v6 = vsel %vm622_vm12, %v3425_v13, -inf  ;;  %v3519_v13 = vld [vmem:[%s5415_s9] sm:$0xff] }
0x2544   :  { %v3460_v48 = vmax.f32 %v3452_v20, %v3459_v6 }
0x2545   :  { %3386 = vrot.lane.b32.xlu2 %v3384_v12, %s3984_s23  ;;  %v3454_v12 = vmax.f32 %v3449_v11, %v3453_v23  ;;  %v3688_v23 = vld [vmem:[%s5414_s8] ss:$0 sm:$0xff] }
0x2546   :  { %v3462_v36 = vmax.f32 %v3458_v47, %v3460_v48 }
0x2547   :  { %v3461_v33 = vmax.f32 %v3454_v12, %v3456_v45 }
0x2549   :  { %v3463_v52 = vmax.f32 %v3461_v33, %v3462_v36 }
0x2559   :  { %v3345_v27 = vpop.permute.xlu1 %3344 }
0x255a   :  { %v3347_v28 = vmul.f32 %v3345_v27, %v3335_v54 }
0x255c   :  { %3349 = vrot.lane.b32.xlu1 %v3347_v28, %s3984_s23 }
0x259f   :  { %v3387_v26 = vpop.permute.xlu2 %3386 }
0x25a0   :  { %v5283_v35 = vadd.f32 %v3387_v26, %v3379_v29 }
0x25a2   :  { %3942 = vtanh.f32 %v5283_v35 }
0x25a8   :  { %v3943_v31 = vpop.eup %3942 }
0x25a9   :  { %3392 = vrot.lane.b32.xlu1 %v3943_v31, %s3985_s3 }
0x25ce   :  { %v3350_v62 = vpop.permute.xlu1 %3349 }
0x25cf   :  { %v5287_v40 = vadd.f32 %v3350_v62, %v3342_v21 }
0x25d1   :  { %3944 = vtanh.f32 %v5287_v40 }
0x25d2   :  { %3946 = vrcp.f32 %v3987_v25 }
0x25d7   :  { %v3945_v41 = vpop.eup %3944 }
0x25d8   :  { %3355 = vrot.lane.b32.xlu0 %v3945_v41, %s3985_s3  ;;  %v3947_v32 = vpop.eup %3946 }
0x25d9   :  { %v3442_v58 = vmul.f32 8.0, %v3947_v32  ;;  %vm3446_vm10 = vweird.f32 %v3947_v32 }
0x25db   :  { %v3443_v61 = vsub.f32 1.0, %v3442_v58  ;;  %v3528_v58 = vld [vmem:[%s5415_s9 + $0x48] sm:$0xff] }
0x25dd   :  { %v3444_v2 = vmul.f32 %v3947_v32, %v3443_v61  ;;  %v3524_v61 = vld [vmem:[%s5415_s9 + $0x28] sm:$0xff] }
0x25df   :  { %v3445_v19 = vadd.f32 %v3947_v32, %v3444_v2  ;;  %v3520_v2 = vld [vmem:[%s5415_s9 + $0x8] sm:$0xff] }
0x25e1   :  { %v3447_v7 = vsel %vm3446_vm10, %v3947_v32, %v3445_v19  ;;  %v3531_v32 = vld [vmem:[%s5415_s9 + $0x60] sm:$0xff] }
0x25e2   :  { %v3448_v10 = vmul.f32 %v3447_v7, %v3440_v3 }
0x25e4   :  { %3467 = vrot.lane.b32.xlu1 %v3448_v10, %s3985_s3 }
0x261b   :  { %v3393_v38 = vpop.permute.xlu1 %3392 }
0x261c   :  { %v3395_v50 = vmul.f32 %v3393_v38, %v5277_v18  ;;  %v3689_v38 = vld [vmem:[%s5416_s10] ss:$0 sm:$0xff] }
0x264a   :  { %v3356_v16 = vpop.permute.xlu0 %3355 }
0x264b   :  { %v3358_v9 = vmul.f32 %v3356_v16, %v3335_v54 }
0x264d   :  { %3397 = vst [vmem:[#allocation1] ss:$2 sm:$0xff] %v3358_v9 }
0x2654   :  { %v3398_v51 = vld.sshfl [vmem:[#allocation1] sm:$0xff pattern:$0x75316420] }
0x2655   :  { %3399 = vrot.lane.b32.xlu2 %v3398_v51, %s3984_s23  ;;  %3404 = vst [vmem:[#allocation1] ss:$2 sm:$0xff] %v3395_v50 }
0x2656   :  { %v3468_v31 = vpop.permute.xlu1 %3467 }
0x265c   :  { %v3405_v54 = vld.sshfl [vmem:[#allocation1] sm:$0xff pattern:$0x75316420] }
0x265d   :  { %3473 = vrot.lane.b32.xlu2 %v3463_v52, %s3986_s25  ;;  %3406 = vrot.lane.b32.xlu0 %v3405_v54, %s3985_s3  ;;  %3411 = vst [vmem:[#allocation1] ss:$2 sm:$0xff] %v5287_v40  ;;  %v3988_v40 = vmov 128.0  }
0x265e   :  { %3948 = vrcp.f32 %v3988_v40 }
0x2664   :  { %v3412_v27 = vld.sshfl [vmem:[#allocation1] sm:$0xff pattern:$0x75316420]  ;;  %v3949_v41 = vpop.eup %3948 }
0x2665   :  { %3413 = vrot.lane.b32.xlu2 %v3412_v27, %s3986_s25  ;;  %v3483_v42 = vmul.f32 128.0, %v3949_v41 }
0x2667   :  { %v3484_v44 = vsub.f32 1.0, %v3483_v42 }
0x2669   :  { %v3485_v49 = vmul.f32 %v3949_v41, %v3484_v44 }
0x266b   :  { %v3486_v25 = vadd.f32 %v3949_v41, %v3485_v49 }
0x26af   :  { %v3400_v28 = vpop.permute.xlu2 %3399 }
0x26b0   :  { %3402 = vst.msk [vmem:[#allocation4] sm:$0xf] %vm622_vm12, %v3400_v28 }
0x26b7   :  { %v3474_v18 = vpop.permute.xlu2 %3473 }
0x26bf   :  { %v3414_v29 = vpop.permute.xlu2 %3413 }
0x26c0   :  { %3416 = vst.msk [vmem:[#allocation5] sm:$0xf] %vm622_vm12, %v3414_v29  ;;  %vm3487_vm12 = vweird.f32 %v3949_v41 }
0x26c1   :  { %3417 = vst.msk [vmem:[#allocation5] sm:$0xf] %vm630_vm13, %v5283_v35  ;;  %v3534_v35 = vld [vmem:[%s5415_s9 + $0x78] sm:$0xff]  ;;  %v3488_v8 = vsel %vm3487_vm12, %v3949_v41, %v3486_v25 }
0x26c2   :  { %3539 = vmatpush.msra.mxu0 %v3534_v35 }
0x26c4   :  { %3540 = vmatpush.msra.mxu0 %v3533_v24 }
0x26c6   :  { %3541 = vmatpush.msra.mxu0 %v3532_v5 }
0x26c8   :  { %3542 = vmatpush.msra.mxu0 %v3531_v32 }
0x26ca   :  { %3543 = vmatpush.msra.mxu0 %v3530_v43 }
0x26cc   :  { %3544 = vmatpush.msra.mxu0 %v3529_v53 }
0x26ce   :  { %3545 = vmatpush.msra.mxu0 %v3528_v58 }
0x26cf   :  { %v3407_v26 = vpop.permute.xlu0 %3406 }
0x26d0   :  { %3409 = vst.msk [vmem:[#allocation4] sm:$0xf] %vm630_vm13, %v3407_v26  ;;  %3546 = vmatpush.msra.mxu0 %v3527_v59 }
0x26d2   :  { %3547 = vmatpush.msra.mxu0 %v3526_v60 }
0x26d4   :  { %3548 = vmatpush.msra.mxu0 %v3525_v56 }
0x26d6   :  { %3549 = vmatpush.msra.mxu0 %v3524_v61 }
0x26d7   :  { %v3464_v22 = vld [vmem:[#allocation4] sm:$0xf] }
0x26d8   :  { %3465 = vst.msk [vmem:[#allocation6] sm:$0xf] %vm485_vm0, %v3464_v22  ;;  %3550 = vmatpush.msra.mxu0 %v3523_v63 }
0x26d9   :  { %3471 = vst.msk [vmem:[#allocation6] sm:$0xf] %vm3470_vm11, %v3468_v31 }
0x26da   :  { %3477 = vst.msk [vmem:[#allocation6] sm:$0xf] %vm3476_vm14, %v3474_v18  ;;  %3551 = vmatpush.msra.mxu0 %v3522_v0 }
0x26dc   :  { %3552 = vmatpush.msra.mxu0 %v3521_v1 }
0x26de   :  { %3553 = vmatpush.msra.mxu0 %v3520_v2 }
0x26e0   :  { %3554 = vmatpush.msra.mxu0 %v3519_v13 }
0x26e1   :  { %v3478_v21 = vld [vmem:[#allocation6] sm:$0xf] }
0x26e2   :  { %v3479_v62 = vsel %vm101_vm3, %v3478_v21, 0.0 }
0x26e3   :  { %3480 = vadd.xlane.f32.xlu0 %v3479_v62 }
0x2756   :  { %v3481_v30 = vpop.xlane.xlu0 %3480 }
0x2757   :  { %v3489_v46 = vmul.f32 %v3488_v8, %v3481_v30 }
0x2759   :  { %v3490_v37 = vsub.f32 %v3478_v21, %v3489_v46 }
0x275b   :  { %v3491_v55 = vmul.f32 %v3490_v37, %v3490_v37 }
0x275d   :  { %v3492_v15 = vsel %vm101_vm3, %v3491_v55, 0.0 }
0x275e   :  { %3493 = vadd.xlane.f32.xlu1 %v3492_v15 }
0x27d1   :  { %v3494_v17 = vpop.xlane.xlu1 %3493 }
0x27d2   :  { %v3495_v4 = vmul.f32 %v3494_v17, %v3488_v8 }
0x27d4   :  { %v3496_v19 = vadd.f32 1e-05, %v3495_v4 }
0x27d6   :  { %3950 = vrsqrt.f32 %v3496_v19  ;;  %vm3503_vm3 = vweird.f32 %v3496_v19 }
0x27dc   :  { %v3951_v3 = vpop.eup %3950 }
0x27dd   :  { %v3498_v7 = vmul.f32 %v3951_v3, %v3496_v19  ;;  %vm3504_vm0 = vweird.f32 %v3951_v3 }
0x27de   :  { %vm3505_vm13 = vmor %vm3503_vm3, %vm3504_vm0 }
0x27df   :  { %v3499_v10 = vmul.f32 %v3951_v3, %v3498_v7 }
0x27e1   :  { %v3500_v16 = vmul.f32 0.5, %v3499_v10 }
0x27e3   :  { %v3501_v9 = vsub.f32 1.5, %v3500_v16 }
0x27e5   :  { %v3502_v11 = vmul.f32 %v3951_v3, %v3501_v9 }
0x27e7   :  { %v3506_v57 = vsel %vm3505_vm13, %v3951_v3, %v3502_v11 }
0x27e8   :  { %v3507_v20 = vmul.f32 %v3506_v57, %v3490_v37 }
0x27ea   :  { %v3512_v39 = vmul.f32 %v3687_v14, %v3507_v20 }
0x27ec   :  { %v3517_v34 = vadd.f32 %v3688_v23, %v3512_v39 }
0x27ee   :  { %v3518_v6 = vmax.f32 %v3517_v34, 0.0 }
0x27f0   :  { %3555 = vmatmul.f32.vlgmr.msra.gmra.mxu0 %v3518_v6 }
0x286d   :  { %v3556_v12 = vpop.f32.mrf.mxu0 }
0x286e   :  { %v3557_v45 = vadd.f32 %v3689_v38, %v3556_v12 }
0x2870   :  { %3560 = vst.msk [vmem:[#allocation7] sm:$0xf] %vm3559_vm15, %v3557_v45 }
0x2871   :  { %3571 = dma.vmem_to_hbm [thread:$0]  %s3567_s21, 64, %s3569_s7, [#allocation8]  }
0x2872   :  { %3981 = dma.done.wait [#allocation8], 64  }
0x2873   :  { %3982 = vsyncadd [#allocation8], 4294967232 }
0x2874   :  { %3576 = vsyncpa [#allocation8], 1 }

</bundles_post_ra>
